<compile_context>
chip_gen: v7x
topology: tpu7x:2x2x1
jax: 0.10.0
libtpu: 0.0.40
codegen_flags: <defaults>
</compile_context>

<pallas_src>
import functools

import jax
import jax.numpy as jnp
from jax.experimental import pallas as pl
from jax.experimental.pallas import tpu as pltpu

EPS = 1e-5
# Above v5e's 16 MiB scoped default, below v7x's 64 MiB physical VMEM.
_VMEM_LIMIT = 48 * 1024 * 1024


def _pick_image_block(N, H, W, C):
    """Images per grid step.

    Big enough that the im2col matmul has M = B*H*W >= ~512 rows (fills the
    MXU row dimension on every generation, amortises per-step overhead), small
    enough that per-step VMEM (double-buffered blocks + pad/col scratch +
    temporaries) stays modest, and keeping >= 2 grid steps when possible so
    v7x megacore can split the batch.
    """
    per_image = H * W * C * 72                 # rough per-image VMEM bytes
    budget = 18 * 1024 * 1024
    divisors = [d for d in range(1, N + 1) if N % d == 0]
    fitting = [d for d in divisors if d * per_image <= budget] or [1]
    target_rows = 512
    reaching = [d for d in fitting if d * H * W >= target_rows]
    b = min(reaching) if reaching else max(fitting)
    if N // b < 2:                             # prefer >= 2 steps (v7x megacore)
        alt = [d for d in fitting
               if N // d >= 2 and d * H * W >= min(target_rows, 256)]
        if alt:
            b = max(alt)
    return b


# --------------------------------------------------------------------------- #
# Kernel 1/2: 3x3 conv (im2col + single bf16 MXU matmul) + BN partial stats.
#   Optionally applies a fused per-channel affine + ReLU (the previous BN)
#   to the incoming activation before the conv.
# --------------------------------------------------------------------------- #
def _conv_pass_kernel(apply_bn_relu, x_ref, ss_ref, w_ref, y_ref, ps_ref,
                      pad_scr, col_scr):
    # x_ref:   (B, H, W, C)      activation block (f32 pass 1, bf16 pass 2)
    # ss_ref:  (2, C)            f32 [scale; shift] of the previous BN
    # w_ref:   (9*C, C)          bf16 conv weights, tap-major (ky, kx, cin)
    # y_ref:   (B, H, W, C)      bf16 raw conv output (pre-BN)
    # ps_ref:  (1, 2, C)         f32 per-step [sum; sum of squares] of conv out
    # pad_scr: (B, H+2, W+2, C)  f32 zero-padded activation scratch
    # col_scr: (B, H, W, 9*C)    bf16 im2col slab scratch
    B, H, W, C = x_ref.shape
    Hp, Wp = H + 2, W + 2

    a = x_ref[...].astype(jnp.float32)
    if apply_bn_relu:
        scale = ss_ref[0:1, :].reshape(1, 1, 1, C)
        shift = ss_ref[1:2, :].reshape(1, 1, 1, C)
        a = jnp.maximum(a * scale + shift, 0.0)             # fused BN + ReLU

    # Zero only the 4 halo strips (rewritten every step so the kernel stays
    # correct when megacore assigns an arbitrary subset of steps to each
    # core), then write the interior once.
    zrow = jnp.zeros((B, 1, Wp, C), jnp.float32)
    zcol = jnp.zeros((B, H, 1, C), jnp.float32)
    pad_scr[:, 0:1, :, :] = zrow
    pad_scr[:, Hp - 1:Hp, :, :] = zrow
    pad_scr[:, 1:H + 1, 0:1, :] = zcol
    pad_scr[:, 1:H + 1, Wp - 1:Wp, :] = zcol
    pad_scr[:, 1:H + 1, 1:W + 1, :] = a

    # im2col: only the 3 kx shifts touch the sublane (W) axis -> one windowed
    # read + one f32->bf16 cast per kx (was 9 of each); the ky shifts are
    # aligned major-axis slices, and every store into the slab is lane-tile
    # aligned (offsets are multiples of C = 128).
    for kx in range(3):
        vb = pad_scr[:, :, kx:kx + W, :].astype(jnp.bfloat16)   # (B, H+2, W, C)
        for ky in range(3):
            lo = (ky * 3 + kx) * C
            col_scr[:, :, :, lo:lo + C] = vb[:, ky:ky + H]

    # Single MXU matmul: K = 9*C, bf16 inputs, f32 accumulation.
    col = col_scr[...].reshape(B * H * W, 9 * C)
    y = jnp.dot(col, w_ref[...], preferred_element_type=jnp.float32)

    y_ref[...] = y.reshape(B, H, W, C).astype(y_ref.dtype)      # bf16 to HBM
    # One (2, C) partial-stats tile per grid step (reduced over all B images).
    ps_ref[0] = jnp.concatenate(
        [jnp.sum(y, axis=0, keepdims=True),
         jnp.sum(y * y, axis=0, keepdims=True)], axis=0)


def _conv_pass(x_nhwc, ss, w_mat, block_n, apply_bn_relu):
    N, H, W, C = x_nhwc.shape
    steps = N // block_n
    kernel = functools.partial(_conv_pass_kernel, apply_bn_relu)
    return pl.pallas_call(
        kernel,
        grid=(steps,),
        in_specs=[
            pl.BlockSpec((block_n, H, W, C), lambda n: (n, 0, 0, 0)),
            pl.BlockSpec((2, C), lambda n: (0, 0)),
            # Constant index_map -> fetched once; pipeline_mode=pl.Buffered(1)
            # could drop its second buffer if v7x VMEM headroom is ever needed.
            pl.BlockSpec((9 * C, C), lambda n: (0, 0)),
        ],
        out_specs=(
            pl.BlockSpec((block_n, H, W, C), lambda n: (n, 0, 0, 0)),
            pl.BlockSpec((1, 2, C), lambda n: (n, 0, 0)),
        ),
        out_shape=(
            jax.ShapeDtypeStruct((N, H, W, C), jnp.bfloat16),   # bf16 intermediate
            jax.ShapeDtypeStruct((steps, 2, C), jnp.float32),
        ),
        scratch_shapes=[
            pltpu.VMEM((block_n, H + 2, W + 2, C), jnp.float32),
            pltpu.VMEM((block_n, H, W, 9 * C), jnp.bfloat16),
        ],
        compiler_params=pltpu.CompilerParams(
            dimension_semantics=("parallel",),
            vmem_limit_bytes=_VMEM_LIMIT),
    )(x_nhwc, ss, w_mat)


# --------------------------------------------------------------------------- #
# Kernel 3: fused BN2 + residual add + ReLU (single elementwise pass).
# --------------------------------------------------------------------------- #
def _bn_add_relu_kernel(y_ref, ss_ref, r_ref, o_ref):
    C = ss_ref.shape[-1]
    scale = ss_ref[0:1, :].reshape(1, 1, 1, C)
    shift = ss_ref[1:2, :].reshape(1, 1, 1, C)
    o_ref[...] = jnp.maximum(
        y_ref[...].astype(jnp.float32) * scale + shift + r_ref[...], 0.0)


def _bn_add_relu(y, ss, res, block_n):
    N, H, W, C = y.shape
    steps = N // block_n
    return pl.pallas_call(
        _bn_add_relu_kernel,
        grid=(steps,),
        in_specs=[
            pl.BlockSpec((block_n, H, W, C), lambda n: (n, 0, 0, 0)),
            pl.BlockSpec((2, C), lambda n: (0, 0)),
            pl.BlockSpec((block_n, H, W, C), lambda n: (n, 0, 0, 0)),
        ],
        out_specs=pl.BlockSpec((block_n, H, W, C), lambda n: (n, 0, 0, 0)),
        out_shape=jax.ShapeDtypeStruct((N, H, W, C), jnp.float32),
        compiler_params=pltpu.CompilerParams(
            dimension_semantics=("parallel",),
            vmem_limit_bytes=_VMEM_LIMIT),
    )(y, ss, res)


# --------------------------------------------------------------------------- #
# Tiny XLA glue: BN stats finalize + weight layout prep.
# --------------------------------------------------------------------------- #
def _finalize_stats(ps, gamma, beta, m_total):
    # NOTE: E[y^2] - E[y]^2 in f32 is cancellation-prone for very large
    # batch*spatial; fine at these sizes.
    s = jnp.sum(ps, axis=0)                                  # (2, C)
    mean = s[0] / m_total
    var = s[1] / m_total - mean * mean                       # biased variance
    scale = gamma.astype(jnp.float32) * jax.lax.rsqrt(var + EPS)
    shift = beta.astype(jnp.float32) - mean * scale
    return jnp.stack([scale, shift], axis=0)                 # (2, C)


def _prep_weight(w):
    # PyTorch (Cout, Cin, 3, 3) -> (9*Cin, Cout), tap-major (ky, kx, cin); bf16.
    cout, cin = w.shape[0], w.shape[1]
    return jnp.transpose(w, (2, 3, 1, 0)).reshape(9 * cin, cout).astype(jnp.bfloat16)


@jax.jit
def residual_layer(x_nchw, w1, g1, b1, w2, g2, b2):
    """x_nchw: (N, C, H, W); w*: (C, C, 3, 3); g*/b*: (C,). Returns (N, C, H, W) f32."""
    N, C, H, W = x_nchw.shape
    x = jnp.transpose(x_nchw, (0, 2, 3, 1)).astype(jnp.float32)   # NHWC
    w1m, w2m = _prep_weight(w1), _prep_weight(w2)
    m_total = float(N * H * W)
    B = _pick_image_block(N, H, W, C)

    dummy_ss = jnp.zeros((2, C), jnp.float32)
    y1, ps1 = _conv_pass(x, dummy_ss, w1m, B, apply_bn_relu=False)  # conv1 + BN1 stats
    ss1 = _finalize_stats(ps1, g1, b1, m_total)
    y2, ps2 = _conv_pass(y1, ss1, w2m, B, apply_bn_relu=True)       # BN1+ReLU fused, conv2 + BN2 stats
    ss2 = _finalize_stats(ps2, g2, b2, m_total)
    out = _bn_add_relu(y2, ss2, x, B)                               # BN2 + residual + ReLU
    return jnp.transpose(out, (0, 3, 1, 2))                         # back to NCHW


# --------------------------------------------------------------------------- #
# Pure-JAX f32 reference matching the PyTorch forward (training-mode BN).
# --------------------------------------------------------------------------- #
def residual_layer_reference(x, w1, g1, b1, w2, g2, b2):
    def conv(x, w):
        return jax.lax.conv_general_dilated(
            x, w, window_strides=(1, 1), padding="SAME",
            dimension_numbers=("NCHW", "OIHW", "NCHW"),
            precision=jax.lax.Precision.HIGHEST)

    def bn(x, g, b):
        mean = x.mean(axis=(0, 2, 3), keepdims=True)
        var = ((x - mean) ** 2).mean(axis=(0, 2, 3), keepdims=True)
        return ((x - mean) * jax.lax.rsqrt(var + EPS)
                * g.reshape(1, -1, 1, 1) + b.reshape(1, -1, 1, 1))

    r = x
    y = jax.nn.relu(bn(conv(x, w1), g1, b1))
    y = bn(conv(y, w2), g2, b2)
    return jax.nn.relu(y + r)


if __name__ == "__main__":
    # Small deterministic shapes; C=128 is the module default (keeps the
    # channel/lane axis dense).  N=8 -> B=4 images/step, 2 grid steps.
    N, C, H, W = 8, 128, 8, 8
    key = jax.random.PRNGKey(0)
    kx_, kw1, kw2, kg1, kb1, kg2, kb2 = jax.random.split(key, 7)

    x = jax.random.normal(kx_, (N, C, H, W), jnp.float32)
    w1 = jax.random.normal(kw1, (C, C, 3, 3), jnp.float32) * 0.1
    w2 = jax.random.normal(kw2, (C, C, 3, 3), jnp.float32) * 0.1
    g1 = 1.0 + 0.1 * jax.random.normal(kg1, (C,), jnp.float32)
    b1 = 0.1 * jax.random.normal(kb1, (C,), jnp.float32)
    g2 = 1.0 + 0.1 * jax.random.normal(kg2, (C,), jnp.float32)
    b2 = 0.1 * jax.random.normal(kb2, (C,), jnp.float32)

    out = residual_layer(x, w1, g1, b1, w2, g2, b2)
    out = jax.block_until_ready(out)

    ref = residual_layer_reference(x, w1, g1, b1, w2, g2, b2)
    assert out.shape == (N, C, H, W) and out.dtype == jnp.float32
    # bf16 MXU inputs + bf16 HBM intermediates vs an f32-HIGHEST reference:
    # observed max abs error is ~1-2e-2 at these shapes.
    err = jnp.max(jnp.abs(out - ref))
    assert jnp.allclose(out, ref, rtol=5e-2, atol=5e-2), f"max abs err {err}"

    print("KERNEL_OK")
</pallas_src>

<mosaic_0001>
module attributes {stable_mosaic.version = 11 : i64} {
  func.func @_conv_pass_kernel(%arg0: i32, %arg1: memref<4x8x8x128xf32, #tpu.memory_space<vmem>>, %arg2: memref<2x128xf32, #tpu.memory_space<vmem>>, %arg3: memref<1152x128xbf16, #tpu.memory_space<vmem>>, %arg4: memref<4x8x8x128xbf16, #tpu.memory_space<vmem>>, %arg5: memref<1x2x128xf32, #tpu.memory_space<vmem>>, %arg6: memref<4x10x10x128xf32, #tpu.memory_space<vmem>>, %arg7: memref<4x8x8x1152xbf16, #tpu.memory_space<vmem>>) attributes {dimension_semantics = [#tpu.dimension_semantics<parallel>], iteration_bounds = array<i64: 2>, scalar_prefetch = 0 : i64, scratch_operands = 2 : i64, tpu.core_type = #tpu.core_type<tc>, window_params = [{transform_indices = @transform_0, window_bounds = array<i64: 4, 8, 8, 128>}, {pipeline_mode = #tpu.pipeline_mode<synchronous>, transform_indices = @transform_1, window_bounds = array<i64: 2, 128>}, {pipeline_mode = #tpu.pipeline_mode<synchronous>, transform_indices = @transform_2, window_bounds = array<i64: 1152, 128>}, {transform_indices = @transform_3, window_bounds = array<i64: 4, 8, 8, 128>}, {transform_indices = @transform_4, window_bounds = array<i64: 1, 2, 128>}]} {
    %c0 = arith.constant 0 : index
    %c0_0 = arith.constant 0 : index
    %c0_1 = arith.constant 0 : index
    %c0_2 = arith.constant 0 : index
    %0 = vector.load %arg1[%c0, %c0_0, %c0_1, %c0_2] : memref<4x8x8x128xf32, #tpu.memory_space<vmem>>, vector<4x8x8x128xf32>
    %cst = arith.constant 0.000000e+00 : f32
    %1 = vector.broadcast %cst : f32 to vector<4x1x10x128xf32>
    %cst_3 = arith.constant 0.000000e+00 : f32
    %2 = vector.broadcast %cst_3 : f32 to vector<4x8x1x128xf32>
    %c0_4 = arith.constant 0 : index
    %c0_5 = arith.constant 0 : index
    %c0_6 = arith.constant 0 : index
    %c0_7 = arith.constant 0 : index
    %3 = vector.load %arg6[%c0_4, %c0_5, %c0_6, %c0_7] : memref<4x10x10x128xf32, #tpu.memory_space<vmem>>, vector<4x1x10x128xf32>
    tpu.vector_store %arg6[%c0_4, %c0_5, %c0_6, %c0_7], %1 {strides = array<i32>} : memref<4x10x10x128xf32, #tpu.memory_space<vmem>>, vector<4x1x10x128xf32>,
    %c0_8 = arith.constant 0 : index
    %c9 = arith.constant 9 : index
    %c0_9 = arith.constant 0 : index
    %c0_10 = arith.constant 0 : index
    %4 = vector.load %arg6[%c0_8, %c9, %c0_9, %c0_10] : memref<4x10x10x128xf32, #tpu.memory_space<vmem>>, vector<4x1x10x128xf32>
    tpu.vector_store %arg6[%c0_8, %c9, %c0_9, %c0_10], %1 {strides = array<i32>} : memref<4x10x10x128xf32, #tpu.memory_space<vmem>>, vector<4x1x10x128xf32>,
    %c0_11 = arith.constant 0 : index
    %c1 = arith.constant 1 : index
    %c0_12 = arith.constant 0 : index
    %c0_13 = arith.constant 0 : index
    %5 = vector.load %arg6[%c0_11, %c1, %c0_12, %c0_13] : memref<4x10x10x128xf32, #tpu.memory_space<vmem>>, vector<4x8x1x128xf32>
    tpu.vector_store %arg6[%c0_11, %c1, %c0_12, %c0_13], %2 {strides = array<i32>} : memref<4x10x10x128xf32, #tpu.memory_space<vmem>>, vector<4x8x1x128xf32>,
    %c0_14 = arith.constant 0 : index
    %c1_15 = arith.constant 1 : index
    %c9_16 = arith.constant 9 : index
    %c0_17 = arith.constant 0 : index
    %6 = vector.load %arg6[%c0_14, %c1_15, %c9_16, %c0_17] : memref<4x10x10x128xf32, #tpu.memory_space<vmem>>, vector<4x8x1x128xf32>
    tpu.vector_store %arg6[%c0_14, %c1_15, %c9_16, %c0_17], %2 {strides = array<i32>} : memref<4x10x10x128xf32, #tpu.memory_space<vmem>>, vector<4x8x1x128xf32>,
    %c0_18 = arith.constant 0 : index
    %c1_19 = arith.constant 1 : index
    %c1_20 = arith.constant 1 : index
    %c0_21 = arith.constant 0 : index
    %7 = vector.load %arg6[%c0_18, %c1_19, %c1_20, %c0_21] : memref<4x10x10x128xf32, #tpu.memory_space<vmem>>, vector<4x8x8x128xf32>
    tpu.vector_store %arg6[%c0_18, %c1_19, %c1_20, %c0_21], %0 {strides = array<i32>} : memref<4x10x10x128xf32, #tpu.memory_space<vmem>>, vector<4x8x8x128xf32>,
    %c0_22 = arith.constant 0 : index
    %c0_23 = arith.constant 0 : index
    %c0_24 = arith.constant 0 : index
    %c0_25 = arith.constant 0 : index
    %8 = vector.load %arg6[%c0_22, %c0_23, %c0_24, %c0_25] : memref<4x10x10x128xf32, #tpu.memory_space<vmem>>, vector<4x10x8x128xf32>
    %9 = arith.truncf %8 : vector<4x10x8x128xf32> to vector<4x10x8x128xbf16>
    %10 = vector.extract_strided_slice %9 {offsets = [0, 0, 0, 0], sizes = [4, 8, 8, 128], strides = [1, 1, 1, 1]} : vector<4x10x8x128xbf16> to vector<4x8x8x128xbf16>
    %c0_26 = arith.constant 0 : index
    %c0_27 = arith.constant 0 : index
    %c0_28 = arith.constant 0 : index
    %c0_29 = arith.constant 0 : index
    %11 = vector.load %arg7[%c0_26, %c0_27, %c0_28, %c0_29] : memref<4x8x8x1152xbf16, #tpu.memory_space<vmem>>, vector<4x8x8x128xbf16>
    tpu.vector_store %arg7[%c0_26, %c0_27, %c0_28, %c0_29], %10 {strides = array<i32>} : memref<4x8x8x1152xbf16, #tpu.memory_space<vmem>>, vector<4x8x8x128xbf16>,
    %12 = vector.extract_strided_slice %9 {offsets = [0, 1, 0, 0], sizes = [4, 8, 8, 128], strides = [1, 1, 1, 1]} : vector<4x10x8x128xbf16> to vector<4x8x8x128xbf16>
    %c0_30 = arith.constant 0 : index
    %c0_31 = arith.constant 0 : index
    %c0_32 = arith.constant 0 : index
    %c384 = arith.constant 384 : index
    %13 = vector.load %arg7[%c0_30, %c0_31, %c0_32, %c384] : memref<4x8x8x1152xbf16, #tpu.memory_space<vmem>>, vector<4x8x8x128xbf16>
    tpu.vector_store %arg7[%c0_30, %c0_31, %c0_32, %c384], %12 {strides = array<i32>} : memref<4x8x8x1152xbf16, #tpu.memory_space<vmem>>, vector<4x8x8x128xbf16>,
    %14 = vector.extract_strided_slice %9 {offsets = [0, 2, 0, 0], sizes = [4, 8, 8, 128], strides = [1, 1, 1, 1]} : vector<4x10x8x128xbf16> to vector<4x8x8x128xbf16>
    %c0_33 = arith.constant 0 : index
    %c0_34 = arith.constant 0 : index
    %c0_35 = arith.constant 0 : index
    %c768 = arith.constant 768 : index
    %15 = vector.load %arg7[%c0_33, %c0_34, %c0_35, %c768] : memref<4x8x8x1152xbf16, #tpu.memory_space<vmem>>, vector<4x8x8x128xbf16>
    tpu.vector_store %arg7[%c0_33, %c0_34, %c0_35, %c768], %14 {strides = array<i32>} : memref<4x8x8x1152xbf16, #tpu.memory_space<vmem>>, vector<4x8x8x128xbf16>,
    %c0_36 = arith.constant 0 : index
    %c0_37 = arith.constant 0 : index
    %c1_38 = arith.constant 1 : index
    %c0_39 = arith.constant 0 : index
    %16 = vector.load %arg6[%c0_36, %c0_37, %c1_38, %c0_39] : memref<4x10x10x128xf32, #tpu.memory_space<vmem>>, vector<4x10x8x128xf32>
    %17 = arith.truncf %16 : vector<4x10x8x128xf32> to vector<4x10x8x128xbf16>
    %18 = vector.extract_strided_slice %17 {offsets = [0, 0, 0, 0], sizes = [4, 8, 8, 128], strides = [1, 1, 1, 1]} : vector<4x10x8x128xbf16> to vector<4x8x8x128xbf16>
    %c0_40 = arith.constant 0 : index
    %c0_41 = arith.constant 0 : index
    %c0_42 = arith.constant 0 : index
    %c128 = arith.constant 128 : index
    %19 = vector.load %arg7[%c0_40, %c0_41, %c0_42, %c128] : memref<4x8x8x1152xbf16, #tpu.memory_space<vmem>>, vector<4x8x8x128xbf16>
    tpu.vector_store %arg7[%c0_40, %c0_41, %c0_42, %c128], %18 {strides = array<i32>} : memref<4x8x8x1152xbf16, #tpu.memory_space<vmem>>, vector<4x8x8x128xbf16>,
    %20 = vector.extract_strided_slice %17 {offsets = [0, 1, 0, 0], sizes = [4, 8, 8, 128], strides = [1, 1, 1, 1]} : vector<4x10x8x128xbf16> to vector<4x8x8x128xbf16>
    %c0_43 = arith.constant 0 : index
    %c0_44 = arith.constant 0 : index
    %c0_45 = arith.constant 0 : index
    %c512 = arith.constant 512 : index
    %21 = vector.load %arg7[%c0_43, %c0_44, %c0_45, %c512] : memref<4x8x8x1152xbf16, #tpu.memory_space<vmem>>, vector<4x8x8x128xbf16>
    tpu.vector_store %arg7[%c0_43, %c0_44, %c0_45, %c512], %20 {strides = array<i32>} : memref<4x8x8x1152xbf16, #tpu.memory_space<vmem>>, vector<4x8x8x128xbf16>,
    %22 = vector.extract_strided_slice %17 {offsets = [0, 2, 0, 0], sizes = [4, 8, 8, 128], strides = [1, 1, 1, 1]} : vector<4x10x8x128xbf16> to vector<4x8x8x128xbf16>
    %c0_46 = arith.constant 0 : index
    %c0_47 = arith.constant 0 : index
    %c0_48 = arith.constant 0 : index
    %c896 = arith.constant 896 : index
    %23 = vector.load %arg7[%c0_46, %c0_47, %c0_48, %c896] : memref<4x8x8x1152xbf16, #tpu.memory_space<vmem>>, vector<4x8x8x128xbf16>
    tpu.vector_store %arg7[%c0_46, %c0_47, %c0_48, %c896], %22 {strides = array<i32>} : memref<4x8x8x1152xbf16, #tpu.memory_space<vmem>>, vector<4x8x8x128xbf16>,
    %c0_49 = arith.constant 0 : index
    %c0_50 = arith.constant 0 : index
    %c2 = arith.constant 2 : index
    %c0_51 = arith.constant 0 : index
    %24 = vector.load %arg6[%c0_49, %c0_50, %c2, %c0_51] : memref<4x10x10x128xf32, #tpu.memory_space<vmem>>, vector<4x10x8x128xf32>
    %25 = arith.truncf %24 : vector<4x10x8x128xf32> to vector<4x10x8x128xbf16>
    %26 = vector.extract_strided_slice %25 {offsets = [0, 0, 0, 0], sizes = [4, 8, 8, 128], strides = [1, 1, 1, 1]} : vector<4x10x8x128xbf16> to vector<4x8x8x128xbf16>
    %c0_52 = arith.constant 0 : index
    %c0_53 = arith.constant 0 : index
    %c0_54 = arith.constant 0 : index
    %c256 = arith.constant 256 : index
    %27 = vector.load %arg7[%c0_52, %c0_53, %c0_54, %c256] : memref<4x8x8x1152xbf16, #tpu.memory_space<vmem>>, vector<4x8x8x128xbf16>
    tpu.vector_store %arg7[%c0_52, %c0_53, %c0_54, %c256], %26 {strides = array<i32>} : memref<4x8x8x1152xbf16, #tpu.memory_space<vmem>>, vector<4x8x8x128xbf16>,
    %28 = vector.extract_strided_slice %25 {offsets = [0, 1, 0, 0], sizes = [4, 8, 8, 128], strides = [1, 1, 1, 1]} : vector<4x10x8x128xbf16> to vector<4x8x8x128xbf16>
    %c0_55 = arith.constant 0 : index
    %c0_56 = arith.constant 0 : index
    %c0_57 = arith.constant 0 : index
    %c640 = arith.constant 640 : index
    %29 = vector.load %arg7[%c0_55, %c0_56, %c0_57, %c640] : memref<4x8x8x1152xbf16, #tpu.memory_space<vmem>>, vector<4x8x8x128xbf16>
    tpu.vector_store %arg7[%c0_55, %c0_56, %c0_57, %c640], %28 {strides = array<i32>} : memref<4x8x8x1152xbf16, #tpu.memory_space<vmem>>, vector<4x8x8x128xbf16>,
    %30 = vector.extract_strided_slice %25 {offsets = [0, 2, 0, 0], sizes = [4, 8, 8, 128], strides = [1, 1, 1, 1]} : vector<4x10x8x128xbf16> to vector<4x8x8x128xbf16>
    %c0_58 = arith.constant 0 : index
    %c0_59 = arith.constant 0 : index
    %c0_60 = arith.constant 0 : index
    %c1024 = arith.constant 1024 : index
    %31 = vector.load %arg7[%c0_58, %c0_59, %c0_60, %c1024] : memref<4x8x8x1152xbf16, #tpu.memory_space<vmem>>, vector<4x8x8x128xbf16>
    tpu.vector_store %arg7[%c0_58, %c0_59, %c0_60, %c1024], %30 {strides = array<i32>} : memref<4x8x8x1152xbf16, #tpu.memory_space<vmem>>, vector<4x8x8x128xbf16>,
    %c0_61 = arith.constant 0 : index
    %c0_62 = arith.constant 0 : index
    %c0_63 = arith.constant 0 : index
    %c0_64 = arith.constant 0 : index
    %32 = vector.load %arg7[%c0_61, %c0_62, %c0_63, %c0_64] : memref<4x8x8x1152xbf16, #tpu.memory_space<vmem>>, vector<4x8x8x1152xbf16>
    %33 = vector.shape_cast %32 : vector<4x8x8x1152xbf16> to vector<256x1152xbf16>
    %c0_65 = arith.constant 0 : index
    %c0_66 = arith.constant 0 : index
    %34 = vector.load %arg3[%c0_65, %c0_66] : memref<1152x128xbf16, #tpu.memory_space<vmem>>, vector<1152x128xbf16>
    %cst_67 = arith.constant dense<0.000000e+00> : vector<256x128xf32>
    %35 = tpu.matmul %33, %34, %cst_67 {dimension_numbers = #tpu.dot_dimension_numbers<[1], [0], [0], [1], [0, 0, 1, 1], [], []>} : vector<256x1152xbf16>, vector<1152x128xbf16>, vector<256x128xf32> -> vector<256x128xf32>
    %36 = vector.shape_cast %35 : vector<256x128xf32> to vector<4x8x8x128xf32>
    %37 = arith.truncf %36 : vector<4x8x8x128xf32> to vector<4x8x8x128xbf16>
    %c0_68 = arith.constant 0 : index
    %c0_69 = arith.constant 0 : index
    %c0_70 = arith.constant 0 : index
    %c0_71 = arith.constant 0 : index
    %38 = vector.load %arg4[%c0_68, %c0_69, %c0_70, %c0_71] : memref<4x8x8x128xbf16, #tpu.memory_space<vmem>>, vector<4x8x8x128xbf16>
    tpu.vector_store %arg4[%c0_68, %c0_69, %c0_70, %c0_71], %37 {strides = array<i32>} : memref<4x8x8x128xbf16, #tpu.memory_space<vmem>>, vector<4x8x8x128xbf16>,
    %cst_72 = arith.constant dense<0.000000e+00> : vector<128xf32>
    %39 = vector.multi_reduction <add>, %35, %cst_72 [0] : vector<256x128xf32> to vector<128xf32>
    %40 = vector.shape_cast %39 : vector<128xf32> to vector<1x128xf32>
    %41 = arith.mulf %35, %35 : vector<256x128xf32>
    %cst_73 = arith.constant dense<0.000000e+00> : vector<128xf32>
    %42 = vector.multi_reduction <add>, %41, %cst_73 [0] : vector<256x128xf32> to vector<128xf32>
    %43 = vector.shape_cast %42 : vector<128xf32> to vector<1x128xf32>
    %44 = tpu.concatenate %40, %43 in 0 : vector<1x128xf32>, vector<1x128xf32> -> vector<2x128xf32>
    %c0_74 = arith.constant 0 : index
    %c0_75 = arith.constant 0 : index
    %c0_76 = arith.constant 0 : index
    %45 = vector.load %arg5[%c0_74, %c0_75, %c0_76] : memref<1x2x128xf32, #tpu.memory_space<vmem>>, vector<1x2x128xf32>
    %46 = vector.shape_cast %45 : vector<1x2x128xf32> to vector<2x128xf32>
    %47 = vector.shape_cast %44 : vector<2x128xf32> to vector<1x2x128xf32>
    tpu.vector_store %arg5[%c0_74, %c0_75, %c0_76], %47 {strides = array<i32>} : memref<1x2x128xf32, #tpu.memory_space<vmem>>, vector<1x2x128xf32>,
    return
  }
  func.func @transform_0(%arg0: i32) -> (i32, i32, i32, i32) {
    %c0_i32 = arith.constant 0 : i32
    %c0_i32_0 = arith.constant 0 : i32
    %c0_i32_1 = arith.constant 0 : i32
    %c0_i32_2 = arith.constant 0 : i32
    return %arg0, %c0_i32, %c0_i32_0, %c0_i32_1 : i32, i32, i32, i32
  }
  func.func @transform_1(%arg0: i32) -> (i32, i32) {
    %c0_i32 = arith.constant 0 : i32
    %c0_i32_0 = arith.constant 0 : i32
    %c0_i32_1 = arith.constant 0 : i32
    return %c0_i32, %c0_i32_0 : i32, i32
  }
  func.func @transform_2(%arg0: i32) -> (i32, i32) {
    %c0_i32 = arith.constant 0 : i32
    %c0_i32_0 = arith.constant 0 : i32
    %c0_i32_1 = arith.constant 0 : i32
    return %c0_i32, %c0_i32_0 : i32, i32
  }
  func.func @transform_3(%arg0: i32) -> (i32, i32, i32, i32) {
    %c0_i32 = arith.constant 0 : i32
    %c0_i32_0 = arith.constant 0 : i32
    %c0_i32_1 = arith.constant 0 : i32
    %c0_i32_2 = arith.constant 0 : i32
    return %arg0, %c0_i32, %c0_i32_0, %c0_i32_1 : i32, i32, i32, i32
  }
  func.func @transform_4(%arg0: i32) -> (i32, i32, i32) {
    %c0_i32 = arith.constant 0 : i32
    %c0_i32_0 = arith.constant 0 : i32
    %c0_i32_1 = arith.constant 0 : i32
    return %arg0, %c0_i32, %c0_i32_0 : i32, i32, i32
  }
}

module attributes {stable_mosaic.version = 11 : i64} {
  func.func @_conv_pass_kernel(%arg0: i32, %arg1: memref<4x8x8x128xbf16, #tpu.memory_space<vmem>>, %arg2: memref<2x128xf32, #tpu.memory_space<vmem>>, %arg3: memref<1152x128xbf16, #tpu.memory_space<vmem>>, %arg4: memref<4x8x8x128xbf16, #tpu.memory_space<vmem>>, %arg5: memref<1x2x128xf32, #tpu.memory_space<vmem>>, %arg6: memref<4x10x10x128xf32, #tpu.memory_space<vmem>>, %arg7: memref<4x8x8x1152xbf16, #tpu.memory_space<vmem>>) attributes {dimension_semantics = [#tpu.dimension_semantics<parallel>], iteration_bounds = array<i64: 2>, scalar_prefetch = 0 : i64, scratch_operands = 2 : i64, tpu.core_type = #tpu.core_type<tc>, window_params = [{transform_indices = @transform_0, window_bounds = array<i64: 4, 8, 8, 128>}, {pipeline_mode = #tpu.pipeline_mode<synchronous>, transform_indices = @transform_1, window_bounds = array<i64: 2, 128>}, {pipeline_mode = #tpu.pipeline_mode<synchronous>, transform_indices = @transform_2, window_bounds = array<i64: 1152, 128>}, {transform_indices = @transform_3, window_bounds = array<i64: 4, 8, 8, 128>}, {transform_indices = @transform_4, window_bounds = array<i64: 1, 2, 128>}]} {
    %c0 = arith.constant 0 : index
    %c0_0 = arith.constant 0 : index
    %c0_1 = arith.constant 0 : index
    %c0_2 = arith.constant 0 : index
    %0 = vector.load %arg1[%c0, %c0_0, %c0_1, %c0_2] : memref<4x8x8x128xbf16, #tpu.memory_space<vmem>>, vector<4x8x8x128xbf16>
    %1 = arith.extf %0 : vector<4x8x8x128xbf16> to vector<4x8x8x128xf32>
    %c0_3 = arith.constant 0 : index
    %c0_4 = arith.constant 0 : index
    %2 = vector.load %arg2[%c0_3, %c0_4] : memref<2x128xf32, #tpu.memory_space<vmem>>, vector<1x128xf32>
    %3 = vector.shape_cast %2 : vector<1x128xf32> to vector<1x1x1x128xf32>
    %c1 = arith.constant 1 : index
    %c0_5 = arith.constant 0 : index
    %4 = vector.load %arg2[%c1, %c0_5] : memref<2x128xf32, #tpu.memory_space<vmem>>, vector<1x128xf32>
    %5 = vector.shape_cast %4 : vector<1x128xf32> to vector<1x1x1x128xf32>
    %6 = vector.broadcast %3 : vector<1x1x1x128xf32> to vector<4x8x8x128xf32>
    %7 = arith.mulf %1, %6 : vector<4x8x8x128xf32>
    %8 = vector.broadcast %5 : vector<1x1x1x128xf32> to vector<4x8x8x128xf32>
    %9 = arith.addf %7, %8 : vector<4x8x8x128xf32>
    %cst = arith.constant 0.000000e+00 : f32
    %10 = vector.broadcast %cst : f32 to vector<4x8x8x128xf32>
    %11 = arith.maximumf %9, %10 : vector<4x8x8x128xf32>
    %cst_6 = arith.constant 0.000000e+00 : f32
    %12 = vector.broadcast %cst_6 : f32 to vector<4x1x10x128xf32>
    %cst_7 = arith.constant 0.000000e+00 : f32
    %13 = vector.broadcast %cst_7 : f32 to vector<4x8x1x128xf32>
    %c0_8 = arith.constant 0 : index
    %c0_9 = arith.constant 0 : index
    %c0_10 = arith.constant 0 : index
    %c0_11 = arith.constant 0 : index
    %14 = vector.load %arg6[%c0_8, %c0_9, %c0_10, %c0_11] : memref<4x10x10x128xf32, #tpu.memory_space<vmem>>, vector<4x1x10x128xf32>
    tpu.vector_store %arg6[%c0_8, %c0_9, %c0_10, %c0_11], %12 {strides = array<i32>} : memref<4x10x10x128xf32, #tpu.memory_space<vmem>>, vector<4x1x10x128xf32>,
    %c0_12 = arith.constant 0 : index
    %c9 = arith.constant 9 : index
    %c0_13 = arith.constant 0 : index
    %c0_14 = arith.constant 0 : index
    %15 = vector.load %arg6[%c0_12, %c9, %c0_13, %c0_14] : memref<4x10x10x128xf32, #tpu.memory_space<vmem>>, vector<4x1x10x128xf32>
    tpu.vector_store %arg6[%c0_12, %c9, %c0_13, %c0_14], %12 {strides = array<i32>} : memref<4x10x10x128xf32, #tpu.memory_space<vmem>>, vector<4x1x10x128xf32>,
    %c0_15 = arith.constant 0 : index
    %c1_16 = arith.constant 1 : index
    %c0_17 = arith.constant 0 : index
    %c0_18 = arith.constant 0 : index
    %16 = vector.load %arg6[%c0_15, %c1_16, %c0_17, %c0_18] : memref<4x10x10x128xf32, #tpu.memory_space<vmem>>, vector<4x8x1x128xf32>
    tpu.vector_store %arg6[%c0_15, %c1_16, %c0_17, %c0_18], %13 {strides = array<i32>} : memref<4x10x10x128xf32, #tpu.memory_space<vmem>>, vector<4x8x1x128xf32>,
    %c0_19 = arith.constant 0 : index
    %c1_20 = arith.constant 1 : index
    %c9_21 = arith.constant 9 : index
    %c0_22 = arith.constant 0 : index
    %17 = vector.load %arg6[%c0_19, %c1_20, %c9_21, %c0_22] : memref<4x10x10x128xf32, #tpu.memory_space<vmem>>, vector<4x8x1x128xf32>
    tpu.vector_store %arg6[%c0_19, %c1_20, %c9_21, %c0_22], %13 {strides = array<i32>} : memref<4x10x10x128xf32, #tpu.memory_space<vmem>>, vector<4x8x1x128xf32>,
    %c0_23 = arith.constant 0 : index
    %c1_24 = arith.constant 1 : index
    %c1_25 = arith.constant 1 : index
    %c0_26 = arith.constant 0 : index
    %18 = vector.load %arg6[%c0_23, %c1_24, %c1_25, %c0_26] : memref<4x10x10x128xf32, #tpu.memory_space<vmem>>, vector<4x8x8x128xf32>
    tpu.vector_store %arg6[%c0_23, %c1_24, %c1_25, %c0_26], %11 {strides = array<i32>} : memref<4x10x10x128xf32, #tpu.memory_space<vmem>>, vector<4x8x8x128xf32>,
    %c0_27 = arith.constant 0 : index
    %c0_28 = arith.constant 0 : index
    %c0_29 = arith.constant 0 : index
    %c0_30 = arith.constant 0 : index
    %19 = vector.load %arg6[%c0_27, %c0_28, %c0_29, %c0_30] : memref<4x10x10x128xf32, #tpu.memory_space<vmem>>, vector<4x10x8x128xf32>
    %20 = arith.truncf %19 : vector<4x10x8x128xf32> to vector<4x10x8x128xbf16>
    %21 = vector.extract_strided_slice %20 {offsets = [0, 0, 0, 0], sizes = [4, 8, 8, 128], strides = [1, 1, 1, 1]} : vector<4x10x8x128xbf16> to vector<4x8x8x128xbf16>
    %c0_31 = arith.constant 0 : index
    %c0_32 = arith.constant 0 : index
    %c0_33 = arith.constant 0 : index
    %c0_34 = arith.constant 0 : index
    %22 = vector.load %arg7[%c0_31, %c0_32, %c0_33, %c0_34] : memref<4x8x8x1152xbf16, #tpu.memory_space<vmem>>, vector<4x8x8x128xbf16>
    tpu.vector_store %arg7[%c0_31, %c0_32, %c0_33, %c0_34], %21 {strides = array<i32>} : memref<4x8x8x1152xbf16, #tpu.memory_space<vmem>>, vector<4x8x8x128xbf16>,
    %23 = vector.extract_strided_slice %20 {offsets = [0, 1, 0, 0], sizes = [4, 8, 8, 128], strides = [1, 1, 1, 1]} : vector<4x10x8x128xbf16> to vector<4x8x8x128xbf16>
    %c0_35 = arith.constant 0 : index
    %c0_36 = arith.constant 0 : index
    %c0_37 = arith.constant 0 : index
    %c384 = arith.constant 384 : index
    %24 = vector.load %arg7[%c0_35, %c0_36, %c0_37, %c384] : memref<4x8x8x1152xbf16, #tpu.memory_space<vmem>>, vector<4x8x8x128xbf16>
    tpu.vector_store %arg7[%c0_35, %c0_36, %c0_37, %c384], %23 {strides = array<i32>} : memref<4x8x8x1152xbf16, #tpu.memory_space<vmem>>, vector<4x8x8x128xbf16>,
    %25 = vector.extract_strided_slice %20 {offsets = [0, 2, 0, 0], sizes = [4, 8, 8, 128], strides = [1, 1, 1, 1]} : vector<4x10x8x128xbf16> to vector<4x8x8x128xbf16>
    %c0_38 = arith.constant 0 : index
    %c0_39 = arith.constant 0 : index
    %c0_40 = arith.constant 0 : index
    %c768 = arith.constant 768 : index
    %26 = vector.load %arg7[%c0_38, %c0_39, %c0_40, %c768] : memref<4x8x8x1152xbf16, #tpu.memory_space<vmem>>, vector<4x8x8x128xbf16>
    tpu.vector_store %arg7[%c0_38, %c0_39, %c0_40, %c768], %25 {strides = array<i32>} : memref<4x8x8x1152xbf16, #tpu.memory_space<vmem>>, vector<4x8x8x128xbf16>,
    %c0_41 = arith.constant 0 : index
    %c0_42 = arith.constant 0 : index
    %c1_43 = arith.constant 1 : index
    %c0_44 = arith.constant 0 : index
    %27 = vector.load %arg6[%c0_41, %c0_42, %c1_43, %c0_44] : memref<4x10x10x128xf32, #tpu.memory_space<vmem>>, vector<4x10x8x128xf32>
    %28 = arith.truncf %27 : vector<4x10x8x128xf32> to vector<4x10x8x128xbf16>
    %29 = vector.extract_strided_slice %28 {offsets = [0, 0, 0, 0], sizes = [4, 8, 8, 128], strides = [1, 1, 1, 1]} : vector<4x10x8x128xbf16> to vector<4x8x8x128xbf16>
    %c0_45 = arith.constant 0 : index
    %c0_46 = arith.constant 0 : index
    %c0_47 = arith.constant 0 : index
    %c128 = arith.constant 128 : index
    %30 = vector.load %arg7[%c0_45, %c0_46, %c0_47, %c128] : memref<4x8x8x1152xbf16, #tpu.memory_space<vmem>>, vector<4x8x8x128xbf16>
    tpu.vector_store %arg7[%c0_45, %c0_46, %c0_47, %c128], %29 {strides = array<i32>} : memref<4x8x8x1152xbf16, #tpu.memory_space<vmem>>, vector<4x8x8x128xbf16>,
    %31 = vector.extract_strided_slice %28 {offsets = [0, 1, 0, 0], sizes = [4, 8, 8, 128], strides = [1, 1, 1, 1]} : vector<4x10x8x128xbf16> to vector<4x8x8x128xbf16>
    %c0_48 = arith.constant 0 : index
    %c0_49 = arith.constant 0 : index
    %c0_50 = arith.constant 0 : index
    %c512 = arith.constant 512 : index
    %32 = vector.load %arg7[%c0_48, %c0_49, %c0_50, %c512] : memref<4x8x8x1152xbf16, #tpu.memory_space<vmem>>, vector<4x8x8x128xbf16>
    tpu.vector_store %arg7[%c0_48, %c0_49, %c0_50, %c512], %31 {strides = array<i32>} : memref<4x8x8x1152xbf16, #tpu.memory_space<vmem>>, vector<4x8x8x128xbf16>,
    %33 = vector.extract_strided_slice %28 {offsets = [0, 2, 0, 0], sizes = [4, 8, 8, 128], strides = [1, 1, 1, 1]} : vector<4x10x8x128xbf16> to vector<4x8x8x128xbf16>
    %c0_51 = arith.constant 0 : index
    %c0_52 = arith.constant 0 : index
    %c0_53 = arith.constant 0 : index
    %c896 = arith.constant 896 : index
    %34 = vector.load %arg7[%c0_51, %c0_52, %c0_53, %c896] : memref<4x8x8x1152xbf16, #tpu.memory_space<vmem>>, vector<4x8x8x128xbf16>
    tpu.vector_store %arg7[%c0_51, %c0_52, %c0_53, %c896], %33 {strides = array<i32>} : memref<4x8x8x1152xbf16, #tpu.memory_space<vmem>>, vector<4x8x8x128xbf16>,
    %c0_54 = arith.constant 0 : index
    %c0_55 = arith.constant 0 : index
    %c2 = arith.constant 2 : index
    %c0_56 = arith.constant 0 : index
    %35 = vector.load %arg6[%c0_54, %c0_55, %c2, %c0_56] : memref<4x10x10x128xf32, #tpu.memory_space<vmem>>, vector<4x10x8x128xf32>
    %36 = arith.truncf %35 : vector<4x10x8x128xf32> to vector<4x10x8x128xbf16>
    %37 = vector.extract_strided_slice %36 {offsets = [0, 0, 0, 0], sizes = [4, 8, 8, 128], strides = [1, 1, 1, 1]} : vector<4x10x8x128xbf16> to vector<4x8x8x128xbf16>
    %c0_57 = arith.constant 0 : index
    %c0_58 = arith.constant 0 : index
    %c0_59 = arith.constant 0 : index
    %c256 = arith.constant 256 : index
    %38 = vector.load %arg7[%c0_57, %c0_58, %c0_59, %c256] : memref<4x8x8x1152xbf16, #tpu.memory_space<vmem>>, vector<4x8x8x128xbf16>
    tpu.vector_store %arg7[%c0_57, %c0_58, %c0_59, %c256], %37 {strides = array<i32>} : memref<4x8x8x1152xbf16, #tpu.memory_space<vmem>>, vector<4x8x8x128xbf16>,
    %39 = vector.extract_strided_slice %36 {offsets = [0, 1, 0, 0], sizes = [4, 8, 8, 128], strides = [1, 1, 1, 1]} : vector<4x10x8x128xbf16> to vector<4x8x8x128xbf16>
    %c0_60 = arith.constant 0 : index
    %c0_61 = arith.constant 0 : index
    %c0_62 = arith.constant 0 : index
    %c640 = arith.constant 640 : index
    %40 = vector.load %arg7[%c0_60, %c0_61, %c0_62, %c640] : memref<4x8x8x1152xbf16, #tpu.memory_space<vmem>>, vector<4x8x8x128xbf16>
    tpu.vector_store %arg7[%c0_60, %c0_61, %c0_62, %c640], %39 {strides = array<i32>} : memref<4x8x8x1152xbf16, #tpu.memory_space<vmem>>, vector<4x8x8x128xbf16>,
    %41 = vector.extract_strided_slice %36 {offsets = [0, 2, 0, 0], sizes = [4, 8, 8, 128], strides = [1, 1, 1, 1]} : vector<4x10x8x128xbf16> to vector<4x8x8x128xbf16>
    %c0_63 = arith.constant 0 : index
    %c0_64 = arith.constant 0 : index
    %c0_65 = arith.constant 0 : index
    %c1024 = arith.constant 1024 : index
    %42 = vector.load %arg7[%c0_63, %c0_64, %c0_65, %c1024] : memref<4x8x8x1152xbf16, #tpu.memory_space<vmem>>, vector<4x8x8x128xbf16>
    tpu.vector_store %arg7[%c0_63, %c0_64, %c0_65, %c1024], %41 {strides = array<i32>} : memref<4x8x8x1152xbf16, #tpu.memory_space<vmem>>, vector<4x8x8x128xbf16>,
    %c0_66 = arith.constant 0 : index
    %c0_67 = arith.constant 0 : index
    %c0_68 = arith.constant 0 : index
    %c0_69 = arith.constant 0 : index
    %43 = vector.load %arg7[%c0_66, %c0_67, %c0_68, %c0_69] : memref<4x8x8x1152xbf16, #tpu.memory_space<vmem>>, vector<4x8x8x1152xbf16>
    %44 = vector.shape_cast %43 : vector<4x8x8x1152xbf16> to vector<256x1152xbf16>
    %c0_70 = arith.constant 0 : index
    %c0_71 = arith.constant 0 : index
    %45 = vector.load %arg3[%c0_70, %c0_71] : memref<1152x128xbf16, #tpu.memory_space<vmem>>, vector<1152x128xbf16>
    %cst_72 = arith.constant dense<0.000000e+00> : vector<256x128xf32>
    %46 = tpu.matmul %44, %45, %cst_72 {dimension_numbers = #tpu.dot_dimension_numbers<[1], [0], [0], [1], [0, 0, 1, 1], [], []>} : vector<256x1152xbf16>, vector<1152x128xbf16>, vector<256x128xf32> -> vector<256x128xf32>
    %47 = vector.shape_cast %46 : vector<256x128xf32> to vector<4x8x8x128xf32>
    %48 = arith.truncf %47 : vector<4x8x8x128xf32> to vector<4x8x8x128xbf16>
    %c0_73 = arith.constant 0 : index
    %c0_74 = arith.constant 0 : index
    %c0_75 = arith.constant 0 : index
    %c0_76 = arith.constant 0 : index
    %49 = vector.load %arg4[%c0_73, %c0_74, %c0_75, %c0_76] : memref<4x8x8x128xbf16, #tpu.memory_space<vmem>>, vector<4x8x8x128xbf16>
    tpu.vector_store %arg4[%c0_73, %c0_74, %c0_75, %c0_76], %48 {strides = array<i32>} : memref<4x8x8x128xbf16, #tpu.memory_space<vmem>>, vector<4x8x8x128xbf16>,
    %cst_77 = arith.constant dense<0.000000e+00> : vector<128xf32>
    %50 = vector.multi_reduction <add>, %46, %cst_77 [0] : vector<256x128xf32> to vector<128xf32>
    %51 = vector.shape_cast %50 : vector<128xf32> to vector<1x128xf32>
    %52 = arith.mulf %46, %46 : vector<256x128xf32>
    %cst_78 = arith.constant dense<0.000000e+00> : vector<128xf32>
    %53 = vector.multi_reduction <add>, %52, %cst_78 [0] : vector<256x128xf32> to vector<128xf32>
    %54 = vector.shape_cast %53 : vector<128xf32> to vector<1x128xf32>
    %55 = tpu.concatenate %51, %54 in 0 : vector<1x128xf32>, vector<1x128xf32> -> vector<2x128xf32>
    %c0_79 = arith.constant 0 : index
    %c0_80 = arith.constant 0 : index
    %c0_81 = arith.constant 0 : index
    %56 = vector.load %arg5[%c0_79, %c0_80, %c0_81] : memref<1x2x128xf32, #tpu.memory_space<vmem>>, vector<1x2x128xf32>
    %57 = vector.shape_cast %56 : vector<1x2x128xf32> to vector<2x128xf32>
    %58 = vector.shape_cast %55 : vector<2x128xf32> to vector<1x2x128xf32>
    tpu.vector_store %arg5[%c0_79, %c0_80, %c0_81], %58 {strides = array<i32>} : memref<1x2x128xf32, #tpu.memory_space<vmem>>, vector<1x2x128xf32>,
    return
  }
  func.func @transform_0(%arg0: i32) -> (i32, i32, i32, i32) {
    %c0_i32 = arith.constant 0 : i32
    %c0_i32_0 = arith.constant 0 : i32
    %c0_i32_1 = arith.constant 0 : i32
    %c0_i32_2 = arith.constant 0 : i32
    return %arg0, %c0_i32, %c0_i32_0, %c0_i32_1 : i32, i32, i32, i32
  }
  func.func @transform_1(%arg0: i32) -> (i32, i32) {
    %c0_i32 = arith.constant 0 : i32
    %c0_i32_0 = arith.constant 0 : i32
    %c0_i32_1 = arith.constant 0 : i32
    return %c0_i32, %c0_i32_0 : i32, i32
  }
  func.func @transform_2(%arg0: i32) -> (i32, i32) {
    %c0_i32 = arith.constant 0 : i32
    %c0_i32_0 = arith.constant 0 : i32
    %c0_i32_1 = arith.constant 0 : i32
    return %c0_i32, %c0_i32_0 : i32, i32
  }
  func.func @transform_3(%arg0: i32) -> (i32, i32, i32, i32) {
    %c0_i32 = arith.constant 0 : i32
    %c0_i32_0 = arith.constant 0 : i32
    %c0_i32_1 = arith.constant 0 : i32
    %c0_i32_2 = arith.constant 0 : i32
    return %arg0, %c0_i32, %c0_i32_0, %c0_i32_1 : i32, i32, i32, i32
  }
  func.func @transform_4(%arg0: i32) -> (i32, i32, i32) {
    %c0_i32 = arith.constant 0 : i32
    %c0_i32_0 = arith.constant 0 : i32
    %c0_i32_1 = arith.constant 0 : i32
    return %arg0, %c0_i32, %c0_i32_0 : i32, i32, i32
  }
}

module attributes {stable_mosaic.version = 11 : i64} {
  func.func @_bn_add_relu_kernel(%arg0: i32, %arg1: memref<4x8x8x128xbf16, #tpu.memory_space<vmem>>, %arg2: memref<2x128xf32, #tpu.memory_space<vmem>>, %arg3: memref<4x8x8x128xf32, #tpu.memory_space<vmem>>, %arg4: memref<4x8x8x128xf32, #tpu.memory_space<vmem>>) attributes {dimension_semantics = [#tpu.dimension_semantics<parallel>], iteration_bounds = array<i64: 2>, scalar_prefetch = 0 : i64, scratch_operands = 0 : i64, tpu.core_type = #tpu.core_type<tc>, window_params = [{transform_indices = @transform_0, window_bounds = array<i64: 4, 8, 8, 128>}, {pipeline_mode = #tpu.pipeline_mode<synchronous>, transform_indices = @transform_1, window_bounds = array<i64: 2, 128>}, {transform_indices = @transform_2, window_bounds = array<i64: 4, 8, 8, 128>}, {transform_indices = @transform_3, window_bounds = array<i64: 4, 8, 8, 128>}]} {
    %c0 = arith.constant 0 : index
    %c0_0 = arith.constant 0 : index
    %0 = vector.load %arg2[%c0, %c0_0] : memref<2x128xf32, #tpu.memory_space<vmem>>, vector<1x128xf32>
    %1 = vector.shape_cast %0 : vector<1x128xf32> to vector<1x1x1x128xf32>
    %c1 = arith.constant 1 : index
    %c0_1 = arith.constant 0 : index
    %2 = vector.load %arg2[%c1, %c0_1] : memref<2x128xf32, #tpu.memory_space<vmem>>, vector<1x128xf32>
    %3 = vector.shape_cast %2 : vector<1x128xf32> to vector<1x1x1x128xf32>
    %c0_2 = arith.constant 0 : index
    %c0_3 = arith.constant 0 : index
    %c0_4 = arith.constant 0 : index
    %c0_5 = arith.constant 0 : index
    %4 = vector.load %arg1[%c0_2, %c0_3, %c0_4, %c0_5] : memref<4x8x8x128xbf16, #tpu.memory_space<vmem>>, vector<4x8x8x128xbf16>
    %5 = arith.extf %4 : vector<4x8x8x128xbf16> to vector<4x8x8x128xf32>
    %6 = vector.broadcast %1 : vector<1x1x1x128xf32> to vector<4x8x8x128xf32>
    %7 = arith.mulf %5, %6 : vector<4x8x8x128xf32>
    %8 = vector.broadcast %3 : vector<1x1x1x128xf32> to vector<4x8x8x128xf32>
    %9 = arith.addf %7, %8 : vector<4x8x8x128xf32>
    %c0_6 = arith.constant 0 : index
    %c0_7 = arith.constant 0 : index
    %c0_8 = arith.constant 0 : index
    %c0_9 = arith.constant 0 : index
    %10 = vector.load %arg3[%c0_6, %c0_7, %c0_8, %c0_9] : memref<4x8x8x128xf32, #tpu.memory_space<vmem>>, vector<4x8x8x128xf32>
    %11 = arith.addf %9, %10 : vector<4x8x8x128xf32>
    %cst = arith.constant 0.000000e+00 : f32
    %12 = vector.broadcast %cst : f32 to vector<4x8x8x128xf32>
    %13 = arith.maximumf %11, %12 : vector<4x8x8x128xf32>
    %c0_10 = arith.constant 0 : index
    %c0_11 = arith.constant 0 : index
    %c0_12 = arith.constant 0 : index
    %c0_13 = arith.constant 0 : index
    %14 = vector.load %arg4[%c0_10, %c0_11, %c0_12, %c0_13] : memref<4x8x8x128xf32, #tpu.memory_space<vmem>>, vector<4x8x8x128xf32>
    tpu.vector_store %arg4[%c0_10, %c0_11, %c0_12, %c0_13], %13 {strides = array<i32>} : memref<4x8x8x128xf32, #tpu.memory_space<vmem>>, vector<4x8x8x128xf32>,
    return
  }
  func.func @transform_0(%arg0: i32) -> (i32, i32, i32, i32) {
    %c0_i32 = arith.constant 0 : i32
    %c0_i32_0 = arith.constant 0 : i32
    %c0_i32_1 = arith.constant 0 : i32
    %c0_i32_2 = arith.constant 0 : i32
    return %arg0, %c0_i32, %c0_i32_0, %c0_i32_1 : i32, i32, i32, i32
  }
  func.func @transform_1(%arg0: i32) -> (i32, i32) {
    %c0_i32 = arith.constant 0 : i32
    %c0_i32_0 = arith.constant 0 : i32
    %c0_i32_1 = arith.constant 0 : i32
    return %c0_i32, %c0_i32_0 : i32, i32
  }
  func.func @transform_2(%arg0: i32) -> (i32, i32, i32, i32) {
    %c0_i32 = arith.constant 0 : i32
    %c0_i32_0 = arith.constant 0 : i32
    %c0_i32_1 = arith.constant 0 : i32
    %c0_i32_2 = arith.constant 0 : i32
    return %arg0, %c0_i32, %c0_i32_0, %c0_i32_1 : i32, i32, i32, i32
  }
  func.func @transform_3(%arg0: i32) -> (i32, i32, i32, i32) {
    %c0_i32 = arith.constant 0 : i32
    %c0_i32_0 = arith.constant 0 : i32
    %c0_i32_1 = arith.constant 0 : i32
    %c0_i32_2 = arith.constant 0 : i32
    return %arg0, %c0_i32, %c0_i32_0, %c0_i32_1 : i32, i32, i32, i32
  }
}

</mosaic_0001>

<bundles_post_ra>
// kernel: residual_layer.5
= control target key start
LH: loop header
LB: loop body
LE: loop exit
PB: predicated region body
PF: predicated region fallthrough
CT: control target
= control target key end

     0   :  { %8 = vsyncpa [#allocation3], 0  ;;  %s1058_s0 = inlined_call_operand.vmem [shape: bf16[8,8,8,128], index: 0, kind: input, shape index: {}]   ;;  %s1059_s1 = inlined_call_operand.vmem [shape: f32[2,128], index: 1, kind: input, shape index: {}]   ;;  %s1060_s2 = inlined_call_operand.vmem [shape: f32[8,8,8,128], index: 2, kind: input, shape index: {}]   ;;  %s1061_s3 = inlined_call_operand.hbm [shape: f32[8,8,8,128], index: 3, kind: output, shape index: {}]  }
   0x1   :  { %10 = vsyncpa [#allocation3 + $0x1], 0  ;;  %s785_s12 = smov 0   ;;  %s787_s13 = smov 0  }
   0x2   :  { %s789_s14 = smov 0   ;;  %s791_s15 = smov 0  }
   0x3 LB: > { %s806_s16 = sadd.s32 4294967295, %s760_s15   ;;  %s555_s17 = sadd.s32 4294967294, %s760_s15   ;;  %s760_s15 = sphi %s791_s15, %s1067_s15   ;;  %s756_s14 = sphi %s789_s14, %s1066_s14   ;;  %s752_s13 = sphi %s787_s13, %s1065_s13   ;;  %s748_s12 = sphi %s785_s12, %s1064_s12  }
   0x4   : > { %s810_s18 = sadd.s32 1, %s760_s15   ;;  %s96_s19 = sadd.s32 1, %s756_s14 }
   0x5   : > { %s93_s20 = ssub.s32 %s760_s15, %s810_s18  ;;  %p106_p0 = scmp.ne.s32.totalorder %s756_s14, %s752_s13 }
   0x6   : > { %p94_p1 = scmp.eq.s32.totalorder %s93_s20, 0  ;;  %p107_p2 = scmp.eq.s32.totalorder %s806_s16, 1 }
   0x7   : > { %p112_p3 = scmp.ne.s32.totalorder %s752_s13, %s748_s12  ;;  %p113_p4 = scmp.eq.s32.totalorder %s555_s17, 1 }
   0x8   : > { %s821_s21 = scalar_select %p94_p1, %s756_s14, %s96_s19  }
   0x9   : > { %p823_p5 = por %p107_p2, %p106_p0  ;;  %p827_p6 = por %p113_p4, %p112_p3 }
   0xa   : > { %p558_p7 = scmp.ge.s32.totalorder %s760_s15, 1  ;;  %p154_p8 = scmp.lt.s32.totalorder %s760_s15, 3 }
   0xc   : > { %p155_p9 = pnand %p558_p7, %p154_p8 }
   0xd   : > { %s560_s24 = sshll.u32 (!%p155_p9), %s806_s16, 2  ;;  %v842_v0 = vld [vmem:[%s1059_s1] ss:$0 sm:$0xff] (!%p155_p9)  ;;  %s182_s8 = sand.u32 (!%p155_p9), 1, %s752_s13   ;;  %v855_v5 = vld [vmem:[%s1059_s1 + $0x1] ss:$0 sm:$0xff] (!%p155_p9) }
   0xe   : > { %158 = sbr.rel (%p155_p9) target bundleno = 82 (0x52), region = 32  ;;  %p186_p10 = scmp.lt.s32.totalorder (!%p155_p9), %s560_s24, 7 }
   0xf   : > { %s867_s11 = sshll.u32 (!%p155_p9), %s182_s8, 8  ;;  %s577_s19 = sshll.u32 (!%p155_p9), %s806_s16, 12 }
  0x10   : > { %s891_s17 = scalar_lea.vmem (!%p155_p9), [#allocation2], %s867_s11  ;;  %s762_s28 = smov (!%p155_p9), [#allocation2]  }
  0x11   : > { %s481_s20 = sshll.u32 (!%p155_p9), %s891_s17, 4  ;;  %s1007_s20 = int_to_ptr.vmem [resolvable:$true] %s481_s20 }
  0x12   : > { %s698_s27 = scalar_lea.vmem (!%p155_p9), %s1007_s20, 4096 }
  0x13   : > { %p699_p11 = scmp.ne.s32.totalorder (!%p155_p9), %s1007_s20, %s698_s27 }
  0x15   : > { %s1069_s24 = smov (!%p186_p10, %s560_s24), 7  ;;  %p700_p12 = pnand %p699_p11, %p823_p5 }
  0x16   : > { %s574_s25 = sshll.u32 %s1069_s24, 5  ;;  %s575_s26 = sshll.u32 %s1069_s24, 6 }
  0x17   : > { %s837_s29 = scalar_lea.vmem %s1058_s0, %s574_s25  ;;  %s848_s7 = scalar_lea.vmem %s1060_s2, %s575_s26 }
  0x18   : > { %v579_v1 = vld [vmem:[%s837_s29] sm:$0xff]   ;;  %v642_v4 = vld [vmem:[%s837_s29 + $0x8] sm:$0xff]   ;;  %v643_v8 = vld [vmem:[%s837_s29 + $0x10] sm:$0xff]   ;;  %s1005_s25 = scalar_lea.hbm %s1061_s3, %s577_s19  ;;  %s1017_s26 = scalar_lea.sflag [#allocation3], %s182_s8 }
  0x19   : > { %v580_v2 = vunpack.c.l.bf16 %v579_v1  ;;  %v581_v3 = vunpack.c.h.bf16 %v579_v1  ;;  %v584_v6 = vunpack.c.l.bf16 %v642_v4  ;;  %v585_v7 = vunpack.c.h.bf16 %v642_v4  ;;  %v644_v13 = vld [vmem:[%s837_s29 + $0x18] sm:$0xff]   ;;  %v338_v14 = vld [vmem:[%s848_s7] sm:$0xff]  ;;  %v339_v15 = vld [vmem:[%s848_s7 + $0x8] sm:$0xff]  ;;  %p701_p13 = pneg %p700_p12 }
  0x1a   : > { %v588_v11 = vunpack.c.l.bf16 %v643_v8  ;;  %v589_v12 = vunpack.c.h.bf16 %v643_v8  ;;  %v592_v18 = vunpack.c.l.bf16 %v644_v13  ;;  %v593_v19 = vunpack.c.h.bf16 %v644_v13  ;;  %v340_v22 = vld [vmem:[%s848_s7 + $0x10] sm:$0xff]  ;;  %v341_v23 = vld [vmem:[%s848_s7 + $0x18] sm:$0xff]  ;;  %v342_v28 = vld [vmem:[%s848_s7 + $0x20] sm:$0xff] }
  0x1b   : > { %v270_v9 = vmul.f32 %v580_v2, %v842_v0  ;;  %v271_v10 = vmul.f32 %v581_v3, %v842_v0  ;;  %v272_v16 = vmul.f32 %v584_v6, %v842_v0  ;;  %v273_v17 = vmul.f32 %v585_v7, %v842_v0  ;;  %v343_v29 = vld [vmem:[%s848_s7 + $0x28] sm:$0xff]  ;;  %v344_v36 = vld [vmem:[%s848_s7 + $0x30] sm:$0xff]  ;;  %v345_v37 = vld [vmem:[%s848_s7 + $0x38] sm:$0xff] }
  0x1c   : > { %v274_v24 = vmul.f32 %v588_v11, %v842_v0  ;;  %v275_v25 = vmul.f32 %v589_v12, %v842_v0  ;;  %v276_v30 = vmul.f32 %v592_v18, %v842_v0  ;;  %v277_v31 = vmul.f32 %v593_v19, %v842_v0  ;;  %v645_v42 = vld [vmem:[%s837_s29 + $0x20] sm:$0xff]   ;;  %v646_v47 = vld [vmem:[%s837_s29 + $0x28] sm:$0xff]   ;;  %v647_v52 = vld [vmem:[%s837_s29 + $0x30] sm:$0xff]  }
  0x1d   : > { %v306_v20 = vadd.f32 %v855_v5, %v270_v9  ;;  %v307_v21 = vadd.f32 %v855_v5, %v271_v10  ;;  %v308_v26 = vadd.f32 %v855_v5, %v272_v16  ;;  %v309_v27 = vadd.f32 %v855_v5, %v273_v17  ;;  %v648_v57 = vld [vmem:[%s837_s29 + $0x38] sm:$0xff]   ;;  %v346_v3 = vld [vmem:[%s848_s7 + $0x40] sm:$0xff]  ;;  %v347_v4 = vld [vmem:[%s848_s7 + $0x48] sm:$0xff] }
  0x1e   : > { %v310_v34 = vadd.f32 %v855_v5, %v274_v24  ;;  %v311_v35 = vadd.f32 %v855_v5, %v275_v25  ;;  %v312_v40 = vadd.f32 %v855_v5, %v276_v30  ;;  %v313_v41 = vadd.f32 %v855_v5, %v277_v31  ;;  %v348_v12 = vld [vmem:[%s848_s7 + $0x50] sm:$0xff]  ;;  %v349_v13 = vld [vmem:[%s848_s7 + $0x58] sm:$0xff]  ;;  %v350_v18 = vld [vmem:[%s848_s7 + $0x60] sm:$0xff] }
  0x1f   : > { %v370_v32 = vadd.f32 %v338_v14, %v306_v20  ;;  %v371_v33 = vadd.f32 %v339_v15, %v307_v21  ;;  %v372_v38 = vadd.f32 %v340_v22, %v308_v26  ;;  %v373_v39 = vadd.f32 %v341_v23, %v309_v27  ;;  %v351_v19 = vld [vmem:[%s848_s7 + $0x68] sm:$0xff]  ;;  %v352_v26 = vld [vmem:[%s848_s7 + $0x70] sm:$0xff]  ;;  %v353_v27 = vld [vmem:[%s848_s7 + $0x78] sm:$0xff] }
  0x20   : > { %v374_v45 = vadd.f32 %v342_v28, %v310_v34  ;;  %v375_v46 = vadd.f32 %v343_v29, %v311_v35  ;;  %v376_v50 = vadd.f32 %v344_v36, %v312_v40  ;;  %v377_v51 = vadd.f32 %v345_v37, %v313_v41  ;;  %v650_v37 = vld [vmem:[%s837_s29 + $0x48] sm:$0xff]  }
  0x21   : > { %v402_v43 = vmax.f32 %v370_v32, 0.0  ;;  %v403_v44 = vmax.f32 %v371_v33, 0.0  ;;  %v404_v48 = vmax.f32 %v372_v38, 0.0  ;;  %v405_v49 = vmax.f32 %v373_v39, 0.0  ;;  %v649_v32 = vld [vmem:[%s837_s29 + $0x40] sm:$0xff]  }
  0x22   : > { %v406_v53 = vmax.f32 %v374_v45, 0.0  ;;  %v407_v54 = vmax.f32 %v375_v46, 0.0  ;;  %v596_v55 = vunpack.c.l.bf16 %v645_v42  ;;  %v597_v56 = vunpack.c.h.bf16 %v645_v42  ;;  %v651_v42 = vld [vmem:[%s837_s29 + $0x50] sm:$0xff]  }
  0x23   : > { %434 = vst [vmem:[%s891_s17] sm:$0xff] %v402_v43  ;;  %435 = vst [vmem:[%s891_s17 + $0x8] sm:$0xff] %v403_v44  ;;  %v408_v58 = vmax.f32 %v376_v50, 0.0  ;;  %v409_v59 = vmax.f32 %v377_v51, 0.0  ;;  %v600_v60 = vunpack.c.l.bf16 %v646_v47  ;;  %v601_v61 = vunpack.c.h.bf16 %v646_v47  ;;  %v652_v47 = vld [vmem:[%s837_s29 + $0x58] sm:$0xff]  }
  0x24   : > { %436 = vst [vmem:[%s891_s17 + $0x10] sm:$0xff] %v404_v48  ;;  %437 = vst [vmem:[%s891_s17 + $0x18] sm:$0xff] %v405_v49  ;;  %v278_v62 = vmul.f32 %v596_v55, %v842_v0  ;;  %v279_v63 = vmul.f32 %v597_v56, %v842_v0  ;;  %v604_v1 = vunpack.c.l.bf16 %v647_v52  ;;  %v605_v2 = vunpack.c.h.bf16 %v647_v52  ;;  %v354_v56 = vld [vmem:[%s848_s7 + $0x80] sm:$0xff] }
  0x25   : > { %438 = vst [vmem:[%s891_s17 + $0x20] sm:$0xff] %v406_v53  ;;  %439 = vst [vmem:[%s891_s17 + $0x28] sm:$0xff] %v407_v54  ;;  %v280_v6 = vmul.f32 %v600_v60, %v842_v0  ;;  %v281_v7 = vmul.f32 %v601_v61, %v842_v0  ;;  %v608_v8 = vunpack.c.l.bf16 %v648_v57  ;;  %v609_v9 = vunpack.c.h.bf16 %v648_v57  ;;  %v355_v57 = vld [vmem:[%s848_s7 + $0x88] sm:$0xff] }
  0x26   : > { %440 = vst [vmem:[%s891_s17 + $0x30] sm:$0xff] %v408_v58  ;;  %441 = vst [vmem:[%s891_s17 + $0x38] sm:$0xff] %v409_v59  ;;  %v314_v10 = vadd.f32 %v855_v5, %v278_v62  ;;  %v315_v11 = vadd.f32 %v855_v5, %v279_v63  ;;  %v282_v14 = vmul.f32 %v604_v1, %v842_v0  ;;  %v612_v45 = vunpack.c.l.bf16 %v649_v32  ;;  %v356_v1 = vld [vmem:[%s848_s7 + $0x90] sm:$0xff] }
  0x27   : > { %v283_v15 = vmul.f32 %v605_v2, %v842_v0  ;;  %v316_v16 = vadd.f32 %v855_v5, %v280_v6  ;;  %v317_v17 = vadd.f32 %v855_v5, %v281_v7  ;;  %v284_v20 = vmul.f32 %v608_v8, %v842_v0  ;;  %v357_v2 = vld [vmem:[%s848_s7 + $0x98] sm:$0xff]  ;;  %v358_v8 = vld [vmem:[%s848_s7 + $0xa0] sm:$0xff] }
  0x28   : > { %v285_v21 = vmul.f32 %v609_v9, %v842_v0  ;;  %v378_v22 = vadd.f32 %v346_v3, %v314_v10  ;;  %v379_v23 = vadd.f32 %v347_v4, %v315_v11  ;;  %v318_v24 = vadd.f32 %v855_v5, %v282_v14  ;;  %v359_v9 = vld [vmem:[%s848_s7 + $0xa8] sm:$0xff] }
  0x29   : > { %v319_v25 = vadd.f32 %v855_v5, %v283_v15  ;;  %v380_v28 = vadd.f32 %v348_v12, %v316_v16  ;;  %v381_v29 = vadd.f32 %v349_v13, %v317_v17  ;;  %v320_v30 = vadd.f32 %v855_v5, %v284_v20  ;;  %v360_v16 = vld [vmem:[%s848_s7 + $0xb0] sm:$0xff]  ;;  %v361_v17 = vld [vmem:[%s848_s7 + $0xb8] sm:$0xff] }
  0x2a   : > { %v321_v31 = vadd.f32 %v855_v5, %v285_v21  ;;  %v410_v33 = vmax.f32 %v378_v22, 0.0  ;;  %v411_v34 = vmax.f32 %v379_v23, 0.0  ;;  %v382_v35 = vadd.f32 %v350_v18, %v318_v24  ;;  %v653_v22 = vld [vmem:[%s837_s29 + $0x60] sm:$0xff]  }
  0x2b   : > { %v383_v36 = vadd.f32 %v351_v19, %v319_v25  ;;  %v412_v38 = vmax.f32 %v380_v28, 0.0  ;;  %v413_v39 = vmax.f32 %v381_v29, 0.0  ;;  %v384_v40 = vadd.f32 %v352_v26, %v320_v30 }
  0x2c   : > { %v385_v41 = vadd.f32 %v353_v27, %v321_v31  ;;  %442 = vst [vmem:[%s891_s17 + $0x40] sm:$0xff] %v410_v33  ;;  %443 = vst [vmem:[%s891_s17 + $0x48] sm:$0xff] %v411_v34  ;;  %v414_v43 = vmax.f32 %v382_v35, 0.0  ;;  %v613_v46 = vunpack.c.h.bf16 %v649_v32  ;;  %v616_v50 = vunpack.c.l.bf16 %v650_v37  ;;  %v654_v27 = vld [vmem:[%s837_s29 + $0x68] sm:$0xff]   ;;  %v655_v32 = vld [vmem:[%s837_s29 + $0x70] sm:$0xff]  }
  0x2d   : > { %v415_v44 = vmax.f32 %v383_v36, 0.0  ;;  %444 = vst [vmem:[%s891_s17 + $0x50] sm:$0xff] %v412_v38  ;;  %445 = vst [vmem:[%s891_s17 + $0x58] sm:$0xff] %v413_v39  ;;  %v416_v48 = vmax.f32 %v384_v40, 0.0  ;;  %v617_v51 = vunpack.c.h.bf16 %v650_v37  ;;  %v286_v52 = vmul.f32 %v612_v45, %v842_v0  ;;  %v656_v37 = vld [vmem:[%s837_s29 + $0x78] sm:$0xff]   ;;  %s702_s29 = sshll.u32 %s762_s28, 4  ;;  %s703_s29 = int_to_ptr.vmem [resolvable:$false] %s702_s29 }
  0x2e   : > { %v417_v49 = vmax.f32 %v385_v41, 0.0  ;;  %446 = vst [vmem:[%s891_s17 + $0x60] sm:$0xff] %v414_v43  ;;  %v287_v53 = vmul.f32 %v613_v46, %v842_v0  ;;  %v620_v54 = vunpack.c.l.bf16 %v651_v42  ;;  %v621_v55 = vunpack.c.h.bf16 %v651_v42  ;;  %v362_v46 = vld [vmem:[%s848_s7 + $0xc0] sm:$0xff]  ;;  %s704_s30 = scalar_lea.vmem %s703_s29, 8192  ;;  %p705_p0 = scmp.lt.s32.totalorder %s1007_s20, %s703_s29 }
  0x2f   : > { %447 = vst [vmem:[%s891_s17 + $0x68] sm:$0xff] %v415_v44  ;;  %448 = vst [vmem:[%s891_s17 + $0x70] sm:$0xff] %v416_v48  ;;  %v288_v58 = vmul.f32 %v616_v50, %v842_v0  ;;  %v289_v59 = vmul.f32 %v617_v51, %v842_v0  ;;  %v624_v60 = vunpack.c.l.bf16 %v652_v47  ;;  %v625_v61 = vunpack.c.h.bf16 %v652_v47  ;;  %v363_v47 = vld [vmem:[%s848_s7 + $0xc8] sm:$0xff]  ;;  %p706_p1 = scmp.lt.s32.totalorder %s704_s30, %s698_s27 }
  0x30   : > { %449 = vst [vmem:[%s891_s17 + $0x78] sm:$0xff] %v417_v49  ;;  %v322_v62 = vadd.f32 %v855_v5, %v286_v52  ;;  %v323_v63 = vadd.f32 %v855_v5, %v287_v53  ;;  %v290_v3 = vmul.f32 %v620_v54, %v842_v0  ;;  %v291_v4 = vmul.f32 %v621_v55, %v842_v0  ;;  %v364_v54 = vld [vmem:[%s848_s7 + $0xd0] sm:$0xff]  ;;  %v365_v55 = vld [vmem:[%s848_s7 + $0xd8] sm:$0xff] }
  0x31   : > { %v324_v6 = vadd.f32 %v855_v5, %v288_v58  ;;  %v325_v7 = vadd.f32 %v855_v5, %v289_v59  ;;  %v292_v10 = vmul.f32 %v624_v60, %v842_v0  ;;  %v293_v11 = vmul.f32 %v625_v61, %v842_v0  ;;  %v366_v60 = vld [vmem:[%s848_s7 + $0xe0] sm:$0xff]  ;;  %v367_v61 = vld [vmem:[%s848_s7 + $0xe8] sm:$0xff]  ;;  %p707_p2 = por %p706_p1, %p705_p0 }
  0x32   : > { %v386_v12 = vadd.f32 %v354_v56, %v322_v62  ;;  %v387_v13 = vadd.f32 %v355_v57, %v323_v63  ;;  %v326_v14 = vadd.f32 %v855_v5, %v290_v3  ;;  %v327_v15 = vadd.f32 %v855_v5, %v291_v4 }
  0x33   : > { %v388_v18 = vadd.f32 %v356_v1, %v324_v6  ;;  %v389_v19 = vadd.f32 %v357_v2, %v325_v7  ;;  %v328_v20 = vadd.f32 %v855_v5, %v292_v10  ;;  %v329_v21 = vadd.f32 %v855_v5, %v293_v11  ;;  %v368_v6 = vld [vmem:[%s848_s7 + $0xf0] sm:$0xff]  ;;  %v369_v7 = vld [vmem:[%s848_s7 + $0xf8] sm:$0xff]  ;;  %p708_p3 = pnand %p707_p2, %p701_p13 }
  0x34   : > { %v418_v23 = vmax.f32 %v386_v12, 0.0  ;;  %v419_v24 = vmax.f32 %v387_v13, 0.0  ;;  %v390_v25 = vadd.f32 %v358_v8, %v326_v14  ;;  %v391_v26 = vadd.f32 %v359_v9, %v327_v15 }
  0x35   : > { %v420_v28 = vmax.f32 %v388_v18, 0.0  ;;  %v421_v29 = vmax.f32 %v389_v19, 0.0  ;;  %v392_v30 = vadd.f32 %v360_v16, %v328_v20  ;;  %v393_v31 = vadd.f32 %v361_v17, %v329_v21 }
  0x36   : > { %450 = vst [vmem:[%s891_s17 + $0x80] sm:$0xff] %v418_v23  ;;  %451 = vst [vmem:[%s891_s17 + $0x88] sm:$0xff] %v419_v24  ;;  %v422_v33 = vmax.f32 %v390_v25, 0.0  ;;  %v423_v34 = vmax.f32 %v391_v26, 0.0  ;;  %v628_v35 = vunpack.c.l.bf16 %v653_v22  ;;  %v629_v36 = vunpack.c.h.bf16 %v653_v22 }
  0x37   : > { %452 = vst [vmem:[%s891_s17 + $0x90] sm:$0xff] %v420_v28  ;;  %453 = vst [vmem:[%s891_s17 + $0x98] sm:$0xff] %v421_v29  ;;  %v424_v38 = vmax.f32 %v392_v30, 0.0  ;;  %v425_v39 = vmax.f32 %v393_v31, 0.0  ;;  %v632_v40 = vunpack.c.l.bf16 %v654_v27  ;;  %v633_v41 = vunpack.c.h.bf16 %v654_v27 }
  0x38   : > { %454 = vst [vmem:[%s891_s17 + $0xa0] sm:$0xff] %v422_v33  ;;  %455 = vst [vmem:[%s891_s17 + $0xa8] sm:$0xff] %v423_v34  ;;  %v294_v42 = vmul.f32 %v628_v35, %v842_v0  ;;  %v295_v43 = vmul.f32 %v629_v36, %v842_v0  ;;  %v636_v44 = vunpack.c.l.bf16 %v655_v32  ;;  %v637_v45 = vunpack.c.h.bf16 %v655_v32 }
  0x39   : > { %456 = vst [vmem:[%s891_s17 + $0xb0] sm:$0xff] %v424_v38  ;;  %457 = vst [vmem:[%s891_s17 + $0xb8] sm:$0xff] %v425_v39  ;;  %v296_v48 = vmul.f32 %v632_v40, %v842_v0  ;;  %v297_v49 = vmul.f32 %v633_v41, %v842_v0  ;;  %v640_v50 = vunpack.c.l.bf16 %v656_v37  ;;  %v641_v51 = vunpack.c.h.bf16 %v656_v37 }
  0x3a   : > { %v330_v52 = vadd.f32 %v855_v5, %v294_v42  ;;  %v331_v53 = vadd.f32 %v855_v5, %v295_v43  ;;  %v298_v56 = vmul.f32 %v636_v44, %v842_v0  ;;  %v299_v57 = vmul.f32 %v637_v45, %v842_v0 }
  0x3b   : > { %v332_v58 = vadd.f32 %v855_v5, %v296_v48  ;;  %v333_v59 = vadd.f32 %v855_v5, %v297_v49  ;;  %v300_v62 = vmul.f32 %v640_v50, %v842_v0  ;;  %v301_v63 = vmul.f32 %v641_v51, %v842_v0 }
  0x3c   : > { %v394_v1 = vadd.f32 %v362_v46, %v330_v52  ;;  %v395_v2 = vadd.f32 %v363_v47, %v331_v53  ;;  %v334_v3 = vadd.f32 %v855_v5, %v298_v56  ;;  %v335_v4 = vadd.f32 %v855_v5, %v299_v57 }
  0x3d   : > { %v396_v8 = vadd.f32 %v364_v54, %v332_v58  ;;  %v397_v9 = vadd.f32 %v365_v55, %v333_v59  ;;  %v336_v10 = vadd.f32 %v855_v5, %v300_v62  ;;  %v337_v11 = vadd.f32 %v855_v5, %v301_v63 }
  0x3e   : > { %v426_v0 = vmax.f32 %v394_v1, 0.0  ;;  %v427_v12 = vmax.f32 %v395_v2, 0.0  ;;  %v398_v13 = vadd.f32 %v366_v60, %v334_v3  ;;  %v399_v14 = vadd.f32 %v367_v61, %v335_v4 }
  0x3f   : > { %v428_v15 = vmax.f32 %v396_v8, 0.0  ;;  %v429_v16 = vmax.f32 %v397_v9, 0.0  ;;  %v400_v17 = vadd.f32 %v368_v6, %v336_v10  ;;  %v401_v18 = vadd.f32 %v369_v7, %v337_v11 }
  0x40   : > { %458 = vst [vmem:[%s891_s17 + $0xc0] sm:$0xff] %v426_v0  ;;  %459 = vst [vmem:[%s891_s17 + $0xc8] sm:$0xff] %v427_v12  ;;  %v430_v5 = vmax.f32 %v398_v13, 0.0  ;;  %v431_v19 = vmax.f32 %v399_v14, 0.0 }
  0x41   : > { %460 = vst [vmem:[%s891_s17 + $0xd0] sm:$0xff] %v428_v15  ;;  %461 = vst [vmem:[%s891_s17 + $0xd8] sm:$0xff] %v429_v16  ;;  %v432_v20 = vmax.f32 %v400_v17, 0.0  ;;  %v433_v21 = vmax.f32 %v401_v18, 0.0 }
  0x42   : > { %462 = vst [vmem:[%s891_s17 + $0xe0] sm:$0xff] %v430_v5  ;;  %463 = vst [vmem:[%s891_s17 + $0xe8] sm:$0xff] %v431_v19 }
  0x43   : > { %464 = vst [vmem:[%s891_s17 + $0xf0] sm:$0xff] %v432_v20  ;;  %465 = vst [vmem:[%s891_s17 + $0xf8] sm:$0xff] %v433_v21 }
  0x44   : > { %711 = shalt.err (!%p708_p3)
}
  0x45   : > { %s712_s4 = scalar_lea.hbm %s1005_s25, 4096  ;;  %s716_s7 = scalar_lea.hbm %s1061_s3, 8192 }
  0x46   : > { %p713_p4 = scmp.ne.s32.totalorder %s1005_s25, %s712_s4  ;;  %p717_p9 = scmp.lt.u32.totalorder %s1005_s25, %s1061_s3 }
  0x47   : > { %p718_p10 = scmp.lt.u32.totalorder %s716_s7, %s712_s4  ;;  %p720_p12 = scmp.lt.u32.totalorder %s712_s4, %s1005_s25 }
  0x48   : > { %p714_p7 = pnand %p713_p4, %p823_p5 }
  0x49   : > { %p719_p11 = por %p718_p10, %p717_p9 }
  0x4a   : > { %p715_p8 = pneg %p714_p7 }
  0x4b   : > { %p721_p13 = por %p720_p12, %p719_p11 }
  0x4d   : > { %p722_p0 = pnand %p721_p13, %p715_p8 }
  0x4f   : > { %725 = shalt.err (!%p722_p0)
}
  0x50   : > { %s763_s10 = smov 128   ;;  %s764_s11 = smov 8  }
  0x51   : > { %657 = dma.vmem_to_hbm [thread:$0]  (%p823_p5), %s1007_s20, 4096, %s1005_s25, %s1017_s26, %s763_s10, %s763_s10, %s764_s11  }
  0x52 PF: > { %p663_p1 = scmp.ge.s32.totalorder %s760_s15, 2  ;;  %s496_s17 = sand.u32 1, %s748_s12  }
  0x53   : > { %s497_s19 = scalar_lea.sflag [#allocation3], %s496_s17 }
  0x54   : > { %p660_p2 = pnand %p663_p1, %p827_p6 }
  0x56   : > { %743 = dma.done.wait (!%p660_p2), %s497_s19, 4096  }
  0x57   : > { %745 = vsyncadd (!%p660_p2), %s497_s19, 4294963200  ;;  %p13_p3 = scmp.ge.s32.totalorder %s810_s18, 4   ;;  %s1064_s12 = smov %s752_s13 }
  0x58   : > { %s1065_s13 = smov %s756_s14  ;;  %s1066_s14 = smov %s821_s21 }
  0x59   : > { %s1067_s15 = smov %s810_s18  ;;  %15 = sbr.rel (!%p13_p3) target bundleno = 3 (0x3), region = 70 }
  0x60   :  { %502 = vsyncpa [#allocation3], 1 }
  0x61   :  { %504 = vsyncpa [#allocation3 + $0x1], 1 }

// kernel: residual_layer.3
= control target key start
LH: loop header
LB: loop body
LE: loop exit
PB: predicated region body
PF: predicated region fallthrough
CT: control target
= control target key end

     0   :  { %s4619_s15 = smov 0   ;;  %s5357_s0 = inlined_call_operand.vmem [shape: f32[8,8,8,128], index: 0, kind: input, shape index: {}]   ;;  %s5358_s1 = inlined_call_operand.vmem [shape: f32[2,128], index: 1, kind: input, shape index: {}]   ;;  %s5359_s2 = inlined_call_operand.vmem [shape: bf16[1152,128], index: 2, kind: input, shape index: {}]   ;;  %s5360_s3 = inlined_call_operand.vmem [shape: bf16[8,8,8,128], index: 3, kind: output, shape index: {0}]   ;;  %s5361_s4 = inlined_call_operand.vmem [shape: f32[2,2,128], index: 4, kind: output, shape index: {1}]  }
   0x1 LB: > { %s4625_s1 = sadd.s32 4294967295, %s4590_s15   ;;  %p3435_p0 = scmp.ge.s32.totalorder %s4590_s15, 1  ;;  %s4590_s15 = sphi %s4619_s15, %s15_s15  }
   0x2   : > { %p167_p1 = scmp.lt.s32.totalorder %s4590_s15, 3 }
   0x4   : > { %p168_p2 = pnand %p3435_p0, %p167_p1 }
   0x5   : > { %v4303_v0 = vld [vmem:[%s5359_s2 + $0x40] sm:$0xff] (!%p168_p2)   ;;  %s3436_s18 = sshll.u32 (!%p168_p2), %s4625_s1, 2  ;;  %v4645_v2 = vld [vmem:[%s5359_s2 + $0x48] sm:$0xff] (!%p168_p2)   ;;  %v4592_v4 = vmov (!%p168_p2), 0.0   ;;  %v4307_v5 = vld [vmem:[%s5359_s2 + $0x50] sm:$0xff] (!%p168_p2)   ;;  %v4593_v6 = vmov (!%p168_p2), 0.0|0.0  }
   0x6   : > { %171 = sbr.rel (%p168_p2) target bundleno = 612 (0x264), region = 32  ;;  %v4304_v1 = vld [vmem:[%s5359_s2] sm:$0xff] (!%p168_p2)   ;;  %p4638_p3 = scmp.lt.s32.totalorder (!%p168_p2), %s3436_s18, 7  ;;  %3758 = vmatprep.subr.bf16.mxu0 (!%p168_p2), %v4303_v0  ;;  %4278 = vmatprep.subr.bf16.mxu1 (!%p168_p2), %v4303_v0  ;;  %v4650_v3 = vld [vmem:[%s5359_s2 + $0x8] sm:$0xff] (!%p168_p2)   ;;  %250 = vst [vmem:[#allocation2] sm:$0xff] (!%p168_p2), %v4592_v4  ;;  %252 = vst [vmem:[#allocation2 + $0xa0] sm:$0xff] (!%p168_p2), %v4592_v4 }
   0x7   : > { %3759 = vmatpush3.bf16.msra.mxu0 (!%p168_p2), %v4304_v1  ;;  %4286 = vmatpush3.bf16.msra.mxu1 (!%p168_p2), %v4304_v1  ;;  %251 = vst [vmem:[#allocation2 + $0x8] sm:$0x3] (!%p168_p2), %v4592_v4  ;;  %268 = vst [vmem:[#allocation2 + $0x10] sm:$0x1] (!%p168_p2), %v4592_v4  ;;  %v4308_v7 = vld [vmem:[%s5359_s2 + $0x10] sm:$0xff] (!%p168_p2)   ;;  %v4309_v8 = vld [vmem:[%s5359_s2 + $0x58] sm:$0xff] (!%p168_p2)  }
   0x8   : > { %253 = vst [vmem:[#allocation2 + $0xa8] sm:$0x3] (!%p168_p2), %v4592_v4  ;;  %254 = vst [vmem:[#allocation2 + $0x140] sm:$0xff] (!%p168_p2), %v4592_v4  ;;  %3760 = vmatprep.subr.bf16.mxu0 (!%p168_p2), %v4645_v2  ;;  %4279 = vmatprep.subr.bf16.mxu1 (!%p168_p2), %v4645_v2  ;;  %v4310_v9 = vld [vmem:[%s5359_s2 + $0x18] sm:$0xff] (!%p168_p2)   ;;  %v4311_v10 = vld [vmem:[%s5359_s2 + $0x60] sm:$0xff] (!%p168_p2)   ;;  %p213_p4 = scmp.lt.s32.totalorder (!%p168_p2), %s4625_s1, 1 }
   0x9   : > { %255 = vst [vmem:[#allocation2 + $0x148] sm:$0x3] (!%p168_p2), %v4592_v4  ;;  %256 = vst [vmem:[#allocation2 + $0x1e0] sm:$0xff] (!%p168_p2), %v4592_v4  ;;  %v4312_v11 = vld [vmem:[%s5359_s2 + $0x20] sm:$0xff] (!%p168_p2)   ;;  %v4313_v12 = vld [vmem:[%s5359_s2 + $0x68] sm:$0xff] (!%p168_p2)   ;;  %vm3339_vm0 = vcmask (!%p168_p2), 1040384  }
   0xa   : > { %257 = vst [vmem:[#allocation2 + $0x1e8] sm:$0x3] (!%p168_p2), %v4592_v4  ;;  %259 = vst [vmem:[#allocation2 + $0x90] sm:$0xff] (!%p168_p2), %v4592_v4  ;;  %v4314_v21 = vld [vmem:[%s5359_s2 + $0x28] sm:$0xff] (!%p168_p2)   ;;  %v4315_v22 = vld [vmem:[%s5359_s2 + $0x70] sm:$0xff] (!%p168_p2)  }
   0xb   : > { %260 = vst [vmem:[#allocation2 + $0x98] sm:$0x3] (!%p168_p2), %v4592_v4  ;;  %261 = vst [vmem:[#allocation2 + $0x130] sm:$0xff] (!%p168_p2), %v4592_v4  ;;  %3761 = vmatpush3.bf16.msra.mxu0 (!%p168_p2), %v4650_v3  ;;  %4287 = vmatpush3.bf16.msra.mxu1 (!%p168_p2), %v4650_v3  ;;  %v4316_v23 = vld [vmem:[%s5359_s2 + $0x30] sm:$0xff] (!%p168_p2)   ;;  %v4317_v24 = vld [vmem:[%s5359_s2 + $0x78] sm:$0xff] (!%p168_p2)  }
   0xc   : > { %262 = vst [vmem:[#allocation2 + $0x138] sm:$0x3] (!%p168_p2), %v4592_v4  ;;  %263 = vst [vmem:[#allocation2 + $0x1d0] sm:$0xff] (!%p168_p2), %v4592_v4  ;;  %3762 = vmatprep.subr.bf16.mxu0 (!%p168_p2), %v4307_v5  ;;  %4280 = vmatprep.subr.bf16.mxu1 (!%p168_p2), %v4307_v5  ;;  %v4318_v36 = vld [vmem:[%s5359_s2 + $0x38] sm:$0xff] (!%p168_p2)   ;;  %v4325_v38 = vld [vmem:[%s5359_s2 + $0xc0] sm:$0xff] (!%p168_p2)  }
   0xd   : > { %264 = vst [vmem:[#allocation2 + $0x1d8] sm:$0x3] %v4592_v4  ;;  %265 = vst [vmem:[#allocation2 + $0x270] sm:$0xff] %v4592_v4  ;;  %s5364_s18 = smov (!%p4638_p3, %s3436_s18), 7  ;;  %v4326_v39 = vld [vmem:[%s5359_s2 + $0x140] sm:$0xff]   ;;  %v4340_v49 = vld [vmem:[%s5359_s2 + $0x148] sm:$0xff]  }
   0xe   : > { %266 = vst [vmem:[#allocation2 + $0x278] sm:$0x3] %v4592_v4  ;;  %269 = vst [vmem:[#allocation2 + $0x20] sm:$0x1] %v4592_v4  ;;  %s3661_s6 = sshll.u32 %s5364_s18, 6  ;;  %v540_v14 = vld [vmem:[#allocation2 + $0x1] sm:$0xff] }
   0xf   : > { %270 = vst [vmem:[#allocation2 + $0x30] sm:$0x1] %v4592_v4  ;;  %271 = vst [vmem:[#allocation2 + $0x40] sm:$0x1] %v4592_v4  ;;  %3763 = vmatpush3.bf16.msra.mxu0 %v4308_v7  ;;  %4288 = vmatpush3.bf16.msra.mxu1 %v4308_v7  ;;  %s4761_s13 = scalar_lea.vmem %s5357_s0, %s3661_s6  ;;  %v580_v16 = vpack.c.bf16 %v540_v14, %v540_v14  ;;  %v4328_v42 = vld [vmem:[%s5359_s2 + $0x100] sm:$0xff]   ;;  %v4329_v54 = vld [vmem:[%s5359_s2 + $0xc8] sm:$0xff]  }
  0x10   : > { %272 = vst [vmem:[#allocation2 + $0x50] sm:$0x1] %v4592_v4  ;;  %273 = vst [vmem:[#allocation2 + $0x60] sm:$0x1] %v4592_v4  ;;  %3764 = vmatprep.subr.bf16.mxu0 %v4309_v8  ;;  %4281 = vmatprep.subr.bf16.mxu1 %v4309_v8  ;;  %v218_v13 = vld [vmem:[%s4761_s13] sm:$0xff]  ;;  %v219_v25 = vld [vmem:[%s4761_s13 + $0x8] sm:$0xff] }
  0x11   : > { %274 = vst [vmem:[#allocation2 + $0x70] sm:$0x1] %v4592_v4  ;;  %275 = vst [vmem:[#allocation2 + $0x80] sm:$0x1] %v4592_v4  ;;  %v242_v15 = vld [vmem:[%s4761_s13 + $0xc0] sm:$0xff]  ;;  %v581_v17 = vpack.c.bf16 %v218_v13, %v218_v13  ;;  %v220_v26 = vld [vmem:[%s4761_s13 + $0x10] sm:$0xff]  ;;  %v582_v29 = vpack.c.bf16 %v219_v25, %v219_v25 }
  0x12   : > { %276 = vst [vmem:[#allocation2 + $0xb0] sm:$0x1] %v4592_v4  ;;  %277 = vst [vmem:[#allocation2 + $0xc0] sm:$0x1] %v4592_v4  ;;  %v570_v18 = vld [vmem:[#allocation2 + $0x1e1] sm:$0xff]  ;;  %v611_v19 = vpack.c.bf16 %v242_v15, %v242_v15  ;;  %v583_v30 = vpack.c.bf16 %v220_v26, %v220_v26  ;;  %v244_v34 = vld [vmem:[%s4761_s13 + $0xd0] sm:$0xff] }
  0x13   : > { %278 = vst [vmem:[#allocation2 + $0xd0] sm:$0x1] %v4592_v4  ;;  %279 = vst [vmem:[#allocation2 + $0xe0] sm:$0x1] %v4592_v4  ;;  %3765 = vmatpush3.bf16.msra.mxu0 %v4310_v9  ;;  %4289 = vmatpush3.bf16.msra.mxu1 %v4310_v9  ;;  %v610_v20 = vpack.c.bf16 %v570_v18, %v570_v18  ;;  %v243_v31 = vld [vmem:[%s4761_s13 + $0xc8] sm:$0xff]  ;;  %v613_v37 = vpack.c.bf16 %v244_v34, %v244_v34  ;;  %v4327_v46 = vld [vmem:[%s5359_s2 + $0x80] sm:$0xff]  }
  0x14   : > { %280 = vst [vmem:[#allocation2 + $0xf0] sm:$0x1] %v4592_v4  ;;  %281 = vst [vmem:[#allocation2 + $0x100] sm:$0x1] %v4592_v4  ;;  %3766 = vmatprep.subr.bf16.mxu0 %v4311_v10  ;;  %4282 = vmatprep.subr.bf16.mxu1 %v4311_v10  ;;  %v612_v35 = vpack.c.bf16 %v243_v31, %v243_v31  ;;  %v221_v50 = vld [vmem:[%s4761_s13 + $0x18] sm:$0xff]  ;;  %v222_v51 = vld [vmem:[%s4761_s13 + $0x20] sm:$0xff] }
  0x15   : > { %282 = vst [vmem:[#allocation2 + $0x110] sm:$0x1] %v4592_v4  ;;  %283 = vst [vmem:[#allocation2 + $0x120] sm:$0x1] %v4592_v4  ;;  %v584_v56 = vpack.c.bf16 %v221_v50, %v221_v50  ;;  %v585_v57 = vpack.c.bf16 %v222_v51, %v222_v51  ;;  %v245_v60 = vld [vmem:[%s4761_s13 + $0xd8] sm:$0xff]  ;;  %v246_v61 = vld [vmem:[%s4761_s13 + $0xe0] sm:$0xff] }
  0x16   : > { %284 = vst [vmem:[#allocation2 + $0x150] sm:$0x1] %v4592_v4  ;;  %285 = vst [vmem:[#allocation2 + $0x160] sm:$0x1] %v4592_v4  ;;  %v614_v62 = vpack.c.bf16 %v245_v60, %v245_v60  ;;  %v615_v63 = vpack.c.bf16 %v246_v61, %v246_v61  ;;  %v4342_v0 = vld [vmem:[%s5359_s2 + $0x108] sm:$0xff]   ;;  %v4337_v2 = vld [vmem:[%s5359_s2 + $0xd0] sm:$0xff]  }
  0x17   : > { %286 = vst [vmem:[#allocation2 + $0x170] sm:$0x1] %v4592_v4  ;;  %287 = vst [vmem:[#allocation2 + $0x180] sm:$0x1] %v4592_v4  ;;  %3767 = vmatpush3.bf16.msra.mxu0 %v4312_v11  ;;  %4290 = vmatpush3.bf16.msra.mxu1 %v4312_v11  ;;  %v4330_v1 = vld [vmem:[%s5359_s2 + $0x88] sm:$0xff]   ;;  %v4338_v5 = vld [vmem:[%s5359_s2 + $0x90] sm:$0xff]  }
  0x18   : > { %288 = vst [vmem:[#allocation2 + $0x190] sm:$0x1] %v4592_v4  ;;  %289 = vst [vmem:[#allocation2 + $0x1a0] sm:$0x1] %v4592_v4  ;;  %3768 = vmatprep.subr.bf16.mxu0 %v4313_v12  ;;  %4283 = vmatprep.subr.bf16.mxu1 %v4313_v12  ;;  %v223_v3 = vld [vmem:[%s4761_s13 + $0x28] sm:$0xff]  ;;  %v4339_v8 = vld [vmem:[%s5359_s2 + $0xd8] sm:$0xff]  }
  0x19   : > { %290 = vst [vmem:[#allocation2 + $0x1b0] sm:$0x1] %v4592_v4  ;;  %291 = vst [vmem:[#allocation2 + $0x1c0] sm:$0x1] %v4592_v4  ;;  %s3662_s26 = sshll.u32 %s5364_s18, 5  ;;  %s5366_s1 = smov (!%p213_p4, %s4625_s1), 1 }
  0x1a   : > { %292 = vst [vmem:[#allocation2 + $0x1f0] sm:$0x1] %v4592_v4  ;;  %293 = vst [vmem:[#allocation2 + $0x200] sm:$0x1] %v4592_v4  ;;  %s5287_s29 = scalar_lea.vmem %s5360_s3, %s3662_s26  ;;  %s3442_s18 = sshll.u32 %s5366_s1, 1 }
  0x1b   : > { %294 = vst [vmem:[#allocation2 + $0x210] sm:$0x1] %v4592_v4  ;;  %295 = vst [vmem:[#allocation2 + $0x220] sm:$0x1] %v4592_v4  ;;  %3769 = vmatpush3.bf16.msra.mxu0 %v4314_v21  ;;  %4291 = vmatpush3.bf16.msra.mxu1 %v4314_v21  ;;  %v247_v21 = vld [vmem:[%s4761_s13 + $0xe8] sm:$0xff]  ;;  %s216_s6 = scalar_lea.vmem %s5361_s4, %s3442_s18 }
  0x1c   : > { %296 = vst [vmem:[#allocation2 + $0x230] sm:$0x1] %v4592_v4  ;;  %297 = vst [vmem:[#allocation2 + $0x240] sm:$0x1] %v4592_v4  ;;  %3770 = vmatprep.subr.bf16.mxu0 %v4315_v22  ;;  %4284 = vmatprep.subr.bf16.mxu1 %v4315_v22  ;;  %v248_v22 = vld [vmem:[%s4761_s13 + $0xf0] sm:$0xff] }
  0x1d   : > { %298 = vst [vmem:[#allocation2 + $0x250] sm:$0x1] %v4592_v4  ;;  %299 = vst [vmem:[#allocation2 + $0x260] sm:$0x1] %v4592_v4 }
  0x1e   : > { %300 = vst [vmem:[#allocation2 + $0x19] sm:$0x1] %v4592_v4  ;;  %301 = vst [vmem:[#allocation2 + $0x29] sm:$0x1] %v4592_v4 }
  0x1f   : > { %302 = vst [vmem:[#allocation2 + $0x39] sm:$0x1] %v4592_v4  ;;  %303 = vst [vmem:[#allocation2 + $0x49] sm:$0x1] %v4592_v4  ;;  %3771 = vmatpush3.bf16.msra.mxu0 %v4316_v23  ;;  %4292 = vmatpush3.bf16.msra.mxu1 %v4316_v23  ;;  %v4349_v23 = vld [vmem:[%s5359_s2 + $0xe0] sm:$0xff]  }
  0x20   : > { %304 = vst [vmem:[#allocation2 + $0x59] sm:$0x1] %v4592_v4  ;;  %305 = vst [vmem:[#allocation2 + $0x69] sm:$0x1] %v4592_v4  ;;  %3772 = vmatprep.subr.bf16.mxu0 %v4317_v24  ;;  %4285 = vmatprep.subr.bf16.mxu1 %v4317_v24 }
  0x21   : > { %306 = vst [vmem:[#allocation2 + $0x79] sm:$0x1] %v4592_v4  ;;  %307 = vst [vmem:[#allocation2 + $0x89] sm:$0x1] %v4592_v4 }
  0x22   : > { %308 = vst [vmem:[#allocation2 + $0xb9] sm:$0x1] %v4592_v4  ;;  %309 = vst [vmem:[#allocation2 + $0xc9] sm:$0x1] %v4592_v4 }
  0x23   : > { %310 = vst [vmem:[#allocation2 + $0xd9] sm:$0x1] %v4592_v4  ;;  %311 = vst [vmem:[#allocation2 + $0xe9] sm:$0x1] %v4592_v4  ;;  %3773 = vmatpush3.bf16.msra.mxu0 %v4318_v36  ;;  %4293 = vmatpush3.bf16.msra.mxu1 %v4318_v36 }
  0x24   : > { %312 = vst [vmem:[#allocation2 + $0xf9] sm:$0x1] %v4592_v4  ;;  %313 = vst [vmem:[#allocation2 + $0x109] sm:$0x1] %v4592_v4  ;;  %3870 = vmatprep.subr.bf16.mxu1 %v4325_v38  ;;  %3982 = vmatprep.subr.bf16.mxu0 %v4326_v39 }
  0x25   : > { %314 = vst [vmem:[#allocation2 + $0x119] sm:$0x1] %v4592_v4  ;;  %315 = vst [vmem:[#allocation2 + $0x129] sm:$0x1] %v4592_v4 }
  0x26   : > { %316 = vst [vmem:[#allocation2 + $0x159] sm:$0x1] %v4592_v4  ;;  %317 = vst [vmem:[#allocation2 + $0x169] sm:$0x1] %v4592_v4 }
  0x27   : > { %318 = vst [vmem:[#allocation2 + $0x179] sm:$0x1] %v4592_v4  ;;  %319 = vst [vmem:[#allocation2 + $0x189] sm:$0x1] %v4592_v4 }
  0x28   : > { %320 = vst [vmem:[#allocation2 + $0x199] sm:$0x1] %v4592_v4  ;;  %321 = vst [vmem:[#allocation2 + $0x1a9] sm:$0x1] %v4592_v4 }
  0x29   : > { %322 = vst [vmem:[#allocation2 + $0x1b9] sm:$0x1] %v4592_v4  ;;  %323 = vst [vmem:[#allocation2 + $0x1c9] sm:$0x1] %v4592_v4 }
  0x2a   : > { %324 = vst [vmem:[#allocation2 + $0x1f9] sm:$0x1] %v4592_v4  ;;  %325 = vst [vmem:[#allocation2 + $0x209] sm:$0x1] %v4592_v4 }
  0x2b   : > { %326 = vst [vmem:[#allocation2 + $0x219] sm:$0x1] %v4592_v4  ;;  %327 = vst [vmem:[#allocation2 + $0x229] sm:$0x1] %v4592_v4 }
  0x2c   : > { %328 = vst [vmem:[#allocation2 + $0x239] sm:$0x1] %v4592_v4  ;;  %329 = vst [vmem:[#allocation2 + $0x249] sm:$0x1] %v4592_v4 }
  0x2d   : > { %330 = vst [vmem:[#allocation2 + $0x259] sm:$0x1] %v4592_v4  ;;  %331 = vst [vmem:[#allocation2 + $0x269] sm:$0x1] %v4592_v4 }
  0x2e   : > { %444 = vst [vmem:[#allocation3] sm:$0xf] %v4593_v6  ;;  %468 = vst [vmem:[#allocation3 + $0x360] sm:$0xf] %v4593_v6 }
  0x2f   : > { %452 = vst [vmem:[#allocation3 + $0x120] sm:$0xf] %v4593_v6  ;;  %460 = vst [vmem:[#allocation3 + $0x240] sm:$0xf] %v4593_v6  ;;  %v586_v6 = vpack.c.bf16 %v223_v3, %v223_v3 }
  0x30   : > { %332 = vst [vmem:[#allocation2 + $0x11] sm:$0xff] %v218_v13  ;;  %356 = vst [vmem:[#allocation2 + $0x1f1] sm:$0xff] %v242_v15 }
  0x31   : > { %620 = vst [vmem:[#allocation3 + $0x4] sm:$0xf] %v580_v16  ;;  %621 = vst [vmem:[#allocation3 + $0x28] sm:$0xf] %v581_v17  ;;  %v4341_v16 = vld [vmem:[%s5359_s2 + $0x98] sm:$0xff]  }
  0x32   : > { %652 = vst [vmem:[#allocation3 + $0x10] sm:$0xf] %v581_v17  ;;  %645 = vst [vmem:[#allocation3 + $0x388] sm:$0xf] %v611_v19 }
  0x33   : > { %676 = vst [vmem:[#allocation3 + $0x370] sm:$0xf] %v611_v19  ;;  %644 = vst [vmem:[#allocation3 + $0x364] sm:$0xf] %v610_v20  ;;  %v224_v20 = vld [vmem:[%s4761_s13 + $0x30] sm:$0xff] }
  0x34   : > { %333 = vst [vmem:[#allocation2 + $0x21] sm:$0xff] %v219_v25  ;;  %334 = vst [vmem:[#allocation2 + $0x31] sm:$0xff] %v220_v26  ;;  %v587_v24 = vpack.c.bf16 %v224_v20, %v224_v20  ;;  %v616_v25 = vpack.c.bf16 %v247_v21, %v247_v21  ;;  %v617_v26 = vpack.c.bf16 %v248_v22, %v248_v22 }
  0x35   : > { %357 = vst [vmem:[#allocation2 + $0x201] sm:$0xff] %v243_v31  ;;  %622 = vst [vmem:[#allocation3 + $0x4c] sm:$0xf] %v582_v29  ;;  %v4350_v31 = vld [vmem:[%s5359_s2 + $0xa0] sm:$0xff]  }
  0x36   : > { %623 = vst [vmem:[#allocation3 + $0x70] sm:$0xf] %v583_v30  ;;  %653 = vst [vmem:[#allocation3 + $0x34] sm:$0xf] %v582_v29 }
  0x37   : > { %v365_v27 = vld [vmem:[#allocation2 + $0x10] sm:$0xff]  ;;  %654 = vst [vmem:[#allocation3 + $0x58] sm:$0xf] %v583_v30  ;;  %684 = vst [vmem:[#allocation3 + $0x1c] sm:$0xf] %v582_v29 }
  0x38   : > { %v395_v28 = vld [vmem:[#allocation2 + $0x1f0] sm:$0xff]  ;;  %v405_v32 = vpack.c.bf16 %v365_v27, %v365_v27  ;;  %685 = vst [vmem:[#allocation3 + $0x40] sm:$0xf] %v583_v30  ;;  %358 = vst [vmem:[#allocation2 + $0x211] sm:$0xff] %v244_v34  ;;  %v4321_v53 = vld [vmem:[#allocation3 + $0x4] ss:$36 sps:$4 sm:$0xff]  }
  0x39   : > { %v435_v33 = vpack.c.bf16 %v395_v28, %v395_v28  ;;  %646 = vst [vmem:[#allocation3 + $0x3ac] sm:$0xf] %v612_v35  ;;  %677 = vst [vmem:[#allocation3 + $0x394] sm:$0xf] %v612_v35  ;;  %2396 = vmatprep.mubr.bf16.mxu0 %v4321_v53  ;;  %v4360_v27 = vld [vmem:[%s5359_s2 + $0x150] sm:$0xff]   ;;  %v4352_v34 = vld [vmem:[%s5359_s2 + $0xa8] sm:$0xff]  }
  0x3a   : > { %445 = vst [vmem:[#allocation3 + $0x24] sm:$0xf] %v405_v32  ;;  %476 = vst [vmem:[#allocation3 + $0xc] sm:$0xf] %v405_v32  ;;  %v4324_v59 = vld [vmem:[#allocation3 + $0x364] ss:$36 sps:$4 sm:$0xff]  }
  0x3b   : > { %469 = vst [vmem:[#allocation3 + $0x384] sm:$0xf] %v435_v33  ;;  %500 = vst [vmem:[#allocation3 + $0x36c] sm:$0xf] %v435_v33  ;;  %v366_v40 = vld [vmem:[#allocation2 + $0x20] sm:$0xff]  ;;  %v367_v41 = vld [vmem:[#allocation2 + $0x30] sm:$0xff]  ;;  %2492 = vmatprep.mubr.bf16.mxu1 %v4324_v59 }
  0x3c   : > { %708 = vst [vmem:[#allocation3 + $0x37c] sm:$0xf] %v612_v35  ;;  %647 = vst [vmem:[#allocation3 + $0x3d0] sm:$0xf] %v613_v37  ;;  %v406_v43 = vpack.c.bf16 %v366_v40, %v366_v40  ;;  %v407_v44 = vpack.c.bf16 %v367_v41, %v367_v41  ;;  %v396_v45 = vld [vmem:[#allocation2 + $0x200] sm:$0xff]  ;;  %v4362_v30 = vld [vmem:[%s5359_s2 + $0x110] sm:$0xff]  }
  0x3d   : > { %678 = vst [vmem:[#allocation3 + $0x3b8] sm:$0xf] %v613_v37  ;;  %709 = vst [vmem:[#allocation3 + $0x3a0] sm:$0xf] %v613_v37  ;;  %v436_v48 = vpack.c.bf16 %v396_v45, %v396_v45  ;;  %v4331_v4 = vld [vmem:[#allocation3 + $0x4c] ss:$36 sps:$4 sm:$0xff]  }
  0x3e   : > { %446 = vst [vmem:[#allocation3 + $0x48] sm:$0xf] %v406_v43  ;;  %447 = vst [vmem:[#allocation3 + $0x6c] sm:$0xf] %v407_v44  ;;  %v4351_v32 = vld [vmem:[%s5359_s2 + $0xe8] sm:$0xff]   ;;  %v226_v33 = vld [vmem:[%s4761_s13 + $0x40] sm:$0xff] }
  0x3f   : > { %v397_v47 = vld [vmem:[#allocation2 + $0x210] sm:$0xff]  ;;  %477 = vst [vmem:[#allocation3 + $0x30] sm:$0xf] %v406_v43  ;;  %478 = vst [vmem:[#allocation3 + $0x54] sm:$0xf] %v407_v44  ;;  %v591_v38 = vpack.c.bf16 %v226_v33, %v226_v33  ;;  %v4364_v59 = vld [vmem:[%s5359_s2 + $0xb8] sm:$0xff]  }
  0x40   : > { %508 = vst [vmem:[#allocation3 + $0x18] sm:$0xf] %v406_v43  ;;  %509 = vst [vmem:[#allocation3 + $0x3c] sm:$0xf] %v407_v44  ;;  %v437_v55 = vpack.c.bf16 %v397_v47, %v397_v47  ;;  %v4359_v43 = vld [vmem:[%s5359_s2 + $0xf0] sm:$0xff]   ;;  %v550_v47 = vld [vmem:[#allocation2 + $0xa1] sm:$0xff] }
  0x41   : > { %v4319_v52 = vld [vmem:[#allocation3] ss:$36 sps:$4 sm:$0xff]   ;;  %335 = vst [vmem:[#allocation2 + $0x41] sm:$0xff] %v221_v50  ;;  %336 = vst [vmem:[#allocation2 + $0x51] sm:$0xff] %v222_v51  ;;  %v717_v50 = vld [vmem:[#allocation2 + $0x12] sm:$0xff] }
  0x42   : > { %v4322_v58 = vld [vmem:[#allocation3 + $0x360] ss:$36 sps:$4 sm:$0xff]   ;;  %470 = vst [vmem:[#allocation3 + $0x3a8] sm:$0xf] %v436_v48  ;;  %501 = vst [vmem:[#allocation3 + $0x390] sm:$0xf] %v436_v48  ;;  %2397 = vmatmul.mubr.bf16.vlgmr.msra.gmra.mrb[0].mxu0 %v4319_v52  ;;  %v757_v53 = vpack.c.bf16 %v717_v50, %v717_v50 }
  0x43   : > { %532 = vst [vmem:[#allocation3 + $0x378] sm:$0xf] %v436_v48  ;;  %471 = vst [vmem:[#allocation3 + $0x3cc] sm:$0xf] %v437_v55  ;;  %2493 = vmatmul.mubr.bf16.vlgmr.msra.gmra.mrb[0].mxu1 %v4322_v58  ;;  %3983 = vmatpush3.bf16.msra.mxu0 %v4328_v42  ;;  %v4333_v10 = vld [vmem:[#allocation3 + $0x3ac] ss:$36 sps:$4 sm:$0xff]  }
  0x44   : > { %502 = vst [vmem:[#allocation3 + $0x3b4] sm:$0xf] %v437_v55  ;;  %533 = vst [vmem:[#allocation3 + $0x39c] sm:$0xf] %v437_v55  ;;  %3871 = vmatpush3.bf16.msra.mxu1 %v4327_v46  ;;  %3984 = vmatprep.subr.bf16.mxu0 %v4340_v49  ;;  %v716_v48 = vld [vmem:[#allocation2 + $0x2] sm:$0xff]  ;;  %v590_v49 = vpack.c.bf16 %v550_v47, %v550_v47  ;;  %v4361_v52 = vld [vmem:[%s5359_s2 + $0xb0] sm:$0xff]  }
  0x45   : > { %624 = vst [vmem:[#allocation3 + $0x94] sm:$0xf] %v584_v56  ;;  %625 = vst [vmem:[#allocation3 + $0xb8] sm:$0xf] %v585_v57  ;;  %3872 = vmatprep.subr.bf16.mxu1 %v4329_v54  ;;  %v4335_v7 = vld [vmem:[#allocation3 + $0x48] ss:$36 sps:$4 sm:$0xff]   ;;  %2404 = vmatprep.mubr.bf16.mxu0 %v4331_v4  ;;  %v756_v51 = vpack.c.bf16 %v716_v48, %v716_v48 }
  0x46   : > { %655 = vst [vmem:[#allocation3 + $0x7c] sm:$0xf] %v584_v56  ;;  %656 = vst [vmem:[#allocation3 + $0xa0] sm:$0xf] %v585_v57  ;;  %2500 = vmatprep.mubr.bf16.mxu1 %v4333_v10  ;;  %v4363_v54 = vld [vmem:[%s5359_s2 + $0xf8] sm:$0xff]   ;;  %v230_v10 = vld [vmem:[%s4761_s13 + $0x60] sm:$0xff] }
  0x47   : > { %686 = vst [vmem:[#allocation3 + $0x64] sm:$0xf] %v584_v56  ;;  %687 = vst [vmem:[#allocation3 + $0x88] sm:$0xf] %v585_v57  ;;  %3985 = vmatpush3.bf16.msra.mxu0 %v4342_v0  ;;  %v4373_v56 = vld [vmem:[%s5359_s2 + $0x158] sm:$0xff]   ;;  %v4371_v0 = vld [vmem:[%s5359_s2 + $0x1c0] sm:$0xff]  }
  0x48   : > { %359 = vst [vmem:[#allocation2 + $0x221] sm:$0xff] %v245_v60  ;;  %360 = vst [vmem:[#allocation2 + $0x231] sm:$0xff] %v246_v61  ;;  %v368_v9 = vld [vmem:[#allocation2 + $0x40] sm:$0xff]  ;;  %3873 = vmatpush3.bf16.msra.mxu1 %v4330_v1  ;;  %v369_v13 = vld [vmem:[#allocation2 + $0x50] sm:$0xff]  ;;  %3986 = vmatprep.subr.bf16.mxu0 %v4360_v27 }
  0x49   : > { %648 = vst [vmem:[#allocation3 + $0x3f4] sm:$0xf] %v614_v62  ;;  %649 = vst [vmem:[#allocation3 + $0x418] sm:$0xf] %v615_v63  ;;  %v408_v12 = vpack.c.bf16 %v368_v9, %v368_v9  ;;  %3874 = vmatprep.subr.bf16.mxu1 %v4337_v2  ;;  %v409_v17 = vpack.c.bf16 %v369_v13, %v369_v13  ;;  %v4374_v58 = vld [vmem:[%s5359_s2 + $0x118] sm:$0xff]   ;;  %v227_v60 = vld [vmem:[%s4761_s13 + $0x48] sm:$0xff]  ;;  %v595_v13 = vpack.c.bf16 %v230_v10, %v230_v10 }
  0x4a   : > { %679 = vst [vmem:[#allocation3 + $0x3dc] sm:$0xf] %v614_v62  ;;  %680 = vst [vmem:[#allocation3 + $0x400] sm:$0xf] %v615_v63  ;;  %v4336_v11 = vld [vmem:[#allocation3 + $0x3a8] ss:$36 sps:$4 sm:$0xff]   ;;  %2405 = vmatmul.mubr.bf16.gmra.mrb[4].mxu0 %v4335_v7  ;;  %v592_v1 = vpack.c.bf16 %v227_v60, %v227_v60 }
  0x4b   : > { %710 = vst [vmem:[#allocation3 + $0x3c4] sm:$0xf] %v614_v62  ;;  %711 = vst [vmem:[#allocation3 + $0x3e8] sm:$0xf] %v615_v63  ;;  %2501 = vmatmul.mubr.bf16.gmra.mrb[4].mxu1 %v4336_v11  ;;  %3987 = vmatpush3.bf16.msra.mxu0 %v4362_v30  ;;  %v228_v61 = vld [vmem:[%s4761_s13 + $0x50] sm:$0xff]  ;;  %v718_v62 = vld [vmem:[#allocation2 + $0x22] sm:$0xff] }
  0x4c   : > { %337 = vst [vmem:[#allocation2 + $0x61] sm:$0xff] %v223_v3  ;;  %626 = vst [vmem:[#allocation3 + $0xdc] sm:$0xf] %v586_v6  ;;  %3875 = vmatpush3.bf16.msra.mxu1 %v4338_v5  ;;  %v4343_v39 = vld [vmem:[#allocation3 + $0x94] ss:$36 sps:$4 sm:$0xff]   ;;  %3988 = vmatprep.subr.bf16.mxu0 %v4373_v56  ;;  %v593_v2 = vpack.c.bf16 %v228_v61, %v228_v61  ;;  %v758_v3 = vpack.c.bf16 %v718_v62, %v718_v62  ;;  %v4388_v27 = vld [vmem:[%s5359_s2 + $0x1c8] sm:$0xff]  }
  0x4d   : > { %657 = vst [vmem:[#allocation3 + $0xc4] sm:$0xf] %v586_v6  ;;  %688 = vst [vmem:[#allocation3 + $0xac] sm:$0xf] %v586_v6  ;;  %3876 = vmatprep.subr.bf16.mxu1 %v4339_v8  ;;  %2412 = vmatprep.mubr.bf16.mxu0 %v4343_v39  ;;  %v719_v7 = vld [vmem:[#allocation2 + $0x32] sm:$0xff]  ;;  %v4397_v47 = vld [vmem:[%s5359_s2 + $0x168] sm:$0xff]  }
  0x4e   : > { %448 = vst [vmem:[#allocation3 + $0x90] sm:$0xf] %v408_v12  ;;  %479 = vst [vmem:[#allocation3 + $0x78] sm:$0xf] %v408_v12  ;;  %v229_v8 = vld [vmem:[%s4761_s13 + $0x58] sm:$0xff]  ;;  %v759_v9 = vpack.c.bf16 %v719_v7, %v719_v7  ;;  %v4398_v50 = vld [vmem:[%s5359_s2 + $0x128] sm:$0xff]  }
  0x4f   : > { %v398_v14 = vld [vmem:[#allocation2 + $0x220] sm:$0xff]  ;;  %v399_v15 = vld [vmem:[#allocation2 + $0x230] sm:$0xff]  ;;  %510 = vst [vmem:[#allocation3 + $0x60] sm:$0xf] %v408_v12  ;;  %338 = vst [vmem:[#allocation2 + $0x71] sm:$0xff] %v224_v20  ;;  %3989 = vmatpush3.bf16.msra.mxu0 %v4374_v58  ;;  %v594_v11 = vpack.c.bf16 %v229_v8, %v229_v8 }
  0x50   : > { %v438_v18 = vpack.c.bf16 %v398_v14, %v398_v14  ;;  %v439_v19 = vpack.c.bf16 %v399_v15, %v399_v15  ;;  %361 = vst [vmem:[#allocation2 + $0x241] sm:$0xff] %v247_v21  ;;  %362 = vst [vmem:[#allocation2 + $0x251] sm:$0xff] %v248_v22  ;;  %3877 = vmatpush3.bf16.msra.mxu1 %v4341_v16  ;;  %v4345_v44 = vld [vmem:[#allocation3 + $0x3f4] ss:$36 sps:$4 sm:$0xff]   ;;  %v4369_v12 = vld [vmem:[#allocation3 + $0xc] ss:$36 sps:$4 sm:$0xff]  }
  0x51   : > { %449 = vst [vmem:[#allocation3 + $0xb4] sm:$0xf] %v409_v17  ;;  %480 = vst [vmem:[#allocation3 + $0x9c] sm:$0xf] %v409_v17  ;;  %3878 = vmatprep.subr.bf16.mxu1 %v4349_v23  ;;  %2508 = vmatprep.mubr.bf16.mxu1 %v4345_v44  ;;  %v720_v14 = vld [vmem:[#allocation2 + $0x42] sm:$0xff]  ;;  %v721_v15 = vld [vmem:[#allocation2 + $0x52] sm:$0xff] }
  0x52   : > { %511 = vst [vmem:[#allocation3 + $0x84] sm:$0xf] %v409_v17  ;;  %472 = vst [vmem:[#allocation3 + $0x3f0] sm:$0xf] %v438_v18  ;;  %v760_v17 = vpack.c.bf16 %v720_v14, %v720_v14  ;;  %v4372_v22 = vld [vmem:[%s5359_s2 + $0x180] sm:$0xff]   ;;  %v225_v39 = vld [vmem:[%s4761_s13 + $0x38] sm:$0xff] }
  0x53   : > { %473 = vst [vmem:[#allocation3 + $0x414] sm:$0xf] %v439_v19  ;;  %503 = vst [vmem:[#allocation3 + $0x3d8] sm:$0xf] %v438_v18  ;;  %v370_v28 = vld [vmem:[#allocation2 + $0x60] sm:$0xff] }
  0x54   : > { %504 = vst [vmem:[#allocation3 + $0x3fc] sm:$0xf] %v439_v19  ;;  %534 = vst [vmem:[#allocation3 + $0x3c0] sm:$0xf] %v438_v18  ;;  %v410_v29 = vpack.c.bf16 %v370_v28, %v370_v28  ;;  %3879 = vmatpush3.bf16.msra.mxu1 %v4350_v31  ;;  %v761_v18 = vpack.c.bf16 %v721_v15, %v721_v15  ;;  %v4583_v7 = vld [vmem:[#allocation2] sm:$0xff] }
  0x55   : > { %535 = vst [vmem:[#allocation3 + $0x3e4] sm:$0xf] %v439_v19  ;;  %627 = vst [vmem:[#allocation3 + $0x100] sm:$0xf] %v587_v24  ;;  %3880 = vmatprep.subr.bf16.mxu1 %v4351_v32  ;;  %v4387_v19 = vld [vmem:[%s5359_s2 + $0x160] sm:$0xff]  }
  0x56   : > { %658 = vst [vmem:[#allocation3 + $0xe8] sm:$0xf] %v587_v24  ;;  %689 = vst [vmem:[#allocation3 + $0xd0] sm:$0xf] %v587_v24  ;;  %v371_v35 = vld [vmem:[#allocation2 + $0x70] sm:$0xff]  ;;  %3990 = vmatprep.subr.bf16.mxu0 %v4387_v19 }
  0x57   : > { %650 = vst [vmem:[#allocation3 + $0x43c] sm:$0xf] %v616_v25  ;;  %651 = vst [vmem:[#allocation3 + $0x460] sm:$0xf] %v617_v26  ;;  %v400_v36 = vld [vmem:[#allocation2 + $0x240] sm:$0xff]  ;;  %v401_v37 = vld [vmem:[#allocation2 + $0x250] sm:$0xff]  ;;  %v411_v40 = vpack.c.bf16 %v371_v35, %v371_v35 }
  0x58   : > { %681 = vst [vmem:[#allocation3 + $0x424] sm:$0xf] %v616_v25  ;;  %682 = vst [vmem:[#allocation3 + $0x448] sm:$0xf] %v617_v26  ;;  %v440_v41 = vpack.c.bf16 %v400_v36, %v400_v36  ;;  %v441_v42 = vpack.c.bf16 %v401_v37, %v401_v37  ;;  %v4347_v45 = vld [vmem:[#allocation3 + $0x90] ss:$36 sps:$4 sm:$0xff]   ;;  %3881 = vmatpush3.bf16.msra.mxu1 %v4352_v34 }
  0x59   : > { %712 = vst [vmem:[#allocation3 + $0x40c] sm:$0xf] %v616_v25  ;;  %713 = vst [vmem:[#allocation3 + $0x430] sm:$0xf] %v617_v26  ;;  %2413 = vmatmul.mubr.bf16.gmra.mrb[8].mxu0 %v4347_v45  ;;  %3882 = vmatprep.subr.bf16.mxu1 %v4359_v43  ;;  %v4377_v32 = vld [vmem:[#allocation3 + $0x54] ss:$36 sps:$4 sm:$0xff]   ;;  %v588_v45 = vpack.c.bf16 %v225_v39, %v225_v39 }
  0x5a   : > { %450 = vst [vmem:[#allocation3 + $0xd8] sm:$0xf] %v410_v29  ;;  %481 = vst [vmem:[#allocation3 + $0xc0] sm:$0xf] %v410_v29  ;;  %v4348_v46 = vld [vmem:[#allocation3 + $0x3f0] ss:$36 sps:$4 sm:$0xff]  }
  0x5b   : > { %512 = vst [vmem:[#allocation3 + $0xa8] sm:$0xf] %v410_v29  ;;  %340 = vst [vmem:[#allocation2 + $0xb1] sm:$0xff] %v226_v33  ;;  %2509 = vmatmul.mubr.bf16.gmra.mrb[8].mxu1 %v4348_v46  ;;  %v4389_v29 = vld [vmem:[%s5359_s2 + $0x120] sm:$0xff]   ;;  %v4390_v34 = vld [vmem:[%s5359_s2 + $0x188] sm:$0xff]  }
  0x5c   : > { %629 = vst [vmem:[#allocation3 + $0x148] sm:$0xf] %v591_v38  ;;  %660 = vst [vmem:[#allocation3 + $0x130] sm:$0xf] %v591_v38  ;;  %v4353_v63 = vld [vmem:[#allocation3 + $0xdc] ss:$36 sps:$4 sm:$0xff]   ;;  %3883 = vmatpush3.bf16.msra.mxu1 %v4361_v52  ;;  %3991 = vmatpush3.bf16.msra.mxu0 %v4389_v29 }
  0x5d   : > { %451 = vst [vmem:[#allocation3 + $0xfc] sm:$0xf] %v411_v40  ;;  %482 = vst [vmem:[#allocation3 + $0xe4] sm:$0xf] %v411_v40  ;;  %3884 = vmatprep.subr.bf16.mxu1 %v4363_v54  ;;  %2420 = vmatprep.mubr.bf16.mxu0 %v4353_v63  ;;  %v231_v35 = vld [vmem:[%s4761_s13 + $0x68] sm:$0xff]  ;;  %v232_v36 = vld [vmem:[%s4761_s13 + $0x70] sm:$0xff] }
  0x5e   : > { %513 = vst [vmem:[#allocation3 + $0xcc] sm:$0xf] %v411_v40  ;;  %474 = vst [vmem:[#allocation3 + $0x438] sm:$0xf] %v440_v41  ;;  %v4355_v4 = vld [vmem:[#allocation3 + $0x43c] ss:$36 sps:$4 sm:$0xff]   ;;  %v596_v37 = vpack.c.bf16 %v231_v35, %v231_v35  ;;  %v597_v38 = vpack.c.bf16 %v232_v36, %v232_v36  ;;  %3992 = vmatprep.subr.bf16.mxu0 %v4397_v47 }
  0x5f   : > { %475 = vst [vmem:[#allocation3 + $0x45c] sm:$0xf] %v441_v42  ;;  %505 = vst [vmem:[#allocation3 + $0x420] sm:$0xf] %v440_v41  ;;  %2516 = vmatprep.mubr.bf16.mxu1 %v4355_v4  ;;  %v722_v40 = vld [vmem:[#allocation2 + $0x62] sm:$0xff]  ;;  %v4405_v4 = vld [vmem:[%s5359_s2 + $0x1d0] sm:$0xff]  }
  0x60   : > { %506 = vst [vmem:[#allocation3 + $0x444] sm:$0xf] %v441_v42  ;;  %536 = vst [vmem:[#allocation3 + $0x408] sm:$0xf] %v440_v41  ;;  %3885 = vmatpush3.bf16.msra.mxu1 %v4364_v59  ;;  %v723_v41 = vld [vmem:[#allocation2 + $0x72] sm:$0xff]  ;;  %v762_v43 = vpack.c.bf16 %v722_v40, %v722_v40  ;;  %v560_v52 = vld [vmem:[#allocation2 + $0x141] sm:$0xff]  ;;  %3993 = vmatpush3.bf16.msra.mxu0 %v4398_v50 }
  0x61   : > { %537 = vst [vmem:[#allocation3 + $0x42c] sm:$0xf] %v441_v42  ;;  %628 = vst [vmem:[#allocation3 + $0x124] sm:$0xf] %v590_v49  ;;  %4094 = vmatprep.subr.bf16.mxu1 %v4371_v0  ;;  %v763_v44 = vpack.c.bf16 %v723_v41, %v723_v41  ;;  %v4383_v46 = vld [vmem:[#allocation3 + $0x9c] ss:$36 sps:$4 sm:$0xff]   ;;  %v600_v56 = vpack.c.bf16 %v560_v52, %v560_v52 }
  0x62   : > { %796 = vst [vmem:[#allocation3 + $0x8] sm:$0xf] %v756_v51  ;;  %v375_v55 = vld [vmem:[#allocation2 + $0xb0] sm:$0xff]  ;;  %797 = vst [vmem:[#allocation3 + $0x2c] sm:$0xf] %v757_v53  ;;  %v234_v51 = vld [vmem:[%s4761_s13 + $0x80] sm:$0xff] }
  0x63   : > { %828 = vst [vmem:[#allocation3 + $0x14] sm:$0xf] %v757_v53  ;;  %v415_v57 = vpack.c.bf16 %v375_v55, %v375_v55  ;;  %341 = vst [vmem:[#allocation2 + $0xc1] sm:$0xff] %v227_v60  ;;  %v601_v53 = vpack.c.bf16 %v234_v51, %v234_v51  ;;  %v726_v54 = vld [vmem:[#allocation2 + $0xa2] sm:$0xff]  ;;  %v4414_v19 = vld [vmem:[%s5359_s2 + $0x130] sm:$0xff]  }
  0x64   : > { %342 = vst [vmem:[#allocation2 + $0xd1] sm:$0xff] %v228_v61  ;;  %v4357_v5 = vld [vmem:[#allocation3 + $0xd8] ss:$36 sps:$4 sm:$0xff]   ;;  %630 = vst [vmem:[#allocation3 + $0x16c] sm:$0xf] %v592_v1  ;;  %v240_v50 = vld [vmem:[%s4761_s13 + $0xb0] sm:$0xff] }
  0x65   : > { %453 = vst [vmem:[#allocation3 + $0x144] sm:$0xf] %v415_v57  ;;  %484 = vst [vmem:[#allocation3 + $0x12c] sm:$0xf] %v415_v57  ;;  %2421 = vmatmul.mubr.bf16.gmra.mrb[12].mxu0 %v4357_v5  ;;  %v766_v57 = vpack.c.bf16 %v726_v54, %v726_v54  ;;  %v4406_v5 = vld [vmem:[%s5359_s2 + $0x190] sm:$0xff]   ;;  %v4423_v47 = vld [vmem:[%s5359_s2 + $0x178] sm:$0xff]  }
  0x66   : > { %v4358_v6 = vld [vmem:[#allocation3 + $0x438] ss:$36 sps:$4 sm:$0xff]   ;;  %631 = vst [vmem:[#allocation3 + $0x190] sm:$0xf] %v593_v2  ;;  %661 = vst [vmem:[#allocation3 + $0x154] sm:$0xf] %v592_v1 }
  0x67   : > { %662 = vst [vmem:[#allocation3 + $0x178] sm:$0xf] %v593_v2  ;;  %692 = vst [vmem:[#allocation3 + $0x13c] sm:$0xf] %v592_v1  ;;  %2517 = vmatmul.mubr.bf16.gmra.mrb[12].mxu1 %v4358_v6  ;;  %v235_v6 = vld [vmem:[%s4761_s13 + $0x88] sm:$0xff]  ;;  %v233_v52 = vld [vmem:[%s4761_s13 + $0x78] sm:$0xff] }
  0x68   : > { %693 = vst [vmem:[#allocation3 + $0x160] sm:$0xf] %v593_v2  ;;  %798 = vst [vmem:[#allocation3 + $0x50] sm:$0xf] %v758_v3  ;;  %2557 = vmatprep.mubr.bf16.mxu1 %v4369_v12  ;;  %v4365_v20 = vld [vmem:[#allocation3 + $0x124] ss:$36 sps:$4 sm:$0xff]  }
  0x69   : > { %829 = vst [vmem:[#allocation3 + $0x38] sm:$0xf] %v758_v3  ;;  %860 = vst [vmem:[#allocation3 + $0x20] sm:$0xf] %v758_v3  ;;  %v4367_v16 = vld [vmem:[#allocation3 + $0x8] ss:$36 sps:$4 sm:$0xff]   ;;  %2428 = vmatprep.mubr.bf16.mxu0 %v4365_v20 }
  0x6a   : > { %343 = vst [vmem:[#allocation2 + $0xe1] sm:$0xff] %v229_v8  ;;  %344 = vst [vmem:[#allocation2 + $0xf1] sm:$0xff] %v230_v10  ;;  %v376_v23 = vld [vmem:[#allocation2 + $0xc0] sm:$0xff]  ;;  %v727_v2 = vld [vmem:[#allocation2 + $0xb2] sm:$0xff]  ;;  %v413_v8 = vpack.c.bf16 %v4583_v7, %v4583_v7  ;;  %v602_v10 = vpack.c.bf16 %v235_v6, %v235_v6 }
  0x6b   : > { %799 = vst [vmem:[#allocation3 + $0x74] sm:$0xf] %v759_v9  ;;  %830 = vst [vmem:[#allocation3 + $0x5c] sm:$0xf] %v759_v9  ;;  %v377_v24 = vld [vmem:[#allocation2 + $0xd0] sm:$0xff]  ;;  %v416_v25 = vpack.c.bf16 %v376_v23, %v376_v23  ;;  %v767_v3 = vpack.c.bf16 %v727_v2, %v727_v2  ;;  %v237_v20 = vld [vmem:[%s4761_s13 + $0x98] sm:$0xff] }
  0x6c   : > { %861 = vst [vmem:[#allocation3 + $0x44] sm:$0xf] %v759_v9  ;;  %632 = vst [vmem:[#allocation3 + $0x1b4] sm:$0xf] %v594_v11  ;;  %v4370_v21 = vld [vmem:[#allocation3 + $0x120] ss:$36 sps:$4 sm:$0xff]   ;;  %v417_v26 = vpack.c.bf16 %v377_v24, %v377_v24 }
  0x6d   : > { %663 = vst [vmem:[#allocation3 + $0x19c] sm:$0xf] %v594_v11  ;;  %694 = vst [vmem:[#allocation3 + $0x184] sm:$0xf] %v594_v11  ;;  %2429 = vmatmul.mubr.bf16.gmra.mrb[16].mxu0 %v4370_v21  ;;  %v4375_v48 = vld [vmem:[#allocation3 + $0x16c] ss:$36 sps:$4 sm:$0xff]  }
  0x6e   : > { %633 = vst [vmem:[#allocation3 + $0x1d8] sm:$0xf] %v595_v13  ;;  %664 = vst [vmem:[#allocation3 + $0x1c0] sm:$0xf] %v595_v13  ;;  %2436 = vmatprep.mubr.bf16.mxu0 %v4375_v48  ;;  %v236_v9 = vld [vmem:[%s4761_s13 + $0x90] sm:$0xff]  ;;  %v728_v11 = vld [vmem:[#allocation2 + $0xc2] sm:$0xff] }
  0x6f   : > { %695 = vst [vmem:[#allocation3 + $0x1a8] sm:$0xf] %v595_v13  ;;  %800 = vst [vmem:[#allocation3 + $0x98] sm:$0xf] %v760_v17  ;;  %2558 = vmatmul.mubr.bf16.vlgmr.msra.gmra.mrb[16].mxu1 %v4367_v16  ;;  %v729_v12 = vld [vmem:[#allocation2 + $0xd2] sm:$0xff]  ;;  %v603_v14 = vpack.c.bf16 %v236_v9, %v236_v9  ;;  %v768_v15 = vpack.c.bf16 %v728_v11, %v728_v11  ;;  %v238_v21 = vld [vmem:[%s4761_s13 + $0xa0] sm:$0xff] }
  0x70   : > { %801 = vst [vmem:[#allocation3 + $0xbc] sm:$0xf] %v761_v18  ;;  %831 = vst [vmem:[#allocation3 + $0x80] sm:$0xf] %v760_v17  ;;  %4095 = vmatpush3.bf16.msra.mxu1 %v4372_v22  ;;  %2565 = vmatprep.mubr.bf16.mxu1 %v4377_v32  ;;  %v769_v16 = vpack.c.bf16 %v729_v12, %v729_v12  ;;  %v604_v22 = vpack.c.bf16 %v237_v20, %v237_v20  ;;  %v4424_v48 = vld [vmem:[%s5359_s2 + $0x138] sm:$0xff]   ;;  %v4439_v12 = vld [vmem:[%s5359_s2 + $0x1a0] sm:$0xff]  }
  0x71   : > { %832 = vst [vmem:[#allocation3 + $0xa4] sm:$0xf] %v761_v18  ;;  %862 = vst [vmem:[#allocation3 + $0x68] sm:$0xf] %v760_v17  ;;  %v378_v28 = vld [vmem:[#allocation2 + $0xe0] sm:$0xff]  ;;  %v379_v30 = vld [vmem:[#allocation2 + $0xf0] sm:$0xff]  ;;  %4096 = vmatprep.subr.bf16.mxu1 %v4388_v27  ;;  %v605_v23 = vpack.c.bf16 %v238_v21, %v238_v21 }
  0x72   : > { %863 = vst [vmem:[#allocation3 + $0x8c] sm:$0xf] %v761_v18  ;;  %454 = vst [vmem:[#allocation3 + $0x168] sm:$0xf] %v416_v25  ;;  %v418_v31 = vpack.c.bf16 %v378_v28, %v378_v28  ;;  %v419_v33 = vpack.c.bf16 %v379_v30, %v379_v30  ;;  %v4380_v42 = vld [vmem:[#allocation3 + $0x50] ss:$36 sps:$4 sm:$0xff]  }
  0x73   : > { %455 = vst [vmem:[#allocation3 + $0x18c] sm:$0xf] %v417_v26  ;;  %485 = vst [vmem:[#allocation3 + $0x150] sm:$0xf] %v416_v25  ;;  %v4413_v18 = vld [vmem:[%s5359_s2 + $0x170] sm:$0xff]   ;;  %v730_v24 = vld [vmem:[#allocation2 + $0xe2] sm:$0xff] }
  0x74   : > { %486 = vst [vmem:[#allocation3 + $0x174] sm:$0xf] %v417_v26  ;;  %516 = vst [vmem:[#allocation3 + $0x138] sm:$0xf] %v416_v25  ;;  %4097 = vmatpush3.bf16.msra.mxu1 %v4390_v34  ;;  %3994 = vmatprep.subr.bf16.mxu0 %v4413_v18  ;;  %v731_v25 = vld [vmem:[#allocation2 + $0xf2] sm:$0xff] }
  0x75   : > { %517 = vst [vmem:[#allocation3 + $0x15c] sm:$0xf] %v417_v26  ;;  %456 = vst [vmem:[#allocation3 + $0x1b0] sm:$0xf] %v418_v31  ;;  %v4381_v55 = vld [vmem:[#allocation3 + $0x1b4] ss:$36 sps:$4 sm:$0xff]   ;;  %4098 = vmatprep.subr.bf16.mxu1 %v4405_v4  ;;  %3995 = vmatpush3.bf16.msra.mxu0 %v4414_v19  ;;  %v770_v26 = vpack.c.bf16 %v730_v24, %v730_v24  ;;  %v771_v28 = vpack.c.bf16 %v731_v25, %v731_v25 }
  0x76   : > { %487 = vst [vmem:[#allocation3 + $0x198] sm:$0xf] %v418_v31  ;;  %518 = vst [vmem:[#allocation3 + $0x180] sm:$0xf] %v418_v31  ;;  %3996 = vmatprep.subr.bf16.mxu0 %v4423_v47  ;;  %v4437_v4 = vld [vmem:[%s5359_s2 + $0x1e0] sm:$0xff]  }
  0x77   : > { %457 = vst [vmem:[#allocation3 + $0x1d4] sm:$0xf] %v419_v33  ;;  %488 = vst [vmem:[#allocation3 + $0x1bc] sm:$0xf] %v419_v33  ;;  %2566 = vmatmul.mubr.bf16.gmra.mrb[20].mxu1 %v4380_v42  ;;  %v4386_v58 = vld [vmem:[#allocation3 + $0x98] ss:$36 sps:$4 sm:$0xff]  }
  0x78   : > { %519 = vst [vmem:[#allocation3 + $0x1a4] sm:$0xf] %v419_v33  ;;  %345 = vst [vmem:[#allocation2 + $0x101] sm:$0xff] %v231_v35  ;;  %2573 = vmatprep.mubr.bf16.mxu1 %v4383_v46  ;;  %4099 = vmatpush3.bf16.msra.mxu1 %v4406_v5 }
  0x79   : > { %346 = vst [vmem:[#allocation2 + $0x111] sm:$0xff] %v232_v36  ;;  %339 = vst [vmem:[#allocation2 + $0x81] sm:$0xff] %v225_v39  ;;  %3997 = vmatpush3.bf16.msra.mxu0 %v4424_v48  ;;  %v4453_v48 = vld [vmem:[%s5359_s2 + $0x208] sm:$0xff]  }
  0x7a   : > { %634 = vst [vmem:[#allocation3 + $0x1fc] sm:$0xf] %v596_v37  ;;  %635 = vst [vmem:[#allocation3 + $0x220] sm:$0xf] %v597_v38  ;;  %v4379_v49 = vld [vmem:[#allocation3 + $0x168] ss:$36 sps:$4 sm:$0xff]  }
  0x7b   : > { %665 = vst [vmem:[#allocation3 + $0x1e4] sm:$0xf] %v596_v37  ;;  %666 = vst [vmem:[#allocation3 + $0x208] sm:$0xf] %v597_v38  ;;  %2437 = vmatmul.mubr.bf16.gmra.mrb[20].mxu0 %v4379_v49  ;;  %v4401_v32 = vld [vmem:[#allocation3 + $0x12c] ss:$36 sps:$4 sm:$0xff]  }
  0x7c   : > { %696 = vst [vmem:[#allocation3 + $0x1cc] sm:$0xf] %v596_v37  ;;  %697 = vst [vmem:[#allocation3 + $0x1f0] sm:$0xf] %v597_v38  ;;  %2444 = vmatprep.mubr.bf16.mxu0 %v4381_v55  ;;  %v239_v49 = vld [vmem:[%s4761_s13 + $0xa8] sm:$0xff]  ;;  %v607_v55 = vpack.c.bf16 %v240_v50, %v240_v50 }
  0x7d   : > { %802 = vst [vmem:[#allocation3 + $0xe0] sm:$0xf] %v762_v43  ;;  %803 = vst [vmem:[#allocation3 + $0x104] sm:$0xf] %v763_v44  ;;  %v4409_v46 = vld [vmem:[#allocation3 + $0x174] ss:$36 sps:$4 sm:$0xff]  }
  0x7e   : > { %833 = vst [vmem:[#allocation3 + $0xc8] sm:$0xf] %v762_v43  ;;  %834 = vst [vmem:[#allocation3 + $0xec] sm:$0xf] %v763_v44  ;;  %v4385_v62 = vld [vmem:[#allocation3 + $0x1b0] ss:$36 sps:$4 sm:$0xff]  }
  0x7f   : > { %864 = vst [vmem:[#allocation3 + $0xb0] sm:$0xf] %v762_v43  ;;  %865 = vst [vmem:[#allocation3 + $0xd4] sm:$0xf] %v763_v44  ;;  %v380_v59 = vld [vmem:[#allocation2 + $0x100] sm:$0xff]  ;;  %2574 = vmatmul.mubr.bf16.gmra.mrb[24].mxu1 %v4386_v58  ;;  %v4421_v43 = vld [vmem:[%s5359_s2 + $0x1d8] sm:$0xff]  }
  0x80   : > { %659 = vst [vmem:[#allocation3 + $0x10c] sm:$0xf] %v588_v45  ;;  %690 = vst [vmem:[#allocation3 + $0xf4] sm:$0xf] %v588_v45  ;;  %v381_v60 = vld [vmem:[#allocation2 + $0x110] sm:$0xff]  ;;  %v372_v61 = vld [vmem:[#allocation2 + $0x80] sm:$0xff]  ;;  %v420_v63 = vpack.c.bf16 %v380_v59, %v380_v59  ;;  %4100 = vmatprep.subr.bf16.mxu1 %v4421_v43 }
  0x81   : > { %348 = vst [vmem:[#allocation2 + $0x151] sm:$0xff] %v234_v51  ;;  %637 = vst [vmem:[#allocation3 + $0x268] sm:$0xf] %v601_v53  ;;  %v421_v0 = vpack.c.bf16 %v381_v60, %v381_v60  ;;  %v412_v1 = vpack.c.bf16 %v372_v61, %v372_v61  ;;  %v4391_v27 = vld [vmem:[#allocation3 + $0x1fc] ss:$36 sps:$4 sm:$0xff]   ;;  %v606_v51 = vpack.c.bf16 %v239_v49, %v239_v49  ;;  %v733_v58 = vld [vmem:[#allocation2 + $0x112] sm:$0xff] }
  0x82   : > { %668 = vst [vmem:[#allocation3 + $0x250] sm:$0xf] %v601_v53  ;;  %636 = vst [vmem:[#allocation3 + $0x244] sm:$0xf] %v600_v56  ;;  %v4422_v44 = vld [vmem:[%s5359_s2 + $0x198] sm:$0xff]   ;;  %v732_v53 = vld [vmem:[#allocation2 + $0x102] sm:$0xff]  ;;  %v773_v60 = vpack.c.bf16 %v733_v58, %v733_v58 }
  0x83   : > { %804 = vst [vmem:[#allocation3 + $0x128] sm:$0xf] %v766_v57  ;;  %458 = vst [vmem:[#allocation3 + $0x1f8] sm:$0xf] %v420_v63  ;;  %2445 = vmatmul.mubr.bf16.gmra.mrb[24].mxu0 %v4385_v62  ;;  %4101 = vmatpush3.bf16.msra.mxu1 %v4422_v44  ;;  %v772_v56 = vpack.c.bf16 %v732_v53, %v732_v53  ;;  %v598_v57 = vpack.c.bf16 %v233_v52, %v233_v52  ;;  %v736_v59 = vld [vmem:[#allocation2 + $0x142] sm:$0xff]  ;;  %v749_v53 = vld [vmem:[#allocation2 + $0x212] sm:$0xff] }
  0x84   : > { %459 = vst [vmem:[#allocation3 + $0x21c] sm:$0xf] %v421_v0  ;;  %489 = vst [vmem:[#allocation3 + $0x1e0] sm:$0xf] %v420_v63  ;;  %2452 = vmatprep.mubr.bf16.mxu0 %v4391_v27  ;;  %v4396_v31 = vld [vmem:[#allocation3 + $0xe0] ss:$36 sps:$4 sm:$0xff]   ;;  %v776_v62 = vpack.c.bf16 %v736_v59, %v736_v59  ;;  %4102 = vmatprep.subr.bf16.mxu1 %v4437_v4 }
  0x85   : > { %490 = vst [vmem:[#allocation3 + $0x204] sm:$0xf] %v421_v0  ;;  %520 = vst [vmem:[#allocation3 + $0x1c8] sm:$0xf] %v420_v63  ;;  %v4433_v43 = vld [vmem:[#allocation3 + $0x10] ss:$36 sps:$4 sm:$0xff]  }
  0x86   : > { %521 = vst [vmem:[#allocation3 + $0x1ec] sm:$0xf] %v421_v0  ;;  %483 = vst [vmem:[#allocation3 + $0x108] sm:$0xf] %v412_v1  ;;  %v751_v58 = vld [vmem:[#allocation2 + $0x232] sm:$0xff] }
  0x87   : > { %514 = vst [vmem:[#allocation3 + $0xf0] sm:$0xf] %v412_v1  ;;  %805 = vst [vmem:[#allocation3 + $0x14c] sm:$0xf] %v767_v3  ;;  %4103 = vmatpush3.bf16.msra.mxu1 %v4439_v12  ;;  %v4445_v59 = vld [vmem:[#allocation3 + $0x58] ss:$36 sps:$4 sm:$0xff]  }
  0x88   : > { %836 = vst [vmem:[#allocation3 + $0x134] sm:$0xf] %v767_v3  ;;  %349 = vst [vmem:[#allocation2 + $0x161] sm:$0xff] %v235_v6  ;;  %v385_v13 = vld [vmem:[#allocation2 + $0x150] sm:$0xff]  ;;  %v4451_v4 = vld [vmem:[#allocation3 + $0xa0] ss:$36 sps:$4 sm:$0xff]  }
  0x89   : > { %350 = vst [vmem:[#allocation2 + $0x171] sm:$0xff] %v236_v9  ;;  %515 = vst [vmem:[#allocation3 + $0x114] sm:$0xf] %v413_v8  ;;  %v425_v17 = vpack.c.bf16 %v385_v13, %v385_v13  ;;  %v4399_v37 = vld [vmem:[#allocation3 + $0x244] ss:$36 sps:$4 sm:$0xff]   ;;  %v737_v61 = vld [vmem:[#allocation2 + $0x152] sm:$0xff] }
  0x8a   : > { %523 = vst [vmem:[#allocation3 + $0x234] sm:$0xf] %v413_v8  ;;  %531 = vst [vmem:[#allocation3 + $0x354] sm:$0xf] %v413_v8  ;;  %v777_v0 = vpack.c.bf16 %v737_v61, %v737_v61  ;;  %v4940_v9 = vld [vmem:[%s5359_s2 + $0x200] sm:$0xff]   ;;  %v791_v61 = vpack.c.bf16 %v751_v58, %v751_v58 }
  0x8b   : > { %539 = vst [vmem:[#allocation3 + $0x474] sm:$0xf] %v413_v8  ;;  %638 = vst [vmem:[#allocation3 + $0x28c] sm:$0xf] %v602_v10  ;;  %v4395_v30 = vld [vmem:[#allocation3 + $0x1f8] ss:$36 sps:$4 sm:$0xff]   ;;  %4230 = vmatprep.subr.bf16.mxu0 %v4940_v9 }
  0x8c   : > { %669 = vst [vmem:[#allocation3 + $0x274] sm:$0xf] %v602_v10  ;;  %700 = vst [vmem:[#allocation3 + $0x25c] sm:$0xf] %v602_v10  ;;  %2453 = vmatmul.mubr.bf16.gmra.mrb[28].mxu0 %v4395_v30  ;;  %v4417_v3 = vld [vmem:[#allocation3 + $0x1bc] ss:$36 sps:$4 sm:$0xff]  }
  0x8d   : > { %639 = vst [vmem:[#allocation3 + $0x2b0] sm:$0xf] %v603_v14  ;;  %670 = vst [vmem:[#allocation3 + $0x298] sm:$0xf] %v603_v14  ;;  %v4393_v29 = vld [vmem:[#allocation3 + $0xe4] ss:$36 sps:$4 sm:$0xff]   ;;  %2460 = vmatprep.mubr.bf16.mxu0 %v4399_v37 }
  0x8e   : > { %701 = vst [vmem:[#allocation3 + $0x280] sm:$0xf] %v603_v14  ;;  %806 = vst [vmem:[#allocation3 + $0x170] sm:$0xf] %v768_v15  ;;  %2581 = vmatprep.mubr.bf16.mxu1 %v4393_v29  ;;  %v4404_v38 = vld [vmem:[#allocation3 + $0x128] ss:$36 sps:$4 sm:$0xff]  }
  0x8f   : > { %807 = vst [vmem:[#allocation3 + $0x194] sm:$0xf] %v769_v16  ;;  %837 = vst [vmem:[#allocation3 + $0x158] sm:$0xf] %v768_v15  ;;  %v386_v33 = vld [vmem:[#allocation2 + $0x160] sm:$0xff]  ;;  %2582 = vmatmul.mubr.bf16.gmra.mrb[28].mxu1 %v4396_v31  ;;  %v4454_v30 = vld [vmem:[%s5359_s2 + $0x1a8] sm:$0xff]  }
  0x90   : > { %838 = vst [vmem:[#allocation3 + $0x17c] sm:$0xf] %v769_v16  ;;  %868 = vst [vmem:[#allocation3 + $0x140] sm:$0xf] %v768_v15  ;;  %v387_v34 = vld [vmem:[#allocation2 + $0x170] sm:$0xff]  ;;  %v426_v35 = vpack.c.bf16 %v386_v33, %v386_v33  ;;  %2589 = vmatprep.mubr.bf16.mxu1 %v4401_v32  ;;  %v738_v13 = vld [vmem:[#allocation2 + $0x162] sm:$0xff] }
  0x91   : > { %869 = vst [vmem:[#allocation3 + $0x164] sm:$0xf] %v769_v16  ;;  %461 = vst [vmem:[#allocation3 + $0x264] sm:$0xf] %v425_v17  ;;  %v427_v36 = vpack.c.bf16 %v387_v34, %v387_v34  ;;  %v739_v14 = vld [vmem:[#allocation2 + $0x172] sm:$0xff]  ;;  %v778_v15 = vpack.c.bf16 %v738_v13, %v738_v13  ;;  %v724_v34 = vld [vmem:[#allocation2 + $0x82] sm:$0xff] }
  0x92   : > { %492 = vst [vmem:[#allocation3 + $0x24c] sm:$0xf] %v425_v17  ;;  %351 = vst [vmem:[#allocation2 + $0x181] sm:$0xff] %v237_v20  ;;  %v779_v16 = vpack.c.bf16 %v739_v14, %v739_v14  ;;  %v241_v31 = vld [vmem:[%s4761_s13 + $0xb8] sm:$0xff]  ;;  %v4500_v58 = vld [vmem:[#allocation3 + $0x64] ss:$36 sps:$4 sm:$0xff]  }
  0x93   : > { %352 = vst [vmem:[#allocation2 + $0x191] sm:$0xff] %v238_v21  ;;  %640 = vst [vmem:[#allocation3 + $0x2d4] sm:$0xf] %v604_v22 }
  0x94   : > { %641 = vst [vmem:[#allocation3 + $0x2f8] sm:$0xf] %v605_v23  ;;  %671 = vst [vmem:[#allocation3 + $0x2bc] sm:$0xf] %v604_v22  ;;  %v4407_v54 = vld [vmem:[#allocation3 + $0x28c] ss:$36 sps:$4 sm:$0xff]  }
  0x95   : > { %672 = vst [vmem:[#allocation3 + $0x2e0] sm:$0xf] %v605_v23  ;;  %702 = vst [vmem:[#allocation3 + $0x2a4] sm:$0xf] %v604_v22 }
  0x96   : > { %703 = vst [vmem:[#allocation3 + $0x2c8] sm:$0xf] %v605_v23  ;;  %808 = vst [vmem:[#allocation3 + $0x1b8] sm:$0xf] %v770_v26  ;;  %v4412_v63 = vld [vmem:[#allocation3 + $0x170] ss:$36 sps:$4 sm:$0xff]  }
  0x97   : > { %839 = vst [vmem:[#allocation3 + $0x1a0] sm:$0xf] %v770_v26  ;;  %870 = vst [vmem:[#allocation3 + $0x188] sm:$0xf] %v770_v26  ;;  %2590 = vmatmul.mubr.bf16.gmra.mrb[32].mxu1 %v4404_v38  ;;  %v4452_v23 = vld [vmem:[%s5359_s2 + $0x1e8] sm:$0xff]   ;;  %v764_v38 = vpack.c.bf16 %v724_v34, %v724_v34 }
  0x98   : > { %809 = vst [vmem:[#allocation3 + $0x1dc] sm:$0xf] %v771_v28  ;;  %840 = vst [vmem:[#allocation3 + $0x1c4] sm:$0xf] %v771_v28  ;;  %v4403_v45 = vld [vmem:[#allocation3 + $0x240] ss:$36 sps:$4 sm:$0xff]   ;;  %2597 = vmatprep.mubr.bf16.mxu1 %v4409_v46  ;;  %4104 = vmatprep.subr.bf16.mxu1 %v4452_v23 }
  0x99   : > { %871 = vst [vmem:[#allocation3 + $0x1ac] sm:$0xf] %v771_v28  ;;  %462 = vst [vmem:[#allocation3 + $0x288] sm:$0xf] %v426_v35  ;;  %v388_v39 = vld [vmem:[#allocation2 + $0x180] sm:$0xff]  ;;  %2461 = vmatmul.mubr.bf16.gmra.mrb[32].mxu0 %v4403_v45  ;;  %4105 = vmatpush3.bf16.msra.mxu1 %v4454_v30  ;;  %v4467_v46 = vld [vmem:[%s5359_s2 + $0x1f0] sm:$0xff]  }
  0x9a   : > { %463 = vst [vmem:[#allocation3 + $0x2ac] sm:$0xf] %v427_v36  ;;  %493 = vst [vmem:[#allocation3 + $0x270] sm:$0xf] %v426_v35  ;;  %v389_v40 = vld [vmem:[#allocation2 + $0x190] sm:$0xff]  ;;  %v428_v41 = vpack.c.bf16 %v388_v39, %v388_v39  ;;  %2468 = vmatprep.mubr.bf16.mxu0 %v4407_v54  ;;  %v740_v18 = vld [vmem:[#allocation2 + $0x182] sm:$0xff]  ;;  %4106 = vmatprep.subr.bf16.mxu1 %v4467_v46 }
  0x9b   : > { %494 = vst [vmem:[#allocation3 + $0x294] sm:$0xf] %v427_v36  ;;  %524 = vst [vmem:[#allocation3 + $0x258] sm:$0xf] %v426_v35  ;;  %v429_v42 = vpack.c.bf16 %v389_v40, %v389_v40  ;;  %v4415_v2 = vld [vmem:[#allocation3 + $0x2d4] ss:$36 sps:$4 sm:$0xff]   ;;  %v780_v20 = vpack.c.bf16 %v740_v18, %v740_v18  ;;  %v608_v35 = vpack.c.bf16 %v241_v31, %v241_v31 }
  0x9c   : > { %525 = vst [vmem:[#allocation3 + $0x27c] sm:$0xf] %v427_v36  ;;  %464 = vst [vmem:[#allocation3 + $0x2d0] sm:$0xf] %v428_v41  ;;  %v741_v21 = vld [vmem:[#allocation2 + $0x192] sm:$0xff]  ;;  %v746_v39 = vld [vmem:[#allocation2 + $0x1e2] sm:$0xff] }
  0x9d   : > { %465 = vst [vmem:[#allocation3 + $0x2f4] sm:$0xf] %v429_v42  ;;  %495 = vst [vmem:[#allocation3 + $0x2b8] sm:$0xf] %v428_v41  ;;  %v781_v22 = vpack.c.bf16 %v741_v21, %v741_v21  ;;  %v4435_v28 = vld [vmem:[#allocation3 + $0x14] ss:$36 sps:$4 sm:$0xff]  }
  0x9e   : > { %496 = vst [vmem:[#allocation3 + $0x2dc] sm:$0xf] %v429_v42  ;;  %526 = vst [vmem:[#allocation3 + $0x2a0] sm:$0xf] %v428_v41  ;;  %v747_v40 = vld [vmem:[#allocation2 + $0x1f2] sm:$0xff]  ;;  %v786_v41 = vpack.c.bf16 %v746_v39, %v746_v39  ;;  %v4510_v23 = vld [vmem:[%s5359_s2 + $0x228] sm:$0xff]  }
  0x9f   : > { %527 = vst [vmem:[#allocation3 + $0x2c4] sm:$0xf] %v429_v42  ;;  %353 = vst [vmem:[#allocation2 + $0x1a1] sm:$0xff] %v239_v49  ;;  %2598 = vmatmul.mubr.bf16.gmra.mrb[36].mxu1 %v4412_v63  ;;  %v4420_v17 = vld [vmem:[#allocation3 + $0x1b8] ss:$36 sps:$4 sm:$0xff]   ;;  %v787_v42 = vpack.c.bf16 %v747_v40, %v747_v40 }
  0xa0   : > { %354 = vst [vmem:[#allocation2 + $0x1b1] sm:$0xff] %v240_v50  ;;  %347 = vst [vmem:[#allocation2 + $0x121] sm:$0xff] %v233_v52  ;;  %2605 = vmatprep.mubr.bf16.mxu1 %v4417_v3  ;;  %v4442_v45 = vld [vmem:[#allocation3 + $0x5c] ss:$36 sps:$4 sm:$0xff]   ;;  %v4469_v50 = vld [vmem:[%s5359_s2 + $0x1b0] sm:$0xff]  }
  0xa1   : > { %642 = vst [vmem:[#allocation3 + $0x31c] sm:$0xf] %v606_v51  ;;  %673 = vst [vmem:[#allocation3 + $0x304] sm:$0xf] %v606_v51  ;;  %v4411_v1 = vld [vmem:[#allocation3 + $0x288] ss:$36 sps:$4 sm:$0xff]   ;;  %4107 = vmatpush3.bf16.msra.mxu1 %v4469_v50 }
  0xa2   : > { %704 = vst [vmem:[#allocation3 + $0x2ec] sm:$0xf] %v606_v51  ;;  %643 = vst [vmem:[#allocation3 + $0x340] sm:$0xf] %v607_v55  ;;  %2469 = vmatmul.mubr.bf16.gmra.mrb[36].mxu0 %v4411_v1  ;;  %v4431_v26 = vld [vmem:[#allocation3 + $0x24c] ss:$36 sps:$4 sm:$0xff]  }
  0xa3   : > { %674 = vst [vmem:[#allocation3 + $0x328] sm:$0xf] %v607_v55  ;;  %705 = vst [vmem:[#allocation3 + $0x310] sm:$0xf] %v607_v55  ;;  %2476 = vmatprep.mubr.bf16.mxu0 %v4415_v2  ;;  %v748_v51 = vld [vmem:[#allocation2 + $0x202] sm:$0xff]  ;;  %v789_v55 = vpack.c.bf16 %v749_v53, %v749_v53  ;;  %v4482_v1 = vld [vmem:[%s5359_s2 + $0x1f8] sm:$0xff]  }
  0xa4   : > { %810 = vst [vmem:[#allocation3 + $0x200] sm:$0xf] %v772_v56  ;;  %841 = vst [vmem:[#allocation3 + $0x1e8] sm:$0xf] %v772_v56  ;;  %v4419_v19 = vld [vmem:[#allocation3 + $0x2d0] ss:$36 sps:$4 sm:$0xff]   ;;  %v788_v54 = vpack.c.bf16 %v748_v51, %v748_v51  ;;  %4108 = vmatprep.subr.bf16.mxu1 %v4482_v1 }
  0xa5   : > { %872 = vst [vmem:[#allocation3 + $0x1d0] sm:$0xf] %v772_v56  ;;  %667 = vst [vmem:[#allocation3 + $0x22c] sm:$0xf] %v598_v57  ;;  %v4440_v47 = vld [vmem:[#allocation3 + $0x294] ss:$36 sps:$4 sm:$0xff]  }
  0xa6   : > { %698 = vst [vmem:[#allocation3 + $0x214] sm:$0xf] %v598_v57  ;;  %811 = vst [vmem:[#allocation3 + $0x224] sm:$0xf] %v773_v60  ;;  %v390_v5 = vld [vmem:[#allocation2 + $0x1a0] sm:$0xff]  ;;  %v4483_v2 = vld [vmem:[%s5359_s2 + $0x218] sm:$0xff]  }
  0xa7   : > { %842 = vst [vmem:[#allocation3 + $0x20c] sm:$0xf] %v773_v60  ;;  %873 = vst [vmem:[#allocation3 + $0x1f4] sm:$0xf] %v773_v60  ;;  %v391_v6 = vld [vmem:[#allocation2 + $0x1b0] sm:$0xff]  ;;  %v430_v7 = vpack.c.bf16 %v390_v5, %v390_v5  ;;  %v382_v8 = vld [vmem:[#allocation2 + $0x120] sm:$0xff]  ;;  %2606 = vmatmul.mubr.bf16.gmra.mrb[40].mxu1 %v4420_v17 }
  0xa8   : > { %812 = vst [vmem:[#allocation3 + $0x248] sm:$0xf] %v776_v62  ;;  %813 = vst [vmem:[#allocation3 + $0x26c] sm:$0xf] %v777_v0  ;;  %v431_v10 = vpack.c.bf16 %v391_v6, %v391_v6  ;;  %v422_v11 = vpack.c.bf16 %v382_v8, %v382_v8  ;;  %v742_v32 = vld [vmem:[#allocation2 + $0x1a2] sm:$0xff]  ;;  %v743_v33 = vld [vmem:[#allocation2 + $0x1b2] sm:$0xff] }
  0xa9   : > { %844 = vst [vmem:[#allocation3 + $0x254] sm:$0xf] %v777_v0  ;;  %466 = vst [vmem:[#allocation3 + $0x318] sm:$0xf] %v430_v7  ;;  %v4425_v24 = vld [vmem:[#allocation3 + $0x31c] ss:$36 sps:$4 sm:$0xff]   ;;  %v782_v36 = vpack.c.bf16 %v742_v32, %v742_v32  ;;  %v783_v37 = vpack.c.bf16 %v743_v33, %v743_v33 }
  0xaa   : > { %497 = vst [vmem:[#allocation3 + $0x300] sm:$0xf] %v430_v7  ;;  %528 = vst [vmem:[#allocation3 + $0x2e8] sm:$0xf] %v430_v7  ;;  %2477 = vmatmul.mubr.bf16.gmra.mrb[40].mxu0 %v4419_v19  ;;  %v750_v56 = vld [vmem:[#allocation2 + $0x222] sm:$0xff]  ;;  %v4468_v60 = vld [vmem:[%s5359_s2 + $0x210] sm:$0xff]  }
  0xab   : > { %467 = vst [vmem:[#allocation3 + $0x33c] sm:$0xf] %v431_v10  ;;  %498 = vst [vmem:[#allocation3 + $0x324] sm:$0xf] %v431_v10  ;;  %2484 = vmatprep.mubr.bf16.mxu0 %v4425_v24  ;;  %v790_v57 = vpack.c.bf16 %v750_v56, %v750_v56  ;;  %v4448_v63 = vld [vmem:[#allocation3 + $0xa4] ss:$36 sps:$4 sm:$0xff]  }
  0xac   : > { %529 = vst [vmem:[#allocation3 + $0x30c] sm:$0xf] %v431_v10  ;;  %491 = vst [vmem:[#allocation3 + $0x228] sm:$0xf] %v422_v11  ;;  %v4484_v3 = vld [vmem:[%s5359_s2 + $0x1b8] sm:$0xff]   ;;  %v752_v6 = vld [vmem:[#allocation2 + $0x242] sm:$0xff] }
  0xad   : > { %522 = vst [vmem:[#allocation3 + $0x210] sm:$0xf] %v422_v11  ;;  %814 = vst [vmem:[#allocation3 + $0x290] sm:$0xf] %v778_v15  ;;  %v4430_v27 = vld [vmem:[#allocation3 + $0x200] ss:$36 sps:$4 sm:$0xff]   ;;  %4109 = vmatpush3.bf16.msra.mxu1 %v4484_v3  ;;  %v792_v10 = vpack.c.bf16 %v752_v6, %v752_v6 }
  0xae   : > { %815 = vst [vmem:[#allocation3 + $0x2b4] sm:$0xf] %v779_v16  ;;  %845 = vst [vmem:[#allocation3 + $0x278] sm:$0xf] %v778_v15  ;;  %v249_v5 = vld [vmem:[%s4761_s13 + $0xf8] sm:$0xff]  ;;  %v734_v13 = vld [vmem:[#allocation2 + $0x122] sm:$0xff] }
  0xaf   : > { %846 = vst [vmem:[#allocation3 + $0x29c] sm:$0xf] %v779_v16  ;;  %876 = vst [vmem:[#allocation3 + $0x260] sm:$0xf] %v778_v15  ;;  %v4436_v44 = vld [vmem:[#allocation3 + $0x248] ss:$36 sps:$4 sm:$0xff]   ;;  %v618_v12 = vpack.c.bf16 %v249_v5, %v249_v5  ;;  %v774_v15 = vpack.c.bf16 %v734_v13, %v734_v13 }
  0xb0   : > { %877 = vst [vmem:[#allocation3 + $0x284] sm:$0xf] %v779_v16  ;;  %816 = vst [vmem:[#allocation3 + $0x2d8] sm:$0xf] %v780_v20  ;;  %v753_v7 = vld [vmem:[#allocation2 + $0x252] sm:$0xff]  ;;  %v4497_v16 = vld [vmem:[%s5359_s2 + $0x220] sm:$0xff]  }
  0xb1   : > { %847 = vst [vmem:[#allocation3 + $0x2c0] sm:$0xf] %v780_v20  ;;  %878 = vst [vmem:[#allocation3 + $0x2a8] sm:$0xf] %v780_v20  ;;  %v4446_v0 = vld [vmem:[#allocation3 + $0x2dc] ss:$36 sps:$4 sm:$0xff]   ;;  %v793_v11 = vpack.c.bf16 %v753_v7, %v753_v7 }
  0xb2   : > { %817 = vst [vmem:[#allocation3 + $0x2fc] sm:$0xf] %v781_v22  ;;  %848 = vst [vmem:[#allocation3 + $0x2e4] sm:$0xf] %v781_v22  ;;  %v4429_v29 = vld [vmem:[#allocation3 + $0x318] ss:$36 sps:$4 sm:$0xff]  }
  0xb3   : > { %879 = vst [vmem:[#allocation3 + $0x2cc] sm:$0xf] %v781_v22  ;;  %v4427_v25 = vld [vmem:[#allocation3 + $0x204] ss:$36 sps:$4 sm:$0xff]   ;;  %355 = vst [vmem:[#allocation2 + $0x1c1] sm:$0xff] %v241_v31  ;;  %2485 = vmatmul.mubr.bf16.gmra.mrb[44].mxu0 %v4429_v29  ;;  %v4523_v32 = vld [vmem:[%s5359_s2 + $0x230] sm:$0xff]  }
  0xb4   : > { %2613 = vmatprep.mubr.bf16.mxu1 %v4427_v25  ;;  %675 = vst [vmem:[#allocation3 + $0x34c] sm:$0xf] %v608_v35  ;;  %706 = vst [vmem:[#allocation3 + $0x334] sm:$0xf] %v608_v35  ;;  %2718 = vmatprep.mubr.bf16.mxu0 %v4435_v28  ;;  %v4460_v17 = vld [vmem:[#allocation3 + $0xe8] ss:$36 sps:$4 sm:$0xff]  }
  0xb5   : > { %2614 = vmatmul.mubr.bf16.gmra.mrb[44].mxu1 %v4430_v27  ;;  %818 = vst [vmem:[#allocation3 + $0x320] sm:$0xf] %v782_v36  ;;  %819 = vst [vmem:[#allocation3 + $0x344] sm:$0xf] %v783_v37  ;;  %v4444_v62 = vld [vmem:[#allocation3 + $0x290] ss:$36 sps:$4 sm:$0xff]  }
  0xb6   : > { %2621 = vmatprep.mubr.bf16.mxu1 %v4431_v26  ;;  %849 = vst [vmem:[#allocation3 + $0x308] sm:$0xf] %v782_v36  ;;  %850 = vst [vmem:[#allocation3 + $0x32c] sm:$0xf] %v783_v37  ;;  %v4461_v21 = vld [vmem:[#allocation3 + $0x36c] ss:$36 sps:$4 sm:$0xff]  }
  0xb7   : > { %880 = vst [vmem:[#allocation3 + $0x2f0] sm:$0xf] %v782_v36  ;;  %881 = vst [vmem:[#allocation3 + $0x314] sm:$0xf] %v783_v37  ;;  %v4463_v22 = vld [vmem:[#allocation3 + $0x134] ss:$36 sps:$4 sm:$0xff]  }
  0xb8   : > { %835 = vst [vmem:[#allocation3 + $0x110] sm:$0xf] %v764_v38  ;;  %866 = vst [vmem:[#allocation3 + $0xf8] sm:$0xf] %v764_v38  ;;  %v549_v26 = vld [vmem:[#allocation2 + $0x91] sm:$0xff] }
  0xb9   : > { %820 = vst [vmem:[#allocation3 + $0x368] sm:$0xf] %v786_v41  ;;  %821 = vst [vmem:[#allocation3 + $0x38c] sm:$0xf] %v787_v42  ;;  %v4450_v8 = vld [vmem:[#allocation3 + $0x2d8] ss:$36 sps:$4 sm:$0xff]   ;;  %v589_v27 = vpack.c.bf16 %v549_v26, %v549_v26 }
  0xba   : > { %852 = vst [vmem:[#allocation3 + $0x374] sm:$0xf] %v787_v42  ;;  %v392_v49 = vld [vmem:[#allocation2 + $0x1c0] sm:$0xff]  ;;  %822 = vst [vmem:[#allocation3 + $0x3b0] sm:$0xf] %v788_v54  ;;  %v4536_v37 = vld [vmem:[%s5359_s2 + $0x238] sm:$0xff]  }
  0xbb   : > { %v432_v52 = vpack.c.bf16 %v392_v49, %v392_v49  ;;  %2719 = vmatmul.mubr.bf16.vlgmr.msra.gmra.mrb[48].mxu0 %v4433_v43  ;;  %853 = vst [vmem:[#allocation3 + $0x398] sm:$0xf] %v788_v54  ;;  %884 = vst [vmem:[#allocation3 + $0x380] sm:$0xf] %v788_v54  ;;  %v744_v24 = vld [vmem:[#allocation2 + $0x1c2] sm:$0xff]  ;;  %v559_v40 = vld [vmem:[#allocation2 + $0x131] sm:$0xff] }
  0xbc   : > { %4231 = vmatpush3.bf16.msra.mxu0 %v4940_v9  ;;  %2726 = vmatprep.mubr.bf16.mxu0 %v4442_v45  ;;  %823 = vst [vmem:[#allocation3 + $0x3d4] sm:$0xf] %v789_v55  ;;  %854 = vst [vmem:[#allocation3 + $0x3bc] sm:$0xf] %v789_v55  ;;  %v4459_v19 = vld [vmem:[#allocation3 + $0x320] ss:$36 sps:$4 sm:$0xff]   ;;  %v784_v25 = vpack.c.bf16 %v744_v24, %v744_v24  ;;  %v599_v41 = vpack.c.bf16 %v559_v40, %v559_v40 }
  0xbd   : > { %2622 = vmatmul.mubr.bf16.gmra.mrb[48].mxu1 %v4436_v44  ;;  %499 = vst [vmem:[#allocation3 + $0x348] sm:$0xf] %v432_v52  ;;  %530 = vst [vmem:[#allocation3 + $0x330] sm:$0xf] %v432_v52  ;;  %4232 = vmatprep.subr.bf16.mxu0 %v4453_v48  ;;  %v4466_v29 = vld [vmem:[#allocation3 + $0x130] ss:$36 sps:$4 sm:$0xff]  }
  0xbe   : > { %2629 = vmatprep.mubr.bf16.mxu1 %v4440_v47  ;;  %885 = vst [vmem:[#allocation3 + $0x3a4] sm:$0xf] %v789_v55  ;;  %824 = vst [vmem:[#allocation3 + $0x3f8] sm:$0xf] %v790_v57  ;;  %v4470_v30 = vld [vmem:[#allocation3 + $0x3b4] ss:$36 sps:$4 sm:$0xff]  }
  0xbf   : > { %855 = vst [vmem:[#allocation3 + $0x3e0] sm:$0xf] %v790_v57  ;;  %886 = vst [vmem:[#allocation3 + $0x3c8] sm:$0xf] %v790_v57  ;;  %v4457_v14 = vld [vmem:[#allocation3 + $0xec] ss:$36 sps:$4 sm:$0xff]  }
  0xc0   : > { %825 = vst [vmem:[#allocation3 + $0x41c] sm:$0xf] %v791_v61  ;;  %856 = vst [vmem:[#allocation3 + $0x404] sm:$0xf] %v791_v61  ;;  %4233 = vmatpush3.bf16.msra.mxu0 %v4453_v48  ;;  %v4465_v28 = vld [vmem:[#allocation3 + $0x368] ss:$36 sps:$4 sm:$0xff]  }
  0xc1   : > { %887 = vst [vmem:[#allocation3 + $0x3ec] sm:$0xf] %v791_v61  ;;  %4234 = vmatprep.subr.bf16.mxu0 %v4468_v60  ;;  %363 = vst [vmem:[#allocation2 + $0x261] sm:$0xff] %v249_v5  ;;  %v4472_v31 = vld [vmem:[#allocation3 + $0x17c] ss:$36 sps:$4 sm:$0xff]   ;;  %v725_v46 = vld [vmem:[#allocation2 + $0x92] sm:$0xff] }
  0xc2   : > { %826 = vst [vmem:[#allocation3 + $0x440] sm:$0xf] %v792_v10  ;;  %827 = vst [vmem:[#allocation3 + $0x464] sm:$0xf] %v793_v11  ;;  %v4475_v34 = vld [vmem:[#allocation3 + $0x178] ss:$36 sps:$4 sm:$0xff]   ;;  %v765_v47 = vpack.c.bf16 %v725_v46, %v725_v46 }
  0xc3   : > { %2727 = vmatmul.mubr.bf16.gmra.mrb[52].mxu0 %v4445_v59  ;;  %857 = vst [vmem:[#allocation3 + $0x428] sm:$0xf] %v792_v10  ;;  %858 = vst [vmem:[#allocation3 + $0x44c] sm:$0xf] %v793_v11  ;;  %v4474_v33 = vld [vmem:[#allocation3 + $0x3b0] ss:$36 sps:$4 sm:$0xff]  }
  0xc4   : > { %2734 = vmatprep.mubr.bf16.mxu0 %v4448_v63  ;;  %4235 = vmatpush3.bf16.msra.mxu0 %v4468_v60  ;;  %v4455_v9 = vld [vmem:[#allocation3 + $0x324] ss:$36 sps:$4 sm:$0xff]   ;;  %888 = vst [vmem:[#allocation3 + $0x410] sm:$0xf] %v792_v10  ;;  %889 = vst [vmem:[#allocation3 + $0x434] sm:$0xf] %v793_v11 }
  0xc5   : > { %2630 = vmatmul.mubr.bf16.gmra.mrb[52].mxu1 %v4444_v62  ;;  %4236 = vmatprep.subr.bf16.mxu0 %v4483_v2  ;;  %683 = vst [vmem:[#allocation3 + $0x46c] sm:$0xf] %v618_v12  ;;  %714 = vst [vmem:[#allocation3 + $0x454] sm:$0xf] %v618_v12  ;;  %v4476_v35 = vld [vmem:[#allocation3 + $0x3fc] ss:$36 sps:$4 sm:$0xff]  }
  0xc6   : > { %2637 = vmatprep.mubr.bf16.mxu1 %v4446_v0  ;;  %843 = vst [vmem:[#allocation3 + $0x230] sm:$0xf] %v774_v15  ;;  %874 = vst [vmem:[#allocation3 + $0x218] sm:$0xf] %v774_v15  ;;  %v4478_v36 = vld [vmem:[#allocation3 + $0x1c4] ss:$36 sps:$4 sm:$0xff]  }
  0xc7   : > { %851 = vst [vmem:[#allocation3 + $0x350] sm:$0xf] %v784_v25  ;;  %882 = vst [vmem:[#allocation3 + $0x338] sm:$0xf] %v784_v25  ;;  %v4481_v42 = vld [vmem:[#allocation3 + $0x1c0] ss:$36 sps:$4 sm:$0xff]  }
  0xc8   : > { %4237 = vmatpush3.bf16.msra.mxu0 %v4483_v2  ;;  %v402_v18 = vld [vmem:[#allocation2 + $0x260] sm:$0xff]  ;;  %691 = vst [vmem:[#allocation3 + $0x118] sm:$0xf] %v589_v27  ;;  %699 = vst [vmem:[#allocation3 + $0x238] sm:$0xf] %v599_v41  ;;  %v569_v51 = vld [vmem:[#allocation2 + $0x1d1] sm:$0xff] }
  0xc9   : > { %4238 = vmatprep.subr.bf16.mxu0 %v4497_v16  ;;  %v442_v20 = vpack.c.bf16 %v402_v18, %v402_v18  ;;  %v754_v38 = vld [vmem:[#allocation2 + $0x262] sm:$0xff]  ;;  %v4480_v43 = vld [vmem:[#allocation3 + $0x3f8] ss:$36 sps:$4 sm:$0xff]   ;;  %867 = vst [vmem:[#allocation3 + $0x11c] sm:$0xf] %v765_v47  ;;  %v609_v52 = vpack.c.bf16 %v569_v51, %v569_v51 }
  0xca   : > { %v794_v39 = vpack.c.bf16 %v754_v38, %v754_v38  ;;  %v4490_v48 = vld [vmem:[#allocation3 + $0x208] ss:$36 sps:$4 sm:$0xff]   ;;  %v4495_v49 = vld [vmem:[#allocation3 + $0x1c] ss:$36 sps:$4 sm:$0xff]   ;;  %v4491_v53 = vld [vmem:[#allocation3 + $0x254] ss:$36 sps:$4 sm:$0xff]  }
  0xcb   : > { %2735 = vmatmul.mubr.bf16.gmra.mrb[56].mxu0 %v4451_v4  ;;  %507 = vst [vmem:[#allocation3 + $0x468] sm:$0xf] %v442_v20  ;;  %538 = vst [vmem:[#allocation3 + $0x450] sm:$0xf] %v442_v20  ;;  %v4489_v50 = vld [vmem:[#allocation3 + $0x440] ss:$36 sps:$4 sm:$0xff]  }
  0xcc   : > { %2742 = vmatprep.mubr.bf16.mxu0 %v4457_v14  ;;  %4239 = vmatpush3.bf16.msra.mxu0 %v4497_v16  ;;  %859 = vst [vmem:[#allocation3 + $0x470] sm:$0xf] %v794_v39  ;;  %890 = vst [vmem:[#allocation3 + $0x458] sm:$0xf] %v794_v39  ;;  %v735_v54 = vld [vmem:[#allocation2 + $0x132] sm:$0xff] }
  0xcd   : > { %2638 = vmatmul.mubr.bf16.gmra.mrb[56].mxu1 %v4450_v8  ;;  %4240 = vmatprep.subr.bf16.mxu0 %v4510_v23  ;;  %v4487_v45 = vld [vmem:[#allocation3 + $0x20c] ss:$36 sps:$4 sm:$0xff]   ;;  %707 = vst [vmem:[#allocation3 + $0x358] sm:$0xf] %v609_v52  ;;  %v775_v55 = vpack.c.bf16 %v735_v54, %v735_v54  ;;  %v4493_v56 = vld [vmem:[#allocation3 + $0x18] ss:$36 sps:$4 sm:$0xff]  }
  0xce   : > { %2645 = vmatprep.mubr.bf16.mxu1 %v4455_v9  ;;  %v4496_v57 = vld [vmem:[#allocation3 + $0x250] ss:$36 sps:$4 sm:$0xff]   ;;  %v4498_v60 = vld [vmem:[#allocation3 + $0x29c] ss:$36 sps:$4 sm:$0xff]   ;;  %v4504_v5 = vld [vmem:[#allocation3 + $0x2e4] ss:$36 sps:$4 sm:$0xff]  }
  0xcf   : > { %875 = vst [vmem:[#allocation3 + $0x23c] sm:$0xf] %v775_v55  ;;  %v745_v59 = vld [vmem:[#allocation2 + $0x1d2] sm:$0xff]  ;;  %v4503_v63 = vld [vmem:[#allocation3 + $0x60] ss:$36 sps:$4 sm:$0xff]  }
  0xd0   : > { %4241 = vmatpush3.bf16.msra.mxu0 %v4510_v23  ;;  %v785_v61 = vpack.c.bf16 %v745_v59, %v745_v59  ;;  %v579_v62 = vld [vmem:[#allocation2 + $0x271] sm:$0xff]  ;;  %v4509_v6 = vld [vmem:[#allocation3 + $0xa8] ss:$36 sps:$4 sm:$0xff]   ;;  %v4508_v7 = vld [vmem:[#allocation3 + $0x2e0] ss:$36 sps:$4 sm:$0xff]  }
  0xd1   : > { %4242 = vmatprep.subr.bf16.mxu0 %v4523_v32  ;;  %v619_v0 = vpack.c.bf16 %v579_v62, %v579_v62  ;;  %v755_v1 = vld [vmem:[#allocation2 + $0x272] sm:$0xff]  ;;  %v4515_v11 = vld [vmem:[#allocation3 + $0x328] ss:$36 sps:$4 sm:$0xff]   ;;  %v4519_v12 = vld [vmem:[#allocation3 + $0x13c] ss:$36 sps:$4 sm:$0xff]  }
  0xd2   : > { %v4485_v44 = vld [vmem:[#allocation3 + $0x444] ss:$36 sps:$4 sm:$0xff]   ;;  %883 = vst [vmem:[#allocation3 + $0x35c] sm:$0xf] %v785_v61  ;;  %v4502_v2 = vld [vmem:[#allocation3 + $0x298] ss:$36 sps:$4 sm:$0xff]   ;;  %v795_v4 = vpack.c.bf16 %v755_v1, %v755_v1 }
  0xd3   : > { %2743 = vmatmul.mubr.bf16.gmra.mrb[60].mxu0 %v4460_v17  ;;  %v4506_v3 = vld [vmem:[#allocation3 + $0xac] ss:$36 sps:$4 sm:$0xff]   ;;  %715 = vst [vmem:[#allocation3 + $0x478] sm:$0xf] %v619_v0  ;;  %v4513_v8 = vld [vmem:[#allocation3 + $0xf4] ss:$36 sps:$4 sm:$0xff]  }
  0xd4   : > { %2750 = vmatprep.mubr.bf16.mxu0 %v4463_v22  ;;  %4243 = vmatpush3.bf16.msra.mxu0 %v4523_v32  ;;  %891 = vst [vmem:[#allocation3 + $0x47c] sm:$0xf] %v795_v4  ;;  %v4511_v9 = vld [vmem:[#allocation3 + $0x32c] ss:$36 sps:$4 sm:$0xff]   ;;  %v4517_v13 = vld [vmem:[#allocation3 + $0x374] ss:$36 sps:$4 sm:$0xff]  }
  0xd5   : > { %2646 = vmatmul.mubr.bf16.gmra.mrb[60].mxu1 %v4459_v19  ;;  %4244 = vmatprep.subr.bf16.mxu0 %v4536_v37  ;;  %v4516_v10 = vld [vmem:[#allocation3 + $0xf0] ss:$36 sps:$4 sm:$0xff]   ;;  %v4522_v14 = vld [vmem:[#allocation3 + $0x138] ss:$36 sps:$4 sm:$0xff]   ;;  %v4526_v16 = vld [vmem:[#allocation3 + $0x184] ss:$36 sps:$4 sm:$0xff]  }
  0xd6   : > { %2653 = vmatprep.mubr.bf16.mxu1 %v4461_v21  ;;  %v4521_v15 = vld [vmem:[#allocation3 + $0x370] ss:$36 sps:$4 sm:$0xff]   ;;  %v4524_v17 = vld [vmem:[#allocation3 + $0x3bc] ss:$36 sps:$4 sm:$0xff]   ;;  %v4530_v21 = vld [vmem:[#allocation3 + $0x404] ss:$36 sps:$4 sm:$0xff]  }
  0xd7   : > { %v4529_v18 = vld [vmem:[#allocation3 + $0x180] ss:$36 sps:$4 sm:$0xff]   ;;  %v4528_v19 = vld [vmem:[#allocation3 + $0x3b8] ss:$36 sps:$4 sm:$0xff]   ;;  %v4532_v20 = vld [vmem:[#allocation3 + $0x1cc] ss:$36 sps:$4 sm:$0xff]  }
  0xd8   : > { %4245 = vmatpush3.bf16.msra.mxu0 %v4536_v37  ;;  %v4535_v22 = vld [vmem:[#allocation3 + $0x1c8] ss:$36 sps:$4 sm:$0xff]   ;;  %v4534_v23 = vld [vmem:[#allocation3 + $0x400] ss:$36 sps:$4 sm:$0xff]   ;;  %v4539_v25 = vld [vmem:[#allocation3 + $0x214] ss:$36 sps:$4 sm:$0xff]  }
  0xd9   : > { %v4542_v38 = vld [vmem:[#allocation3 + $0x210] ss:$36 sps:$4 sm:$0xff]   ;;  %v4541_v39 = vld [vmem:[#allocation3 + $0x448] ss:$36 sps:$4 sm:$0xff]   ;;  %v4543_v41 = vld [vmem:[#allocation3 + $0x25c] ss:$36 sps:$4 sm:$0xff]  }
  0xda   : > { %v4546_v54 = vld [vmem:[#allocation3 + $0x258] ss:$36 sps:$4 sm:$0xff]   ;;  %v4547_v55 = vld [vmem:[#allocation3 + $0x68] ss:$36 sps:$4 sm:$0xff]  }
  0xdb   : > { %2751 = vmatmul.mubr.bf16.gmra.mrb[64].mxu0 %v4466_v29 }
  0xdc   : > { %2758 = vmatprep.mubr.bf16.mxu0 %v4472_v31 }
  0xdd   : > { %2654 = vmatmul.mubr.bf16.gmra.mrb[64].mxu1 %v4465_v28  ;;  %v4537_v28 = vld [vmem:[#allocation3 + $0x44c] ss:$36 sps:$4 sm:$0xff]  }
  0xde   : > { %2661 = vmatprep.mubr.bf16.mxu1 %v4470_v30 }
  0xe3   : > { %2759 = vmatmul.mubr.bf16.gmra.mrb[68].mxu0 %v4475_v34 }
  0xe4   : > { %2766 = vmatprep.mubr.bf16.mxu0 %v4478_v36 }
  0xe5   : > { %2662 = vmatmul.mubr.bf16.gmra.mrb[68].mxu1 %v4474_v33 }
  0xe6   : > { %2669 = vmatprep.mubr.bf16.mxu1 %v4476_v35 }
  0xeb   : > { %2767 = vmatmul.mubr.bf16.gmra.mrb[72].mxu0 %v4481_v42 }
  0xec   : > { %2774 = vmatprep.mubr.bf16.mxu0 %v4487_v45 }
  0xed   : > { %2670 = vmatmul.mubr.bf16.gmra.mrb[72].mxu1 %v4480_v43 }
  0xee   : > { %2677 = vmatprep.mubr.bf16.mxu1 %v4485_v44  ;;  %v4545_v44 = vld [vmem:[#allocation3 + $0x20] ss:$36 sps:$4 sm:$0xff]  }
  0xf3   : > { %2775 = vmatmul.mubr.bf16.gmra.mrb[76].mxu0 %v4490_v48 }
  0xf4   : > { %2782 = vmatprep.mubr.bf16.mxu0 %v4491_v53 }
  0xf5   : > { %2678 = vmatmul.mubr.bf16.gmra.mrb[76].mxu1 %v4489_v50 }
  0xf6   : > { %2879 = vmatprep.mubr.bf16.mxu1 %v4495_v49 }
  0xfb   : > { %2783 = vmatmul.mubr.bf16.gmra.mrb[80].mxu0 %v4496_v57  ;;  %v4550_v57 = vld [vmem:[#allocation3 + $0xb0] ss:$36 sps:$4 sm:$0xff]  }
  0xfc   : > { %2790 = vmatprep.mubr.bf16.mxu0 %v4498_v60 }
  0xfd   : > { %2880 = vmatmul.mubr.bf16.vlgmr.msra.gmra.mrb[80].mxu1 %v4493_v56  ;;  %v4548_v56 = vld [vmem:[#allocation3 + $0x2a4] ss:$36 sps:$4 sm:$0xff]  }
  0xfe   : > { %2887 = vmatprep.mubr.bf16.mxu1 %v4500_v58 }
 0x103   : > { %2791 = vmatmul.mubr.bf16.gmra.mrb[84].mxu0 %v4502_v2 }
 0x104   : > { %2798 = vmatprep.mubr.bf16.mxu0 %v4504_v5 }
 0x105   : > { %2888 = vmatmul.mubr.bf16.gmra.mrb[84].mxu1 %v4503_v63 }
 0x106   : > { %2895 = vmatprep.mubr.bf16.mxu1 %v4506_v3  ;;  %v4551_v3 = vld [vmem:[#allocation3 + $0x2a0] ss:$36 sps:$4 sm:$0xff]  }
 0x10b   : > { %2799 = vmatmul.mubr.bf16.gmra.mrb[88].mxu0 %v4508_v7  ;;  %v4553_v7 = vld [vmem:[#allocation3 + $0x2ec] ss:$36 sps:$4 sm:$0xff]  }
 0x10c   : > { %2806 = vmatprep.mubr.bf16.mxu0 %v4511_v9  ;;  %v4555_v9 = vld [vmem:[#allocation3 + $0x140] ss:$36 sps:$4 sm:$0xff]  }
 0x10d   : > { %2896 = vmatmul.mubr.bf16.gmra.mrb[88].mxu1 %v4509_v6  ;;  %v4552_v6 = vld [vmem:[#allocation3 + $0xf8] ss:$36 sps:$4 sm:$0xff]  }
 0x10e   : > { %2903 = vmatprep.mubr.bf16.mxu1 %v4513_v8 }
 0x113   : > { %2807 = vmatmul.mubr.bf16.gmra.mrb[92].mxu0 %v4515_v11 }
 0x114   : > { %2814 = vmatprep.mubr.bf16.mxu0 %v4517_v13 }
 0x115   : > { %2904 = vmatmul.mubr.bf16.gmra.mrb[92].mxu1 %v4516_v10  ;;  %v3774_v24 = vpop.f32.mrb[0].mxu0 }
 0x116   : > { %2911 = vmatprep.mubr.bf16.mxu1 %v4519_v12  ;;  %v3846_v26 = vpop.f32.mrb[0].mxu1  ;;  %v3775_v27 = vpop.f32.mrb[1].mxu0 }
 0x117   : > { %v4988_v29 = vadd.f32 %v3775_v27, %v3774_v24  ;;  %v3847_v30 = vpop.f32.mrb[1].mxu1  ;;  %v3777_v31 = vpop.f32.mrb[2].mxu0  ;;  %v4560_v24 = vld [vmem:[#allocation3 + $0x1d0] ss:$36 sps:$4 sm:$0xff]  }
 0x118   : > { %v4990_v32 = vadd.f32 %v3847_v30, %v3846_v26  ;;  %v3849_v33 = vpop.f32.mrb[2].mxu1  ;;  %v3778_v34 = vpop.f32.mrb[3].mxu0 }
 0x119   : > { %v4992_v35 = vadd.f32 %v3778_v34, %v3777_v31  ;;  %v3850_v36 = vpop.f32.mrb[3].mxu1  ;;  %v4561_v34 = vld [vmem:[#allocation3 + $0x330] ss:$36 sps:$4 sm:$0xff]  }
 0x11a   : > { %v4994_v37 = vadd.f32 %v3850_v36, %v3849_v33 }
 0x11b   : > { %2815 = vmatmul.mubr.bf16.gmra.mrb[96].mxu0 %v4521_v15 }
 0x11c   : > { %2822 = vmatprep.mubr.bf16.mxu0 %v4524_v17 }
 0x11d   : > { %2912 = vmatmul.mubr.bf16.gmra.mrb[96].mxu1 %v4522_v14  ;;  %v3780_v40 = vpop.f32.mrb[4].mxu0 }
 0x11e   : > { %2919 = vmatprep.mubr.bf16.mxu1 %v4526_v16  ;;  %v3852_v42 = vpop.f32.mrb[4].mxu1  ;;  %v3781_v43 = vpop.f32.mrb[5].mxu0  ;;  %v4556_v16 = vld [vmem:[#allocation3 + $0x2e8] ss:$36 sps:$4 sm:$0xff]  }
 0x11f   : > { %v4996_v45 = vadd.f32 %v3781_v43, %v3780_v40  ;;  %v3853_v46 = vpop.f32.mrb[5].mxu1  ;;  %v3783_v47 = vpop.f32.mrb[6].mxu0  ;;  %v4562_v40 = vld [vmem:[#allocation3 + $0x218] ss:$36 sps:$4 sm:$0xff]  }
 0x120   : > { %v4998_v48 = vadd.f32 %v3853_v46, %v3852_v42  ;;  %v3855_v49 = vpop.f32.mrb[6].mxu1  ;;  %v3784_v50 = vpop.f32.mrb[7].mxu0 }
 0x121   : > { %v5000_v51 = vadd.f32 %v3784_v50, %v3783_v47  ;;  %v3856_v52 = vpop.f32.mrb[7].mxu1 }
 0x122   : > { %v5002_v53 = vadd.f32 %v3856_v52, %v3855_v49 }
 0x123   : > { %2823 = vmatmul.mubr.bf16.gmra.mrb[100].mxu0 %v4528_v19 }
 0x124   : > { %2830 = vmatprep.mubr.bf16.mxu0 %v4530_v21  ;;  %v4558_v21 = vld [vmem:[#allocation3 + $0x334] ss:$36 sps:$4 sm:$0xff]  }
 0x125   : > { %2920 = vmatmul.mubr.bf16.gmra.mrb[100].mxu1 %v4529_v18 }
 0x126   : > { %2927 = vmatprep.mubr.bf16.mxu1 %v4532_v20  ;;  %v4557_v20 = vld [vmem:[#allocation3 + $0x188] ss:$36 sps:$4 sm:$0xff]  }
 0x12b   : > { %2831 = vmatmul.mubr.bf16.gmra.mrb[104].mxu0 %v4534_v23 }
 0x12c   : > { %2838 = vmatprep.mubr.bf16.mxu0 %v4537_v28  ;;  %v3786_v58 = vpop.f32.mrb[8].mxu0 }
 0x12d   : > { %2928 = vmatmul.mubr.bf16.gmra.mrb[104].mxu1 %v4535_v22  ;;  %v3787_v60 = vpop.f32.mrb[9].mxu0 }
 0x12e   : > { %2935 = vmatprep.mubr.bf16.mxu1 %v4539_v25  ;;  %v3858_v59 = vpop.f32.mrb[8].mxu1  ;;  %v5004_v61 = vadd.f32 %v3787_v60, %v3786_v58  ;;  %v3789_v63 = vpop.f32.mrb[10].mxu0  ;;  %v4568_v60 = vld [vmem:[#allocation3 + $0x3c4] ss:$36 sps:$4 sm:$0xff]  }
 0x12f   : > { %v3859_v62 = vpop.f32.mrb[9].mxu1  ;;  %v3790_v2 = vpop.f32.mrb[11].mxu0 }
 0x130   : > { %v5006_v0 = vadd.f32 %v3859_v62, %v3858_v59  ;;  %v3861_v1 = vpop.f32.mrb[10].mxu1  ;;  %v5008_v4 = vadd.f32 %v3790_v2, %v3789_v63  ;;  %v4567_v59 = vld [vmem:[#allocation3 + $0x2a8] ss:$36 sps:$4 sm:$0xff]  }
 0x131   : > { %v3862_v5 = vpop.f32.mrb[11].mxu1 }
 0x132   : > { %v5010_v8 = vadd.f32 %v3862_v5, %v3861_v1  ;;  %v4570_v1 = vld [vmem:[#allocation3 + $0x2f0] ss:$36 sps:$4 sm:$0xff]  }
 0x133   : > { %2839 = vmatmul.mubr.bf16.gmra.mrb[108].mxu0 %v4541_v39 }
 0x134   : > { %4246 = vmatprep.mubr.bf16.mxu0 %v4545_v44  ;;  %v4565_v44 = vld [vmem:[#allocation3 + $0x260] ss:$36 sps:$4 sm:$0xff]  }
 0x135   : > { %2936 = vmatmul.mubr.bf16.gmra.mrb[108].mxu1 %v4542_v38 }
 0x136   : > { %2943 = vmatprep.mubr.bf16.mxu1 %v4543_v41  ;;  %v4563_v41 = vld [vmem:[#allocation3 + $0x37c] ss:$36 sps:$4 sm:$0xff]  }
 0x138   : > { %v3792_v10 = vpop.f32.mrb[12].mxu0 }
 0x139   : > { %v3793_v12 = vpop.f32.mrb[13].mxu0 }
 0x13a   : > { %v3864_v11 = vpop.f32.mrb[12].mxu1  ;;  %v5012_v13 = vadd.f32 %v3793_v12, %v3792_v10  ;;  %v3795_v15 = vpop.f32.mrb[14].mxu0 }
 0x13b   : > { %4247 = vmatmul.mubr.bf16.vlgmr.msra.gmra.mrb[112].mxu0 %v4547_v55  ;;  %v3865_v14 = vpop.f32.mrb[13].mxu1  ;;  %v3796_v19 = vpop.f32.mrb[15].mxu0  ;;  %v4566_v55 = vld [vmem:[#allocation3 + $0x378] ss:$36 sps:$4 sm:$0xff]  }
 0x13c   : > { %4250 = vmatprep.mubr.bf16.mxu0 %v4550_v57  ;;  %v5014_v17 = vadd.f32 %v3865_v14, %v3864_v11  ;;  %v3867_v18 = vpop.f32.mrb[14].mxu1  ;;  %v5016_v22 = vadd.f32 %v3796_v19, %v3795_v15  ;;  %v4571_v11 = vld [vmem:[#allocation3 + $0x3c0] ss:$36 sps:$4 sm:$0xff]  }
 0x13d   : > { %2944 = vmatmul.mubr.bf16.gmra.mrb[112].mxu1 %v4546_v54  ;;  %v3868_v23 = vpop.f32.mrb[15].mxu1 }
 0x13e   : > { %2951 = vmatprep.mubr.bf16.mxu1 %v4548_v56  ;;  %v5018_v25 = vadd.f32 %v3868_v23, %v3867_v18 }
 0x140   : > { %v3798_v26 = vpop.f32.mrb[16].mxu0 }
 0x141   : > { %v3799_v28 = vpop.f32.mrb[17].mxu0 }
 0x142   : > { %v3886_v27 = vpop.f32.mrb[16].mxu1  ;;  %v5020_v30 = vadd.f32 %v3799_v28, %v3798_v26  ;;  %v3801_v33 = vpop.f32.mrb[18].mxu0 }
 0x143   : > { %4251 = vmatmul.mubr.bf16.gmra.mrb[116].mxu0 %v4552_v6  ;;  %v3887_v31 = vpop.f32.mrb[17].mxu1  ;;  %v3802_v39 = vpop.f32.mrb[19].mxu0 }
 0x144   : > { %4254 = vmatprep.mubr.bf16.mxu0 %v4555_v9  ;;  %v3888_v36 = vadd.f32 %v3887_v31, %v3886_v27  ;;  %v3889_v38 = vpop.f32.mrb[18].mxu1  ;;  %v5022_v42 = vadd.f32 %v3802_v39, %v3801_v33 }
 0x145   : > { %2952 = vmatmul.mubr.bf16.gmra.mrb[116].mxu1 %v4551_v3  ;;  %v3890_v43 = vpop.f32.mrb[19].mxu1 }
 0x146   : > { %2959 = vmatprep.mubr.bf16.mxu1 %v4553_v7  ;;  %v5025_v46 = vadd.f32 %v3888_v36, %v4988_v29  ;;  %v3891_v47 = vadd.f32 %v3890_v43, %v3889_v38 }
 0x148   : > { %v5028_v49 = vadd.f32 %v3891_v47, %v4992_v35  ;;  %v4580_v47 = vld [vmem:[#allocation3 + $0x410] ss:$36 sps:$4 sm:$0xff]  }
 0x14a   : > { %v3892_v50 = vpop.f32.mrb[20].mxu1 }
 0x14b   : > { %4255 = vmatmul.mubr.bf16.gmra.mrb[120].mxu0 %v4557_v20  ;;  %v3893_v54 = vpop.f32.mrb[21].mxu1 }
 0x14c   : > { %4258 = vmatprep.mubr.bf16.mxu0 %v4560_v24  ;;  %v3894_v57 = vadd.f32 %v3893_v54, %v3892_v50  ;;  %v3895_v58 = vpop.f32.mrb[22].mxu1 }
 0x14d   : > { %2960 = vmatmul.mubr.bf16.gmra.mrb[120].mxu1 %v4556_v16  ;;  %v3896_v63 = vpop.f32.mrb[23].mxu1  ;;  %v4573_v16 = vld [vmem:[#allocation3 + $0x40c] ss:$36 sps:$4 sm:$0xff]  }
 0x14e   : > { %2967 = vmatprep.mubr.bf16.mxu1 %v4558_v21  ;;  %v3804_v52 = vpop.f32.mrb[20].mxu0  ;;  %v5033_v35 = vadd.f32 %v3894_v57, %v4996_v45  ;;  %v3897_v3 = vadd.f32 %v3896_v63, %v3895_v58  ;;  %v4572_v45 = vld [vmem:[#allocation3 + $0x338] ss:$36 sps:$4 sm:$0xff]   ;;  %v4575_v21 = vld [vmem:[#allocation3 + $0x380] ss:$36 sps:$4 sm:$0xff]  }
 0x14f   : > { %v3805_v56 = vpop.f32.mrb[21].mxu0 }
 0x150   : > { %v5030_v62 = vadd.f32 %v3805_v56, %v3804_v52  ;;  %v3807_v29 = vpop.f32.mrb[22].mxu0  ;;  %v5038_v6 = vadd.f32 %v3897_v3, %v5000_v51 }
 0x151   : > { %v3808_v2 = vpop.f32.mrb[23].mxu0 }
 0x152   : > { %v5035_v5 = vadd.f32 %v3808_v2, %v3807_v29  ;;  %v3898_v7 = vpop.f32.mrb[24].mxu1 }
 0x153   : > { %4259 = vmatmul.mubr.bf16.gmra.mrb[124].mxu0 %v4562_v40  ;;  %v3899_v10 = vpop.f32.mrb[25].mxu1  ;;  %v4578_v40 = vld [vmem:[#allocation3 + $0x454] ss:$36 sps:$4 sm:$0xff]  }
 0x154   : > { %4262 = vmatprep.mubr.bf16.mxu0 %v4565_v44  ;;  %v3900_v14 = vadd.f32 %v3899_v10, %v3898_v7  ;;  %v3901_v15 = vpop.f32.mrb[26].mxu1 }
 0x155   : > { %2968 = vmatmul.mubr.bf16.gmra.mrb[124].mxu1 %v4561_v34  ;;  %v3902_v20 = vpop.f32.mrb[27].mxu1  ;;  %v4576_v34 = vld [vmem:[#allocation3 + $0x408] ss:$36 sps:$4 sm:$0xff]  }
 0x156   : > { %2975 = vmatprep.mubr.bf16.mxu1 %v4563_v41  ;;  %v3810_v9 = vpop.f32.mrb[24].mxu0  ;;  %v5043_v51 = vadd.f32 %v3900_v14, %v5004_v61  ;;  %v3903_v24 = vadd.f32 %v3902_v20, %v3901_v15  ;;  %v4577_v61 = vld [vmem:[#allocation3 + $0x3c8] ss:$36 sps:$4 sm:$0xff]  }
 0x157   : > { %v3811_v12 = vpop.f32.mrb[25].mxu0 }
 0x158   : > { %v5040_v18 = vadd.f32 %v3811_v12, %v3810_v9  ;;  %v3813_v19 = vpop.f32.mrb[26].mxu0  ;;  %v5048_v27 = vadd.f32 %v3903_v24, %v5008_v4 }
 0x159   : > { %v3814_v23 = vpop.f32.mrb[27].mxu0 }
 0x15a   : > { %v5045_v26 = vadd.f32 %v3814_v23, %v3813_v19 }
 0x15b   : > { %4263 = vmatmul.mubr.bf16.gmra.mrb[128].mxu0 %v4567_v59  ;;  %v4581_v59 = vld [vmem:[#allocation3 + $0x450] ss:$36 sps:$4 sm:$0xff]  }
 0x15c   : > { %4266 = vmatprep.mubr.bf16.mxu0 %v4570_v1 }
 0x15d   : > { %2976 = vmatmul.mubr.bf16.gmra.mrb[128].mxu1 %v4566_v55 }
 0x15e   : > { %2983 = vmatprep.mubr.bf16.mxu1 %v4568_v60 }
 0x15f   : > { %v3816_v31 = vpop.f32.mrb[28].mxu0 }
 0x160   : > { %v3817_v36 = vpop.f32.mrb[29].mxu0 }
 0x161   : > { %v5050_v41 = vadd.f32 %v3817_v36, %v3816_v31  ;;  %v3819_v43 = vpop.f32.mrb[30].mxu0 }
 0x162   : > { %v3904_v28 = vpop.f32.mrb[28].mxu1  ;;  %v3820_v50 = vpop.f32.mrb[31].mxu0 }
 0x163   : > { %4267 = vmatmul.mubr.bf16.gmra.mrb[132].mxu0 %v4572_v45  ;;  %v3905_v33 = vpop.f32.mrb[29].mxu1  ;;  %v5055_v54 = vadd.f32 %v3820_v50, %v3819_v43 }
 0x164   : > { %4270 = vmatprep.mubr.bf16.mxu0 %v4575_v21  ;;  %v3906_v38 = vadd.f32 %v3905_v33, %v3904_v28  ;;  %v3907_v39 = vpop.f32.mrb[30].mxu1 }
 0x165   : > { %2984 = vmatmul.mubr.bf16.gmra.mrb[132].mxu1 %v4571_v11  ;;  %v3908_v44 = vpop.f32.mrb[31].mxu1 }
 0x166   : > { %2991 = vmatprep.mubr.bf16.mxu1 %v4573_v16  ;;  %v5053_v4 = vadd.f32 %v3906_v38, %v5012_v13  ;;  %v3909_v52 = vadd.f32 %v3908_v44, %v3907_v39  ;;  %v4582_v13 = vld [vmem:[#allocation3 + $0x458] ss:$36 sps:$4 sm:$0xff]  }
 0x168   : > { %v5058_v55 = vadd.f32 %v3909_v52, %v5016_v22 }
 0x16a   : > { %v3910_v56 = vpop.f32.mrb[32].mxu1 }
 0x16b   : > { %4271 = vmatmul.mubr.bf16.gmra.mrb[136].mxu0 %v4577_v61  ;;  %v3911_v58 = vpop.f32.mrb[33].mxu1 }
 0x16c   : > { %4274 = vmatprep.mubr.bf16.mxu0 %v4580_v47  ;;  %v3822_v57 = vpop.f32.mrb[32].mxu0  ;;  %v3912_v29 = vadd.f32 %v3911_v58, %v3910_v56  ;;  %v3913_v63 = vpop.f32.mrb[34].mxu1 }
 0x16d   : > { %2992 = vmatmul.mubr.bf16.gmra.mrb[136].mxu1 %v4576_v34  ;;  %v3823_v60 = vpop.f32.mrb[33].mxu0  ;;  %v3914_v3 = vpop.f32.mrb[35].mxu1 }
 0x16e   : > { %2999 = vmatprep.mubr.bf16.mxu1 %v4578_v40  ;;  %v3824_v1 = vadd.f32 %v3823_v60, %v3822_v57  ;;  %v3825_v2 = vpop.f32.mrb[34].mxu0  ;;  %v5061_v7 = vadd.f32 %v3912_v29, %v5020_v30  ;;  %v3915_v22 = vadd.f32 %v3914_v3, %v3913_v63 }
 0x16f   : > { %v3826_v9 = vpop.f32.mrb[35].mxu0 }
 0x170   : > { %v3827_v10 = vadd.f32 %v3826_v9, %v3825_v2  ;;  %v5064_v11 = vadd.f32 %v3915_v22, %v5022_v42 }
 0x172   : > { %v3916_v12 = vpop.f32.mrb[36].mxu1 }
 0x173   : > { %4275 = vmatmul.mubr.bf16.gmra.mrb[140].mxu0 %v4582_v13  ;;  %v3917_v15 = vpop.f32.mrb[37].mxu1 }
 0x174   : > { %v3918_v16 = vadd.f32 %v3917_v15, %v3916_v12  ;;  %v3919_v19 = vpop.f32.mrb[38].mxu1 }
 0x175   : > { %3000 = vmatmul.mubr.bf16.gmra.mrb[140].mxu1 %v4581_v59  ;;  %v3828_v14 = vpop.f32.mrb[36].mxu0  ;;  %v3920_v23 = vpop.f32.mrb[39].mxu1 }
 0x176   : > { %v3829_v45 = vpop.f32.mrb[37].mxu0  ;;  %v5067_v30 = vadd.f32 %v3918_v16, %v5030_v62  ;;  %v3921_v28 = vadd.f32 %v3920_v23, %v3919_v19 }
 0x177   : > { %v3830_v20 = vadd.f32 %v3829_v45, %v3828_v14  ;;  %v3831_v21 = vpop.f32.mrb[38].mxu0 }
 0x178   : > { %v3832_v24 = vpop.f32.mrb[39].mxu0  ;;  %v5070_v33 = vadd.f32 %v3921_v28, %v5035_v5 }
 0x179   : > { %v3833_v31 = vadd.f32 %v3832_v24, %v3831_v21 }
 0x17a   : > { %v3922_v42 = vpop.f32.mrb[40].mxu1 }
 0x17b   : > { %v3923_v36 = vpop.f32.mrb[41].mxu1 }
 0x17c   : > { %v3924_v39 = vadd.f32 %v3923_v36, %v3922_v42  ;;  %v3925_v61 = vpop.f32.mrb[42].mxu1 }
 0x17d   : > { %v3834_v34 = vpop.f32.mrb[40].mxu0  ;;  %v3926_v44 = vpop.f32.mrb[43].mxu1 }
 0x17e   : > { %v3835_v38 = vpop.f32.mrb[41].mxu0  ;;  %v5075_v47 = vadd.f32 %v3924_v39, %v5040_v18  ;;  %v3927_v50 = vadd.f32 %v3926_v44, %v3925_v61 }
 0x17f   : > { %v5072_v40 = vadd.f32 %v3835_v38, %v3834_v34  ;;  %v3837_v43 = vpop.f32.mrb[42].mxu0 }
 0x180   : > { %v3838_v62 = vpop.f32.mrb[43].mxu0  ;;  %v5078_v56 = vadd.f32 %v3927_v50, %v5045_v26 }
 0x181   : > { %v3839_v52 = vadd.f32 %v3838_v62, %v3837_v43 }
 0x186   : > { %v3840_v57 = vpop.f32.mrb[44].mxu0 }
 0x187   : > { %v3841_v59 = vpop.f32.mrb[45].mxu0 }
 0x188   : > { %v3928_v5 = vpop.f32.mrb[44].mxu1  ;;  %v5080_v63 = vadd.f32 %v3841_v59, %v3840_v57  ;;  %v3843_v13 = vpop.f32.mrb[46].mxu0 }
 0x189   : > { %v3929_v58 = vpop.f32.mrb[45].mxu1  ;;  %v3844_v18 = vpop.f32.mrb[47].mxu0 }
 0x18a   : > { %v3930_v60 = vadd.f32 %v3929_v58, %v3928_v5  ;;  %v3931_v29 = vpop.f32.mrb[46].mxu1  ;;  %v5085_v22 = vadd.f32 %v3844_v18, %v3843_v13 }
 0x18b   : > { %v3932_v2 = vpop.f32.mrb[47].mxu1 }
 0x18c   : > { %v5083_v3 = vadd.f32 %v3930_v60, %v5050_v41  ;;  %v3933_v9 = vadd.f32 %v3932_v2, %v3931_v29 }
 0x18e   : > { %v5088_v26 = vadd.f32 %v3933_v9, %v5055_v54  ;;  %v3998_v14 = vpop.f32.mrb[48].mxu0 }
 0x18f   : > { %v3999_v16 = vpop.f32.mrb[49].mxu0 }
 0x190   : > { %v3934_v12 = vpop.f32.mrb[48].mxu1  ;;  %v4000_v21 = vadd.f32 %v3999_v16, %v3998_v14  ;;  %v4001_v23 = vpop.f32.mrb[50].mxu0 }
 0x191   : > { %v3935_v15 = vpop.f32.mrb[49].mxu1  ;;  %v4002_v42 = vpop.f32.mrb[51].mxu0 }
 0x192   : > { %v3936_v45 = vadd.f32 %v3935_v15, %v3934_v12  ;;  %v3937_v19 = vpop.f32.mrb[50].mxu1  ;;  %v5093_v34 = vadd.f32 %v4000_v21, %v5025_v46  ;;  %v4003_v36 = vadd.f32 %v4002_v42, %v4001_v23 }
 0x193   : > { %v3938_v24 = vpop.f32.mrb[51].mxu1 }
 0x194   : > { %v5090_v28 = vadd.f32 %v3936_v45, %v3824_v1  ;;  %v3939_v41 = vadd.f32 %v3938_v24, %v3937_v19  ;;  %v5098_v54 = vadd.f32 %v4003_v36, %v5028_v49 }
 0x196   : > { %v5095_v38 = vadd.f32 %v3939_v41, %v3827_v10  ;;  %v4004_v61 = vpop.f32.mrb[52].mxu0 }
 0x197   : > { %v4005_v62 = vpop.f32.mrb[53].mxu0 }
 0x198   : > { %v3940_v39 = vpop.f32.mrb[52].mxu1  ;;  %v4006_v5 = vadd.f32 %v4005_v62, %v4004_v61  ;;  %v4007_v1 = vpop.f32.mrb[54].mxu0 }
 0x199   : > { %v3941_v43 = vpop.f32.mrb[53].mxu1  ;;  %v4008_v46 = vpop.f32.mrb[55].mxu0 }
 0x19a   : > { %v3942_v44 = vadd.f32 %v3941_v43, %v3940_v39  ;;  %v3943_v50 = vpop.f32.mrb[54].mxu1  ;;  %v5103_v60 = vadd.f32 %v4006_v5, %v5033_v35  ;;  %v4009_v10 = vadd.f32 %v4008_v46, %v4007_v1 }
 0x19b   : > { %v3944_v57 = vpop.f32.mrb[55].mxu1 }
 0x19c   : > { %v5100_v58 = vadd.f32 %v3942_v44, %v3830_v20  ;;  %v3945_v59 = vadd.f32 %v3944_v57, %v3943_v50  ;;  %v5108_v49 = vadd.f32 %v4009_v10, %v5038_v6 }
 0x19e   : > { %v5105_v29 = vadd.f32 %v3945_v59, %v3833_v31  ;;  %v4010_v2 = vpop.f32.mrb[56].mxu0 }
 0x19f   : > { %v4011_v12 = vpop.f32.mrb[57].mxu0 }
 0x1a0   : > { %v3946_v13 = vpop.f32.mrb[56].mxu1  ;;  %v4012_v15 = vadd.f32 %v4011_v12, %v4010_v2  ;;  %v4013_v20 = vpop.f32.mrb[58].mxu0 }
 0x1a1   : > { %v3947_v18 = vpop.f32.mrb[57].mxu1  ;;  %v4014_v19 = vpop.f32.mrb[59].mxu0 }
 0x1a2   : > { %v3948_v9 = vadd.f32 %v3947_v18, %v3946_v13  ;;  %v3949_v14 = vpop.f32.mrb[58].mxu1  ;;  %v5114_v31 = vadd.f32 %v4012_v15, %v5043_v51  ;;  %v4015_v21 = vadd.f32 %v4014_v19, %v4013_v20 }
 0x1a3   : > { %v3950_v45 = vpop.f32.mrb[59].mxu1 }
 0x1a4   : > { %v5111_v16 = vadd.f32 %v3948_v9, %v5072_v40  ;;  %v3951_v35 = vadd.f32 %v3950_v45, %v3949_v14  ;;  %v5119_v23 = vadd.f32 %v4015_v21, %v5048_v27 }
 0x1a6   : > { %v5116_v6 = vadd.f32 %v3951_v35, %v3839_v52  ;;  %v4016_v41 = vpop.f32.mrb[60].mxu0 }
 0x1a7   : > { %v4017_v39 = vpop.f32.mrb[61].mxu0 }
 0x1a8   : > { %v3952_v24 = vpop.f32.mrb[60].mxu1  ;;  %v4018_v43 = vadd.f32 %v4017_v39, %v4016_v41  ;;  %v4019_v40 = vpop.f32.mrb[62].mxu0 }
 0x1a9   : > { %v3953_v42 = vpop.f32.mrb[61].mxu1  ;;  %v4020_v50 = vpop.f32.mrb[63].mxu0 }
 0x1aa   : > { %v3954_v36 = vadd.f32 %v3953_v42, %v3952_v24  ;;  %v3955_v61 = vpop.f32.mrb[62].mxu1  ;;  %v5125_v52 = vadd.f32 %v4018_v43, %v5053_v4  ;;  %v4021_v5 = vadd.f32 %v4020_v50, %v4019_v40 }
 0x1ab   : > { %v3956_v44 = vpop.f32.mrb[63].mxu1 }
 0x1ac   : > { %v5122_v62 = vadd.f32 %v3954_v36, %v5080_v63  ;;  %v3957_v51 = vadd.f32 %v3956_v44, %v3955_v61  ;;  %v5131_v1 = vadd.f32 %v4021_v5, %v5058_v55 }
 0x1ae   : > { %v5128_v27 = vadd.f32 %v3957_v51, %v5085_v22  ;;  %v4022_v59 = vpop.f32.mrb[64].mxu0 }
 0x1af   : > { %v4023_v13 = vpop.f32.mrb[65].mxu0 }
 0x1b0   : > { %v3958_v57 = vpop.f32.mrb[64].mxu1  ;;  %v4024_v63 = vadd.f32 %v4023_v13, %v4022_v59  ;;  %v4025_v18 = vpop.f32.mrb[66].mxu0 }
 0x1b1   : > { %v3959_v46 = vpop.f32.mrb[65].mxu1  ;;  %v4026_v14 = vpop.f32.mrb[67].mxu0 }
 0x1b2   : > { %v3960_v10 = vadd.f32 %v3959_v46, %v3958_v57  ;;  %v3961_v2 = vpop.f32.mrb[66].mxu1  ;;  %v5137_v22 = vadd.f32 %v4024_v63, %v5061_v7  ;;  %v4027_v15 = vadd.f32 %v4026_v14, %v4025_v18 }
 0x1b3   : > { %v3962_v9 = vpop.f32.mrb[67].mxu1 }
 0x1b4   : > { %v5134_v12 = vadd.f32 %v3960_v10, %v4990_v32  ;;  %v3963_v4 = vadd.f32 %v3962_v9, %v3961_v2  ;;  %v5143_v20 = vadd.f32 %v4027_v15, %v5064_v11 }
 0x1b6   : > { %v5140_v55 = vadd.f32 %v3963_v4, %v4994_v37  ;;  %v4028_v35 = vpop.f32.mrb[68].mxu0 }
 0x1b7   : > { %v4029_v24 = vpop.f32.mrb[69].mxu0 }
 0x1b8   : > { %v3964_v45 = vpop.f32.mrb[68].mxu1  ;;  %v4030_v32 = vadd.f32 %v4029_v24, %v4028_v35  ;;  %v4031_v42 = vpop.f32.mrb[70].mxu0 }
 0x1b9   : > { %v3965_v19 = vpop.f32.mrb[69].mxu1  ;;  %v4032_v61 = vpop.f32.mrb[71].mxu0 }
 0x1ba   : > { %v3966_v21 = vadd.f32 %v3965_v19, %v3964_v45  ;;  %v3967_v41 = vpop.f32.mrb[70].mxu1  ;;  %v5149_v37 = vadd.f32 %v4030_v32, %v5067_v30  ;;  %v4033_v43 = vadd.f32 %v4032_v61, %v4031_v42 }
 0x1bb   : > { %v3968_v36 = vpop.f32.mrb[71].mxu1 }
 0x1bc   : > { %v5146_v39 = vadd.f32 %v3966_v21, %v4998_v48  ;;  %v3969_v7 = vadd.f32 %v3968_v36, %v3967_v41  ;;  %v5155_v40 = vadd.f32 %v4033_v43, %v5070_v33 }
 0x1be   : > { %v5152_v11 = vadd.f32 %v3969_v7, %v5002_v53  ;;  %v4034_v51 = vpop.f32.mrb[72].mxu0 }
 0x1bf   : > { %v4035_v57 = vpop.f32.mrb[73].mxu0 }
 0x1c0   : > { %v3970_v44 = vpop.f32.mrb[72].mxu1  ;;  %v4036_v48 = vadd.f32 %v4035_v57, %v4034_v51  ;;  %v4037_v46 = vpop.f32.mrb[74].mxu0 }
 0x1c1   : > { %v3971_v50 = vpop.f32.mrb[73].mxu1  ;;  %v4038_v2 = vpop.f32.mrb[75].mxu0 }
 0x1c2   : > { %v3972_v5 = vadd.f32 %v3971_v50, %v3970_v44  ;;  %v3973_v59 = vpop.f32.mrb[74].mxu1  ;;  %v5161_v53 = vadd.f32 %v4036_v48, %v5075_v47  ;;  %v4039_v63 = vadd.f32 %v4038_v2, %v4037_v46 }
 0x1c3   : > { %v3974_v10 = vpop.f32.mrb[75].mxu1 }
 0x1c4   : > { %v5158_v13 = vadd.f32 %v3972_v5, %v5006_v0  ;;  %v3975_v30 = vadd.f32 %v3974_v10, %v3973_v59  ;;  %v5167_v18 = vadd.f32 %v4039_v63, %v5078_v56 }
 0x1c6   : > { %v5164_v33 = vadd.f32 %v3975_v30, %v5010_v8  ;;  %v4040_v4 = vpop.f32.mrb[76].mxu0 }
 0x1c7   : > { %v4041_v45 = vpop.f32.mrb[77].mxu0 }
 0x1c8   : > { %v3976_v9 = vpop.f32.mrb[76].mxu1  ;;  %v4042_v0 = vadd.f32 %v4041_v45, %v4040_v4  ;;  %v4043_v19 = vpop.f32.mrb[78].mxu0 }
 0x1c9   : > { %v3977_v14 = vpop.f32.mrb[77].mxu1  ;;  %v4044_v41 = vpop.f32.mrb[79].mxu0 }
 0x1ca   : > { %v3978_v15 = vadd.f32 %v3977_v14, %v3976_v9  ;;  %v3979_v35 = vpop.f32.mrb[78].mxu1  ;;  %v5173_v8 = vadd.f32 %v4042_v0, %v5083_v3  ;;  %v4045_v32 = vadd.f32 %v4044_v41, %v4043_v19 }
 0x1cb   : > { %v3980_v21 = vpop.f32.mrb[79].mxu1 }
 0x1cc   : > { %v5170_v24 = vadd.f32 %v3978_v15, %v5014_v17  ;;  %v3981_v47 = vadd.f32 %v3980_v21, %v3979_v35  ;;  %v5179_v42 = vadd.f32 %v4045_v32, %v5088_v26 }
 0x1ce   : > { %v5176_v56 = vadd.f32 %v3981_v47, %v5018_v25  ;;  %v4046_v7 = vpop.f32.mrb[80].mxu0 }
 0x1cf   : > { %v4047_v43 = vpop.f32.mrb[81].mxu0 }
 0x1d0   : > { %v4110_v36 = vpop.f32.mrb[80].mxu1  ;;  %v4048_v17 = vadd.f32 %v4047_v43, %v4046_v7  ;;  %v4049_v50 = vpop.f32.mrb[82].mxu0 }
 0x1d1   : > { %v4111_v61 = vpop.f32.mrb[81].mxu1  ;;  %v4050_v57 = vpop.f32.mrb[83].mxu0 }
 0x1d2   : > { %v4112_v44 = vadd.f32 %v4111_v61, %v4110_v36  ;;  %v4113_v51 = vpop.f32.mrb[82].mxu1  ;;  %v5185_v25 = vadd.f32 %v4048_v17, %v5090_v28  ;;  %v4051_v48 = vadd.f32 %v4050_v57, %v4049_v50 }
 0x1d3   : > { %v4114_v5 = vpop.f32.mrb[83].mxu1 }
 0x1d4   : > { %v4115_v59 = vadd.f32 %v4114_v5, %v4113_v51  ;;  %v5182_v3 = vadd.f32 %v4112_v44, %v5093_v34  ;;  %v5191_v46 = vadd.f32 %v4051_v48, %v5095_v38 }
 0x1d6   : > { %v5188_v26 = vadd.f32 %v4115_v59, %v5098_v54  ;;  %v4052_v30 = vpop.f32.mrb[84].mxu0 }
 0x1d7   : > { %v4053_v63 = vpop.f32.mrb[85].mxu0 }
 0x1d8   : > { %v4116_v10 = vpop.f32.mrb[84].mxu1  ;;  %v4054_v14 = vadd.f32 %v4053_v63, %v4052_v30  ;;  %v4055_v15 = vpop.f32.mrb[86].mxu0 }
 0x1d9   : > { %v4117_v2 = vpop.f32.mrb[85].mxu1  ;;  %v4056_v45 = vpop.f32.mrb[87].mxu0 }
 0x1da   : > { %v4118_v9 = vadd.f32 %v4117_v2, %v4116_v10  ;;  %v4119_v4 = vpop.f32.mrb[86].mxu1  ;;  %v5197_v54 = vadd.f32 %v4054_v14, %v5100_v58  ;;  %v4057_v0 = vadd.f32 %v4056_v45, %v4055_v15 }
 0x1db   : > { %v4120_v34 = vpop.f32.mrb[87].mxu1 }
 0x1dc   : > { %v4121_v35 = vadd.f32 %v4120_v34, %v4119_v4  ;;  %v5194_v28 = vadd.f32 %v4118_v9, %v5103_v60  ;;  %v5203_v19 = vadd.f32 %v4057_v0, %v5105_v29 }
 0x1de   : > { %v5200_v38 = vadd.f32 %v4121_v35, %v5108_v49  ;;  %v4058_v47 = vpop.f32.mrb[88].mxu0 }
 0x1df   : > { %v4059_v32 = vpop.f32.mrb[89].mxu0 }
 0x1e0   : > { %v4122_v21 = vpop.f32.mrb[88].mxu1  ;;  %v4060_v61 = vadd.f32 %v4059_v32, %v4058_v47  ;;  %v4061_v43 = vpop.f32.mrb[90].mxu0 }
 0x1e1   : > { %v4123_v41 = vpop.f32.mrb[89].mxu1  ;;  %v4062_v44 = vpop.f32.mrb[91].mxu0 }
 0x1e2   : > { %v4124_v36 = vadd.f32 %v4123_v41, %v4122_v21  ;;  %v4125_v7 = vpop.f32.mrb[90].mxu1  ;;  %v5209_v49 = vadd.f32 %v4060_v61, %v5111_v16  ;;  %v4063_v17 = vadd.f32 %v4062_v44, %v4061_v43 }
 0x1e3   : > { %v4126_v60 = vpop.f32.mrb[91].mxu1 }
 0x1e4   : > { %v4127_v51 = vadd.f32 %v4126_v60, %v4125_v7  ;;  %v5206_v58 = vadd.f32 %v4124_v36, %v5114_v31  ;;  %v5215_v50 = vadd.f32 %v4063_v17, %v5116_v6 }
 0x1e6   : > { %v5212_v29 = vadd.f32 %v4127_v51, %v5119_v23  ;;  %v4064_v57 = vpop.f32.mrb[92].mxu0 }
 0x1e7   : > { %v4065_v48 = vpop.f32.mrb[93].mxu0 }
 0x1e8   : > { %v4128_v5 = vpop.f32.mrb[92].mxu1  ;;  %v4066_v2 = vadd.f32 %v4065_v48, %v4064_v57  ;;  %v4067_v63 = vpop.f32.mrb[94].mxu0 }
 0x1e9   : > { %v4129_v59 = vpop.f32.mrb[93].mxu1  ;;  %v4068_v9 = vpop.f32.mrb[95].mxu0 }
 0x1ea   : > { %v4130_v10 = vadd.f32 %v4129_v59, %v4128_v5  ;;  %v4131_v30 = vpop.f32.mrb[94].mxu1  ;;  %v5221_v23 = vadd.f32 %v4066_v2, %v5122_v62  ;;  %v4069_v14 = vadd.f32 %v4068_v9, %v4067_v63 }
 0x1eb   : > { %v4132_v31 = vpop.f32.mrb[95].mxu1 }
 0x1ec   : > { %v4133_v4 = vadd.f32 %v4132_v31, %v4131_v30  ;;  %v5218_v16 = vadd.f32 %v4130_v10, %v5125_v52  ;;  %v5227_v15 = vadd.f32 %v4069_v14, %v5128_v27 }
 0x1ee   : > { %v5224_v6 = vadd.f32 %v4133_v4, %v5131_v1  ;;  %v4070_v45 = vpop.f32.mrb[96].mxu0 }
 0x1ef   : > { %v4071_v0 = vpop.f32.mrb[97].mxu0 }
 0x1f0   : > { %v4134_v34 = vpop.f32.mrb[96].mxu1  ;;  %v4072_v41 = vadd.f32 %v4071_v0, %v4070_v45  ;;  %v4073_v32 = vpop.f32.mrb[98].mxu0 }
 0x1f1   : > { %v4135_v35 = vpop.f32.mrb[97].mxu1  ;;  %v4074_v36 = vpop.f32.mrb[99].mxu0 }
 0x1f2   : > { %v4136_v21 = vadd.f32 %v4135_v35, %v4134_v34  ;;  %v4137_v47 = vpop.f32.mrb[98].mxu1  ;;  %v5233_v1 = vadd.f32 %v4072_v41, %v5134_v12  ;;  %v4075_v61 = vadd.f32 %v4074_v36, %v4073_v32 }
 0x1f3   : > { %v4138_v52 = vpop.f32.mrb[99].mxu1 }
 0x1f4   : > { %v4139_v7 = vadd.f32 %v4138_v52, %v4137_v47  ;;  %v5230_v62 = vadd.f32 %v4136_v21, %v5137_v22  ;;  %v5239_v43 = vadd.f32 %v4075_v61, %v5140_v55 }
 0x1f6   : > { %v5236_v27 = vadd.f32 %v4139_v7, %v5143_v20  ;;  %v4076_v44 = vpop.f32.mrb[100].mxu0 }
 0x1f7   : > { %v4077_v17 = vpop.f32.mrb[101].mxu0 }
 0x1f8   : > { %v4140_v60 = vpop.f32.mrb[100].mxu1  ;;  %v4078_v59 = vadd.f32 %v4077_v17, %v4076_v44  ;;  %v4079_v48 = vpop.f32.mrb[102].mxu0 }
 0x1f9   : > { %v4141_v51 = vpop.f32.mrb[101].mxu1  ;;  %v4080_v10 = vpop.f32.mrb[103].mxu0 }
 0x1fa   : > { %v4142_v5 = vadd.f32 %v4141_v51, %v4140_v60  ;;  %v4143_v57 = vpop.f32.mrb[102].mxu1  ;;  %v5245_v20 = vadd.f32 %v4078_v59, %v5146_v39  ;;  %v4081_v2 = vadd.f32 %v4080_v10, %v4079_v48 }
 0x1fb   : > { %v4144_v22 = vpop.f32.mrb[103].mxu1 }
 0x1fc   : > { %v4145_v30 = vadd.f32 %v4144_v22, %v4143_v57  ;;  %v5242_v12 = vadd.f32 %v4142_v5, %v5149_v37  ;;  %v5251_v63 = vadd.f32 %v4081_v2, %v5152_v11 }
 0x1fe   : > { %v5248_v55 = vadd.f32 %v4145_v30, %v5155_v40  ;;  %v4082_v9 = vpop.f32.mrb[104].mxu0 }
 0x1ff   : > { %v4083_v14 = vpop.f32.mrb[105].mxu0 }
 0x200   : > { %v4146_v31 = vpop.f32.mrb[104].mxu1  ;;  %v4084_v35 = vadd.f32 %v4083_v14, %v4082_v9  ;;  %v4085_v0 = vpop.f32.mrb[106].mxu0 }
 0x201   : > { %v4147_v4 = vpop.f32.mrb[105].mxu1  ;;  %v4086_v21 = vpop.f32.mrb[107].mxu0 }
 0x202   : > { %v4148_v34 = vadd.f32 %v4147_v4, %v4146_v31  ;;  %v4149_v45 = vpop.f32.mrb[106].mxu1  ;;  %v5257_v40 = vadd.f32 %v4084_v35, %v5158_v13  ;;  %v4087_v41 = vadd.f32 %v4086_v21, %v4085_v0 }
 0x203   : > { %v4150_v37 = vpop.f32.mrb[107].mxu1 }
 0x204   : > { %v4151_v47 = vadd.f32 %v4150_v37, %v4149_v45  ;;  %v5254_v39 = vadd.f32 %v4148_v34, %v5161_v53  ;;  %v5263_v32 = vadd.f32 %v4087_v41, %v5164_v33 }
 0x206   : > { %v5260_v11 = vadd.f32 %v4151_v47, %v5167_v18  ;;  %v4088_v36 = vpop.f32.mrb[108].mxu0 }
 0x207   : > { %v4089_v61 = vpop.f32.mrb[109].mxu0 }
 0x208   : > { %v4152_v52 = vpop.f32.mrb[108].mxu1  ;;  %v4090_v51 = vadd.f32 %v4089_v61, %v4088_v36  ;;  %v4091_v17 = vpop.f32.mrb[110].mxu0 }
 0x209   : > { %v4153_v7 = vpop.f32.mrb[109].mxu1  ;;  %v4092_v5 = vpop.f32.mrb[111].mxu0 }
 0x20a   : > { %v4154_v60 = vadd.f32 %v4153_v7, %v4152_v52  ;;  %v4155_v44 = vpop.f32.mrb[110].mxu1  ;;  %v5269_v18 = vadd.f32 %v4090_v51, %v5170_v24  ;;  %v4093_v33 = vadd.f32 %v4092_v5, %v4091_v17 }
 0x20b   : > { %v4156_v53 = vpop.f32.mrb[111].mxu1 }
 0x20c   : > { %v4157_v13 = vadd.f32 %v4156_v53, %v4155_v44  ;;  %v5266_v57 = vadd.f32 %v4154_v60, %v5173_v8  ;;  %v5275_v48 = vadd.f32 %v4093_v33, %v5176_v56 }
 0x20e   : > { %v5272_v59 = vadd.f32 %v4157_v13, %v5179_v42  ;;  %v4248_v10 = vpop.f32.mrb[112].mxu0 }
 0x20f   : > { %v3051_v2 = vadd.f32 %v4248_v10, %v5194_v28  ;;  %v3042_v9 = vpop.f32.mrb[113].mxu0 }
 0x210   : > { %v4158_v22 = vpop.f32.mrb[112].mxu1  ;;  %v3043_v8 = vadd.f32 %v3042_v9, %v5182_v3  ;;  %v4249_v24 = vpop.f32.mrb[114].mxu0 }
 0x211   : > { %v4159_v30 = vpop.f32.mrb[113].mxu1  ;;  %v3054_v34 = vadd.f32 %v4249_v24, %v5200_v38  ;;  %v3045_v45 = vpop.f32.mrb[115].mxu0  ;;  %v3272_v47 = vmul.f32 %v3051_v2, %v3051_v2 }
 0x212   : > { %v4160_v31 = vadd.f32 %v4159_v30, %v4158_v22  ;;  %v4161_v4 = vpop.f32.mrb[114].mxu1  ;;  %v3046_v28 = vadd.f32 %v3045_v45, %v5188_v26  ;;  %v3270_v0 = vmul.f32 %v3043_v8, %v3043_v8 }
 0x213   : > { %v4162_v14 = vpop.f32.mrb[115].mxu1  ;;  %v3671_v35 = vpack.c.bf16 %v3054_v34, %v3051_v2  ;;  %v3273_v51 = vmul.f32 %v3054_v34, %v3054_v34 }
 0x214   : > { %v4163_v42 = vadd.f32 %v4162_v14, %v4161_v4  ;;  %v5282_v56 = vadd.f32 %v4160_v31, %v5185_v25  ;;  %v3666_v38 = vpack.c.bf16 %v3046_v28, %v3043_v8  ;;  %v3233_v37 = vadd.f32 %v3046_v28, %v3043_v8 }
 0x215   : > { %v3271_v21 = vmul.f32 %v3046_v28, %v3046_v28  ;;  %3743 = vst [vmem:[%s5287_s29 + $0x8] sm:$0xff] %v3671_v35  }
 0x216   : > { %v5291_v3 = vadd.f32 %v4163_v42, %v5191_v46  ;;  %3667 = vst [vmem:[%s5287_s29] sm:$0xff] %v3666_v38   ;;  %v3234_v41 = vadd.f32 %v3233_v37, %v3051_v2  ;;  %v4252_v36 = vpop.f32.mrb[116].mxu0 }
 0x217   : > { %v3302_v52 = vadd.f32 %v3271_v21, %v3270_v0  ;;  %v3067_v61 = vadd.f32 %v4252_v36, %v5218_v16  ;;  %v3058_v26 = vpop.f32.mrb[117].mxu0 }
 0x218   : > { %v4164_v25 = vpop.f32.mrb[116].mxu1  ;;  %v3059_v17 = vadd.f32 %v3058_v26, %v5206_v58  ;;  %v3235_v53 = vadd.f32 %v3234_v41, %v3054_v34  ;;  %v4253_v5 = vpop.f32.mrb[118].mxu0 }
 0x219   : > { %v4165_v7 = vpop.f32.mrb[117].mxu1  ;;  %v3303_v46 = vadd.f32 %v3302_v52, %v3272_v47  ;;  %v3070_v33 = vadd.f32 %v4253_v5, %v5224_v6  ;;  %v3061_v10 = vpop.f32.mrb[119].mxu0  ;;  %v3276_v42 = vmul.f32 %v3067_v61, %v3067_v61 }
 0x21a   : > { %v4166_v60 = vadd.f32 %v4165_v7, %v4164_v25  ;;  %v4167_v44 = vpop.f32.mrb[118].mxu1  ;;  %v3236_v16 = vadd.f32 %v3235_v53, %v3059_v17  ;;  %v3274_v2 = vmul.f32 %v3059_v17, %v3059_v17  ;;  %v3062_v9 = vadd.f32 %v3061_v10, %v5212_v29 }
 0x21b   : > { %v4168_v13 = vpop.f32.mrb[119].mxu1  ;;  %v3304_v31 = vadd.f32 %v3303_v46, %v3273_v51  ;;  %v3681_v4 = vpack.c.bf16 %v3070_v33, %v3067_v61  ;;  %v3277_v21 = vmul.f32 %v3070_v33, %v3070_v33 }
 0x21c   : > { %v4169_v22 = vadd.f32 %v4168_v13, %v4167_v44  ;;  %v5299_v30 = vadd.f32 %v4166_v60, %v5197_v54  ;;  %v3676_v24 = vpack.c.bf16 %v3062_v9, %v3059_v17  ;;  %v3237_v14 = vadd.f32 %v3236_v16, %v3062_v9 }
 0x21d   : > { %v3305_v8 = vadd.f32 %v3304_v31, %v3274_v2  ;;  %v3275_v34 = vmul.f32 %v3062_v9, %v3062_v9  ;;  %3745 = vst [vmem:[%s5287_s29 + $0x18] sm:$0xff] %v3681_v4  }
 0x21e   : > { %v5303_v58 = vadd.f32 %v4169_v22, %v5203_v19  ;;  %3744 = vst [vmem:[%s5287_s29 + $0x10] sm:$0xff] %v3676_v24   ;;  %v3238_v45 = vadd.f32 %v3237_v14, %v3067_v61  ;;  %v4256_v28 = vpop.f32.mrb[120].mxu0 }
 0x21f   : > { %v3306_v54 = vadd.f32 %v3305_v8, %v3275_v34  ;;  %v3083_v0 = vadd.f32 %v4256_v28, %v5242_v12  ;;  %v3074_v29 = vpop.f32.mrb[121].mxu0 }
 0x220   : > { %v4170_v6 = vpop.f32.mrb[120].mxu1  ;;  %v3075_v25 = vadd.f32 %v3074_v29, %v5230_v62  ;;  %v3239_v47 = vadd.f32 %v3238_v45, %v3070_v33  ;;  %v4257_v41 = vpop.f32.mrb[122].mxu0 }
 0x221   : > { %v4171_v35 = vpop.f32.mrb[121].mxu1  ;;  %v3307_v19 = vadd.f32 %v3306_v54, %v3276_v42  ;;  %v3086_v36 = vadd.f32 %v4257_v41, %v5248_v55  ;;  %v3077_v61 = vpop.f32.mrb[123].mxu0  ;;  %v3280_v33 = vmul.f32 %v3083_v0, %v3083_v0 }
 0x222   : > { %v4172_v38 = vadd.f32 %v4171_v35, %v4170_v6  ;;  %v4173_v37 = vpop.f32.mrb[122].mxu1  ;;  %v3240_v12 = vadd.f32 %v3239_v47, %v3075_v25  ;;  %v3278_v26 = vmul.f32 %v3075_v25, %v3075_v25  ;;  %v3078_v51 = vadd.f32 %v3077_v61, %v5236_v27 }
 0x223   : > { %v4174_v52 = vpop.f32.mrb[123].mxu1  ;;  %v3308_v44 = vadd.f32 %v3307_v19, %v3277_v21  ;;  %v3691_v46 = vpack.c.bf16 %v3086_v36, %v3083_v0  ;;  %v3281_v4 = vmul.f32 %v3086_v36, %v3086_v36 }
 0x224   : > { %v4175_v7 = vadd.f32 %v4174_v52, %v4173_v37  ;;  %v5311_v60 = vadd.f32 %v4172_v38, %v5209_v49  ;;  %v3686_v53 = vpack.c.bf16 %v3078_v51, %v3075_v25  ;;  %v3241_v5 = vadd.f32 %v3240_v12, %v3078_v51 }
 0x225   : > { %v3309_v17 = vadd.f32 %v3308_v44, %v3278_v26  ;;  %v3279_v13 = vmul.f32 %v3078_v51, %v3078_v51  ;;  %3747 = vst [vmem:[%s5287_s29 + $0x28] sm:$0xff] %v3691_v46  }
 0x226   : > { %v5315_v62 = vadd.f32 %v4175_v7, %v5215_v50  ;;  %3746 = vst [vmem:[%s5287_s29 + $0x20] sm:$0xff] %v3686_v53   ;;  %v3242_v22 = vadd.f32 %v3241_v5, %v3083_v0  ;;  %v4260_v10 = vpop.f32.mrb[124].mxu0 }
 0x227   : > { %v3310_v49 = vadd.f32 %v3309_v17, %v3279_v13  ;;  %v3099_v2 = vadd.f32 %v4260_v10, %v5266_v57  ;;  %v3090_v27 = vpop.f32.mrb[125].mxu0 }
 0x228   : > { %v4176_v55 = vpop.f32.mrb[124].mxu1  ;;  %v3091_v8 = vadd.f32 %v3090_v27, %v5254_v39  ;;  %v3243_v24 = vadd.f32 %v3242_v22, %v3086_v36  ;;  %v4261_v14 = vpop.f32.mrb[126].mxu0 }
 0x229   : > { %v4177_v16 = vpop.f32.mrb[125].mxu1  ;;  %v3311_v50 = vadd.f32 %v3310_v49, %v3280_v33  ;;  %v3102_v6 = vadd.f32 %v4261_v14, %v5272_v59  ;;  %v3093_v45 = vpop.f32.mrb[127].mxu0  ;;  %v3284_v59 = vmul.f32 %v3099_v2, %v3099_v2 }
 0x22a   : > { %v4178_v31 = vadd.f32 %v4177_v16, %v4176_v55  ;;  %v4179_v9 = vpop.f32.mrb[126].mxu1  ;;  %v3244_v28 = vadd.f32 %v3243_v24, %v3091_v8  ;;  %v3282_v57 = vmul.f32 %v3091_v8, %v3091_v8  ;;  %v3094_v0 = vadd.f32 %v3093_v45, %v5260_v11 }
 0x22b   : > { %v4180_v34 = vpop.f32.mrb[127].mxu1  ;;  %v3312_v35 = vadd.f32 %v3311_v50, %v3281_v4  ;;  %v3701_v38 = vpack.c.bf16 %v3102_v6, %v3099_v2  ;;  %v3285_v12 = vmul.f32 %v3102_v6, %v3102_v6 }
 0x22c   : > { %v4181_v42 = vadd.f32 %v4180_v34, %v4179_v9  ;;  %v2970_v54 = vadd.f32 %v4178_v31, %v5221_v23  ;;  %v3696_v37 = vpack.c.bf16 %v3094_v0, %v3091_v8  ;;  %v3245_v21 = vadd.f32 %v3244_v28, %v3094_v0 }
 0x22d   : > { %v3313_v39 = vadd.f32 %v3312_v35, %v3282_v57  ;;  %v3283_v19 = vmul.f32 %v3094_v0, %v3094_v0  ;;  %3749 = vst [vmem:[%s5287_s29 + $0x38] sm:$0xff] %v3701_v38  }
 0x22e   : > { %v2973_v29 = vadd.f32 %v4181_v42, %v5227_v15  ;;  %3748 = vst [vmem:[%s5287_s29 + $0x30] sm:$0xff] %v3696_v37   ;;  %v3246_v47 = vadd.f32 %v3245_v21, %v3099_v2  ;;  %v4264_v52 = vpop.f32.mrb[128].mxu0 }
 0x22f   : > { %v3314_v41 = vadd.f32 %v3313_v39, %v3283_v19  ;;  %v3115_v36 = vadd.f32 %v4264_v52, %v5299_v30  ;;  %v3106_v61 = vpop.f32.mrb[129].mxu0 }
 0x230   : > { %v4182_v25 = vpop.f32.mrb[128].mxu1  ;;  %v3107_v15 = vadd.f32 %v3106_v61, %v5282_v56  ;;  %v3247_v44 = vadd.f32 %v3246_v47, %v3102_v6  ;;  %v4265_v51 = vpop.f32.mrb[130].mxu0 }
 0x231   : > { %v4183_v23 = vpop.f32.mrb[129].mxu1  ;;  %v3315_v26 = vadd.f32 %v3314_v41, %v3284_v59  ;;  %v3118_v17 = vadd.f32 %v4265_v51, %v5303_v58  ;;  %v3109_v5 = vpop.f32.mrb[131].mxu0  ;;  %v3288_v58 = vmul.f32 %v3115_v36, %v3115_v36 }
 0x232   : > { %v4184_v7 = vadd.f32 %v4183_v23, %v4182_v25  ;;  %v4185_v11 = vpop.f32.mrb[130].mxu1  ;;  %v3248_v55 = vadd.f32 %v3247_v44, %v3107_v15  ;;  %v3286_v30 = vmul.f32 %v3107_v15, %v3107_v15  ;;  %v3110_v22 = vadd.f32 %v3109_v5, %v5291_v3 }
 0x233   : > { %v4186_v46 = vpop.f32.mrb[131].mxu1  ;;  %v3316_v33 = vadd.f32 %v3315_v26, %v3285_v12  ;;  %v3711_v49 = vpack.c.bf16 %v3118_v17, %v3115_v36  ;;  %v3289_v3 = vmul.f32 %v3118_v17, %v3118_v17 }
 0x234   : > { %v4187_v53 = vadd.f32 %v4186_v46, %v4185_v11  ;;  %v2978_v13 = vadd.f32 %v4184_v7, %v5233_v1  ;;  %v3706_v16 = vpack.c.bf16 %v3110_v22, %v3107_v15  ;;  %v3249_v2 = vadd.f32 %v3248_v55, %v3110_v22 }
 0x235   : > { %v3317_v56 = vadd.f32 %v3316_v33, %v3286_v30  ;;  %v3287_v31 = vmul.f32 %v3110_v22, %v3110_v22  ;;  %3751 = vst [vmem:[%s5287_s29 + $0x48] sm:$0xff] %v3711_v49  }
 0x236   : > { %v2981_v10 = vadd.f32 %v4187_v53, %v5239_v43  ;;  %3750 = vst [vmem:[%s5287_s29 + $0x40] sm:$0xff] %v3706_v16   ;;  %v3250_v9 = vadd.f32 %v3249_v2, %v3115_v36  ;;  %v4268_v50 = vpop.f32.mrb[132].mxu0 }
 0x237   : > { %v3318_v4 = vadd.f32 %v3317_v56, %v3287_v31  ;;  %v3131_v8 = vadd.f32 %v4268_v50, %v2970_v54  ;;  %v3122_v14 = vpop.f32.mrb[133].mxu0 }
 0x238   : > { %v4188_v27 = vpop.f32.mrb[132].mxu1  ;;  %v3123_v43 = vadd.f32 %v3122_v14, %v5311_v60  ;;  %v3251_v42 = vadd.f32 %v3250_v9, %v3118_v17  ;;  %v4269_v45 = vpop.f32.mrb[134].mxu0 }
 0x239   : > { %v4189_v1 = vpop.f32.mrb[133].mxu1  ;;  %v3319_v6 = vadd.f32 %v3318_v4, %v3288_v58  ;;  %v3134_v57 = vadd.f32 %v4269_v45, %v2973_v29  ;;  %v3125_v0 = vpop.f32.mrb[135].mxu0  ;;  %v3292_v29 = vmul.f32 %v3131_v8, %v3131_v8 }
 0x23a   : > { %v4190_v24 = vadd.f32 %v4189_v1, %v4188_v27  ;;  %v4191_v34 = vpop.f32.mrb[134].mxu1  ;;  %v3252_v39 = vadd.f32 %v3251_v42, %v3123_v43  ;;  %v3290_v37 = vmul.f32 %v3123_v43, %v3123_v43  ;;  %v3126_v21 = vadd.f32 %v3125_v0, %v5315_v62 }
 0x23b   : > { %v4192_v28 = vpop.f32.mrb[135].mxu1  ;;  %v3320_v54 = vadd.f32 %v3319_v6, %v3289_v3  ;;  %v3721_v19 = vpack.c.bf16 %v3134_v57, %v3131_v8  ;;  %v3293_v62 = vmul.f32 %v3134_v57, %v3134_v57 }
 0x23c   : > { %v4193_v35 = vadd.f32 %v4192_v28, %v4191_v34  ;;  %v2986_v38 = vadd.f32 %v4190_v24, %v5245_v20  ;;  %v3716_v60 = vpack.c.bf16 %v3126_v21, %v3123_v43  ;;  %v3253_v47 = vadd.f32 %v3252_v39, %v3126_v21 }
 0x23d   : > { %v3321_v59 = vadd.f32 %v3320_v54, %v3290_v37  ;;  %v3291_v41 = vmul.f32 %v3126_v21, %v3126_v21  ;;  %3753 = vst [vmem:[%s5287_s29 + $0x58] sm:$0xff] %v3721_v19  }
 0x23e   : > { %v2989_v25 = vadd.f32 %v4193_v35, %v5251_v63  ;;  %3752 = vst [vmem:[%s5287_s29 + $0x50] sm:$0xff] %v3716_v60   ;;  %v3254_v23 = vadd.f32 %v3253_v47, %v3131_v8  ;;  %v4272_v7 = vpop.f32.mrb[136].mxu0 }
 0x23f   : > { %v3322_v36 = vadd.f32 %v3321_v59, %v3291_v41  ;;  %v3147_v61 = vadd.f32 %v4272_v7, %v2986_v38  ;;  %v3138_v12 = vpop.f32.mrb[137].mxu0 }
 0x240   : > { %v4194_v52 = vpop.f32.mrb[136].mxu1  ;;  %v3139_v44 = vadd.f32 %v3138_v12, %v2978_v13  ;;  %v3255_v63 = vadd.f32 %v3254_v23, %v3134_v57  ;;  %v4273_v51 = vpop.f32.mrb[138].mxu0 }
 0x241   : > { %v4195_v20 = vpop.f32.mrb[137].mxu1  ;;  %v3323_v15 = vadd.f32 %v3322_v36, %v3292_v29  ;;  %v3150_v17 = vadd.f32 %v4273_v51, %v2989_v25  ;;  %v3141_v5 = vpop.f32.mrb[139].mxu0  ;;  %v3296_v9 = vmul.f32 %v3147_v61, %v3147_v61 }
 0x242   : > { %v4196_v11 = vadd.f32 %v4195_v20, %v4194_v52  ;;  %v4197_v26 = vpop.f32.mrb[138].mxu1  ;;  %v3256_v30 = vadd.f32 %v3255_v63, %v3139_v44  ;;  %v3294_v33 = vmul.f32 %v3139_v44, %v3139_v44  ;;  %v3142_v49 = vadd.f32 %v3141_v5, %v2981_v10 }
 0x243   : > { %v4198_v46 = vpop.f32.mrb[139].mxu1  ;;  %v3324_v22 = vadd.f32 %v3323_v15, %v3293_v62  ;;  %v3731_v56 = vpack.c.bf16 %v3150_v17, %v3147_v61  ;;  %v3297_v34 = vmul.f32 %v3150_v17, %v3150_v17 }
 0x244   : > { %v4199_v53 = vadd.f32 %v4198_v46, %v4197_v26  ;;  %v2994_v55 = vadd.f32 %v4196_v11, %v5257_v40  ;;  %v3726_v31 = vpack.c.bf16 %v3142_v49, %v3139_v44  ;;  %v3257_v13 = vadd.f32 %v3256_v30, %v3142_v49 }
 0x245   : > { %v3325_v2 = vadd.f32 %v3324_v22, %v3294_v33  ;;  %v3295_v27 = vmul.f32 %v3142_v49, %v3142_v49  ;;  %3755 = vst [vmem:[%s5287_s29 + $0x68] sm:$0xff] %v3731_v56  }
 0x246   : > { %v2997_v16 = vadd.f32 %v4199_v53, %v5263_v32  ;;  %3754 = vst [vmem:[%s5287_s29 + $0x60] sm:$0xff] %v3726_v31   ;;  %v3258_v4 = vadd.f32 %v3257_v13, %v3147_v61  ;;  %v4276_v1 = vpop.f32.mrb[140].mxu0 }
 0x247   : > { %v3326_v50 = vadd.f32 %v3325_v2, %v3295_v27  ;;  %v3154_v24 = vpop.f32.mrb[141].mxu0 }
 0x248   : > { %v4200_v58 = vpop.f32.mrb[140].mxu1  ;;  %v3155_v3 = vadd.f32 %v3154_v24, %v2994_v55  ;;  %v3259_v6 = vadd.f32 %v3258_v4, %v3150_v17  ;;  %v4277_v32 = vpop.f32.mrb[142].mxu0 }
 0x249   : > { %v4201_v8 = vpop.f32.mrb[141].mxu1  ;;  %v3327_v10 = vadd.f32 %v3326_v50, %v3296_v9  ;;  %v3157_v28 = vpop.f32.mrb[143].mxu0 }
 0x24a   : > { %v4202_v40 = vadd.f32 %v4201_v8, %v4200_v58  ;;  %v4203_v14 = vpop.f32.mrb[142].mxu1  ;;  %v3260_v57 = vadd.f32 %v3259_v6, %v3155_v3  ;;  %v3298_v35 = vmul.f32 %v3155_v3, %v3155_v3  ;;  %v3158_v38 = vadd.f32 %v3157_v28, %v2997_v16 }
 0x24b   : > { %v4204_v43 = vpop.f32.mrb[143].mxu1  ;;  %v3328_v0 = vadd.f32 %v3327_v10, %v3297_v34 }
 0x24c   : > { %v3002_v42 = vadd.f32 %v4202_v40, %v5269_v18  ;;  %v4205_v45 = vadd.f32 %v4204_v43, %v4203_v14  ;;  %v3736_v21 = vpack.c.bf16 %v3158_v38, %v3155_v3  ;;  %v3261_v19 = vadd.f32 %v3260_v57, %v3158_v38 }
 0x24d   : > { %v3329_v54 = vadd.f32 %v3328_v0, %v3298_v35  ;;  %v3299_v25 = vmul.f32 %v3158_v38, %v3158_v38 }
 0x24e   : > { %v3163_v39 = vadd.f32 %v4276_v1, %v3002_v42  ;;  %v3005_v37 = vadd.f32 %v4205_v45, %v5275_v48  ;;  %3756 = vst [vmem:[%s5287_s29 + $0x70] sm:$0xff] %v3736_v21  }
 0x24f   : > { %v3330_v47 = vadd.f32 %v3329_v54, %v3299_v25 }
 0x250   : > { %v3300_v59 = vmul.f32 %v3163_v39, %v3163_v39  ;;  %v3166_v60 = vadd.f32 %v4277_v32, %v3005_v37  ;;  %v3262_v18 = vadd.f32 %v3261_v19, %v3163_v39 }
 0x252   : > { %v3741_v41 = vpack.c.bf16 %v3166_v60, %v3163_v39  ;;  %v3301_v52 = vmul.f32 %v3166_v60, %v3166_v60  ;;  %v3263_v29 = vadd.f32 %v3262_v18, %v3166_v60  ;;  %v3331_v23 = vadd.f32 %v3330_v47, %v3300_v59 }
 0x254   : > { %3757 = vst [vmem:[%s5287_s29 + $0x78] sm:$0xff] %v3741_v41   ;;  %v3264_v36 = vrot.slane %v3263_v29, 4  ;;  %v3332_v7 = vadd.f32 %v3331_v23, %v3301_v52 }
 0x256   : > { %v3265_v48 = vadd.f32 %v3264_v36, %v3263_v29  ;;  %v3333_v20 = vrot.slane %v3332_v7, 4 }
 0x258   : > { %v3266_v61 = vrot.slane %v3265_v48, 2  ;;  %v3334_v11 = vadd.f32 %v3333_v20, %v3332_v7 }
 0x25a   : > { %v3267_v12 = vadd.f32 %v3266_v61, %v3265_v48  ;;  %v3335_v26 = vrot.slane %v3334_v11, 2 }
 0x25c   : > { %v3268_v62 = vrot.slane %v3267_v12, 1  ;;  %v3336_v15 = vadd.f32 %v3335_v26, %v3334_v11 }
 0x25e   : > { %v3337_v44 = vrot.slane %v3336_v15, 1  ;;  %v3269_v63 = vadd.f32 %v3268_v62, %v3267_v12 }
 0x260   : > { %v3338_v51 = vadd.f32 %v3337_v44, %v3336_v15 }
 0x262   : > { %v3340_v46 = vsel %vm3339_vm0, %v3269_v63, %v3338_v51 }
 0x263   : > { %3341 = vst [vmem:[%s216_s6] sm:$0x3] %v3340_v46 }
 0x264 PF: > { %s15_s15 = sadd.s32 1, %s4590_s15  }
 0x265   : > { %p12_p5 = scmp.ge.s32.totalorder %s15_s15, 4  }
 0x267   :  { %14 = sbr.rel (!%p12_p5) target bundleno = 1 (0x1), region = 76 }

// kernel: residual_layer.4
= control target key start
LH: loop header
LB: loop body
LE: loop exit
PB: predicated region body
PF: predicated region fallthrough
CT: control target
= control target key end

     0   :  { %s4841_s15 = smov 0   ;;  %s5648_s0 = inlined_call_operand.vmem [shape: bf16[8,8,8,128], index: 0, kind: input, shape index: {}]   ;;  %s5649_s1 = inlined_call_operand.vmem [shape: f32[2,128], index: 1, kind: input, shape index: {}]   ;;  %s5650_s2 = inlined_call_operand.vmem [shape: bf16[1152,128], index: 2, kind: input, shape index: {}]   ;;  %s5651_s3 = inlined_call_operand.vmem [shape: bf16[8,8,8,128], index: 3, kind: output, shape index: {0}]   ;;  %s5652_s4 = inlined_call_operand.vmem [shape: f32[2,2,128], index: 4, kind: output, shape index: {1}]  }
   0x1 LB: > { %s4847_s16 = sadd.s32 4294967295, %s4812_s15   ;;  %p3573_p0 = scmp.ge.s32.totalorder %s4812_s15, 1  ;;  %s4812_s15 = sphi %s4841_s15, %s15_s15  }
   0x2   : > { %p167_p1 = scmp.lt.s32.totalorder %s4812_s15, 3 }
   0x4   : > { %p168_p2 = pnand %p3573_p0, %p167_p1 }
   0x5   : > { %v4522_v0 = vld [vmem:[%s5650_s2 + $0x40] sm:$0xff] (!%p168_p2)   ;;  %s3574_s19 = sshll.u32 (!%p168_p2), %s4847_s16, 2  ;;  %v4867_v2 = vld [vmem:[%s5650_s2 + $0x48] sm:$0xff] (!%p168_p2)   ;;  %v4814_v4 = vmov (!%p168_p2), 0.0   ;;  %v4526_v5 = vld [vmem:[%s5650_s2 + $0x50] sm:$0xff] (!%p168_p2)   ;;  %v4815_v6 = vmov (!%p168_p2), 0.0|0.0  }
   0x6   : > { %171 = sbr.rel (%p168_p2) target bundleno = 617 (0x269), region = 32  ;;  %v4523_v1 = vld [vmem:[%s5650_s2] sm:$0xff] (!%p168_p2)   ;;  %p4860_p3 = scmp.lt.s32.totalorder (!%p168_p2), %s3574_s19, 7  ;;  %3977 = vmatprep.subr.bf16.mxu0 (!%p168_p2), %v4522_v0  ;;  %4497 = vmatprep.subr.bf16.mxu1 (!%p168_p2), %v4522_v0  ;;  %v4872_v3 = vld [vmem:[%s5650_s2 + $0x8] sm:$0xff] (!%p168_p2)   ;;  %388 = vst [vmem:[#allocation2] sm:$0xff] (!%p168_p2), %v4814_v4  ;;  %390 = vst [vmem:[#allocation2 + $0xa0] sm:$0xff] (!%p168_p2), %v4814_v4 }
   0x7   : > { %3978 = vmatpush3.bf16.msra.mxu0 (!%p168_p2), %v4523_v1  ;;  %4505 = vmatpush3.bf16.msra.mxu1 (!%p168_p2), %v4523_v1  ;;  %389 = vst [vmem:[#allocation2 + $0x8] sm:$0x3] (!%p168_p2), %v4814_v4  ;;  %406 = vst [vmem:[#allocation2 + $0x10] sm:$0x1] (!%p168_p2), %v4814_v4  ;;  %v4527_v7 = vld [vmem:[%s5650_s2 + $0x10] sm:$0xff] (!%p168_p2)   ;;  %v4528_v8 = vld [vmem:[%s5650_s2 + $0x58] sm:$0xff] (!%p168_p2)  }
   0x8   : > { %391 = vst [vmem:[#allocation2 + $0xa8] sm:$0x3] (!%p168_p2), %v4814_v4  ;;  %392 = vst [vmem:[#allocation2 + $0x140] sm:$0xff] (!%p168_p2), %v4814_v4  ;;  %3979 = vmatprep.subr.bf16.mxu0 (!%p168_p2), %v4867_v2  ;;  %4498 = vmatprep.subr.bf16.mxu1 (!%p168_p2), %v4867_v2  ;;  %v4529_v9 = vld [vmem:[%s5650_s2 + $0x18] sm:$0xff] (!%p168_p2)   ;;  %v4530_v10 = vld [vmem:[%s5650_s2 + $0x60] sm:$0xff] (!%p168_p2)   ;;  %p213_p4 = scmp.lt.s32.totalorder (!%p168_p2), %s4847_s16, 1 }
   0x9   : > { %393 = vst [vmem:[#allocation2 + $0x148] sm:$0x3] (!%p168_p2), %v4814_v4  ;;  %394 = vst [vmem:[#allocation2 + $0x1e0] sm:$0xff] (!%p168_p2), %v4814_v4  ;;  %v4531_v11 = vld [vmem:[%s5650_s2 + $0x20] sm:$0xff] (!%p168_p2)   ;;  %v4532_v12 = vld [vmem:[%s5650_s2 + $0x68] sm:$0xff] (!%p168_p2)   ;;  %vm3477_vm0 = vcmask (!%p168_p2), 1040384  }
   0xa   : > { %395 = vst [vmem:[#allocation2 + $0x1e8] sm:$0x3] (!%p168_p2), %v4814_v4  ;;  %397 = vst [vmem:[#allocation2 + $0x90] sm:$0xff] (!%p168_p2), %v4814_v4  ;;  %v4997_v14 = vld [vmem:[%s5649_s1] ss:$0 sm:$0xff] (!%p168_p2)  ;;  %v4533_v25 = vld [vmem:[%s5650_s2 + $0x28] sm:$0xff] (!%p168_p2)  }
   0xb   : > { %398 = vst [vmem:[#allocation2 + $0x98] sm:$0x3] (!%p168_p2), %v4814_v4  ;;  %399 = vst [vmem:[#allocation2 + $0x130] sm:$0xff] (!%p168_p2), %v4814_v4  ;;  %3980 = vmatpush3.bf16.msra.mxu0 (!%p168_p2), %v4872_v3  ;;  %4506 = vmatpush3.bf16.msra.mxu1 (!%p168_p2), %v4872_v3  ;;  %v5003_v20 = vld [vmem:[%s5649_s1 + $0x1] ss:$0 sm:$0xff] (!%p168_p2)  ;;  %v4534_v28 = vld [vmem:[%s5650_s2 + $0x70] sm:$0xff] (!%p168_p2)  }
   0xc   : > { %400 = vst [vmem:[#allocation2 + $0x138] sm:$0x3] (!%p168_p2), %v4814_v4  ;;  %401 = vst [vmem:[#allocation2 + $0x1d0] sm:$0xff] (!%p168_p2), %v4814_v4  ;;  %3981 = vmatprep.subr.bf16.mxu0 (!%p168_p2), %v4526_v5  ;;  %4499 = vmatprep.subr.bf16.mxu1 (!%p168_p2), %v4526_v5  ;;  %v4535_v35 = vld [vmem:[%s5650_s2 + $0x30] sm:$0xff] (!%p168_p2)   ;;  %v4536_v37 = vld [vmem:[%s5650_s2 + $0x78] sm:$0xff] (!%p168_p2)  }
   0xd   : > { %402 = vst [vmem:[#allocation2 + $0x1d8] sm:$0x3] %v4814_v4  ;;  %403 = vst [vmem:[#allocation2 + $0x270] sm:$0xff] %v4814_v4  ;;  %s5655_s19 = smov (!%p4860_p3, %s3574_s19), 7  ;;  %v4537_v43 = vld [vmem:[%s5650_s2 + $0x38] sm:$0xff]   ;;  %v4544_v49 = vld [vmem:[%s5650_s2 + $0xc0] sm:$0xff]  }
   0xe   : > { %404 = vst [vmem:[#allocation2 + $0x278] sm:$0x3] %v4814_v4  ;;  %407 = vst [vmem:[#allocation2 + $0x20] sm:$0x1] %v4814_v4  ;;  %s3801_s7 = sshll.u32 %s5655_s19, 5  ;;  %v678_v17 = vld [vmem:[#allocation2 + $0x1] sm:$0xff] }
   0xf   : > { %408 = vst [vmem:[#allocation2 + $0x30] sm:$0x1] %v4814_v4  ;;  %409 = vst [vmem:[#allocation2 + $0x40] sm:$0x1] %v4814_v4  ;;  %3982 = vmatpush3.bf16.msra.mxu0 %v4527_v7  ;;  %4507 = vmatpush3.bf16.msra.mxu1 %v4527_v7  ;;  %s4985_s14 = scalar_lea.vmem %s5648_s0, %s3801_s7  ;;  %v718_v21 = vpack.c.bf16 %v678_v17, %v678_v17  ;;  %v4545_v56 = vld [vmem:[%s5650_s2 + $0x140] sm:$0xff]   ;;  %s5572_s26 = scalar_lea.vmem %s5651_s3, %s3801_s7 }
  0x10   : > { %410 = vst [vmem:[#allocation2 + $0x50] sm:$0x1] %v4814_v4  ;;  %411 = vst [vmem:[#allocation2 + $0x60] sm:$0x1] %v4814_v4  ;;  %3983 = vmatprep.subr.bf16.mxu0 %v4528_v8  ;;  %4500 = vmatprep.subr.bf16.mxu1 %v4528_v8  ;;  %v3804_v13 = vld [vmem:[%s4985_s14] sm:$0xff]   ;;  %v3947_v39 = vld [vmem:[%s4985_s14 + $0x8] sm:$0xff]  }
  0x11   : > { %412 = vst [vmem:[#allocation2 + $0x70] sm:$0x1] %v4814_v4  ;;  %413 = vst [vmem:[#allocation2 + $0x80] sm:$0x1] %v4814_v4  ;;  %v3805_v15 = vunpack.c.l.bf16 %v3804_v13  ;;  %v3806_v16 = vunpack.c.h.bf16 %v3804_v13  ;;  %v3958_v18 = vld [vmem:[%s4985_s14 + $0x60] sm:$0xff]   ;;  %v3959_v41 = vld [vmem:[%s4985_s14 + $0x68] sm:$0xff]   ;;  %v3809_v45 = vunpack.c.l.bf16 %v3947_v39  ;;  %v3810_v47 = vunpack.c.h.bf16 %v3947_v39 }
  0x12   : > { %414 = vst [vmem:[#allocation2 + $0xb0] sm:$0x1] %v4814_v4  ;;  %415 = vst [vmem:[#allocation2 + $0xc0] sm:$0x1] %v4814_v4  ;;  %v708_v19 = vld [vmem:[#allocation2 + $0x1e1] sm:$0xff]  ;;  %v3853_v22 = vunpack.c.l.bf16 %v3958_v18  ;;  %v3854_v23 = vunpack.c.h.bf16 %v3958_v18  ;;  %v3857_v46 = vunpack.c.l.bf16 %v3959_v41  ;;  %v3858_v52 = vunpack.c.h.bf16 %v3959_v41  ;;  %v3948_v0 = vld [vmem:[%s4985_s14 + $0x10] sm:$0xff]  }
  0x13   : > { %416 = vst [vmem:[#allocation2 + $0xd0] sm:$0x1] %v4814_v4  ;;  %417 = vst [vmem:[#allocation2 + $0xe0] sm:$0x1] %v4814_v4  ;;  %3984 = vmatpush3.bf16.msra.mxu0 %v4529_v9  ;;  %4508 = vmatpush3.bf16.msra.mxu1 %v4529_v9  ;;  %v748_v24 = vpack.c.bf16 %v708_v19, %v708_v19  ;;  %v288_v26 = vmul.f32 %v3805_v15, %v4997_v14  ;;  %v3960_v2 = vld [vmem:[%s4985_s14 + $0x70] sm:$0xff]   ;;  %v3814_v7 = vunpack.c.h.bf16 %v3948_v0  ;;  %s5657_s16 = smov (!%p213_p4, %s4847_s16), 1 }
  0x14   : > { %418 = vst [vmem:[#allocation2 + $0xf0] sm:$0x1] %v4814_v4  ;;  %419 = vst [vmem:[#allocation2 + $0x100] sm:$0x1] %v4814_v4  ;;  %3985 = vmatprep.subr.bf16.mxu0 %v4530_v10  ;;  %4501 = vmatprep.subr.bf16.mxu1 %v4530_v10  ;;  %v289_v27 = vmul.f32 %v3806_v16, %v4997_v14  ;;  %v312_v29 = vmul.f32 %v3853_v22, %v4997_v14  ;;  %v3861_v5 = vunpack.c.l.bf16 %v3960_v2  ;;  %s3580_s19 = sshll.u32 %s5657_s16, 1 }
  0x15   : > { %420 = vst [vmem:[#allocation2 + $0x110] sm:$0x1] %v4814_v4  ;;  %421 = vst [vmem:[#allocation2 + $0x120] sm:$0x1] %v4814_v4  ;;  %v313_v30 = vmul.f32 %v3854_v23, %v4997_v14  ;;  %v324_v31 = vadd.f32 %v5003_v20, %v288_v26  ;;  %v290_v53 = vmul.f32 %v3809_v45, %v4997_v14  ;;  %s216_s28 = scalar_lea.vmem %s5652_s4, %s3580_s19 }
  0x16   : > { %422 = vst [vmem:[#allocation2 + $0x150] sm:$0x1] %v4814_v4  ;;  %423 = vst [vmem:[#allocation2 + $0x160] sm:$0x1] %v4814_v4  ;;  %v325_v32 = vadd.f32 %v5003_v20, %v289_v27  ;;  %v348_v33 = vadd.f32 %v5003_v20, %v312_v29  ;;  %v314_v54 = vmul.f32 %v3857_v46, %v4997_v14  ;;  %v3949_v27 = vld [vmem:[%s4985_s14 + $0x18] sm:$0xff]   ;;  %v4546_v46 = vld [vmem:[%s5650_s2 + $0x80] sm:$0xff]  }
  0x17   : > { %424 = vst [vmem:[#allocation2 + $0x170] sm:$0x1] %v4814_v4  ;;  %425 = vst [vmem:[#allocation2 + $0x180] sm:$0x1] %v4814_v4  ;;  %3986 = vmatpush3.bf16.msra.mxu0 %v4531_v11  ;;  %4509 = vmatpush3.bf16.msra.mxu1 %v4531_v11  ;;  %v349_v34 = vadd.f32 %v5003_v20, %v313_v30  ;;  %v356_v36 = vmax.f32 %v324_v31, 0.0  ;;  %v291_v55 = vmul.f32 %v3810_v47, %v4997_v14  ;;  %v5054_v29 = vld [vmem:[%s4985_s14 + $0x78] sm:$0xff]  }
  0x18   : > { %426 = vst [vmem:[#allocation2 + $0x190] sm:$0x1] %v4814_v4  ;;  %427 = vst [vmem:[#allocation2 + $0x1a0] sm:$0x1] %v4814_v4  ;;  %3987 = vmatprep.subr.bf16.mxu0 %v4532_v12  ;;  %4502 = vmatprep.subr.bf16.mxu1 %v4532_v12  ;;  %v380_v38 = vmax.f32 %v348_v33, 0.0  ;;  %v357_v40 = vmax.f32 %v325_v32, 0.0  ;;  %v315_v57 = vmul.f32 %v3858_v52, %v4997_v14  ;;  %v3817_v32 = vunpack.c.l.bf16 %v3949_v27 }
  0x19   : > { %428 = vst [vmem:[#allocation2 + $0x1b0] sm:$0x1] %v4814_v4  ;;  %429 = vst [vmem:[#allocation2 + $0x1c0] sm:$0x1] %v4814_v4  ;;  %v381_v42 = vmax.f32 %v349_v34, 0.0  ;;  %v719_v44 = vpack.c.bf16 %v356_v36, %v356_v36  ;;  %v326_v58 = vadd.f32 %v5003_v20, %v290_v53  ;;  %v350_v59 = vadd.f32 %v5003_v20, %v314_v54 }
  0x1a   : > { %430 = vst [vmem:[#allocation2 + $0x1f0] sm:$0x1] %v4814_v4  ;;  %431 = vst [vmem:[#allocation2 + $0x200] sm:$0x1] %v4814_v4  ;;  %v749_v48 = vpack.c.bf16 %v380_v38, %v380_v38  ;;  %v720_v50 = vpack.c.bf16 %v357_v40, %v357_v40  ;;  %v327_v60 = vadd.f32 %v5003_v20, %v291_v55  ;;  %v3865_v33 = vunpack.c.l.bf16 %v5054_v29  ;;  %v4548_v55 = vld [vmem:[%s5650_s2 + $0xc8] sm:$0xff]  }
  0x1b   : > { %432 = vst [vmem:[#allocation2 + $0x210] sm:$0x1] %v4814_v4  ;;  %433 = vst [vmem:[#allocation2 + $0x220] sm:$0x1] %v4814_v4  ;;  %3988 = vmatpush3.bf16.msra.mxu0 %v4533_v25  ;;  %4510 = vmatpush3.bf16.msra.mxu1 %v4533_v25  ;;  %v750_v51 = vpack.c.bf16 %v381_v42, %v381_v42  ;;  %v351_v61 = vadd.f32 %v5003_v20, %v315_v57  ;;  %v358_v62 = vmax.f32 %v326_v58, 0.0 }
  0x1c   : > { %434 = vst [vmem:[#allocation2 + $0x230] sm:$0x1] %v4814_v4  ;;  %435 = vst [vmem:[#allocation2 + $0x240] sm:$0x1] %v4814_v4  ;;  %3989 = vmatprep.subr.bf16.mxu0 %v4534_v28  ;;  %4503 = vmatprep.subr.bf16.mxu1 %v4534_v28  ;;  %v382_v63 = vmax.f32 %v350_v59, 0.0  ;;  %v359_v1 = vmax.f32 %v327_v60, 0.0  ;;  %v293_v23 = vmul.f32 %v3814_v7, %v4997_v14  ;;  %v3818_v34 = vunpack.c.h.bf16 %v3949_v27 }
  0x1d   : > { %436 = vst [vmem:[#allocation2 + $0x250] sm:$0x1] %v4814_v4  ;;  %437 = vst [vmem:[#allocation2 + $0x260] sm:$0x1] %v4814_v4  ;;  %v721_v11 = vpack.c.bf16 %v358_v62, %v358_v62 }
  0x1e   : > { %438 = vst [vmem:[#allocation2 + $0x19] sm:$0x1] %v4814_v4  ;;  %439 = vst [vmem:[#allocation2 + $0x29] sm:$0x1] %v4814_v4  ;;  %v751_v13 = vpack.c.bf16 %v382_v63, %v382_v63  ;;  %v722_v15 = vpack.c.bf16 %v359_v1, %v359_v1  ;;  %v329_v28 = vadd.f32 %v5003_v20, %v293_v23  ;;  %v3950_v23 = vld [vmem:[%s4985_s14 + $0x20] sm:$0xff]  }
  0x1f   : > { %440 = vst [vmem:[#allocation2 + $0x39] sm:$0x1] %v4814_v4  ;;  %441 = vst [vmem:[#allocation2 + $0x49] sm:$0x1] %v4814_v4  ;;  %3990 = vmatpush3.bf16.msra.mxu0 %v4535_v35  ;;  %4511 = vmatpush3.bf16.msra.mxu1 %v4535_v35  ;;  %v295_v45 = vmul.f32 %v3818_v34, %v4997_v14  ;;  %v3821_v27 = vunpack.c.l.bf16 %v3950_v23 }
  0x20   : > { %442 = vst [vmem:[#allocation2 + $0x59] sm:$0x1] %v4814_v4  ;;  %443 = vst [vmem:[#allocation2 + $0x69] sm:$0x1] %v4814_v4  ;;  %3991 = vmatprep.subr.bf16.mxu0 %v4536_v37  ;;  %4504 = vmatprep.subr.bf16.mxu1 %v4536_v37 }
  0x21   : > { %444 = vst [vmem:[#allocation2 + $0x79] sm:$0x1] %v4814_v4  ;;  %445 = vst [vmem:[#allocation2 + $0x89] sm:$0x1] %v4814_v4 }
  0x22   : > { %446 = vst [vmem:[#allocation2 + $0xb9] sm:$0x1] %v4814_v4  ;;  %447 = vst [vmem:[#allocation2 + $0xc9] sm:$0x1] %v4814_v4 }
  0x23   : > { %448 = vst [vmem:[#allocation2 + $0xd9] sm:$0x1] %v4814_v4  ;;  %449 = vst [vmem:[#allocation2 + $0xe9] sm:$0x1] %v4814_v4  ;;  %3992 = vmatpush3.bf16.msra.mxu0 %v4537_v43  ;;  %4512 = vmatpush3.bf16.msra.mxu1 %v4537_v43  ;;  %v294_v43 = vmul.f32 %v3817_v32, %v4997_v14 }
  0x24   : > { %450 = vst [vmem:[#allocation2 + $0xf9] sm:$0x1] %v4814_v4  ;;  %451 = vst [vmem:[#allocation2 + $0x109] sm:$0x1] %v4814_v4  ;;  %4089 = vmatprep.subr.bf16.mxu1 %v4544_v49  ;;  %4201 = vmatprep.subr.bf16.mxu0 %v4545_v56  ;;  %v4559_v49 = vld [vmem:[%s5650_s2 + $0x148] sm:$0xff]  }
  0x25   : > { %452 = vst [vmem:[#allocation2 + $0x119] sm:$0x1] %v4814_v4  ;;  %453 = vst [vmem:[#allocation2 + $0x129] sm:$0x1] %v4814_v4  ;;  %v330_v57 = vadd.f32 %v5003_v20, %v294_v43 }
  0x26   : > { %454 = vst [vmem:[#allocation2 + $0x159] sm:$0x1] %v4814_v4  ;;  %455 = vst [vmem:[#allocation2 + $0x169] sm:$0x1] %v4814_v4 }
  0x27   : > { %456 = vst [vmem:[#allocation2 + $0x179] sm:$0x1] %v4814_v4  ;;  %457 = vst [vmem:[#allocation2 + $0x189] sm:$0x1] %v4814_v4 }
  0x28   : > { %458 = vst [vmem:[#allocation2 + $0x199] sm:$0x1] %v4814_v4  ;;  %459 = vst [vmem:[#allocation2 + $0x1a9] sm:$0x1] %v4814_v4 }
  0x29   : > { %460 = vst [vmem:[#allocation2 + $0x1b9] sm:$0x1] %v4814_v4  ;;  %461 = vst [vmem:[#allocation2 + $0x1c9] sm:$0x1] %v4814_v4 }
  0x2a   : > { %462 = vst [vmem:[#allocation2 + $0x1f9] sm:$0x1] %v4814_v4  ;;  %463 = vst [vmem:[#allocation2 + $0x209] sm:$0x1] %v4814_v4 }
  0x2b   : > { %464 = vst [vmem:[#allocation2 + $0x219] sm:$0x1] %v4814_v4  ;;  %465 = vst [vmem:[#allocation2 + $0x229] sm:$0x1] %v4814_v4 }
  0x2c   : > { %466 = vst [vmem:[#allocation2 + $0x239] sm:$0x1] %v4814_v4  ;;  %467 = vst [vmem:[#allocation2 + $0x249] sm:$0x1] %v4814_v4 }
  0x2d   : > { %468 = vst [vmem:[#allocation2 + $0x259] sm:$0x1] %v4814_v4  ;;  %469 = vst [vmem:[#allocation2 + $0x269] sm:$0x1] %v4814_v4  ;;  %v3813_v4 = vunpack.c.l.bf16 %v3948_v0  ;;  %v362_v0 = vmax.f32 %v330_v57, 0.0 }
  0x2e   : > { %582 = vst [vmem:[#allocation3] sm:$0xf] %v4815_v6  ;;  %606 = vst [vmem:[#allocation3 + $0x360] sm:$0xf] %v4815_v6 }
  0x2f   : > { %590 = vst [vmem:[#allocation3 + $0x120] sm:$0xf] %v4815_v6  ;;  %598 = vst [vmem:[#allocation3 + $0x240] sm:$0xf] %v4815_v6  ;;  %v383_v6 = vmax.f32 %v351_v61, 0.0  ;;  %v292_v19 = vmul.f32 %v3813_v4, %v4997_v14  ;;  %v725_v7 = vpack.c.bf16 %v362_v0, %v362_v0 }
  0x30   : > { %758 = vst [vmem:[#allocation3 + $0x4] sm:$0xf] %v718_v21  ;;  %782 = vst [vmem:[#allocation3 + $0x364] sm:$0xf] %v748_v24  ;;  %v316_v21 = vmul.f32 %v3861_v5, %v4997_v14  ;;  %v3862_v24 = vunpack.c.h.bf16 %v3960_v2  ;;  %v4549_v2 = vld [vmem:[%s5650_s2 + $0x88] sm:$0xff]   ;;  %v4554_v5 = vld [vmem:[%s5650_s2 + $0xd0] sm:$0xff]  }
  0x31   : > { %470 = vst [vmem:[#allocation2 + $0x11] sm:$0xff] %v356_v36  ;;  %494 = vst [vmem:[#allocation2 + $0x1f1] sm:$0xff] %v380_v38  ;;  %v752_v22 = vpack.c.bf16 %v383_v6, %v383_v6  ;;  %v328_v25 = vadd.f32 %v5003_v20, %v292_v19  ;;  %v361_v36 = vmax.f32 %v329_v28, 0.0  ;;  %v4547_v38 = vld [vmem:[%s5650_s2 + $0x100] sm:$0xff]   ;;  %v3822_v28 = vunpack.c.h.bf16 %v3950_v23 }
  0x32   : > { %471 = vst [vmem:[#allocation2 + $0x21] sm:$0xff] %v357_v40  ;;  %495 = vst [vmem:[#allocation2 + $0x201] sm:$0xff] %v381_v42  ;;  %v352_v26 = vadd.f32 %v5003_v20, %v316_v21  ;;  %v317_v30 = vmul.f32 %v3862_v24, %v4997_v14  ;;  %v688_v24 = vld [vmem:[#allocation2 + $0xa1] sm:$0xff] }
  0x33   : > { %759 = vst [vmem:[#allocation3 + $0x28] sm:$0xf] %v719_v44  ;;  %790 = vst [vmem:[#allocation3 + $0x10] sm:$0xf] %v719_v44  ;;  %v360_v31 = vmax.f32 %v328_v25, 0.0  ;;  %v318_v44 = vmul.f32 %v3865_v33, %v4997_v14  ;;  %v724_v58 = vpack.c.bf16 %v361_v36, %v361_v36 }
  0x34   : > { %783 = vst [vmem:[#allocation3 + $0x388] sm:$0xf] %v749_v48  ;;  %814 = vst [vmem:[#allocation3 + $0x370] sm:$0xf] %v749_v48  ;;  %v384_v35 = vmax.f32 %v352_v26, 0.0  ;;  %v353_v37 = vadd.f32 %v5003_v20, %v317_v30  ;;  %v4558_v26 = vld [vmem:[%s5650_s2 + $0xd8] sm:$0xff]  }
  0x35   : > { %760 = vst [vmem:[#allocation3 + $0x4c] sm:$0xf] %v720_v50  ;;  %791 = vst [vmem:[#allocation3 + $0x34] sm:$0xf] %v720_v50  ;;  %v723_v42 = vpack.c.bf16 %v360_v31, %v360_v31  ;;  %v354_v59 = vadd.f32 %v5003_v20, %v318_v44 }
  0x36   : > { %822 = vst [vmem:[#allocation3 + $0x1c] sm:$0xf] %v720_v50  ;;  %784 = vst [vmem:[#allocation3 + $0x3ac] sm:$0xf] %v750_v51  ;;  %v753_v52 = vpack.c.bf16 %v384_v35, %v384_v35 }
  0x37   : > { %815 = vst [vmem:[#allocation3 + $0x394] sm:$0xf] %v750_v51  ;;  %846 = vst [vmem:[#allocation3 + $0x37c] sm:$0xf] %v750_v51 }
  0x38   : > { %v503_v3 = vld [vmem:[#allocation2 + $0x10] sm:$0xff]  ;;  %472 = vst [vmem:[#allocation2 + $0x31] sm:$0xff] %v358_v62  ;;  %496 = vst [vmem:[#allocation2 + $0x211] sm:$0xff] %v382_v63  ;;  %v385_v62 = vmax.f32 %v353_v37, 0.0  ;;  %v331_v63 = vadd.f32 %v5003_v20, %v295_v45 }
  0x39   : > { %v543_v8 = vpack.c.bf16 %v503_v3, %v503_v3  ;;  %v533_v9 = vld [vmem:[#allocation2 + $0x1f0] sm:$0xff]  ;;  %v504_v10 = vld [vmem:[#allocation2 + $0x20] sm:$0xff]  ;;  %473 = vst [vmem:[#allocation2 + $0x41] sm:$0xff] %v359_v1  ;;  %497 = vst [vmem:[#allocation2 + $0x221] sm:$0xff] %v383_v6  ;;  %v386_v1 = vmax.f32 %v354_v59, 0.0 }
  0x3a   : > { %v534_v12 = vld [vmem:[#allocation2 + $0x200] sm:$0xff]  ;;  %v573_v16 = vpack.c.bf16 %v533_v9, %v533_v9  ;;  %v544_v17 = vpack.c.bf16 %v504_v10, %v504_v10  ;;  %761 = vst [vmem:[#allocation3 + $0x70] sm:$0xf] %v721_v11  ;;  %792 = vst [vmem:[#allocation3 + $0x58] sm:$0xf] %v721_v11  ;;  %v754_v3 = vpack.c.bf16 %v385_v62, %v385_v62  ;;  %v363_v4 = vmax.f32 %v331_v63, 0.0 }
  0x3b   : > { %v574_v18 = vpack.c.bf16 %v534_v12, %v534_v12  ;;  %583 = vst [vmem:[#allocation3 + $0x24] sm:$0xf] %v543_v8  ;;  %614 = vst [vmem:[#allocation3 + $0xc] sm:$0xf] %v543_v8  ;;  %v4540_v54 = vld [vmem:[#allocation3 + $0x4] ss:$36 sps:$4 sm:$0xff]   ;;  %v755_v8 = vpack.c.bf16 %v386_v1, %v386_v1  ;;  %v3866_v9 = vunpack.c.h.bf16 %v5054_v29  ;;  %v728_v29 = vpack.c.bf16 %v688_v24, %v688_v24 }
  0x3c   : > { %823 = vst [vmem:[#allocation3 + $0x40] sm:$0xf] %v721_v11  ;;  %785 = vst [vmem:[#allocation3 + $0x3d0] sm:$0xf] %v751_v13  ;;  %v4543_v61 = vld [vmem:[#allocation3 + $0x364] ss:$36 sps:$4 sm:$0xff]   ;;  %2534 = vmatprep.mubr.bf16.mxu0 %v4540_v54  ;;  %v726_v12 = vpack.c.bf16 %v363_v4, %v363_v4 }
  0x3d   : > { %816 = vst [vmem:[#allocation3 + $0x3b8] sm:$0xf] %v751_v13  ;;  %847 = vst [vmem:[#allocation3 + $0x3a0] sm:$0xf] %v751_v13  ;;  %2630 = vmatprep.mubr.bf16.mxu1 %v4543_v61  ;;  %v4561_v6 = vld [vmem:[%s5650_s2 + $0x108] sm:$0xff]   ;;  %v4577_v11 = vld [vmem:[%s5650_s2 + $0x150] sm:$0xff]  }
  0x3e   : > { %762 = vst [vmem:[#allocation3 + $0x94] sm:$0xf] %v722_v15  ;;  %793 = vst [vmem:[#allocation3 + $0x7c] sm:$0xf] %v722_v15  ;;  %v855_v45 = vld [vmem:[#allocation2 + $0x12] sm:$0xff]  ;;  %v4569_v54 = vld [vmem:[%s5650_s2 + $0xa0] sm:$0xff]  }
  0x3f   : > { %824 = vst [vmem:[#allocation3 + $0x64] sm:$0xf] %v722_v15  ;;  %607 = vst [vmem:[#allocation3 + $0x384] sm:$0xf] %v573_v16  ;;  %v505_v39 = vld [vmem:[#allocation2 + $0x30] sm:$0xff]  ;;  %v4571_v63 = vld [vmem:[%s5650_s2 + $0xa8] sm:$0xff]  }
  0x40   : > { %638 = vst [vmem:[#allocation3 + $0x36c] sm:$0xf] %v573_v16  ;;  %584 = vst [vmem:[#allocation3 + $0x48] sm:$0xf] %v544_v17  ;;  %v535_v40 = vld [vmem:[#allocation2 + $0x210] sm:$0xff]  ;;  %v506_v41 = vld [vmem:[#allocation2 + $0x40] sm:$0xff]  ;;  %v545_v47 = vpack.c.bf16 %v505_v39, %v505_v39 }
  0x41   : > { %615 = vst [vmem:[#allocation3 + $0x30] sm:$0xf] %v544_v17  ;;  %646 = vst [vmem:[#allocation3 + $0x18] sm:$0xf] %v544_v17  ;;  %v575_v48 = vpack.c.bf16 %v535_v40, %v535_v40  ;;  %v546_v50 = vpack.c.bf16 %v506_v41, %v506_v41  ;;  %v536_v51 = vld [vmem:[#allocation2 + $0x220] sm:$0xff]  ;;  %v319_v17 = vmul.f32 %v3866_v9, %v4997_v14 }
  0x42   : > { %608 = vst [vmem:[#allocation3 + $0x3a8] sm:$0xf] %v574_v18  ;;  %639 = vst [vmem:[#allocation3 + $0x390] sm:$0xf] %v574_v18  ;;  %v4538_v53 = vld [vmem:[#allocation3] ss:$36 sps:$4 sm:$0xff]   ;;  %v576_v56 = vpack.c.bf16 %v536_v51, %v536_v51 }
  0x43   : > { %670 = vst [vmem:[#allocation3 + $0x378] sm:$0xf] %v574_v18  ;;  %786 = vst [vmem:[#allocation3 + $0x3f4] sm:$0xf] %v752_v22  ;;  %2535 = vmatmul.mubr.bf16.vlgmr.msra.gmra.mrb[0].mxu0 %v4538_v53  ;;  %v4557_v18 = vld [vmem:[%s5650_s2 + $0x90] sm:$0xff]   ;;  %v355_v30 = vadd.f32 %v5003_v20, %v319_v17  ;;  %v854_v41 = vld [vmem:[#allocation2 + $0x2] sm:$0xff] }
  0x44   : > { %817 = vst [vmem:[#allocation3 + $0x3dc] sm:$0xf] %v752_v22  ;;  %848 = vst [vmem:[#allocation3 + $0x3c4] sm:$0xf] %v752_v22  ;;  %4202 = vmatpush3.bf16.msra.mxu0 %v4547_v38  ;;  %v4581_v22 = vld [vmem:[%s5650_s2 + $0x110] sm:$0xff]  }
  0x45   : > { %474 = vst [vmem:[#allocation2 + $0x51] sm:$0xff] %v360_v31  ;;  %498 = vst [vmem:[#allocation2 + $0x231] sm:$0xff] %v384_v35  ;;  %4203 = vmatprep.subr.bf16.mxu0 %v4559_v49  ;;  %v4550_v25 = vld [vmem:[#allocation3 + $0x4c] ss:$36 sps:$4 sm:$0xff]   ;;  %v296_v35 = vmul.f32 %v3821_v27, %v4997_v14  ;;  %v387_v37 = vmax.f32 %v355_v30, 0.0 }
  0x46   : > { %475 = vst [vmem:[#allocation2 + $0x61] sm:$0xff] %v361_v36  ;;  %763 = vst [vmem:[#allocation3 + $0xb8] sm:$0xf] %v723_v42  ;;  %v4541_v60 = vld [vmem:[#allocation3 + $0x360] ss:$36 sps:$4 sm:$0xff]   ;;  %2542 = vmatprep.mubr.bf16.mxu0 %v4550_v25  ;;  %v297_v36 = vmul.f32 %v3822_v28, %v4997_v14 }
  0x47   : > { %794 = vst [vmem:[#allocation3 + $0xa0] sm:$0xf] %v723_v42  ;;  %825 = vst [vmem:[#allocation3 + $0x88] sm:$0xf] %v723_v42  ;;  %2631 = vmatmul.mubr.bf16.vlgmr.msra.gmra.mrb[0].mxu1 %v4541_v60  ;;  %v4552_v31 = vld [vmem:[#allocation3 + $0x3ac] ss:$36 sps:$4 sm:$0xff]   ;;  %v332_v44 = vadd.f32 %v5003_v20, %v296_v35 }
  0x48   : > { %585 = vst [vmem:[#allocation3 + $0x6c] sm:$0xf] %v545_v47  ;;  %616 = vst [vmem:[#allocation3 + $0x54] sm:$0xf] %v545_v47  ;;  %4090 = vmatpush3.bf16.msra.mxu1 %v4546_v46  ;;  %4204 = vmatpush3.bf16.msra.mxu0 %v4561_v6  ;;  %v4560_v46 = vld [vmem:[%s5650_s2 + $0x98] sm:$0xff]   ;;  %v333_v49 = vadd.f32 %v5003_v20, %v297_v36 }
  0x49   : > { %647 = vst [vmem:[#allocation3 + $0x3c] sm:$0xf] %v545_v47  ;;  %609 = vst [vmem:[#allocation3 + $0x3cc] sm:$0xf] %v575_v48  ;;  %4091 = vmatprep.subr.bf16.mxu1 %v4548_v55  ;;  %4205 = vmatprep.subr.bf16.mxu0 %v4577_v11  ;;  %v894_v47 = vpack.c.bf16 %v854_v41, %v854_v41  ;;  %v364_v51 = vmax.f32 %v332_v44, 0.0  ;;  %v4592_v60 = vld [vmem:[%s5650_s2 + $0x158] sm:$0xff]  }
  0x4a   : > { %640 = vst [vmem:[#allocation3 + $0x3b4] sm:$0xf] %v575_v48  ;;  %671 = vst [vmem:[#allocation3 + $0x39c] sm:$0xf] %v575_v48  ;;  %2638 = vmatprep.mubr.bf16.mxu1 %v4552_v31  ;;  %v895_v48 = vpack.c.bf16 %v855_v45, %v855_v45  ;;  %v365_v55 = vmax.f32 %v333_v49, 0.0  ;;  %v4583_v41 = vld [vmem:[%s5650_s2 + $0xb8] sm:$0xff]  }
  0x4b   : > { %586 = vst [vmem:[#allocation3 + $0x90] sm:$0xf] %v546_v50  ;;  %617 = vst [vmem:[#allocation3 + $0x78] sm:$0xf] %v546_v50  ;;  %v729_v59 = vpack.c.bf16 %v364_v51, %v364_v51  ;;  %v4589_v45 = vld [vmem:[%s5650_s2 + $0x1c0] sm:$0xff]  }
  0x4c   : > { %648 = vst [vmem:[#allocation3 + $0x60] sm:$0xf] %v546_v50  ;;  %787 = vst [vmem:[#allocation3 + $0x418] sm:$0xf] %v753_v52  ;;  %v507_v10 = vld [vmem:[#allocation2 + $0x50] sm:$0xff]  ;;  %4092 = vmatpush3.bf16.msra.mxu1 %v4549_v2  ;;  %4206 = vmatpush3.bf16.msra.mxu0 %v4581_v22  ;;  %v4566_v50 = vld [vmem:[%s5650_s2 + $0xe0] sm:$0xff]   ;;  %v730_v61 = vpack.c.bf16 %v365_v55, %v365_v55 }
  0x4d   : > { %818 = vst [vmem:[#allocation3 + $0x400] sm:$0xf] %v753_v52  ;;  %849 = vst [vmem:[#allocation3 + $0x3e8] sm:$0xf] %v753_v52  ;;  %v547_v13 = vpack.c.bf16 %v507_v10, %v507_v10  ;;  %v537_v15 = vld [vmem:[#allocation2 + $0x230] sm:$0xff]  ;;  %v508_v16 = vld [vmem:[#allocation2 + $0x60] sm:$0xff]  ;;  %4093 = vmatprep.subr.bf16.mxu1 %v4554_v5  ;;  %4207 = vmatprep.subr.bf16.mxu0 %v4592_v60 }
  0x4e   : > { %610 = vst [vmem:[#allocation3 + $0x3f0] sm:$0xf] %v576_v56  ;;  %641 = vst [vmem:[#allocation3 + $0x3d8] sm:$0xf] %v576_v56  ;;  %v577_v19 = vpack.c.bf16 %v537_v15, %v537_v15  ;;  %v548_v21 = vpack.c.bf16 %v508_v16, %v508_v16  ;;  %v4562_v52 = vld [vmem:[#allocation3 + $0x94] ss:$36 sps:$4 sm:$0xff]  }
  0x4f   : > { %672 = vst [vmem:[#allocation3 + $0x3c0] sm:$0xf] %v576_v56  ;;  %764 = vst [vmem:[#allocation3 + $0xdc] sm:$0xf] %v724_v58  ;;  %v4555_v32 = vld [vmem:[#allocation3 + $0x48] ss:$36 sps:$4 sm:$0xff]  }
  0x50   : > { %795 = vst [vmem:[#allocation3 + $0xc4] sm:$0xf] %v724_v58  ;;  %826 = vst [vmem:[#allocation3 + $0xac] sm:$0xf] %v724_v58  ;;  %v4556_v33 = vld [vmem:[#allocation3 + $0x3a8] ss:$36 sps:$4 sm:$0xff]   ;;  %2543 = vmatmul.mubr.bf16.gmra.mrb[4].mxu0 %v4555_v32  ;;  %4094 = vmatpush3.bf16.msra.mxu1 %v4557_v18 }
  0x51   : > { %499 = vst [vmem:[#allocation2 + $0x241] sm:$0xff] %v385_v62  ;;  %476 = vst [vmem:[#allocation2 + $0x71] sm:$0xff] %v362_v0  ;;  %2639 = vmatmul.mubr.bf16.gmra.mrb[4].mxu1 %v4556_v33  ;;  %4095 = vmatprep.subr.bf16.mxu1 %v4558_v26  ;;  %v4570_v58 = vld [vmem:[%s5650_s2 + $0xe8] sm:$0xff]   ;;  %v4593_v62 = vld [vmem:[%s5650_s2 + $0x118] sm:$0xff]  }
  0x52   : > { %500 = vst [vmem:[#allocation2 + $0x251] sm:$0xff] %v386_v1  ;;  %788 = vst [vmem:[#allocation3 + $0x43c] sm:$0xf] %v754_v3  ;;  %2550 = vmatprep.mubr.bf16.mxu0 %v4562_v52  ;;  %v3951_v0 = vld [vmem:[%s4985_s14 + $0x28] sm:$0xff]   ;;  %v857_v2 = vld [vmem:[#allocation2 + $0x32] sm:$0xff]  ;;  %4208 = vmatpush3.bf16.msra.mxu0 %v4593_v62 }
  0x53   : > { %819 = vst [vmem:[#allocation3 + $0x424] sm:$0xf] %v754_v3  ;;  %850 = vst [vmem:[#allocation3 + $0x40c] sm:$0xf] %v754_v3  ;;  %v4564_v56 = vld [vmem:[#allocation3 + $0x3f4] ss:$36 sps:$4 sm:$0xff]   ;;  %v3825_v3 = vunpack.c.l.bf16 %v3951_v0  ;;  %v897_v5 = vpack.c.bf16 %v857_v2, %v857_v2  ;;  %v3826_v6 = vunpack.c.h.bf16 %v3951_v0 }
  0x54   : > { %477 = vst [vmem:[#allocation2 + $0x81] sm:$0xff] %v363_v4  ;;  %765 = vst [vmem:[#allocation3 + $0x100] sm:$0xf] %v725_v7  ;;  %4096 = vmatpush3.bf16.msra.mxu1 %v4560_v46  ;;  %2646 = vmatprep.mubr.bf16.mxu1 %v4564_v56  ;;  %v856_v1 = vld [vmem:[#allocation2 + $0x22] sm:$0xff]  ;;  %v4576_v15 = vld [vmem:[%s5650_s2 + $0xf0] sm:$0xff]  }
  0x55   : > { %796 = vst [vmem:[#allocation3 + $0xe8] sm:$0xf] %v725_v7  ;;  %827 = vst [vmem:[#allocation3 + $0xd0] sm:$0xf] %v725_v7  ;;  %4097 = vmatprep.subr.bf16.mxu1 %v4566_v50  ;;  %v896_v4 = vpack.c.bf16 %v856_v1, %v856_v1  ;;  %v3952_v7 = vld [vmem:[%s4985_s14 + $0x30] sm:$0xff]   ;;  %v298_v17 = vmul.f32 %v3825_v3, %v4997_v14  ;;  %v299_v18 = vmul.f32 %v3826_v6, %v4997_v14  ;;  %v4591_v46 = vld [vmem:[%s5650_s2 + $0x180] sm:$0xff]  }
  0x56   : > { %789 = vst [vmem:[#allocation3 + $0x460] sm:$0xf] %v755_v8  ;;  %820 = vst [vmem:[#allocation3 + $0x448] sm:$0xf] %v755_v8  ;;  %v3829_v10 = vunpack.c.l.bf16 %v3952_v7  ;;  %v4588_v26 = vld [vmem:[#allocation3 + $0xc] ss:$36 sps:$4 sm:$0xff]  }
  0x57   : > { %851 = vst [vmem:[#allocation3 + $0x430] sm:$0xf] %v755_v8  ;;  %797 = vst [vmem:[#allocation3 + $0x10c] sm:$0xf] %v726_v12  ;;  %v858_v8 = vld [vmem:[#allocation2 + $0x42] sm:$0xff]  ;;  %v334_v27 = vadd.f32 %v5003_v20, %v298_v17  ;;  %v859_v32 = vld [vmem:[#allocation2 + $0x52] sm:$0xff] }
  0x58   : > { %828 = vst [vmem:[#allocation3 + $0xf4] sm:$0xf] %v726_v12  ;;  %587 = vst [vmem:[#allocation3 + $0xb4] sm:$0xf] %v547_v13  ;;  %v538_v34 = vld [vmem:[#allocation2 + $0x240] sm:$0xff]  ;;  %v509_v38 = vld [vmem:[#allocation2 + $0x70] sm:$0xff]  ;;  %4098 = vmatpush3.bf16.msra.mxu1 %v4569_v54  ;;  %v898_v11 = vpack.c.bf16 %v858_v8, %v858_v8  ;;  %v3830_v12 = vunpack.c.h.bf16 %v3952_v7  ;;  %v300_v22 = vmul.f32 %v3829_v10, %v4997_v14 }
  0x59   : > { %618 = vst [vmem:[#allocation3 + $0x9c] sm:$0xf] %v547_v13  ;;  %649 = vst [vmem:[#allocation3 + $0x84] sm:$0xf] %v547_v13  ;;  %v539_v39 = vld [vmem:[#allocation2 + $0x250] sm:$0xff]  ;;  %v578_v40 = vpack.c.bf16 %v538_v34, %v538_v34  ;;  %v549_v42 = vpack.c.bf16 %v509_v38, %v509_v38  ;;  %4099 = vmatprep.subr.bf16.mxu1 %v4570_v58  ;;  %v366_v34 = vmax.f32 %v334_v27, 0.0 }
  0x5a   : > { %611 = vst [vmem:[#allocation3 + $0x414] sm:$0xf] %v577_v19  ;;  %642 = vst [vmem:[#allocation3 + $0x3fc] sm:$0xf] %v577_v19  ;;  %v579_v43 = vpack.c.bf16 %v539_v39, %v539_v39  ;;  %v301_v23 = vmul.f32 %v3830_v12, %v4997_v14  ;;  %v336_v31 = vadd.f32 %v5003_v20, %v300_v22  ;;  %v4582_v14 = vld [vmem:[%s5650_s2 + $0xf8] sm:$0xff]   ;;  %v4605_v52 = vld [vmem:[%s5650_s2 + $0x1c8] sm:$0xff]  }
  0x5b   : > { %673 = vst [vmem:[#allocation3 + $0x3e4] sm:$0xf] %v577_v19  ;;  %588 = vst [vmem:[#allocation3 + $0xd8] sm:$0xf] %v548_v21  ;;  %v4572_v9 = vld [vmem:[#allocation3 + $0xdc] ss:$36 sps:$4 sm:$0xff]   ;;  %v899_v36 = vpack.c.bf16 %v859_v32, %v859_v32  ;;  %v731_v39 = vpack.c.bf16 %v366_v34, %v366_v34 }
  0x5c   : > { %619 = vst [vmem:[#allocation3 + $0xc0] sm:$0xf] %v548_v21  ;;  %650 = vst [vmem:[#allocation3 + $0xa8] sm:$0xf] %v548_v21  ;;  %v4580_v19 = vld [vmem:[%s5650_s2 + $0xb0] sm:$0xff]   ;;  %4100 = vmatpush3.bf16.msra.mxu1 %v4571_v63  ;;  %v337_v33 = vadd.f32 %v5003_v20, %v301_v23  ;;  %v368_v38 = vmax.f32 %v336_v31, 0.0 }
  0x5d   : > { %766 = vst [vmem:[#allocation3 + $0x124] sm:$0xf] %v728_v29  ;;  %501 = vst [vmem:[#allocation2 + $0x261] sm:$0xff] %v387_v37  ;;  %v4574_v13 = vld [vmem:[#allocation3 + $0x43c] ss:$36 sps:$4 sm:$0xff]   ;;  %v335_v29 = vadd.f32 %v5003_v20, %v299_v18  ;;  %4101 = vmatprep.subr.bf16.mxu1 %v4576_v15  ;;  %v4616_v63 = vld [vmem:[%s5650_s2 + $0x168] sm:$0xff]  }
  0x5e   : > { %612 = vst [vmem:[#allocation3 + $0x438] sm:$0xf] %v578_v40  ;;  %643 = vst [vmem:[#allocation3 + $0x420] sm:$0xf] %v578_v40  ;;  %v4604_v37 = vld [vmem:[%s5650_s2 + $0x160] sm:$0xff]   ;;  %v4609_v6 = vld [vmem:[%s5650_s2 + $0x188] sm:$0xff]  }
  0x5f   : > { %674 = vst [vmem:[#allocation3 + $0x408] sm:$0xf] %v578_v40  ;;  %589 = vst [vmem:[#allocation3 + $0xfc] sm:$0xf] %v549_v42  ;;  %v4567_v53 = vld [vmem:[#allocation3 + $0x90] ss:$36 sps:$4 sm:$0xff]   ;;  %4209 = vmatprep.subr.bf16.mxu0 %v4604_v37 }
  0x60   : > { %620 = vst [vmem:[#allocation3 + $0xe4] sm:$0xf] %v549_v42  ;;  %651 = vst [vmem:[#allocation3 + $0xcc] sm:$0xf] %v549_v42  ;;  %2551 = vmatmul.mubr.bf16.gmra.mrb[8].mxu0 %v4567_v53  ;;  %v367_v35 = vmax.f32 %v335_v29, 0.0  ;;  %v4608_v20 = vld [vmem:[%s5650_s2 + $0x120] sm:$0xff]   ;;  %4102 = vmatpush3.bf16.msra.mxu1 %v4580_v19  ;;  %v733_v42 = vpack.c.bf16 %v368_v38, %v368_v38 }
  0x61   : > { %613 = vst [vmem:[#allocation3 + $0x45c] sm:$0xf] %v579_v43  ;;  %644 = vst [vmem:[#allocation3 + $0x444] sm:$0xf] %v579_v43  ;;  %v4568_v57 = vld [vmem:[#allocation3 + $0x3f0] ss:$36 sps:$4 sm:$0xff]   ;;  %2558 = vmatprep.mubr.bf16.mxu0 %v4572_v9  ;;  %4103 = vmatprep.subr.bf16.mxu1 %v4582_v14 }
  0x62   : > { %675 = vst [vmem:[#allocation3 + $0x42c] sm:$0xf] %v579_v43  ;;  %934 = vst [vmem:[#allocation3 + $0x8] sm:$0xf] %v894_v47  ;;  %2647 = vmatmul.mubr.bf16.gmra.mrb[8].mxu1 %v4568_v57  ;;  %v732_v40 = vpack.c.bf16 %v367_v35, %v367_v35  ;;  %v369_v43 = vmax.f32 %v337_v33, 0.0  ;;  %4210 = vmatpush3.bf16.msra.mxu0 %v4608_v20  ;;  %v510_v50 = vld [vmem:[#allocation2 + $0x80] sm:$0xff] }
  0x63   : > { %935 = vst [vmem:[#allocation3 + $0x2c] sm:$0xf] %v895_v48  ;;  %966 = vst [vmem:[#allocation3 + $0x14] sm:$0xf] %v895_v48  ;;  %2654 = vmatprep.mubr.bf16.mxu1 %v4574_v13  ;;  %v4596_v47 = vld [vmem:[#allocation3 + $0x54] ss:$36 sps:$4 sm:$0xff]   ;;  %v550_v54 = vpack.c.bf16 %v510_v50, %v510_v50  ;;  %4211 = vmatprep.subr.bf16.mxu0 %v4616_v63 }
  0x64   : > { %478 = vst [vmem:[#allocation2 + $0xb1] sm:$0xff] %v364_v51  ;;  %479 = vst [vmem:[#allocation2 + $0xc1] sm:$0xff] %v365_v55  ;;  %v3953_v48 = vld [vmem:[%s4985_s14 + $0x38] sm:$0xff]   ;;  %v734_v49 = vpack.c.bf16 %v369_v43, %v369_v43  ;;  %v860_v51 = vld [vmem:[#allocation2 + $0x62] sm:$0xff]  ;;  %4104 = vmatpush3.bf16.msra.mxu1 %v4583_v41 }
  0x65   : > { %767 = vst [vmem:[#allocation3 + $0x148] sm:$0xf] %v729_v59  ;;  %798 = vst [vmem:[#allocation3 + $0x130] sm:$0xf] %v729_v59  ;;  %v3833_v53 = vunpack.c.l.bf16 %v3953_v48  ;;  %v861_v55 = vld [vmem:[#allocation2 + $0x72] sm:$0xff]  ;;  %v900_v56 = vpack.c.bf16 %v860_v51, %v860_v51  ;;  %v3834_v57 = vunpack.c.h.bf16 %v3953_v48  ;;  %4313 = vmatprep.subr.bf16.mxu1 %v4589_v45  ;;  %v4617_v10 = vld [vmem:[%s5650_s2 + $0x128] sm:$0xff]  }
  0x66   : > { %768 = vst [vmem:[#allocation3 + $0x16c] sm:$0xf] %v730_v61  ;;  %799 = vst [vmem:[#allocation3 + $0x154] sm:$0xf] %v730_v61  ;;  %v4578_v16 = vld [vmem:[#allocation3 + $0xd8] ss:$36 sps:$4 sm:$0xff]   ;;  %v901_v60 = vpack.c.bf16 %v861_v55, %v861_v55  ;;  %4212 = vmatpush3.bf16.msra.mxu0 %v4617_v10 }
  0x67   : > { %830 = vst [vmem:[#allocation3 + $0x13c] sm:$0xf] %v730_v61  ;;  %936 = vst [vmem:[#allocation3 + $0x50] sm:$0xf] %v896_v4  ;;  %v5168_v61 = vld [vmem:[%s5649_s1] ss:$0 sm:$0xff] }
  0x68   : > { %937 = vst [vmem:[#allocation3 + $0x74] sm:$0xf] %v897_v5  ;;  %967 = vst [vmem:[#allocation3 + $0x38] sm:$0xf] %v896_v4  ;;  %v4579_v24 = vld [vmem:[#allocation3 + $0x438] ss:$36 sps:$4 sm:$0xff]   ;;  %2559 = vmatmul.mubr.bf16.gmra.mrb[12].mxu0 %v4578_v16  ;;  %v302_v62 = vmul.f32 %v5168_v61, %v3833_v53  ;;  %v303_v0 = vmul.f32 %v5168_v61, %v3834_v57 }
  0x69   : > { %968 = vst [vmem:[#allocation3 + $0x5c] sm:$0xf] %v897_v5  ;;  %998 = vst [vmem:[#allocation3 + $0x20] sm:$0xf] %v896_v4  ;;  %v5181_v7 = vld [vmem:[%s5649_s1 + $0x1] ss:$0 sm:$0xff] }
  0x6a   : > { %999 = vst [vmem:[#allocation3 + $0x44] sm:$0xf] %v897_v5  ;;  %938 = vst [vmem:[#allocation3 + $0x98] sm:$0xf] %v898_v11  ;;  %2655 = vmatmul.mubr.bf16.gmra.mrb[12].mxu1 %v4579_v24  ;;  %v4586_v44 = vld [vmem:[#allocation3 + $0x8] ss:$36 sps:$4 sm:$0xff]   ;;  %v338_v8 = vadd.f32 %v5181_v7, %v302_v62  ;;  %v339_v12 = vadd.f32 %v5181_v7, %v303_v0 }
  0x6b   : > { %v513_v21 = vld [vmem:[#allocation2 + $0xb0] sm:$0xff]  ;;  %969 = vst [vmem:[#allocation3 + $0x80] sm:$0xf] %v898_v11  ;;  %1000 = vst [vmem:[#allocation3 + $0x68] sm:$0xf] %v898_v11  ;;  %v514_v28 = vld [vmem:[#allocation2 + $0xc0] sm:$0xff]  ;;  %2695 = vmatprep.mubr.bf16.mxu1 %v4588_v26 }
  0x6c   : > { %v553_v25 = vpack.c.bf16 %v513_v21, %v513_v21  ;;  %v554_v30 = vpack.c.bf16 %v514_v28, %v514_v28  ;;  %480 = vst [vmem:[#allocation2 + $0xd1] sm:$0xff] %v366_v34  ;;  %481 = vst [vmem:[#allocation2 + $0xe1] sm:$0xff] %v367_v35  ;;  %v4584_v58 = vld [vmem:[#allocation3 + $0x124] ss:$36 sps:$4 sm:$0xff]   ;;  %v370_v15 = vmax.f32 %v338_v8, 0.0  ;;  %v371_v27 = vmax.f32 %v339_v12, 0.0 }
  0x6d   : > { %939 = vst [vmem:[#allocation3 + $0xbc] sm:$0xf] %v899_v36  ;;  %970 = vst [vmem:[#allocation3 + $0xa4] sm:$0xf] %v899_v36  ;;  %2566 = vmatprep.mubr.bf16.mxu0 %v4584_v58  ;;  %v3954_v11 = vld [vmem:[%s4985_s14 + $0x40] sm:$0xff]   ;;  %v4622_v31 = vld [vmem:[%s5650_s2 + $0x1d0] sm:$0xff]  }
  0x6e   : > { %591 = vst [vmem:[#allocation3 + $0x144] sm:$0xf] %v553_v25  ;;  %622 = vst [vmem:[#allocation3 + $0x12c] sm:$0xf] %v553_v25  ;;  %v3837_v17 = vunpack.c.l.bf16 %v3954_v11  ;;  %v3838_v18 = vunpack.c.h.bf16 %v3954_v11  ;;  %v698_v19 = vld [vmem:[#allocation2 + $0x141] sm:$0xff]  ;;  %v865_v25 = vld [vmem:[#allocation2 + $0xb2] sm:$0xff]  ;;  %v735_v28 = vpack.c.bf16 %v370_v15, %v370_v15  ;;  %v736_v34 = vpack.c.bf16 %v371_v27, %v371_v27 }
  0x6f   : > { %592 = vst [vmem:[#allocation3 + $0x168] sm:$0xf] %v554_v30  ;;  %623 = vst [vmem:[#allocation3 + $0x150] sm:$0xf] %v554_v30  ;;  %v4599_v13 = vld [vmem:[#allocation3 + $0x50] ss:$36 sps:$4 sm:$0xff]   ;;  %v738_v24 = vpack.c.bf16 %v698_v19, %v698_v19 }
  0x70   : > { %654 = vst [vmem:[#allocation3 + $0x138] sm:$0xf] %v554_v30  ;;  %1001 = vst [vmem:[#allocation3 + $0x8c] sm:$0xf] %v899_v36  ;;  %v864_v21 = vld [vmem:[#allocation2 + $0xa2] sm:$0xff]  ;;  %v304_v29 = vmul.f32 %v5168_v61, %v3837_v17  ;;  %v905_v30 = vpack.c.bf16 %v865_v25, %v865_v25  ;;  %v305_v32 = vmul.f32 %v5168_v61, %v3838_v18  ;;  %v4625_v33 = vld [vmem:[%s5650_s2 + $0x190] sm:$0xff]  }
  0x71   : > { %482 = vst [vmem:[#allocation2 + $0xf1] sm:$0xff] %v368_v38  ;;  %769 = vst [vmem:[#allocation3 + $0x190] sm:$0xf] %v731_v39  ;;  %v4602_v22 = vld [vmem:[#allocation3 + $0x9c] ss:$36 sps:$4 sm:$0xff]   ;;  %v904_v26 = vpack.c.bf16 %v864_v21, %v864_v21  ;;  %v3955_v14 = vld [vmem:[%s4985_s14 + $0x48] sm:$0xff]  }
  0x72   : > { %800 = vst [vmem:[#allocation3 + $0x178] sm:$0xf] %v731_v39  ;;  %831 = vst [vmem:[#allocation3 + $0x160] sm:$0xf] %v731_v39  ;;  %2696 = vmatmul.mubr.bf16.vlgmr.msra.gmra.mrb[16].mxu1 %v4586_v44  ;;  %v340_v35 = vadd.f32 %v5181_v7, %v304_v29  ;;  %v3841_v36 = vunpack.c.l.bf16 %v3955_v14  ;;  %v341_v37 = vadd.f32 %v5181_v7, %v305_v32  ;;  %v3842_v38 = vunpack.c.h.bf16 %v3955_v14  ;;  %v866_v20 = vld [vmem:[#allocation2 + $0xc2] sm:$0xff]  ;;  %v4630_v44 = vld [vmem:[%s5650_s2 + $0x170] sm:$0xff]  }
  0x73   : > { %770 = vst [vmem:[#allocation3 + $0x1b4] sm:$0xf] %v732_v40  ;;  %801 = vst [vmem:[#allocation3 + $0x19c] sm:$0xf] %v732_v40  ;;  %v515_v1 = vld [vmem:[#allocation2 + $0xd0] sm:$0xff]  ;;  %v516_v2 = vld [vmem:[#allocation2 + $0xe0] sm:$0xff]  ;;  %4314 = vmatpush3.bf16.msra.mxu1 %v4591_v46  ;;  %2703 = vmatprep.mubr.bf16.mxu1 %v4596_v47 }
  0x74   : > { %832 = vst [vmem:[#allocation3 + $0x184] sm:$0xf] %v732_v40  ;;  %771 = vst [vmem:[#allocation3 + $0x1d8] sm:$0xf] %v733_v42  ;;  %v555_v3 = vpack.c.bf16 %v515_v1, %v515_v1  ;;  %v556_v5 = vpack.c.bf16 %v516_v2, %v516_v2  ;;  %4315 = vmatprep.subr.bf16.mxu1 %v4605_v52  ;;  %v867_v39 = vld [vmem:[#allocation2 + $0xd2] sm:$0xff]  ;;  %v372_v40 = vmax.f32 %v340_v35, 0.0  ;;  %4213 = vmatprep.subr.bf16.mxu0 %v4630_v44 }
  0x75   : > { %802 = vst [vmem:[#allocation3 + $0x1c0] sm:$0xf] %v733_v42  ;;  %833 = vst [vmem:[#allocation3 + $0x1a8] sm:$0xf] %v733_v42  ;;  %v4590_v59 = vld [vmem:[#allocation3 + $0x120] ss:$36 sps:$4 sm:$0xff]   ;;  %v306_v41 = vmul.f32 %v5168_v61, %v3841_v36  ;;  %v907_v48 = vpack.c.bf16 %v867_v39, %v867_v39 }
  0x76   : > { %483 = vst [vmem:[#allocation2 + $0x101] sm:$0xff] %v369_v43  ;;  %772 = vst [vmem:[#allocation3 + $0x1fc] sm:$0xf] %v734_v49  ;;  %2567 = vmatmul.mubr.bf16.gmra.mrb[16].mxu0 %v4590_v59  ;;  %v373_v42 = vmax.f32 %v341_v37, 0.0  ;;  %v906_v43 = vpack.c.bf16 %v866_v20, %v866_v20  ;;  %v4633_v45 = vld [vmem:[%s5650_s2 + $0x130] sm:$0xff]   ;;  %v739_v51 = vpack.c.bf16 %v372_v40, %v372_v40  ;;  %v868_v1 = vld [vmem:[#allocation2 + $0xe2] sm:$0xff] }
  0x77   : > { %803 = vst [vmem:[#allocation3 + $0x1e4] sm:$0xf] %v734_v49  ;;  %834 = vst [vmem:[#allocation3 + $0x1cc] sm:$0xf] %v734_v49  ;;  %4316 = vmatpush3.bf16.msra.mxu1 %v4609_v6  ;;  %v307_v49 = vmul.f32 %v5168_v61, %v3842_v38  ;;  %v342_v52 = vadd.f32 %v5181_v7, %v306_v41  ;;  %4214 = vmatpush3.bf16.msra.mxu0 %v4633_v45  ;;  %v3956_v0 = vld [vmem:[%s4985_s14 + $0x50] sm:$0xff]   ;;  %v4804_v10 = vld [vmem:[#allocation2] sm:$0xff] }
  0x78   : > { %621 = vst [vmem:[#allocation3 + $0x108] sm:$0xf] %v550_v54  ;;  %940 = vst [vmem:[#allocation3 + $0xe0] sm:$0xf] %v900_v56  ;;  %v517_v4 = vld [vmem:[#allocation2 + $0xf0] sm:$0xff]  ;;  %4317 = vmatprep.subr.bf16.mxu1 %v4622_v31  ;;  %v740_v53 = vpack.c.bf16 %v373_v42, %v373_v42  ;;  %v3845_v2 = vunpack.c.l.bf16 %v3956_v0  ;;  %v3846_v6 = vunpack.c.h.bf16 %v3956_v0  ;;  %v551_v11 = vpack.c.bf16 %v4804_v10, %v4804_v10  ;;  %v4643_v31 = vld [vmem:[%s5650_s2 + $0x138] sm:$0xff]  }
  0x79   : > { %652 = vst [vmem:[#allocation3 + $0xf0] sm:$0xf] %v550_v54  ;;  %971 = vst [vmem:[#allocation3 + $0xc8] sm:$0xf] %v900_v56  ;;  %v557_v9 = vpack.c.bf16 %v517_v4, %v517_v4  ;;  %v4594_v46 = vld [vmem:[#allocation3 + $0x16c] ss:$36 sps:$4 sm:$0xff]  }
  0x7a   : > { %1002 = vst [vmem:[#allocation3 + $0xb0] sm:$0xf] %v900_v56  ;;  %941 = vst [vmem:[#allocation3 + $0x104] sm:$0xf] %v901_v60  ;;  %2704 = vmatmul.mubr.bf16.gmra.mrb[20].mxu1 %v4599_v13  ;;  %2574 = vmatprep.mubr.bf16.mxu0 %v4594_v46  ;;  %v4607_v54 = vld [vmem:[#allocation3 + $0x98] ss:$36 sps:$4 sm:$0xff]   ;;  %v343_v56 = vadd.f32 %v5181_v7, %v307_v49 }
  0x7b   : > { %972 = vst [vmem:[#allocation3 + $0xec] sm:$0xf] %v901_v60  ;;  %1003 = vst [vmem:[#allocation3 + $0xd4] sm:$0xf] %v901_v60  ;;  %2711 = vmatprep.mubr.bf16.mxu1 %v4602_v22  ;;  %4318 = vmatpush3.bf16.msra.mxu1 %v4625_v33  ;;  %v4600_v50 = vld [vmem:[#allocation3 + $0x1b4] ss:$36 sps:$4 sm:$0xff]  }
  0x7c   : > { %593 = vst [vmem:[#allocation3 + $0x18c] sm:$0xf] %v555_v3  ;;  %624 = vst [vmem:[#allocation3 + $0x174] sm:$0xf] %v555_v3  ;;  %v374_v58 = vmax.f32 %v342_v52, 0.0  ;;  %v375_v60 = vmax.f32 %v343_v56, 0.0 }
  0x7d   : > { %655 = vst [vmem:[#allocation3 + $0x15c] sm:$0xf] %v555_v3  ;;  %594 = vst [vmem:[#allocation3 + $0x1b0] sm:$0xf] %v556_v5  ;;  %v518_v16 = vld [vmem:[#allocation2 + $0x100] sm:$0xff]  ;;  %v869_v4 = vld [vmem:[#allocation2 + $0xf2] sm:$0xff] }
  0x7e   : > { %625 = vst [vmem:[#allocation3 + $0x198] sm:$0xf] %v556_v5  ;;  %656 = vst [vmem:[#allocation3 + $0x180] sm:$0xf] %v556_v5  ;;  %v558_v23 = vpack.c.bf16 %v518_v16, %v518_v16  ;;  %v741_v63 = vpack.c.bf16 %v374_v58, %v374_v58  ;;  %v742_v3 = vpack.c.bf16 %v375_v60, %v375_v60  ;;  %v4641_v22 = vld [vmem:[%s5650_s2 + $0x198] sm:$0xff]   ;;  %v870_v37 = vld [vmem:[#allocation2 + $0x102] sm:$0xff] }
  0x7f   : > { %595 = vst [vmem:[#allocation3 + $0x1d4] sm:$0xf] %v557_v9  ;;  %626 = vst [vmem:[#allocation3 + $0x1bc] sm:$0xf] %v557_v9  ;;  %v4612_v59 = vld [vmem:[#allocation3 + $0xe4] ss:$36 sps:$4 sm:$0xff]   ;;  %v908_v5 = vpack.c.bf16 %v868_v1, %v868_v1  ;;  %v909_v8 = vpack.c.bf16 %v869_v4, %v869_v4  ;;  %v309_v16 = vmul.f32 %v5168_v61, %v3846_v6 }
  0x80   : > { %657 = vst [vmem:[#allocation3 + $0x1a4] sm:$0xf] %v557_v9  ;;  %484 = vst [vmem:[#allocation2 + $0x111] sm:$0xff] %v370_v15  ;;  %v4638_v9 = vld [vmem:[%s5650_s2 + $0x1d8] sm:$0xff]   ;;  %v308_v15 = vmul.f32 %v5168_v61, %v3845_v2  ;;  %v910_v41 = vpack.c.bf16 %v870_v37, %v870_v37  ;;  %v4658_v2 = vld [vmem:[%s5650_s2 + $0x1a0] sm:$0xff]  }
  0x81   : > { %596 = vst [vmem:[#allocation3 + $0x1f8] sm:$0xf] %v558_v23  ;;  %627 = vst [vmem:[#allocation3 + $0x1e0] sm:$0xf] %v558_v23  ;;  %v4615_v17 = vld [vmem:[#allocation3 + $0xe0] ss:$36 sps:$4 sm:$0xff]   ;;  %4319 = vmatprep.subr.bf16.mxu1 %v4638_v9 }
  0x82   : > { %658 = vst [vmem:[#allocation3 + $0x1c8] sm:$0xf] %v558_v23  ;;  %774 = vst [vmem:[#allocation3 + $0x244] sm:$0xf] %v738_v24  ;;  %2712 = vmatmul.mubr.bf16.gmra.mrb[24].mxu1 %v4607_v54  ;;  %v344_v21 = vadd.f32 %v5181_v7, %v308_v15  ;;  %v345_v23 = vadd.f32 %v5181_v7, %v309_v16  ;;  %v4642_v24 = vld [vmem:[%s5650_s2 + $0x178] sm:$0xff]   ;;  %v4655_v54 = vld [vmem:[%s5650_s2 + $0x1e0] sm:$0xff]  }
  0x83   : > { %942 = vst [vmem:[#allocation3 + $0x128] sm:$0xf] %v904_v26  ;;  %485 = vst [vmem:[#allocation2 + $0x121] sm:$0xff] %v371_v27  ;;  %v4598_v47 = vld [vmem:[#allocation3 + $0x168] ss:$36 sps:$4 sm:$0xff]   ;;  %2719 = vmatprep.mubr.bf16.mxu1 %v4612_v59  ;;  %4320 = vmatpush3.bf16.msra.mxu1 %v4641_v22  ;;  %v3957_v35 = vld [vmem:[%s4985_s14 + $0x58] sm:$0xff]  }
  0x84   : > { %773 = vst [vmem:[#allocation3 + $0x220] sm:$0xf] %v735_v28  ;;  %804 = vst [vmem:[#allocation3 + $0x208] sm:$0xf] %v735_v28  ;;  %2575 = vmatmul.mubr.bf16.gmra.mrb[20].mxu0 %v4598_v47  ;;  %v4620_v26 = vld [vmem:[#allocation3 + $0x12c] ss:$36 sps:$4 sm:$0xff]   ;;  %4215 = vmatprep.subr.bf16.mxu0 %v4642_v24  ;;  %v3849_v38 = vunpack.c.l.bf16 %v3957_v35  ;;  %v3850_v45 = vunpack.c.h.bf16 %v3957_v35 }
  0x85   : > { %835 = vst [vmem:[#allocation3 + $0x1f0] sm:$0xf] %v735_v28  ;;  %943 = vst [vmem:[#allocation3 + $0x14c] sm:$0xf] %v905_v30  ;;  %2582 = vmatprep.mubr.bf16.mxu0 %v4600_v50  ;;  %v376_v27 = vmax.f32 %v344_v21, 0.0  ;;  %v377_v32 = vmax.f32 %v345_v23, 0.0  ;;  %4216 = vmatpush3.bf16.msra.mxu0 %v4643_v31 }
  0x86   : > { %974 = vst [vmem:[#allocation3 + $0x134] sm:$0xf] %v905_v30  ;;  %805 = vst [vmem:[#allocation3 + $0x22c] sm:$0xf] %v736_v34  ;;  %v4606_v62 = vld [vmem:[#allocation3 + $0x1b0] ss:$36 sps:$4 sm:$0xff]   ;;  %v310_v46 = vmul.f32 %v5168_v61, %v3849_v38  ;;  %v311_v50 = vmul.f32 %v5168_v61, %v3850_v45  ;;  %4321 = vmatprep.subr.bf16.mxu1 %v4655_v54 }
  0x87   : > { %836 = vst [vmem:[#allocation3 + $0x214] sm:$0xf] %v736_v34  ;;  %486 = vst [vmem:[#allocation2 + $0x151] sm:$0xff] %v372_v40  ;;  %v519_v55 = vld [vmem:[#allocation2 + $0x110] sm:$0xff]  ;;  %v743_v34 = vpack.c.bf16 %v376_v27, %v376_v27  ;;  %v744_v20 = vpack.c.bf16 %v377_v32, %v377_v32  ;;  %v5238_v61 = vld [vmem:[%s5650_s2 + $0x200] sm:$0xff]   ;;  %4322 = vmatpush3.bf16.msra.mxu1 %v4658_v2 }
  0x88   : > { %487 = vst [vmem:[#allocation2 + $0x161] sm:$0xff] %v373_v42  ;;  %944 = vst [vmem:[#allocation3 + $0x170] sm:$0xf] %v906_v43  ;;  %v559_v57 = vpack.c.bf16 %v519_v55, %v519_v55  ;;  %v871_v40 = vld [vmem:[#allocation2 + $0x112] sm:$0xff]  ;;  %v874_v42 = vld [vmem:[#allocation2 + $0x142] sm:$0xff]  ;;  %v347_v55 = vadd.f32 %v5181_v7, %v311_v50  ;;  %4449 = vmatprep.subr.bf16.mxu0 %v5238_v61 }
  0x89   : > { %975 = vst [vmem:[#allocation3 + $0x158] sm:$0xf] %v906_v43  ;;  %1006 = vst [vmem:[#allocation3 + $0x140] sm:$0xf] %v906_v43  ;;  %v911_v43 = vpack.c.bf16 %v871_v40, %v871_v40  ;;  %v914_v44 = vpack.c.bf16 %v874_v42, %v874_v42  ;;  %v4628_v52 = vld [vmem:[#allocation3 + $0x174] ss:$36 sps:$4 sm:$0xff]  }
  0x8a   : > { %945 = vst [vmem:[#allocation3 + $0x194] sm:$0xf] %v907_v48  ;;  %976 = vst [vmem:[#allocation3 + $0x17c] sm:$0xf] %v907_v48  ;;  %v520_v36 = vld [vmem:[#allocation2 + $0x120] sm:$0xff]  ;;  %2720 = vmatmul.mubr.bf16.gmra.mrb[28].mxu1 %v4615_v17  ;;  %v4673_v23 = vld [vmem:[%s5650_s2 + $0x1a8] sm:$0xff]  }
  0x8b   : > { %1007 = vst [vmem:[#allocation3 + $0x164] sm:$0xf] %v907_v48  ;;  %775 = vst [vmem:[#allocation3 + $0x268] sm:$0xf] %v739_v51  ;;  %v4610_v25 = vld [vmem:[#allocation3 + $0x1fc] ss:$36 sps:$4 sm:$0xff]   ;;  %v560_v39 = vpack.c.bf16 %v520_v36, %v520_v36  ;;  %2727 = vmatprep.mubr.bf16.mxu1 %v4620_v26 }
  0x8c   : > { %806 = vst [vmem:[#allocation3 + $0x250] sm:$0xf] %v739_v51  ;;  %776 = vst [vmem:[#allocation3 + $0x28c] sm:$0xf] %v740_v53  ;;  %2583 = vmatmul.mubr.bf16.gmra.mrb[24].mxu0 %v4606_v62  ;;  %v4624_v51 = vld [vmem:[#allocation3 + $0x128] ss:$36 sps:$4 sm:$0xff]  }
  0x8d   : > { %807 = vst [vmem:[#allocation3 + $0x274] sm:$0xf] %v740_v53  ;;  %838 = vst [vmem:[#allocation3 + $0x25c] sm:$0xf] %v740_v53  ;;  %2590 = vmatprep.mubr.bf16.mxu0 %v4610_v25  ;;  %v346_v53 = vadd.f32 %v5181_v7, %v310_v46  ;;  %v885_v38 = vld [vmem:[#allocation2 + $0x1f2] sm:$0xff]  ;;  %v886_v42 = vld [vmem:[#allocation2 + $0x202] sm:$0xff] }
  0x8e   : > { %597 = vst [vmem:[#allocation3 + $0x21c] sm:$0xf] %v559_v57  ;;  %628 = vst [vmem:[#allocation3 + $0x204] sm:$0xf] %v559_v57  ;;  %v523_v12 = vld [vmem:[#allocation2 + $0x150] sm:$0xff] }
  0x8f   : > { %659 = vst [vmem:[#allocation3 + $0x1ec] sm:$0xf] %v559_v57  ;;  %488 = vst [vmem:[#allocation2 + $0x171] sm:$0xff] %v374_v58  ;;  %v524_v13 = vld [vmem:[#allocation2 + $0x160] sm:$0xff]  ;;  %v563_v18 = vpack.c.bf16 %v523_v12, %v523_v12  ;;  %v875_v47 = vld [vmem:[#allocation2 + $0x152] sm:$0xff]  ;;  %v378_v57 = vmax.f32 %v346_v53, 0.0 }
  0x90   : > { %489 = vst [vmem:[#allocation2 + $0x181] sm:$0xff] %v375_v60  ;;  %777 = vst [vmem:[#allocation3 + $0x2b0] sm:$0xf] %v741_v63  ;;  %v564_v19 = vpack.c.bf16 %v524_v13, %v524_v13  ;;  %v915_v49 = vpack.c.bf16 %v875_v47, %v875_v47  ;;  %v379_v60 = vmax.f32 %v347_v55, 0.0  ;;  %v4684_v40 = vld [vmem:[%s5650_s2 + $0x1f0] sm:$0xff]   ;;  %v4699_v55 = vld [vmem:[%s5650_s2 + $0x1f8] sm:$0xff]  }
  0x91   : > { %808 = vst [vmem:[#allocation3 + $0x298] sm:$0xf] %v741_v63  ;;  %839 = vst [vmem:[#allocation3 + $0x280] sm:$0xf] %v741_v63  ;;  %v745_v1 = vpack.c.bf16 %v378_v57, %v378_v57  ;;  %v4632_v4 = vld [vmem:[#allocation3 + $0x170] ss:$36 sps:$4 sm:$0xff]  }
  0x92   : > { %778 = vst [vmem:[#allocation3 + $0x2d4] sm:$0xf] %v742_v3  ;;  %809 = vst [vmem:[#allocation3 + $0x2bc] sm:$0xf] %v742_v3  ;;  %v4618_v48 = vld [vmem:[#allocation3 + $0x244] ss:$36 sps:$4 sm:$0xff]   ;;  %2728 = vmatmul.mubr.bf16.gmra.mrb[32].mxu1 %v4624_v51  ;;  %v746_v7 = vpack.c.bf16 %v379_v60, %v379_v60 }
  0x93   : > { %840 = vst [vmem:[#allocation3 + $0x2a4] sm:$0xf] %v742_v3  ;;  %946 = vst [vmem:[#allocation3 + $0x1b8] sm:$0xf] %v908_v5  ;;  %2735 = vmatprep.mubr.bf16.mxu1 %v4628_v52  ;;  %v876_v3 = vld [vmem:[#allocation2 + $0x162] sm:$0xff]  ;;  %v887_v46 = vld [vmem:[#allocation2 + $0x212] sm:$0xff] }
  0x94   : > { %977 = vst [vmem:[#allocation3 + $0x1a0] sm:$0xf] %v908_v5  ;;  %1008 = vst [vmem:[#allocation3 + $0x188] sm:$0xf] %v908_v5  ;;  %v4636_v5 = vld [vmem:[#allocation3 + $0x1bc] ss:$36 sps:$4 sm:$0xff]   ;;  %v916_v6 = vpack.c.bf16 %v876_v3, %v876_v3  ;;  %v927_v47 = vpack.c.bf16 %v887_v46, %v887_v46 }
  0x95   : > { %947 = vst [vmem:[#allocation3 + $0x1dc] sm:$0xf] %v909_v8  ;;  %978 = vst [vmem:[#allocation3 + $0x1c4] sm:$0xf] %v909_v8  ;;  %v4614_v28 = vld [vmem:[#allocation3 + $0x1f8] ss:$36 sps:$4 sm:$0xff]  }
  0x96   : > { %1009 = vst [vmem:[#allocation3 + $0x1ac] sm:$0xf] %v909_v8  ;;  %653 = vst [vmem:[#allocation3 + $0x114] sm:$0xf] %v551_v11  ;;  %v525_v29 = vld [vmem:[#allocation2 + $0x170] sm:$0xff]  ;;  %2591 = vmatmul.mubr.bf16.gmra.mrb[28].mxu0 %v4614_v28  ;;  %v862_v28 = vld [vmem:[#allocation2 + $0x82] sm:$0xff] }
  0x97   : > { %661 = vst [vmem:[#allocation3 + $0x234] sm:$0xf] %v551_v11  ;;  %669 = vst [vmem:[#allocation3 + $0x354] sm:$0xf] %v551_v11  ;;  %v526_v30 = vld [vmem:[#allocation2 + $0x180] sm:$0xff]  ;;  %v565_v33 = vpack.c.bf16 %v525_v29, %v525_v29  ;;  %2598 = vmatprep.mubr.bf16.mxu0 %v4618_v48  ;;  %v877_v8 = vld [vmem:[#allocation2 + $0x172] sm:$0xff] }
  0x98   : > { %677 = vst [vmem:[#allocation3 + $0x474] sm:$0xf] %v551_v11  ;;  %599 = vst [vmem:[#allocation3 + $0x264] sm:$0xf] %v563_v18  ;;  %v566_v14 = vpack.c.bf16 %v526_v30, %v526_v30  ;;  %v4626_v63 = vld [vmem:[#allocation3 + $0x28c] ss:$36 sps:$4 sm:$0xff]   ;;  %v917_v9 = vpack.c.bf16 %v877_v8, %v877_v8 }
  0x99   : > { %630 = vst [vmem:[#allocation3 + $0x24c] sm:$0xf] %v563_v18  ;;  %600 = vst [vmem:[#allocation3 + $0x288] sm:$0xf] %v564_v19  ;;  %v878_v10 = vld [vmem:[#allocation2 + $0x182] sm:$0xff]  ;;  %v889_v50 = vld [vmem:[#allocation2 + $0x232] sm:$0xff] }
  0x9a   : > { %631 = vst [vmem:[#allocation3 + $0x270] sm:$0xf] %v564_v19  ;;  %662 = vst [vmem:[#allocation3 + $0x258] sm:$0xf] %v564_v19  ;;  %v918_v13 = vpack.c.bf16 %v878_v10, %v878_v10  ;;  %2736 = vmatmul.mubr.bf16.gmra.mrb[36].mxu1 %v4632_v4  ;;  %v4669_v19 = vld [vmem:[%s5650_s2 + $0x1e8] sm:$0xff]   ;;  %v929_v53 = vpack.c.bf16 %v889_v50, %v889_v50  ;;  %v4700_v8 = vld [vmem:[%s5650_s2 + $0x218] sm:$0xff]  }
  0x9b   : > { %490 = vst [vmem:[#allocation2 + $0x191] sm:$0xff] %v376_v27  ;;  %491 = vst [vmem:[#allocation2 + $0x1a1] sm:$0xff] %v377_v32  ;;  %2743 = vmatprep.mubr.bf16.mxu1 %v4636_v5  ;;  %4323 = vmatprep.subr.bf16.mxu1 %v4669_v19  ;;  %v902_v32 = vpack.c.bf16 %v862_v28, %v862_v28  ;;  %v4654_v45 = vld [vmem:[#allocation3 + $0x14] ss:$36 sps:$4 sm:$0xff]  }
  0x9c   : > { %601 = vst [vmem:[#allocation3 + $0x2ac] sm:$0xf] %v565_v33  ;;  %632 = vst [vmem:[#allocation3 + $0x294] sm:$0xf] %v565_v33  ;;  %v4640_v21 = vld [vmem:[#allocation3 + $0x1b8] ss:$36 sps:$4 sm:$0xff]   ;;  %4324 = vmatpush3.bf16.msra.mxu1 %v4673_v23 }
  0x9d   : > { %663 = vst [vmem:[#allocation3 + $0x27c] sm:$0xf] %v565_v33  ;;  %602 = vst [vmem:[#allocation3 + $0x2d0] sm:$0xf] %v566_v14  ;;  %v884_v33 = vld [vmem:[#allocation2 + $0x1e2] sm:$0xff]  ;;  %4325 = vmatprep.subr.bf16.mxu1 %v4684_v40  ;;  %v4685_v5 = vld [vmem:[%s5650_s2 + $0x210] sm:$0xff]  }
  0x9e   : > { %779 = vst [vmem:[#allocation3 + $0x2f8] sm:$0xf] %v743_v34  ;;  %633 = vst [vmem:[#allocation3 + $0x2b8] sm:$0xf] %v566_v14  ;;  %v924_v36 = vpack.c.bf16 %v884_v33, %v884_v33  ;;  %v4652_v54 = vld [vmem:[#allocation3 + $0x10] ss:$36 sps:$4 sm:$0xff]  }
  0x9f   : > { %664 = vst [vmem:[#allocation3 + $0x2a0] sm:$0xf] %v566_v14  ;;  %810 = vst [vmem:[#allocation3 + $0x2e0] sm:$0xf] %v743_v34  ;;  %v4623_v62 = vld [vmem:[#allocation3 + $0x240] ss:$36 sps:$4 sm:$0xff]  }
  0xa0   : > { %841 = vst [vmem:[#allocation3 + $0x2c8] sm:$0xf] %v743_v34  ;;  %780 = vst [vmem:[#allocation3 + $0x31c] sm:$0xf] %v744_v20  ;;  %2599 = vmatmul.mubr.bf16.gmra.mrb[32].mxu0 %v4623_v62  ;;  %v4805_v14 = vld [vmem:[#allocation2 + $0x261] sm:$0xff]  ;;  %v4740_v23 = vld [vmem:[%s5650_s2 + $0x230] sm:$0xff]  }
  0xa1   : > { %811 = vst [vmem:[#allocation3 + $0x304] sm:$0xf] %v744_v20  ;;  %842 = vst [vmem:[#allocation3 + $0x2ec] sm:$0xf] %v744_v20  ;;  %2606 = vmatprep.mubr.bf16.mxu0 %v4626_v63  ;;  %v756_v34 = vpack.c.bf16 %v4805_v14, %v4805_v14  ;;  %v4650_v20 = vld [vmem:[#allocation3 + $0x24c] ss:$36 sps:$4 sm:$0xff]  }
  0xa2   : > { %629 = vst [vmem:[#allocation3 + $0x228] sm:$0xf] %v560_v39  ;;  %948 = vst [vmem:[#allocation3 + $0x200] sm:$0xf] %v910_v41  ;;  %v527_v56 = vld [vmem:[#allocation2 + $0x190] sm:$0xff]  ;;  %v528_v59 = vld [vmem:[#allocation2 + $0x1a0] sm:$0xff]  ;;  %2744 = vmatmul.mubr.bf16.gmra.mrb[40].mxu1 %v4640_v21 }
  0xa3   : > { %660 = vst [vmem:[#allocation3 + $0x210] sm:$0xf] %v560_v39  ;;  %979 = vst [vmem:[#allocation3 + $0x1e8] sm:$0xf] %v910_v41  ;;  %v567_v58 = vpack.c.bf16 %v527_v56, %v527_v56  ;;  %v568_v0 = vpack.c.bf16 %v528_v59, %v528_v59  ;;  %v879_v12 = vld [vmem:[#allocation2 + $0x192] sm:$0xff]  ;;  %v880_v26 = vld [vmem:[#allocation2 + $0x1a2] sm:$0xff]  ;;  %v925_v39 = vpack.c.bf16 %v885_v38, %v885_v38 }
  0xa4   : > { %1010 = vst [vmem:[#allocation3 + $0x1d0] sm:$0xf] %v910_v41  ;;  %949 = vst [vmem:[#allocation3 + $0x224] sm:$0xf] %v911_v43  ;;  %v4631_v15 = vld [vmem:[#allocation3 + $0x288] ss:$36 sps:$4 sm:$0xff]   ;;  %v919_v17 = vpack.c.bf16 %v879_v12, %v879_v12  ;;  %v920_v30 = vpack.c.bf16 %v880_v26, %v880_v26 }
  0xa5   : > { %980 = vst [vmem:[#allocation3 + $0x20c] sm:$0xf] %v911_v43  ;;  %1011 = vst [vmem:[#allocation3 + $0x1f4] sm:$0xf] %v911_v43  ;;  %v4634_v18 = vld [vmem:[#allocation3 + $0x2d4] ss:$36 sps:$4 sm:$0xff]  }
  0xa6   : > { %950 = vst [vmem:[#allocation3 + $0x248] sm:$0xf] %v914_v44  ;;  %951 = vst [vmem:[#allocation3 + $0x26c] sm:$0xf] %v915_v49  ;;  %v4688_v41 = vld [vmem:[%s5650_s2 + $0x1b0] sm:$0xff]   ;;  %v926_v44 = vpack.c.bf16 %v886_v42, %v886_v42  ;;  %v540_v59 = vld [vmem:[#allocation2 + $0x260] sm:$0xff] }
  0xa7   : > { %982 = vst [vmem:[#allocation3 + $0x254] sm:$0xf] %v915_v49  ;;  %492 = vst [vmem:[#allocation2 + $0x1b1] sm:$0xff] %v378_v57  ;;  %4326 = vmatpush3.bf16.msra.mxu1 %v4688_v41  ;;  %v888_v49 = vld [vmem:[#allocation2 + $0x222] sm:$0xff]  ;;  %v4659_v51 = vld [vmem:[#allocation3 + $0x294] ss:$36 sps:$4 sm:$0xff]  }
  0xa8   : > { %603 = vst [vmem:[#allocation3 + $0x2f4] sm:$0xf] %v567_v58  ;;  %634 = vst [vmem:[#allocation3 + $0x2dc] sm:$0xf] %v567_v58  ;;  %2607 = vmatmul.mubr.bf16.gmra.mrb[36].mxu0 %v4631_v15  ;;  %v928_v52 = vpack.c.bf16 %v888_v49, %v888_v49  ;;  %v4661_v56 = vld [vmem:[#allocation3 + $0x5c] ss:$36 sps:$4 sm:$0xff]   ;;  %4327 = vmatprep.subr.bf16.mxu1 %v4699_v55 }
  0xa9   : > { %665 = vst [vmem:[#allocation3 + $0x2c4] sm:$0xf] %v567_v58  ;;  %493 = vst [vmem:[#allocation2 + $0x1c1] sm:$0xff] %v379_v60  ;;  %v4646_v22 = vld [vmem:[#allocation3 + $0x204] ss:$36 sps:$4 sm:$0xff]   ;;  %2614 = vmatprep.mubr.bf16.mxu0 %v4634_v18  ;;  %v4703_v58 = vld [vmem:[%s5650_s2 + $0x1b8] sm:$0xff]   ;;  %v580_v60 = vpack.c.bf16 %v540_v59, %v540_v59 }
  0xaa   : > { %604 = vst [vmem:[#allocation3 + $0x318] sm:$0xf] %v568_v0  ;;  %781 = vst [vmem:[#allocation3 + $0x340] sm:$0xf] %v745_v1  ;;  %2751 = vmatprep.mubr.bf16.mxu1 %v4646_v22  ;;  %v4670_v57 = vld [vmem:[%s5650_s2 + $0x208] sm:$0xff]   ;;  %v891_v63 = vld [vmem:[#allocation2 + $0x252] sm:$0xff] }
  0xab   : > { %635 = vst [vmem:[#allocation3 + $0x300] sm:$0xf] %v568_v0  ;;  %666 = vst [vmem:[#allocation3 + $0x2e8] sm:$0xf] %v568_v0  ;;  %v4649_v37 = vld [vmem:[#allocation3 + $0x200] ss:$36 sps:$4 sm:$0xff]   ;;  %4328 = vmatpush3.bf16.msra.mxu1 %v4703_v58  ;;  %v931_v3 = vpack.c.bf16 %v891_v63, %v891_v63 }
  0xac   : > { %812 = vst [vmem:[#allocation3 + $0x328] sm:$0xf] %v745_v1  ;;  %843 = vst [vmem:[#allocation3 + $0x310] sm:$0xf] %v745_v1  ;;  %2752 = vmatmul.mubr.bf16.gmra.mrb[44].mxu1 %v4649_v37  ;;  %v890_v62 = vld [vmem:[#allocation2 + $0x242] sm:$0xff]  ;;  %v687_v18 = vld [vmem:[#allocation2 + $0x91] sm:$0xff] }
  0xad   : > { %813 = vst [vmem:[#allocation3 + $0x34c] sm:$0xf] %v746_v7  ;;  %844 = vst [vmem:[#allocation3 + $0x334] sm:$0xf] %v746_v7  ;;  %2759 = vmatprep.mubr.bf16.mxu1 %v4650_v20  ;;  %v4657_v48 = vld [vmem:[#allocation3 + $0x248] ss:$36 sps:$4 sm:$0xff]   ;;  %v930_v2 = vpack.c.bf16 %v890_v62, %v890_v62  ;;  %v727_v21 = vpack.c.bf16 %v687_v18, %v687_v18 }
  0xae   : > { %952 = vst [vmem:[#allocation3 + $0x290] sm:$0xf] %v916_v6  ;;  %983 = vst [vmem:[#allocation3 + $0x278] sm:$0xf] %v916_v6  ;;  %v529_v11 = vld [vmem:[#allocation2 + $0x1b0] sm:$0xff]  ;;  %v872_v0 = vld [vmem:[#allocation2 + $0x122] sm:$0xff] }
  0xaf   : > { %1014 = vst [vmem:[#allocation3 + $0x260] sm:$0xf] %v916_v6  ;;  %v569_v16 = vpack.c.bf16 %v529_v11, %v529_v11  ;;  %953 = vst [vmem:[#allocation3 + $0x2b4] sm:$0xf] %v917_v9  ;;  %v881_v27 = vld [vmem:[#allocation2 + $0x1b2] sm:$0xff]  ;;  %v912_v4 = vpack.c.bf16 %v872_v0, %v872_v0  ;;  %v4715_v11 = vld [vmem:[%s5650_s2 + $0x220] sm:$0xff]  }
  0xb0   : > { %984 = vst [vmem:[#allocation3 + $0x29c] sm:$0xf] %v917_v9  ;;  %1015 = vst [vmem:[#allocation3 + $0x284] sm:$0xf] %v917_v9  ;;  %v530_v24 = vld [vmem:[#allocation2 + $0x1c0] sm:$0xff]  ;;  %v921_v31 = vpack.c.bf16 %v881_v27, %v881_v27  ;;  %v697_v33 = vld [vmem:[#allocation2 + $0x131] sm:$0xff] }
  0xb1   : > { %954 = vst [vmem:[#allocation3 + $0x2d8] sm:$0xf] %v918_v13  ;;  %985 = vst [vmem:[#allocation3 + $0x2c0] sm:$0xf] %v918_v13  ;;  %v570_v25 = vpack.c.bf16 %v530_v24, %v530_v24  ;;  %v4639_v29 = vld [vmem:[#allocation3 + $0x2d0] ss:$36 sps:$4 sm:$0xff]   ;;  %v737_v14 = vpack.c.bf16 %v697_v33, %v697_v33 }
  0xb2   : > { %1016 = vst [vmem:[#allocation3 + $0x2a8] sm:$0xf] %v918_v13  ;;  %605 = vst [vmem:[#allocation3 + $0x33c] sm:$0xf] %v569_v16  ;;  %v4644_v35 = vld [vmem:[#allocation3 + $0x31c] ss:$36 sps:$4 sm:$0xff]   ;;  %2615 = vmatmul.mubr.bf16.gmra.mrb[40].mxu0 %v4639_v29 }
  0xb3   : > { %636 = vst [vmem:[#allocation3 + $0x324] sm:$0xf] %v569_v16  ;;  %667 = vst [vmem:[#allocation3 + $0x30c] sm:$0xf] %v569_v16  ;;  %2622 = vmatprep.mubr.bf16.mxu0 %v4644_v35  ;;  %v4665_v7 = vld [vmem:[#allocation3 + $0x2dc] ss:$36 sps:$4 sm:$0xff]  }
  0xb4   : > { %955 = vst [vmem:[#allocation3 + $0x2fc] sm:$0xf] %v919_v17  ;;  %986 = vst [vmem:[#allocation3 + $0x2e4] sm:$0xf] %v919_v17  ;;  %2760 = vmatmul.mubr.bf16.gmra.mrb[48].mxu1 %v4657_v48  ;;  %v4664_v6 = vld [vmem:[#allocation3 + $0x58] ss:$36 sps:$4 sm:$0xff]  }
  0xb5   : > { %1017 = vst [vmem:[#allocation3 + $0x2cc] sm:$0xf] %v919_v17  ;;  %637 = vst [vmem:[#allocation3 + $0x348] sm:$0xf] %v570_v25  ;;  %2767 = vmatprep.mubr.bf16.mxu1 %v4659_v51  ;;  %v4672_v12 = vld [vmem:[#allocation3 + $0xa0] ss:$36 sps:$4 sm:$0xff]  }
  0xb6   : > { %668 = vst [vmem:[#allocation3 + $0x330] sm:$0xf] %v570_v25  ;;  %956 = vst [vmem:[#allocation3 + $0x320] sm:$0xf] %v920_v30  ;;  %v4663_v1 = vld [vmem:[#allocation3 + $0x290] ss:$36 sps:$4 sm:$0xff]  }
  0xb7   : > { %957 = vst [vmem:[#allocation3 + $0x344] sm:$0xf] %v921_v31  ;;  %987 = vst [vmem:[#allocation3 + $0x308] sm:$0xf] %v920_v30  ;;  %v4727_v16 = vld [vmem:[%s5650_s2 + $0x228] sm:$0xff]   ;;  %v4753_v29 = vld [vmem:[%s5650_s2 + $0x238] sm:$0xff]  }
  0xb8   : > { %988 = vst [vmem:[#allocation3 + $0x32c] sm:$0xf] %v921_v31  ;;  %1018 = vst [vmem:[#allocation3 + $0x2f0] sm:$0xf] %v920_v30  ;;  %v882_v17 = vld [vmem:[#allocation2 + $0x1c2] sm:$0xff]  ;;  %v707_v41 = vld [vmem:[#allocation2 + $0x1d1] sm:$0xff] }
  0xb9   : > { %1019 = vst [vmem:[#allocation3 + $0x314] sm:$0xf] %v921_v31  ;;  %973 = vst [vmem:[#allocation3 + $0x110] sm:$0xf] %v902_v32  ;;  %v4648_v43 = vld [vmem:[#allocation3 + $0x318] ss:$36 sps:$4 sm:$0xff]   ;;  %v922_v19 = vpack.c.bf16 %v882_v17, %v882_v17  ;;  %v747_v42 = vpack.c.bf16 %v707_v41, %v707_v41 }
  0xba   : > { %1004 = vst [vmem:[#allocation3 + $0xf8] sm:$0xf] %v902_v32  ;;  %821 = vst [vmem:[#allocation3 + $0x46c] sm:$0xf] %v756_v34  ;;  %2623 = vmatmul.mubr.bf16.gmra.mrb[44].mxu0 %v4648_v43  ;;  %v4680_v22 = vld [vmem:[#allocation3 + $0x36c] ss:$36 sps:$4 sm:$0xff]  }
  0xbb   : > { %852 = vst [vmem:[#allocation3 + $0x454] sm:$0xf] %v756_v34  ;;  %958 = vst [vmem:[#allocation3 + $0x368] sm:$0xf] %v924_v36  ;;  %2856 = vmatprep.mubr.bf16.mxu0 %v4654_v45  ;;  %v4671_v9 = vld [vmem:[#allocation3 + $0x2d8] ss:$36 sps:$4 sm:$0xff]  }
  0xbc   : > { %959 = vst [vmem:[#allocation3 + $0x38c] sm:$0xf] %v925_v39  ;;  %990 = vst [vmem:[#allocation3 + $0x374] sm:$0xf] %v925_v39  ;;  %2768 = vmatmul.mubr.bf16.gmra.mrb[52].mxu1 %v4663_v1  ;;  %v4674_v10 = vld [vmem:[#allocation3 + $0x324] ss:$36 sps:$4 sm:$0xff]  }
  0xbd   : > { %960 = vst [vmem:[#allocation3 + $0x3b0] sm:$0xf] %v926_v44  ;;  %991 = vst [vmem:[#allocation3 + $0x398] sm:$0xf] %v926_v44  ;;  %2775 = vmatprep.mubr.bf16.mxu1 %v4665_v7  ;;  %v4679_v24 = vld [vmem:[#allocation3 + $0xe8] ss:$36 sps:$4 sm:$0xff]  }
  0xbe   : > { %1022 = vst [vmem:[#allocation3 + $0x380] sm:$0xf] %v926_v44  ;;  %961 = vst [vmem:[#allocation3 + $0x3d4] sm:$0xf] %v927_v47  ;;  %v4678_v15 = vld [vmem:[#allocation3 + $0x320] ss:$36 sps:$4 sm:$0xff]  }
  0xbf   : > { %992 = vst [vmem:[#allocation3 + $0x3bc] sm:$0xf] %v927_v47  ;;  %1023 = vst [vmem:[#allocation3 + $0x3a4] sm:$0xf] %v927_v47  ;;  %v4682_v25 = vld [vmem:[#allocation3 + $0x134] ss:$36 sps:$4 sm:$0xff]  }
  0xc0   : > { %962 = vst [vmem:[#allocation3 + $0x3f8] sm:$0xf] %v928_v52  ;;  %963 = vst [vmem:[#allocation3 + $0x41c] sm:$0xf] %v929_v53  ;;  %v4676_v13 = vld [vmem:[#allocation3 + $0xec] ss:$36 sps:$4 sm:$0xff]  }
  0xc1   : > { %993 = vst [vmem:[#allocation3 + $0x3e0] sm:$0xf] %v928_v52  ;;  %994 = vst [vmem:[#allocation3 + $0x404] sm:$0xf] %v929_v53  ;;  %v4689_v27 = vld [vmem:[#allocation3 + $0x3b4] ss:$36 sps:$4 sm:$0xff]  }
  0xc2   : > { %1024 = vst [vmem:[#allocation3 + $0x3c8] sm:$0xf] %v928_v52  ;;  %1025 = vst [vmem:[#allocation3 + $0x3ec] sm:$0xf] %v929_v53  ;;  %2857 = vmatmul.mubr.bf16.vlgmr.msra.gmra.mrb[48].mxu0 %v4652_v54  ;;  %v4687_v28 = vld [vmem:[#allocation3 + $0x130] ss:$36 sps:$4 sm:$0xff]  }
  0xc3   : > { %4450 = vmatpush3.bf16.msra.mxu0 %v5238_v61  ;;  %2864 = vmatprep.mubr.bf16.mxu0 %v4661_v56  ;;  %645 = vst [vmem:[#allocation3 + $0x468] sm:$0xf] %v580_v60  ;;  %676 = vst [vmem:[#allocation3 + $0x450] sm:$0xf] %v580_v60  ;;  %v4667_v61 = vld [vmem:[#allocation3 + $0xa4] ss:$36 sps:$4 sm:$0xff]  }
  0xc4   : > { %4451 = vmatprep.subr.bf16.mxu0 %v4670_v57  ;;  %964 = vst [vmem:[#allocation3 + $0x440] sm:$0xf] %v930_v2  ;;  %965 = vst [vmem:[#allocation3 + $0x464] sm:$0xf] %v931_v3  ;;  %2776 = vmatmul.mubr.bf16.gmra.mrb[56].mxu1 %v4671_v9  ;;  %v4686_v26 = vld [vmem:[#allocation3 + $0x368] ss:$36 sps:$4 sm:$0xff]  }
  0xc5   : > { %995 = vst [vmem:[#allocation3 + $0x428] sm:$0xf] %v930_v2  ;;  %996 = vst [vmem:[#allocation3 + $0x44c] sm:$0xf] %v931_v3  ;;  %2783 = vmatprep.mubr.bf16.mxu1 %v4674_v10  ;;  %v4691_v30 = vld [vmem:[#allocation3 + $0x17c] ss:$36 sps:$4 sm:$0xff]  }
  0xc6   : > { %1026 = vst [vmem:[#allocation3 + $0x410] sm:$0xf] %v930_v2  ;;  %1027 = vst [vmem:[#allocation3 + $0x434] sm:$0xf] %v931_v3  ;;  %v892_v31 = vld [vmem:[#allocation2 + $0x262] sm:$0xff]  ;;  %v863_v36 = vld [vmem:[#allocation2 + $0x92] sm:$0xff] }
  0xc7   : > { %981 = vst [vmem:[#allocation3 + $0x230] sm:$0xf] %v912_v4  ;;  %1012 = vst [vmem:[#allocation3 + $0x218] sm:$0xf] %v912_v4  ;;  %4452 = vmatpush3.bf16.msra.mxu0 %v4670_v57  ;;  %v932_v32 = vpack.c.bf16 %v892_v31, %v892_v31  ;;  %v4693_v34 = vld [vmem:[#allocation3 + $0x3b0] ss:$36 sps:$4 sm:$0xff]   ;;  %v903_v38 = vpack.c.bf16 %v863_v36, %v863_v36 }
  0xc8   : > { %4453 = vmatprep.subr.bf16.mxu0 %v4685_v5  ;;  %989 = vst [vmem:[#allocation3 + $0x350] sm:$0xf] %v922_v19  ;;  %1020 = vst [vmem:[#allocation3 + $0x338] sm:$0xf] %v922_v19  ;;  %v4695_v35 = vld [vmem:[#allocation3 + $0x3fc] ss:$36 sps:$4 sm:$0xff]  }
  0xc9   : > { %829 = vst [vmem:[#allocation3 + $0x118] sm:$0xf] %v727_v21  ;;  %997 = vst [vmem:[#allocation3 + $0x470] sm:$0xf] %v932_v32  ;;  %v4694_v37 = vld [vmem:[#allocation3 + $0x178] ss:$36 sps:$4 sm:$0xff]  }
  0xca   : > { %2865 = vmatmul.mubr.bf16.gmra.mrb[52].mxu0 %v4664_v6  ;;  %1028 = vst [vmem:[#allocation3 + $0x458] sm:$0xf] %v932_v32  ;;  %837 = vst [vmem:[#allocation3 + $0x238] sm:$0xf] %v737_v14  ;;  %v4697_v20 = vld [vmem:[#allocation3 + $0x1c4] ss:$36 sps:$4 sm:$0xff]  }
  0xcb   : > { %2872 = vmatprep.mubr.bf16.mxu0 %v4667_v61  ;;  %4454 = vmatpush3.bf16.msra.mxu0 %v4685_v5  ;;  %1005 = vst [vmem:[#allocation3 + $0x11c] sm:$0xf] %v903_v38  ;;  %v4701_v39 = vld [vmem:[#allocation3 + $0x3f8] ss:$36 sps:$4 sm:$0xff]   ;;  %v4704_v40 = vld [vmem:[#allocation3 + $0x444] ss:$36 sps:$4 sm:$0xff]  }
  0xcc   : > { %4455 = vmatprep.subr.bf16.mxu0 %v4700_v8  ;;  %2784 = vmatmul.mubr.bf16.gmra.mrb[60].mxu1 %v4678_v15  ;;  %v873_v43 = vld [vmem:[#allocation2 + $0x132] sm:$0xff]  ;;  %v4702_v44 = vld [vmem:[#allocation3 + $0x1c0] ss:$36 sps:$4 sm:$0xff]   ;;  %845 = vst [vmem:[#allocation3 + $0x358] sm:$0xf] %v747_v42 }
  0xcd   : > { %2791 = vmatprep.mubr.bf16.mxu1 %v4680_v22  ;;  %v913_v45 = vpack.c.bf16 %v873_v43, %v873_v43  ;;  %v4708_v47 = vld [vmem:[#allocation3 + $0x440] ss:$36 sps:$4 sm:$0xff]   ;;  %v883_v49 = vld [vmem:[#allocation2 + $0x1d2] sm:$0xff]  ;;  %v4709_v51 = vld [vmem:[#allocation3 + $0x208] ss:$36 sps:$4 sm:$0xff]  }
  0xce   : > { %v4706_v46 = vld [vmem:[#allocation3 + $0x20c] ss:$36 sps:$4 sm:$0xff]   ;;  %v4714_v48 = vld [vmem:[#allocation3 + $0x1c] ss:$36 sps:$4 sm:$0xff]   ;;  %v923_v50 = vpack.c.bf16 %v883_v49, %v883_v49  ;;  %v4710_v52 = vld [vmem:[#allocation3 + $0x254] ss:$36 sps:$4 sm:$0xff]  }
  0xcf   : > { %4456 = vmatpush3.bf16.msra.mxu0 %v4700_v8  ;;  %1013 = vst [vmem:[#allocation3 + $0x23c] sm:$0xf] %v913_v45  ;;  %v4712_v53 = vld [vmem:[#allocation3 + $0x18] ss:$36 sps:$4 sm:$0xff]   ;;  %v4719_v56 = vld [vmem:[#allocation3 + $0x64] ss:$36 sps:$4 sm:$0xff]  }
  0xd0   : > { %4457 = vmatprep.subr.bf16.mxu0 %v4715_v11  ;;  %1021 = vst [vmem:[#allocation3 + $0x35c] sm:$0xf] %v923_v50  ;;  %v717_v54 = vld [vmem:[#allocation2 + $0x271] sm:$0xff]  ;;  %v4717_v60 = vld [vmem:[#allocation3 + $0x29c] ss:$36 sps:$4 sm:$0xff]  }
  0xd1   : > { %v757_v55 = vpack.c.bf16 %v717_v54, %v717_v54  ;;  %v893_v57 = vld [vmem:[#allocation2 + $0x272] sm:$0xff]  ;;  %v4722_v62 = vld [vmem:[#allocation3 + $0x60] ss:$36 sps:$4 sm:$0xff]   ;;  %v4729_v7 = vld [vmem:[#allocation3 + $0xa8] ss:$36 sps:$4 sm:$0xff]  }
  0xd2   : > { %2873 = vmatmul.mubr.bf16.gmra.mrb[56].mxu0 %v4672_v12  ;;  %v933_v58 = vpack.c.bf16 %v893_v57, %v893_v57  ;;  %v4716_v59 = vld [vmem:[#allocation3 + $0x250] ss:$36 sps:$4 sm:$0xff]   ;;  %v4721_v0 = vld [vmem:[#allocation3 + $0x298] ss:$36 sps:$4 sm:$0xff]   ;;  %v4723_v1 = vld [vmem:[#allocation3 + $0x2e4] ss:$36 sps:$4 sm:$0xff]  }
  0xd3   : > { %2880 = vmatprep.mubr.bf16.mxu0 %v4676_v13  ;;  %4458 = vmatpush3.bf16.msra.mxu0 %v4715_v11  ;;  %853 = vst [vmem:[#allocation3 + $0x478] sm:$0xf] %v757_v55  ;;  %v4725_v63 = vld [vmem:[#allocation3 + $0xac] ss:$36 sps:$4 sm:$0xff]   ;;  %v4732_v2 = vld [vmem:[#allocation3 + $0xf4] ss:$36 sps:$4 sm:$0xff]  }
  0xd4   : > { %4459 = vmatprep.subr.bf16.mxu0 %v4727_v16  ;;  %2792 = vmatmul.mubr.bf16.gmra.mrb[64].mxu1 %v4686_v26  ;;  %1029 = vst [vmem:[#allocation3 + $0x47c] sm:$0xf] %v933_v58  ;;  %v4728_v3 = vld [vmem:[#allocation3 + $0x2e0] ss:$36 sps:$4 sm:$0xff]   ;;  %v4730_v4 = vld [vmem:[#allocation3 + $0x32c] ss:$36 sps:$4 sm:$0xff]  }
  0xd5   : > { %2799 = vmatprep.mubr.bf16.mxu1 %v4689_v27  ;;  %v4735_v5 = vld [vmem:[#allocation3 + $0xf0] ss:$36 sps:$4 sm:$0xff]   ;;  %v4738_v6 = vld [vmem:[#allocation3 + $0x13c] ss:$36 sps:$4 sm:$0xff]   ;;  %v4734_v61 = vld [vmem:[#allocation3 + $0x328] ss:$36 sps:$4 sm:$0xff]  }
  0xd6   : > { %v4736_v8 = vld [vmem:[#allocation3 + $0x374] ss:$36 sps:$4 sm:$0xff]   ;;  %v4745_v10 = vld [vmem:[#allocation3 + $0x184] ss:$36 sps:$4 sm:$0xff]   ;;  %v4743_v12 = vld [vmem:[#allocation3 + $0x3bc] ss:$36 sps:$4 sm:$0xff]  }
  0xd7   : > { %4460 = vmatpush3.bf16.msra.mxu0 %v4727_v16  ;;  %v4742_v9 = vld [vmem:[#allocation3 + $0x138] ss:$36 sps:$4 sm:$0xff]   ;;  %v4741_v11 = vld [vmem:[#allocation3 + $0x370] ss:$36 sps:$4 sm:$0xff]   ;;  %v4748_v13 = vld [vmem:[#allocation3 + $0x180] ss:$36 sps:$4 sm:$0xff]  }
  0xd8   : > { %4461 = vmatprep.subr.bf16.mxu0 %v4740_v23  ;;  %v4751_v15 = vld [vmem:[#allocation3 + $0x1cc] ss:$36 sps:$4 sm:$0xff]   ;;  %v4747_v16 = vld [vmem:[#allocation3 + $0x3b8] ss:$36 sps:$4 sm:$0xff]   ;;  %v4749_v17 = vld [vmem:[#allocation3 + $0x404] ss:$36 sps:$4 sm:$0xff]  }
  0xd9   : > { %v4755_v18 = vld [vmem:[#allocation3 + $0x1c8] ss:$36 sps:$4 sm:$0xff]   ;;  %v4758_v19 = vld [vmem:[#allocation3 + $0x214] ss:$36 sps:$4 sm:$0xff]   ;;  %v4754_v21 = vld [vmem:[#allocation3 + $0x400] ss:$36 sps:$4 sm:$0xff]  }
  0xda   : > { %2881 = vmatmul.mubr.bf16.gmra.mrb[60].mxu0 %v4679_v24  ;;  %v4756_v22 = vld [vmem:[#allocation3 + $0x44c] ss:$36 sps:$4 sm:$0xff]   ;;  %v4762_v33 = vld [vmem:[#allocation3 + $0x25c] ss:$36 sps:$4 sm:$0xff]  }
  0xdb   : > { %2888 = vmatprep.mubr.bf16.mxu0 %v4682_v25  ;;  %4462 = vmatpush3.bf16.msra.mxu0 %v4740_v23  ;;  %v4760_v36 = vld [vmem:[#allocation3 + $0x448] ss:$36 sps:$4 sm:$0xff]   ;;  %v4765_v43 = vld [vmem:[#allocation3 + $0x258] ss:$36 sps:$4 sm:$0xff]  }
  0xdc   : > { %4463 = vmatprep.subr.bf16.mxu0 %v4753_v29  ;;  %2800 = vmatmul.mubr.bf16.gmra.mrb[68].mxu1 %v4693_v34 }
  0xdd   : > { %2807 = vmatprep.mubr.bf16.mxu1 %v4695_v35 }
  0xdf   : > { %4464 = vmatpush3.bf16.msra.mxu0 %v4753_v29  ;;  %v4761_v29 = vld [vmem:[#allocation3 + $0x210] ss:$36 sps:$4 sm:$0xff]  }
  0xe2   : > { %2889 = vmatmul.mubr.bf16.gmra.mrb[64].mxu0 %v4687_v28 }
  0xe3   : > { %2896 = vmatprep.mubr.bf16.mxu0 %v4691_v30 }
  0xe4   : > { %2808 = vmatmul.mubr.bf16.gmra.mrb[72].mxu1 %v4701_v39 }
  0xe5   : > { %2815 = vmatprep.mubr.bf16.mxu1 %v4704_v40 }
  0xea   : > { %2897 = vmatmul.mubr.bf16.gmra.mrb[68].mxu0 %v4694_v37  ;;  %v4764_v37 = vld [vmem:[#allocation3 + $0x20] ss:$36 sps:$4 sm:$0xff]  }
  0xeb   : > { %2904 = vmatprep.mubr.bf16.mxu0 %v4697_v20 }
  0xec   : > { %2816 = vmatmul.mubr.bf16.gmra.mrb[76].mxu1 %v4708_v47  ;;  %v4767_v47 = vld [vmem:[#allocation3 + $0x2a4] ss:$36 sps:$4 sm:$0xff]  }
  0xed   : > { %3017 = vmatprep.mubr.bf16.mxu1 %v4714_v48 }
  0xf2   : > { %2905 = vmatmul.mubr.bf16.gmra.mrb[72].mxu0 %v4702_v44 }
  0xf3   : > { %2912 = vmatprep.mubr.bf16.mxu0 %v4706_v46 }
  0xf4   : > { %3018 = vmatmul.mubr.bf16.vlgmr.msra.gmra.mrb[80].mxu1 %v4712_v53 }
  0xf5   : > { %3025 = vmatprep.mubr.bf16.mxu1 %v4719_v56 }
  0xfa   : > { %2913 = vmatmul.mubr.bf16.gmra.mrb[76].mxu0 %v4709_v51  ;;  %v4766_v51 = vld [vmem:[#allocation3 + $0x68] ss:$36 sps:$4 sm:$0xff]  }
  0xfb   : > { %2920 = vmatprep.mubr.bf16.mxu0 %v4710_v52  ;;  %v4769_v52 = vld [vmem:[#allocation3 + $0xb0] ss:$36 sps:$4 sm:$0xff]  }
  0xfc   : > { %3026 = vmatmul.mubr.bf16.gmra.mrb[84].mxu1 %v4722_v62 }
  0xfd   : > { %3033 = vmatprep.mubr.bf16.mxu1 %v4725_v63 }
 0x102   : > { %2921 = vmatmul.mubr.bf16.gmra.mrb[80].mxu0 %v4716_v59  ;;  %v4770_v59 = vld [vmem:[#allocation3 + $0x2a0] ss:$36 sps:$4 sm:$0xff]  }
 0x103   : > { %2928 = vmatprep.mubr.bf16.mxu0 %v4717_v60 }
 0x104   : > { %3034 = vmatmul.mubr.bf16.gmra.mrb[88].mxu1 %v4729_v7 }
 0x105   : > { %3041 = vmatprep.mubr.bf16.mxu1 %v4732_v2 }
 0x10a   : > { %2929 = vmatmul.mubr.bf16.gmra.mrb[84].mxu0 %v4721_v0  ;;  %v4772_v0 = vld [vmem:[#allocation3 + $0x2ec] ss:$36 sps:$4 sm:$0xff]  }
 0x10b   : > { %2936 = vmatprep.mubr.bf16.mxu0 %v4723_v1 }
 0x10c   : > { %3042 = vmatmul.mubr.bf16.gmra.mrb[92].mxu1 %v4735_v5 }
 0x10d   : > { %3049 = vmatprep.mubr.bf16.mxu1 %v4738_v6 }
 0x112   : > { %2937 = vmatmul.mubr.bf16.gmra.mrb[88].mxu0 %v4728_v3  ;;  %v4771_v3 = vld [vmem:[#allocation3 + $0xf8] ss:$36 sps:$4 sm:$0xff]  }
 0x113   : > { %2944 = vmatprep.mubr.bf16.mxu0 %v4730_v4  ;;  %v4774_v4 = vld [vmem:[#allocation3 + $0x140] ss:$36 sps:$4 sm:$0xff]  }
 0x114   : > { %3050 = vmatmul.mubr.bf16.gmra.mrb[96].mxu1 %v4742_v9 }
 0x115   : > { %3057 = vmatprep.mubr.bf16.mxu1 %v4745_v10 }
 0x116   : > { %v3993_v23 = vpop.f32.mrb[0].mxu0 }
 0x117   : > { %v3994_v25 = vpop.f32.mrb[1].mxu0 }
 0x118   : > { %v5284_v26 = vadd.f32 %v3994_v25, %v3993_v23  ;;  %v3996_v28 = vpop.f32.mrb[2].mxu0 }
 0x119   : > { %v3997_v32 = vpop.f32.mrb[3].mxu0 }
 0x11a   : > { %2945 = vmatmul.mubr.bf16.gmra.mrb[92].mxu0 %v4734_v61  ;;  %v4065_v24 = vpop.f32.mrb[0].mxu1  ;;  %v5288_v14 = vadd.f32 %v3997_v32, %v3996_v28  ;;  %v4780_v28 = vld [vmem:[#allocation3 + $0x330] ss:$36 sps:$4 sm:$0xff]  }
 0x11b   : > { %2952 = vmatprep.mubr.bf16.mxu0 %v4736_v8  ;;  %v4066_v27 = vpop.f32.mrb[1].mxu1 }
 0x11c   : > { %3058 = vmatmul.mubr.bf16.gmra.mrb[100].mxu1 %v4748_v13  ;;  %v5286_v30 = vadd.f32 %v4066_v27, %v4065_v24  ;;  %v4068_v31 = vpop.f32.mrb[2].mxu1 }
 0x11d   : > { %3065 = vmatprep.mubr.bf16.mxu1 %v4751_v15  ;;  %v4069_v34 = vpop.f32.mrb[3].mxu1 }
 0x11e   : > { %v5290_v35 = vadd.f32 %v4069_v34, %v4068_v31  ;;  %v4782_v34 = vld [vmem:[#allocation3 + $0x37c] ss:$36 sps:$4 sm:$0xff]  }
 0x122   : > { %2953 = vmatmul.mubr.bf16.gmra.mrb[96].mxu0 %v4741_v11  ;;  %v4775_v11 = vld [vmem:[#allocation3 + $0x2e8] ss:$36 sps:$4 sm:$0xff]  }
 0x123   : > { %2960 = vmatprep.mubr.bf16.mxu0 %v4743_v12  ;;  %v3999_v38 = vpop.f32.mrb[4].mxu0 }
 0x124   : > { %3066 = vmatmul.mubr.bf16.gmra.mrb[104].mxu1 %v4755_v18  ;;  %v4071_v20 = vpop.f32.mrb[4].mxu1  ;;  %v4000_v39 = vpop.f32.mrb[5].mxu0 }
 0x125   : > { %3073 = vmatprep.mubr.bf16.mxu1 %v4758_v19  ;;  %v5292_v40 = vadd.f32 %v4000_v39, %v3999_v38  ;;  %v4072_v41 = vpop.f32.mrb[5].mxu1  ;;  %v4002_v42 = vpop.f32.mrb[6].mxu0 }
 0x126   : > { %v5294_v44 = vadd.f32 %v4072_v41, %v4071_v20  ;;  %v4074_v45 = vpop.f32.mrb[6].mxu1  ;;  %v4003_v46 = vpop.f32.mrb[7].mxu0  ;;  %v4781_v41 = vld [vmem:[#allocation3 + $0x218] ss:$36 sps:$4 sm:$0xff]  }
 0x127   : > { %v5296_v48 = vadd.f32 %v4003_v46, %v4002_v42  ;;  %v4075_v49 = vpop.f32.mrb[7].mxu1 }
 0x128   : > { %v5298_v50 = vadd.f32 %v4075_v49, %v4074_v45 }
 0x12a   : > { %2961 = vmatmul.mubr.bf16.gmra.mrb[100].mxu0 %v4747_v16  ;;  %v4777_v16 = vld [vmem:[#allocation3 + $0x334] ss:$36 sps:$4 sm:$0xff]  }
 0x12b   : > { %2968 = vmatprep.mubr.bf16.mxu0 %v4749_v17 }
 0x12c   : > { %3074 = vmatmul.mubr.bf16.gmra.mrb[108].mxu1 %v4761_v29 }
 0x12d   : > { %3081 = vmatprep.mubr.bf16.mxu1 %v4762_v33 }
 0x132   : > { %2969 = vmatmul.mubr.bf16.gmra.mrb[104].mxu0 %v4754_v21  ;;  %v4776_v21 = vld [vmem:[#allocation3 + $0x188] ss:$36 sps:$4 sm:$0xff]  }
 0x133   : > { %2976 = vmatprep.mubr.bf16.mxu0 %v4756_v22  ;;  %v4005_v53 = vpop.f32.mrb[8].mxu0  ;;  %v4779_v22 = vld [vmem:[#allocation3 + $0x1d0] ss:$36 sps:$4 sm:$0xff]  }
 0x134   : > { %3082 = vmatmul.mubr.bf16.gmra.mrb[112].mxu1 %v4765_v43  ;;  %v4006_v55 = vpop.f32.mrb[9].mxu0  ;;  %v4784_v43 = vld [vmem:[#allocation3 + $0x260] ss:$36 sps:$4 sm:$0xff]  }
 0x135   : > { %3089 = vmatprep.mubr.bf16.mxu1 %v4767_v47  ;;  %v4077_v54 = vpop.f32.mrb[8].mxu1  ;;  %v5300_v56 = vadd.f32 %v4006_v55, %v4005_v53  ;;  %v4008_v58 = vpop.f32.mrb[10].mxu0  ;;  %v4785_v47 = vld [vmem:[#allocation3 + $0x378] ss:$36 sps:$4 sm:$0xff]  }
 0x136   : > { %v4078_v57 = vpop.f32.mrb[9].mxu1  ;;  %v4009_v63 = vpop.f32.mrb[11].mxu0 }
 0x137   : > { %v5302_v60 = vadd.f32 %v4078_v57, %v4077_v54  ;;  %v4080_v62 = vpop.f32.mrb[10].mxu1  ;;  %v5304_v1 = vadd.f32 %v4009_v63, %v4008_v58  ;;  %v4789_v63 = vld [vmem:[#allocation3 + $0x2f0] ss:$36 sps:$4 sm:$0xff]  }
 0x138   : > { %v4081_v7 = vpop.f32.mrb[11].mxu1 }
 0x139   : > { %v5306_v2 = vadd.f32 %v4081_v7, %v4080_v62 }
 0x13a   : > { %2977 = vmatmul.mubr.bf16.gmra.mrb[108].mxu0 %v4760_v36 }
 0x13b   : > { %4465 = vmatprep.mubr.bf16.mxu0 %v4764_v37  ;;  %v4011_v5 = vpop.f32.mrb[12].mxu0 }
 0x13c   : > { %3090 = vmatmul.mubr.bf16.gmra.mrb[116].mxu1 %v4770_v59  ;;  %v4012_v61 = vpop.f32.mrb[13].mxu0 }
 0x13d   : > { %3097 = vmatprep.mubr.bf16.mxu1 %v4772_v0  ;;  %v4083_v6 = vpop.f32.mrb[12].mxu1  ;;  %v5308_v8 = vadd.f32 %v4012_v61, %v4011_v5  ;;  %v4014_v10 = vpop.f32.mrb[14].mxu0  ;;  %v4792_v61 = vld [vmem:[#allocation3 + $0x40c] ss:$36 sps:$4 sm:$0xff]  }
 0x13e   : > { %v4084_v9 = vpop.f32.mrb[13].mxu1  ;;  %v4015_v15 = vpop.f32.mrb[15].mxu0 }
 0x13f   : > { %v5310_v12 = vadd.f32 %v4084_v9, %v4083_v6  ;;  %v4086_v13 = vpop.f32.mrb[14].mxu1  ;;  %v5312_v17 = vadd.f32 %v4015_v15, %v4014_v10  ;;  %v4791_v15 = vld [vmem:[#allocation3 + $0x338] ss:$36 sps:$4 sm:$0xff]  }
 0x140   : > { %v4087_v18 = vpop.f32.mrb[15].mxu1 }
 0x141   : > { %v5314_v19 = vadd.f32 %v4087_v18, %v4086_v13 }
 0x142   : > { %4466 = vmatmul.mubr.bf16.vlgmr.msra.gmra.mrb[112].mxu0 %v4766_v51 }
 0x143   : > { %4469 = vmatprep.mubr.bf16.mxu0 %v4769_v52  ;;  %v4787_v52 = vld [vmem:[#allocation3 + $0x3c4] ss:$36 sps:$4 sm:$0xff]  }
 0x144   : > { %3098 = vmatmul.mubr.bf16.gmra.mrb[120].mxu1 %v4775_v11 }
 0x145   : > { %3105 = vmatprep.mubr.bf16.mxu1 %v4777_v16  ;;  %v4105_v24 = vpop.f32.mrb[16].mxu1 }
 0x146   : > { %v4106_v27 = vpop.f32.mrb[17].mxu1 }
 0x147   : > { %v4107_v31 = vadd.f32 %v4106_v27, %v4105_v24  ;;  %v4108_v33 = vpop.f32.mrb[18].mxu1 }
 0x148   : > { %v4109_v37 = vpop.f32.mrb[19].mxu1 }
 0x149   : > { %v4017_v23 = vpop.f32.mrb[16].mxu0  ;;  %v5319_v38 = vadd.f32 %v4107_v31, %v5284_v26  ;;  %v4110_v39 = vadd.f32 %v4109_v37, %v4108_v33 }
 0x14a   : > { %4470 = vmatmul.mubr.bf16.gmra.mrb[116].mxu0 %v4771_v3  ;;  %v4018_v25 = vpop.f32.mrb[17].mxu0 }
 0x14b   : > { %4473 = vmatprep.mubr.bf16.mxu0 %v4774_v4  ;;  %v5316_v29 = vadd.f32 %v4018_v25, %v4017_v23  ;;  %v4020_v32 = vpop.f32.mrb[18].mxu0  ;;  %v5324_v42 = vadd.f32 %v4110_v39, %v5288_v14  ;;  %v4786_v14 = vld [vmem:[#allocation3 + $0x2a8] ss:$36 sps:$4 sm:$0xff]  }
 0x14c   : > { %v4021_v36 = vpop.f32.mrb[19].mxu0  ;;  %3106 = vmatmul.mubr.bf16.gmra.mrb[124].mxu1 %v4780_v28  ;;  %v4796_v39 = vld [vmem:[#allocation3 + $0x3c8] ss:$36 sps:$4 sm:$0xff]  }
 0x14d   : > { %v5321_v20 = vadd.f32 %v4021_v36, %v4020_v32  ;;  %3113 = vmatprep.mubr.bf16.mxu1 %v4782_v34  ;;  %v4111_v45 = vpop.f32.mrb[20].mxu1  ;;  %v4797_v32 = vld [vmem:[#allocation3 + $0x454] ss:$36 sps:$4 sm:$0xff]  }
 0x14e   : > { %v4112_v46 = vpop.f32.mrb[21].mxu1 }
 0x14f   : > { %v4113_v49 = vadd.f32 %v4112_v46, %v4111_v45  ;;  %v4114_v51 = vpop.f32.mrb[22].mxu1  ;;  %v4799_v46 = vld [vmem:[#allocation3 + $0x410] ss:$36 sps:$4 sm:$0xff]  }
 0x150   : > { %v4115_v26 = vpop.f32.mrb[23].mxu1 }
 0x151   : > { %v5327_v54 = vadd.f32 %v4113_v49, %v5292_v40  ;;  %v4116_v55 = vadd.f32 %v4115_v26, %v4114_v51  ;;  %v4790_v40 = vld [vmem:[#allocation3 + $0x3c0] ss:$36 sps:$4 sm:$0xff]   ;;  %v4800_v26 = vld [vmem:[#allocation3 + $0x450] ss:$36 sps:$4 sm:$0xff]  }
 0x152   : > { %4474 = vmatmul.mubr.bf16.gmra.mrb[120].mxu0 %v4776_v21 }
 0x153   : > { %4477 = vmatprep.mubr.bf16.mxu0 %v4779_v22  ;;  %v5332_v62 = vadd.f32 %v4116_v55, %v5296_v48  ;;  %v4794_v22 = vld [vmem:[#allocation3 + $0x380] ss:$36 sps:$4 sm:$0xff]  }
 0x154   : > { %3114 = vmatmul.mubr.bf16.gmra.mrb[128].mxu1 %v4785_v47 }
 0x155   : > { %3121 = vmatprep.mubr.bf16.mxu1 %v4787_v52  ;;  %v4117_v3 = vpop.f32.mrb[24].mxu1 }
 0x156   : > { %v4118_v4 = vpop.f32.mrb[25].mxu1 }
 0x157   : > { %v4023_v53 = vpop.f32.mrb[20].mxu0  ;;  %v4119_v5 = vadd.f32 %v4118_v4, %v4117_v3  ;;  %v4120_v6 = vpop.f32.mrb[26].mxu1 }
 0x158   : > { %v4024_v57 = vpop.f32.mrb[21].mxu0  ;;  %v4121_v9 = vpop.f32.mrb[27].mxu1 }
 0x159   : > { %v5329_v58 = vadd.f32 %v4024_v57, %v4023_v53  ;;  %v4026_v59 = vpop.f32.mrb[22].mxu0  ;;  %v5337_v11 = vadd.f32 %v4119_v5, %v5300_v56  ;;  %v4122_v48 = vadd.f32 %v4121_v9, %v4120_v6  ;;  %v4795_v56 = vld [vmem:[#allocation3 + $0x408] ss:$36 sps:$4 sm:$0xff]  }
 0x15a   : > { %4478 = vmatmul.mubr.bf16.gmra.mrb[124].mxu0 %v4781_v41  ;;  %v4027_v0 = vpop.f32.mrb[23].mxu0 }
 0x15b   : > { %4481 = vmatprep.mubr.bf16.mxu0 %v4784_v43  ;;  %v5334_v7 = vadd.f32 %v4027_v0, %v4026_v59  ;;  %v5342_v21 = vadd.f32 %v4122_v48, %v5304_v1 }
 0x15c   : > { %3122 = vmatmul.mubr.bf16.gmra.mrb[132].mxu1 %v4790_v40 }
 0x15d   : > { %3129 = vmatprep.mubr.bf16.mxu1 %v4792_v61  ;;  %v4123_v25 = vpop.f32.mrb[28].mxu1 }
 0x15e   : > { %v4124_v27 = vpop.f32.mrb[29].mxu1 }
 0x15f   : > { %v4029_v10 = vpop.f32.mrb[24].mxu0  ;;  %v4125_v28 = vadd.f32 %v4124_v27, %v4123_v25  ;;  %v4126_v31 = vpop.f32.mrb[30].mxu1 }
 0x160   : > { %v4030_v13 = vpop.f32.mrb[25].mxu0  ;;  %v4127_v33 = vpop.f32.mrb[31].mxu1 }
 0x161   : > { %v5339_v16 = vadd.f32 %v4030_v13, %v4029_v10  ;;  %v4032_v18 = vpop.f32.mrb[26].mxu0  ;;  %v5347_v36 = vadd.f32 %v4125_v28, %v5308_v8  ;;  %v4128_v1 = vadd.f32 %v4127_v33, %v4126_v31 }
 0x162   : > { %4482 = vmatmul.mubr.bf16.gmra.mrb[128].mxu0 %v4786_v14  ;;  %v4033_v23 = vpop.f32.mrb[27].mxu0 }
 0x163   : > { %4485 = vmatprep.mubr.bf16.mxu0 %v4789_v63  ;;  %v5344_v24 = vadd.f32 %v4033_v23, %v4032_v18  ;;  %v5350_v45 = vadd.f32 %v4128_v1, %v5312_v17  ;;  %v4801_v17 = vld [vmem:[#allocation3 + $0x458] ss:$36 sps:$4 sm:$0xff]  }
 0x164   : > { %3130 = vmatmul.mubr.bf16.gmra.mrb[136].mxu1 %v4795_v56 }
 0x165   : > { %3137 = vmatprep.mubr.bf16.mxu1 %v4797_v32  ;;  %v4129_v51 = vpop.f32.mrb[32].mxu1 }
 0x166   : > { %v4130_v52 = vpop.f32.mrb[33].mxu1 }
 0x167   : > { %v4131_v53 = vadd.f32 %v4130_v52, %v4129_v51  ;;  %v4132_v8 = vpop.f32.mrb[34].mxu1 }
 0x168   : > { %v4133_v55 = vpop.f32.mrb[35].mxu1 }
 0x169   : > { %v4035_v34 = vpop.f32.mrb[28].mxu0  ;;  %v5353_v14 = vadd.f32 %v4131_v53, %v5316_v29  ;;  %v4134_v59 = vadd.f32 %v4133_v55, %v4132_v8 }
 0x16a   : > { %4486 = vmatmul.mubr.bf16.gmra.mrb[132].mxu0 %v4791_v15  ;;  %v4036_v37 = vpop.f32.mrb[29].mxu0 }
 0x16b   : > { %4489 = vmatprep.mubr.bf16.mxu0 %v4794_v22  ;;  %v4037_v41 = vadd.f32 %v4036_v37, %v4035_v34  ;;  %v4038_v43 = vpop.f32.mrb[30].mxu0  ;;  %v5356_v4 = vadd.f32 %v4134_v59, %v5321_v20 }
 0x16c   : > { %v4039_v47 = vpop.f32.mrb[31].mxu0  ;;  %3138 = vmatmul.mubr.bf16.gmra.mrb[140].mxu1 %v4800_v26 }
 0x16d   : > { %v4040_v49 = vadd.f32 %v4039_v47, %v4038_v43  ;;  %v4135_v6 = vpop.f32.mrb[36].mxu1 }
 0x16e   : > { %v4136_v61 = vpop.f32.mrb[37].mxu1 }
 0x16f   : > { %v4137_v9 = vadd.f32 %v4136_v61, %v4135_v6  ;;  %v4138_v10 = vpop.f32.mrb[38].mxu1 }
 0x170   : > { %v4139_v48 = vpop.f32.mrb[39].mxu1 }
 0x171   : > { %v5359_v29 = vadd.f32 %v4137_v9, %v5329_v58  ;;  %v4140_v15 = vadd.f32 %v4139_v48, %v4138_v10 }
 0x172   : > { %4490 = vmatmul.mubr.bf16.gmra.mrb[136].mxu0 %v4796_v39 }
 0x173   : > { %4493 = vmatprep.mubr.bf16.mxu0 %v4799_v46  ;;  %v4041_v57 = vpop.f32.mrb[32].mxu0  ;;  %v5362_v25 = vadd.f32 %v4140_v15, %v5334_v7 }
 0x174   : > { %v4042_v63 = vpop.f32.mrb[33].mxu0 }
 0x175   : > { %v4043_v0 = vadd.f32 %v4042_v63, %v4041_v57  ;;  %v4044_v3 = vpop.f32.mrb[34].mxu0  ;;  %v4141_v56 = vpop.f32.mrb[40].mxu1 }
 0x176   : > { %v4045_v40 = vpop.f32.mrb[35].mxu0  ;;  %v4142_v28 = vpop.f32.mrb[41].mxu1 }
 0x177   : > { %v4046_v5 = vadd.f32 %v4045_v40, %v4044_v3  ;;  %v4143_v31 = vadd.f32 %v4142_v28, %v4141_v56  ;;  %v4144_v32 = vpop.f32.mrb[42].mxu1 }
 0x178   : > { %v4145_v33 = vpop.f32.mrb[43].mxu1 }
 0x179   : > { %v5365_v1 = vadd.f32 %v4143_v31, %v5339_v16  ;;  %v4146_v58 = vadd.f32 %v4145_v33, %v4144_v32 }
 0x17a   : > { %4494 = vmatmul.mubr.bf16.gmra.mrb[140].mxu0 %v4801_v17 }
 0x17b   : > { %v4047_v13 = vpop.f32.mrb[36].mxu0  ;;  %v5368_v46 = vadd.f32 %v4146_v58, %v5344_v24 }
 0x17c   : > { %v4048_v18 = vpop.f32.mrb[37].mxu0 }
 0x17d   : > { %v4049_v22 = vadd.f32 %v4048_v18, %v4047_v13  ;;  %v4050_v23 = vpop.f32.mrb[38].mxu0 }
 0x17e   : > { %v4051_v20 = vpop.f32.mrb[39].mxu0 }
 0x17f   : > { %v4052_v27 = vadd.f32 %v4051_v20, %v4050_v23  ;;  %v4147_v51 = vpop.f32.mrb[44].mxu1 }
 0x180   : > { %v4148_v52 = vpop.f32.mrb[45].mxu1 }
 0x181   : > { %v4149_v26 = vadd.f32 %v4148_v52, %v4147_v51  ;;  %v4150_v53 = vpop.f32.mrb[46].mxu1 }
 0x182   : > { %v4151_v8 = vpop.f32.mrb[47].mxu1 }
 0x183   : > { %v5370_v57 = vadd.f32 %v4149_v26, %v4037_v41  ;;  %v4152_v59 = vadd.f32 %v4151_v8, %v4150_v53 }
 0x185   : > { %v4053_v34 = vpop.f32.mrb[40].mxu0  ;;  %v5372_v3 = vadd.f32 %v4152_v59, %v4040_v49 }
 0x186   : > { %v4054_v37 = vpop.f32.mrb[41].mxu0 }
 0x187   : > { %v4055_v39 = vadd.f32 %v4054_v37, %v4053_v34  ;;  %v4056_v43 = vpop.f32.mrb[42].mxu0  ;;  %v4153_v24 = vpop.f32.mrb[48].mxu1 }
 0x188   : > { %v4057_v7 = vpop.f32.mrb[43].mxu0  ;;  %v4154_v61 = vpop.f32.mrb[49].mxu1 }
 0x189   : > { %v4058_v47 = vadd.f32 %v4057_v7, %v4056_v43  ;;  %v4155_v9 = vadd.f32 %v4154_v61, %v4153_v24  ;;  %v4156_v10 = vpop.f32.mrb[50].mxu1 }
 0x18a   : > { %v4157_v48 = vpop.f32.mrb[51].mxu1 }
 0x18b   : > { %v5374_v15 = vadd.f32 %v4155_v9, %v4043_v0  ;;  %v4158_v18 = vadd.f32 %v4157_v48, %v4156_v10 }
 0x18d   : > { %v4059_v55 = vpop.f32.mrb[44].mxu0  ;;  %v5376_v56 = vadd.f32 %v4158_v18, %v4046_v5 }
 0x18e   : > { %v4060_v16 = vpop.f32.mrb[45].mxu0 }
 0x18f   : > { %v4061_v63 = vadd.f32 %v4060_v16, %v4059_v55  ;;  %v4062_v17 = vpop.f32.mrb[46].mxu0  ;;  %v4159_v32 = vpop.f32.mrb[52].mxu1 }
 0x190   : > { %v4063_v40 = vpop.f32.mrb[47].mxu0  ;;  %v4160_v33 = vpop.f32.mrb[53].mxu1 }
 0x191   : > { %v4064_v6 = vadd.f32 %v4063_v40, %v4062_v17  ;;  %v4161_v58 = vadd.f32 %v4160_v33, %v4159_v32  ;;  %v4162_v37 = vpop.f32.mrb[54].mxu1 }
 0x192   : > { %v4163_v0 = vpop.f32.mrb[55].mxu1 }
 0x193   : > { %v5384_v7 = vadd.f32 %v4161_v58, %v4049_v22  ;;  %v4164_v51 = vadd.f32 %v4163_v0, %v4162_v37 }
 0x195   : > { %v4217_v13 = vpop.f32.mrb[48].mxu0  ;;  %v5386_v53 = vadd.f32 %v4164_v51, %v4052_v27 }
 0x196   : > { %v4218_v23 = vpop.f32.mrb[49].mxu0 }
 0x197   : > { %v4219_v41 = vadd.f32 %v4218_v23, %v4217_v13  ;;  %v4220_v20 = vpop.f32.mrb[50].mxu0  ;;  %v4165_v59 = vpop.f32.mrb[56].mxu1 }
 0x198   : > { %v4221_v28 = vpop.f32.mrb[51].mxu0 }
 0x199   : > { %v5379_v49 = vadd.f32 %v4219_v41, %v5319_v38  ;;  %v4222_v31 = vadd.f32 %v4221_v28, %v4220_v20 }
 0x19b   : > { %v5382_v34 = vadd.f32 %v4222_v31, %v5324_v42  ;;  %v4166_v42 = vpop.f32.mrb[57].mxu1 }
 0x19c   : > { %v4167_v17 = vadd.f32 %v4166_v42, %v4165_v59  ;;  %v4168_v40 = vpop.f32.mrb[58].mxu1 }
 0x19d   : > { %v4223_v43 = vpop.f32.mrb[52].mxu0  ;;  %v4169_v22 = vpop.f32.mrb[59].mxu1 }
 0x19e   : > { %v4224_v52 = vpop.f32.mrb[53].mxu0  ;;  %v5394_v61 = vadd.f32 %v4167_v17, %v4055_v39  ;;  %v4170_v9 = vadd.f32 %v4169_v22, %v4168_v40 }
 0x19f   : > { %v4225_v5 = vadd.f32 %v4224_v52, %v4223_v43  ;;  %v4226_v26 = vpop.f32.mrb[54].mxu0  ;;  %v4171_v41 = vpop.f32.mrb[60].mxu1 }
 0x1a0   : > { %v4227_v38 = vpop.f32.mrb[55].mxu0  ;;  %v5396_v13 = vadd.f32 %v4170_v9, %v4058_v47 }
 0x1a1   : > { %v5389_v8 = vadd.f32 %v4225_v5, %v5327_v54  ;;  %v4228_v55 = vadd.f32 %v4227_v38, %v4226_v26 }
 0x1a3   : > { %v5392_v16 = vadd.f32 %v4228_v55, %v5332_v62  ;;  %v4172_v62 = vpop.f32.mrb[61].mxu1 }
 0x1a4   : > { %v4173_v28 = vadd.f32 %v4172_v62, %v4171_v41  ;;  %v4174_v31 = vpop.f32.mrb[62].mxu1 }
 0x1a5   : > { %v4229_v24 = vpop.f32.mrb[56].mxu0  ;;  %v4175_v39 = vpop.f32.mrb[63].mxu1 }
 0x1a6   : > { %v4230_v10 = vpop.f32.mrb[57].mxu0  ;;  %v5404_v33 = vadd.f32 %v4173_v28, %v4061_v63  ;;  %v4176_v58 = vadd.f32 %v4175_v39, %v4174_v31 }
 0x1a7   : > { %v4231_v27 = vadd.f32 %v4230_v10, %v4229_v24  ;;  %v4232_v48 = vpop.f32.mrb[58].mxu0  ;;  %v4177_v5 = vpop.f32.mrb[64].mxu1 }
 0x1a8   : > { %v4233_v54 = vpop.f32.mrb[59].mxu0  ;;  %v5406_v43 = vadd.f32 %v4176_v58, %v4064_v6 }
 0x1a9   : > { %v5399_v18 = vadd.f32 %v4231_v27, %v5337_v11  ;;  %v4234_v23 = vadd.f32 %v4233_v54, %v4232_v48 }
 0x1ab   : > { %v5402_v20 = vadd.f32 %v4234_v23, %v5342_v21  ;;  %v4178_v21 = vpop.f32.mrb[65].mxu1 }
 0x1ac   : > { %v4179_v38 = vadd.f32 %v4178_v21, %v4177_v5  ;;  %v4180_v55 = vpop.f32.mrb[66].mxu1 }
 0x1ad   : > { %v4235_v32 = vpop.f32.mrb[60].mxu0  ;;  %v4181_v63 = vpop.f32.mrb[67].mxu1 }
 0x1ae   : > { %v4236_v37 = vpop.f32.mrb[61].mxu0  ;;  %v5415_v42 = vadd.f32 %v4179_v38, %v5286_v30  ;;  %v4182_v17 = vadd.f32 %v4181_v63, %v4180_v55 }
 0x1af   : > { %v4237_v47 = vadd.f32 %v4236_v37, %v4235_v32  ;;  %v4238_v0 = vpop.f32.mrb[62].mxu0  ;;  %v4183_v10 = vpop.f32.mrb[68].mxu1 }
 0x1b0   : > { %v4239_v11 = vpop.f32.mrb[63].mxu0  ;;  %v4184_v27 = vpop.f32.mrb[69].mxu1 }
 0x1b1   : > { %v5409_v51 = vadd.f32 %v4237_v47, %v5347_v36  ;;  %v4240_v52 = vadd.f32 %v4239_v11, %v4238_v0  ;;  %v5418_v36 = vadd.f32 %v4182_v17, %v5290_v35  ;;  %v4185_v54 = vadd.f32 %v4184_v27, %v4183_v10  ;;  %v4186_v30 = vpop.f32.mrb[70].mxu1 }
 0x1b2   : > { %v4187_v23 = vpop.f32.mrb[71].mxu1 }
 0x1b3   : > { %v5412_v26 = vadd.f32 %v4240_v52, %v5350_v45  ;;  %v5427_v62 = vadd.f32 %v4185_v54, %v5294_v44  ;;  %v4188_v28 = vadd.f32 %v4187_v23, %v4186_v30 }
 0x1b5   : > { %v4241_v59 = vpop.f32.mrb[64].mxu0 }
 0x1b6   : > { %v4242_v6 = vpop.f32.mrb[65].mxu0 }
 0x1b7   : > { %v4243_v40 = vadd.f32 %v4242_v6, %v4241_v59  ;;  %v4244_v22 = vpop.f32.mrb[66].mxu0  ;;  %v4189_v37 = vpop.f32.mrb[72].mxu1 }
 0x1b8   : > { %v4245_v24 = vpop.f32.mrb[67].mxu0  ;;  %v4190_v47 = vpop.f32.mrb[73].mxu1 }
 0x1b9   : > { %v5421_v9 = vadd.f32 %v4243_v40, %v5353_v14  ;;  %v4246_v45 = vadd.f32 %v4245_v24, %v4244_v22  ;;  %v5430_v14 = vadd.f32 %v4188_v28, %v5298_v50  ;;  %v4191_v11 = vadd.f32 %v4190_v47, %v4189_v37  ;;  %v4192_v44 = vpop.f32.mrb[74].mxu1 }
 0x1ba   : > { %v4193_v52 = vpop.f32.mrb[75].mxu1 }
 0x1bb   : > { %v5424_v48 = vadd.f32 %v4246_v45, %v5356_v4  ;;  %v5439_v21 = vadd.f32 %v4191_v11, %v5302_v60  ;;  %v4194_v38 = vadd.f32 %v4193_v52, %v4192_v44 }
 0x1bd   : > { %v4247_v41 = vpop.f32.mrb[68].mxu0 }
 0x1be   : > { %v4248_v35 = vpop.f32.mrb[69].mxu0 }
 0x1bf   : > { %v4249_v31 = vadd.f32 %v4248_v35, %v4247_v41  ;;  %v4250_v39 = vpop.f32.mrb[70].mxu0  ;;  %v4195_v6 = vpop.f32.mrb[76].mxu1 }
 0x1c0   : > { %v4251_v32 = vpop.f32.mrb[71].mxu0  ;;  %v4196_v40 = vpop.f32.mrb[77].mxu1 }
 0x1c1   : > { %v5433_v58 = vadd.f32 %v4249_v31, %v5359_v29  ;;  %v4252_v4 = vadd.f32 %v4251_v32, %v4250_v39  ;;  %v5442_v29 = vadd.f32 %v4194_v38, %v5306_v2  ;;  %v4197_v24 = vadd.f32 %v4196_v40, %v4195_v6  ;;  %v4198_v60 = vpop.f32.mrb[78].mxu1 }
 0x1c2   : > { %v4199_v45 = vpop.f32.mrb[79].mxu1 }
 0x1c3   : > { %v5436_v0 = vadd.f32 %v4252_v4, %v5362_v25  ;;  %v5451_v27 = vadd.f32 %v4197_v24, %v5310_v12  ;;  %v4200_v54 = vadd.f32 %v4199_v45, %v4198_v60 }
 0x1c5   : > { %v4253_v5 = vpop.f32.mrb[72].mxu0 }
 0x1c6   : > { %v4254_v50 = vpop.f32.mrb[73].mxu0 }
 0x1c7   : > { %v4255_v55 = vadd.f32 %v4254_v50, %v4253_v5  ;;  %v4256_v63 = vpop.f32.mrb[74].mxu0  ;;  %v4329_v35 = vpop.f32.mrb[80].mxu1 }
 0x1c8   : > { %v4257_v59 = vpop.f32.mrb[75].mxu0  ;;  %v4330_v31 = vpop.f32.mrb[81].mxu1 }
 0x1c9   : > { %v5445_v17 = vadd.f32 %v4255_v55, %v5365_v1  ;;  %v4258_v25 = vadd.f32 %v4257_v59, %v4256_v63  ;;  %v5454_v1 = vadd.f32 %v4200_v54, %v5314_v19  ;;  %v4331_v32 = vadd.f32 %v4330_v31, %v4329_v35  ;;  %v4332_v12 = vpop.f32.mrb[82].mxu1 }
 0x1ca   : > { %v4333_v4 = vpop.f32.mrb[83].mxu1 }
 0x1cb   : > { %v5448_v22 = vadd.f32 %v4258_v25, %v5368_v46  ;;  %v4334_v47 = vadd.f32 %v4333_v4, %v4332_v12  ;;  %v5463_v11 = vadd.f32 %v4331_v32, %v5379_v49 }
 0x1cd   : > { %v4259_v10 = vpop.f32.mrb[76].mxu0 }
 0x1ce   : > { %v4260_v2 = vpop.f32.mrb[77].mxu0 }
 0x1cf   : > { %v4261_v30 = vadd.f32 %v4260_v2, %v4259_v10  ;;  %v4262_v23 = vpop.f32.mrb[78].mxu0  ;;  %v4335_v50 = vpop.f32.mrb[84].mxu1 }
 0x1d0   : > { %v4263_v41 = vpop.f32.mrb[79].mxu0  ;;  %v4336_v55 = vpop.f32.mrb[85].mxu1 }
 0x1d1   : > { %v5457_v28 = vadd.f32 %v4261_v30, %v5370_v57  ;;  %v4264_v46 = vadd.f32 %v4263_v41, %v4262_v23  ;;  %v5466_v57 = vadd.f32 %v4334_v47, %v5382_v34  ;;  %v4337_v59 = vadd.f32 %v4336_v55, %v4335_v50  ;;  %v4338_v25 = vpop.f32.mrb[86].mxu1 }
 0x1d2   : > { %v4339_v49 = vpop.f32.mrb[87].mxu1 }
 0x1d3   : > { %v5460_v39 = vadd.f32 %v4264_v46, %v5372_v3  ;;  %v4340_v40 = vadd.f32 %v4339_v49, %v4338_v25  ;;  %v5475_v24 = vadd.f32 %v4337_v59, %v5389_v8 }
 0x1d5   : > { %v4265_v37 = vpop.f32.mrb[80].mxu0 }
 0x1d6   : > { %v4266_v19 = vpop.f32.mrb[81].mxu0 }
 0x1d7   : > { %v4267_v44 = vadd.f32 %v4266_v19, %v4265_v37  ;;  %v4268_v52 = vpop.f32.mrb[82].mxu0  ;;  %v4341_v2 = vpop.f32.mrb[88].mxu1 }
 0x1d8   : > { %v4269_v5 = vpop.f32.mrb[83].mxu0  ;;  %v4342_v30 = vpop.f32.mrb[89].mxu1 }
 0x1d9   : > { %v5469_v38 = vadd.f32 %v4267_v44, %v5374_v15  ;;  %v4270_v3 = vadd.f32 %v4269_v5, %v4268_v52  ;;  %v5478_v15 = vadd.f32 %v4340_v40, %v5392_v16  ;;  %v4343_v41 = vadd.f32 %v4342_v30, %v4341_v2  ;;  %v4344_v46 = vpop.f32.mrb[90].mxu1 }
 0x1da   : > { %v4345_v8 = vpop.f32.mrb[91].mxu1 }
 0x1db   : > { %v5472_v63 = vadd.f32 %v4270_v3, %v5376_v56  ;;  %v4346_v31 = vadd.f32 %v4345_v8, %v4344_v46  ;;  %v5487_v32 = vadd.f32 %v4343_v41, %v5399_v18 }
 0x1dd   : > { %v4271_v6 = vpop.f32.mrb[84].mxu0 }
 0x1de   : > { %v4272_v34 = vpop.f32.mrb[85].mxu0 }
 0x1df   : > { %v4273_v60 = vadd.f32 %v4272_v34, %v4271_v6  ;;  %v4274_v45 = vpop.f32.mrb[86].mxu0  ;;  %v4347_v19 = vpop.f32.mrb[92].mxu1 }
 0x1e0   : > { %v4275_v10 = vpop.f32.mrb[87].mxu0  ;;  %v4348_v44 = vpop.f32.mrb[93].mxu1 }
 0x1e1   : > { %v5481_v54 = vadd.f32 %v4273_v60, %v5384_v7  ;;  %v4276_v56 = vadd.f32 %v4275_v10, %v4274_v45  ;;  %v5490_v7 = vadd.f32 %v4346_v31, %v5402_v20  ;;  %v4349_v5 = vadd.f32 %v4348_v44, %v4347_v19  ;;  %v4350_v3 = vpop.f32.mrb[94].mxu1 }
 0x1e2   : > { %v4351_v18 = vpop.f32.mrb[95].mxu1 }
 0x1e3   : > { %v5484_v23 = vadd.f32 %v4276_v56, %v5386_v53  ;;  %v4352_v55 = vadd.f32 %v4351_v18, %v4350_v3  ;;  %v5499_v59 = vadd.f32 %v4349_v5, %v5409_v51 }
 0x1e5   : > { %v4277_v35 = vpop.f32.mrb[88].mxu0 }
 0x1e6   : > { %v4278_v16 = vpop.f32.mrb[89].mxu0 }
 0x1e7   : > { %v4279_v12 = vadd.f32 %v4278_v16, %v4277_v35  ;;  %v4280_v4 = vpop.f32.mrb[90].mxu0  ;;  %v4353_v34 = vpop.f32.mrb[96].mxu1 }
 0x1e8   : > { %v4281_v37 = vpop.f32.mrb[91].mxu0  ;;  %v4354_v60 = vpop.f32.mrb[97].mxu1 }
 0x1e9   : > { %v5493_v47 = vadd.f32 %v4279_v12, %v5394_v61  ;;  %v4282_v53 = vadd.f32 %v4281_v37, %v4280_v4  ;;  %v5502_v61 = vadd.f32 %v4352_v55, %v5412_v26  ;;  %v4355_v10 = vadd.f32 %v4354_v60, %v4353_v34  ;;  %v4356_v56 = vpop.f32.mrb[98].mxu1 }
 0x1ea   : > { %v4357_v51 = vpop.f32.mrb[99].mxu1 }
 0x1eb   : > { %v5496_v52 = vadd.f32 %v4282_v53, %v5396_v13  ;;  %v4358_v30 = vadd.f32 %v4357_v51, %v4356_v56  ;;  %v5511_v41 = vadd.f32 %v4355_v10, %v5421_v9 }
 0x1ed   : > { %v4283_v50 = vpop.f32.mrb[92].mxu0 }
 0x1ee   : > { %v4284_v20 = vpop.f32.mrb[93].mxu0 }
 0x1ef   : > { %v4285_v25 = vadd.f32 %v4284_v20, %v4283_v50  ;;  %v4286_v49 = vpop.f32.mrb[94].mxu0  ;;  %v4359_v16 = vpop.f32.mrb[100].mxu1 }
 0x1f0   : > { %v4287_v6 = vpop.f32.mrb[95].mxu0  ;;  %v4360_v12 = vpop.f32.mrb[101].mxu1 }
 0x1f1   : > { %v5505_v40 = vadd.f32 %v4285_v25, %v5404_v33  ;;  %v4288_v13 = vadd.f32 %v4287_v6, %v4286_v49  ;;  %v5514_v33 = vadd.f32 %v4358_v30, %v5424_v48  ;;  %v4361_v37 = vadd.f32 %v4360_v12, %v4359_v16  ;;  %v4362_v53 = vpop.f32.mrb[102].mxu1 }
 0x1f2   : > { %v4363_v9 = vpop.f32.mrb[103].mxu1 }
 0x1f3   : > { %v5508_v45 = vadd.f32 %v4288_v13, %v5406_v43  ;;  %v4364_v44 = vadd.f32 %v4363_v9, %v4362_v53  ;;  %v5523_v5 = vadd.f32 %v4361_v37, %v5433_v58 }
 0x1f5   : > { %v4289_v2 = vpop.f32.mrb[96].mxu0 }
 0x1f6   : > { %v4290_v26 = vpop.f32.mrb[97].mxu0 }
 0x1f7   : > { %v4291_v46 = vadd.f32 %v4290_v26, %v4289_v2  ;;  %v4292_v8 = vpop.f32.mrb[98].mxu0  ;;  %v4365_v20 = vpop.f32.mrb[104].mxu1 }
 0x1f8   : > { %v4293_v35 = vpop.f32.mrb[99].mxu0  ;;  %v4366_v25 = vpop.f32.mrb[105].mxu1 }
 0x1f9   : > { %v5517_v31 = vadd.f32 %v4291_v46, %v5415_v42  ;;  %v4294_v43 = vadd.f32 %v4293_v35, %v4292_v8  ;;  %v5526_v42 = vadd.f32 %v4364_v44, %v5436_v0  ;;  %v4367_v6 = vadd.f32 %v4366_v25, %v4365_v20  ;;  %v4368_v13 = vpop.f32.mrb[106].mxu1 }
 0x1fa   : > { %v4369_v58 = vpop.f32.mrb[107].mxu1 }
 0x1fb   : > { %v5520_v4 = vadd.f32 %v4294_v43, %v5418_v36  ;;  %v4370_v60 = vadd.f32 %v4369_v58, %v4368_v13  ;;  %v5535_v10 = vadd.f32 %v4367_v6, %v5445_v17 }
 0x1fd   : > { %v4295_v19 = vpop.f32.mrb[100].mxu0 }
 0x1fe   : > { %v4296_v48 = vpop.f32.mrb[101].mxu0 }
 0x1ff   : > { %v4297_v3 = vadd.f32 %v4296_v48, %v4295_v19  ;;  %v4298_v18 = vpop.f32.mrb[102].mxu0  ;;  %v4371_v26 = vpop.f32.mrb[108].mxu1 }
 0x200   : > { %v4299_v50 = vpop.f32.mrb[103].mxu0  ;;  %v4372_v46 = vpop.f32.mrb[109].mxu1 }
 0x201   : > { %v5529_v55 = vadd.f32 %v4297_v3, %v5427_v62  ;;  %v4300_v36 = vadd.f32 %v4299_v50, %v4298_v18  ;;  %v5538_v62 = vadd.f32 %v4370_v60, %v5448_v22  ;;  %v4373_v35 = vadd.f32 %v4372_v46, %v4371_v26  ;;  %v4374_v43 = vpop.f32.mrb[110].mxu1 }
 0x202   : > { %v4375_v17 = vpop.f32.mrb[111].mxu1 }
 0x203   : > { %v5532_v49 = vadd.f32 %v4300_v36, %v5430_v14  ;;  %v4376_v12 = vadd.f32 %v4375_v17, %v4374_v43  ;;  %v5547_v37 = vadd.f32 %v4373_v35, %v5457_v28 }
 0x205   : > { %v4301_v34 = vpop.f32.mrb[104].mxu0 }
 0x206   : > { %v4302_v0 = vpop.f32.mrb[105].mxu0 }
 0x207   : > { %v4303_v56 = vadd.f32 %v4302_v0, %v4301_v34  ;;  %v4304_v51 = vpop.f32.mrb[106].mxu0  ;;  %v4377_v48 = vpop.f32.mrb[112].mxu1 }
 0x208   : > { %v4305_v2 = vpop.f32.mrb[107].mxu0  ;;  %v4378_v3 = vpop.f32.mrb[113].mxu1 }
 0x209   : > { %v5541_v30 = vadd.f32 %v4303_v56, %v5439_v21  ;;  %v4306_v14 = vadd.f32 %v4305_v2, %v4304_v51  ;;  %v5550_v21 = vadd.f32 %v4376_v12, %v5460_v39  ;;  %v4379_v50 = vadd.f32 %v4378_v3, %v4377_v48  ;;  %v4380_v28 = vpop.f32.mrb[114].mxu1 }
 0x20a   : > { %v4381_v36 = vpop.f32.mrb[115].mxu1 }
 0x20b   : > { %v5544_v8 = vadd.f32 %v4306_v14, %v5442_v29  ;;  %v4382_v25 = vadd.f32 %v4381_v36, %v4380_v28  ;;  %v5559_v6 = vadd.f32 %v4379_v50, %v5469_v38 }
 0x20d   : > { %v4307_v16 = vpop.f32.mrb[108].mxu0  ;;  %v5564_v34 = vadd.f32 %v4382_v25, %v5472_v63 }
 0x20e   : > { %v4308_v22 = vpop.f32.mrb[109].mxu0 }
 0x20f   : > { %v4309_v53 = vadd.f32 %v4308_v22, %v4307_v16  ;;  %v4310_v9 = vpop.f32.mrb[110].mxu0 }
 0x210   : > { %v4311_v19 = vpop.f32.mrb[111].mxu0 }
 0x211   : > { %v5553_v44 = vadd.f32 %v4309_v53, %v5451_v27  ;;  %v4312_v29 = vadd.f32 %v4311_v19, %v4310_v9 }
 0x213   : > { %v5556_v18 = vadd.f32 %v4312_v29, %v5454_v1 }
 0x215   : > { %v4467_v20 = vpop.f32.mrb[112].mxu0 }
 0x216   : > { %v3189_v39 = vadd.f32 %v4467_v20, %v5475_v24  ;;  %v3180_v13 = vpop.f32.mrb[113].mxu0  ;;  %v4383_v24 = vpop.f32.mrb[116].mxu1 }
 0x217   : > { %v3181_v27 = vadd.f32 %v3180_v13, %v5463_v11  ;;  %v4468_v58 = vpop.f32.mrb[114].mxu0  ;;  %v4384_v56 = vpop.f32.mrb[117].mxu1 }
 0x218   : > { %v3192_v1 = vadd.f32 %v4468_v58, %v5478_v15  ;;  %v3183_v60 = vpop.f32.mrb[115].mxu0  ;;  %v4385_v14 = vadd.f32 %v4384_v56, %v4383_v24  ;;  %v4386_v15 = vpop.f32.mrb[118].mxu1  ;;  %v3410_v26 = vmul.f32 %v3189_v39, %v3189_v39 }
 0x219   : > { %v3184_v38 = vadd.f32 %v3183_v60, %v5466_v57  ;;  %v3408_v0 = vmul.f32 %v3181_v27, %v3181_v27  ;;  %v4387_v46 = vpop.f32.mrb[119].mxu1 }
 0x21a   : > { %v3875_v11 = vpack.c.bf16 %v3192_v1, %v3189_v39  ;;  %v4388_v16 = vadd.f32 %v4387_v46, %v4386_v15  ;;  %v5578_v12 = vadd.f32 %v4385_v14, %v5481_v54  ;;  %v3411_v57 = vmul.f32 %v3192_v1, %v3192_v1 }
 0x21b   : > { %v3870_v51 = vpack.c.bf16 %v3184_v38, %v3181_v27  ;;  %v3371_v63 = vadd.f32 %v3184_v38, %v3181_v27  ;;  %v3409_v2 = vmul.f32 %v3184_v38, %v3184_v38 }
 0x21c   : > { %3962 = vst [vmem:[%s5572_s26 + $0x8] sm:$0xff] %v3875_v11   ;;  %v5583_v3 = vadd.f32 %v4388_v16, %v5484_v23 }
 0x21d   : > { %3871 = vst [vmem:[%s5572_s26] sm:$0xff] %v3870_v51   ;;  %v3372_v35 = vadd.f32 %v3371_v63, %v3189_v39  ;;  %v3440_v43 = vadd.f32 %v3409_v2, %v3408_v0  ;;  %v4471_v17 = vpop.f32.mrb[116].mxu0 }
 0x21e   : > { %v3205_v22 = vadd.f32 %v4471_v17, %v5499_v59  ;;  %v3196_v53 = vpop.f32.mrb[117].mxu0  ;;  %v4389_v59 = vpop.f32.mrb[120].mxu1 }
 0x21f   : > { %v3441_v9 = vadd.f32 %v3440_v43, %v3410_v26  ;;  %v3197_v19 = vadd.f32 %v3196_v53, %v5487_v32  ;;  %v3373_v29 = vadd.f32 %v3372_v35, %v3192_v1  ;;  %v4472_v48 = vpop.f32.mrb[118].mxu0  ;;  %v4390_v13 = vpop.f32.mrb[121].mxu1 }
 0x220   : > { %v3208_v50 = vadd.f32 %v4472_v48, %v5502_v61  ;;  %v3199_v28 = vpop.f32.mrb[119].mxu0  ;;  %v4392_v60 = vpop.f32.mrb[122].mxu1  ;;  %v4391_v23 = vadd.f32 %v4390_v13, %v4389_v59  ;;  %v3414_v24 = vmul.f32 %v3205_v22, %v3205_v22 }
 0x221   : > { %v3374_v36 = vadd.f32 %v3373_v29, %v3197_v19  ;;  %v3412_v54 = vmul.f32 %v3197_v19, %v3197_v19  ;;  %v3442_v20 = vadd.f32 %v3441_v9, %v3411_v57  ;;  %v3200_v25 = vadd.f32 %v3199_v28, %v5490_v7  ;;  %v4393_v38 = vpop.f32.mrb[123].mxu1 }
 0x222   : > { %v3885_v39 = vpack.c.bf16 %v3208_v50, %v3205_v22  ;;  %v4394_v56 = vadd.f32 %v4393_v38, %v4392_v60  ;;  %v3415_v51 = vmul.f32 %v3208_v50, %v3208_v50  ;;  %v5591_v2 = vadd.f32 %v4391_v23, %v5493_v47  ;;  %v4395_v47 = vpop.f32.mrb[124].mxu1 }
 0x223   : > { %v3443_v27 = vadd.f32 %v3442_v20, %v3412_v54  ;;  %v3880_v32 = vpack.c.bf16 %v3200_v25, %v3197_v19  ;;  %v3375_v58 = vadd.f32 %v3374_v36, %v3200_v25  ;;  %v3413_v1 = vmul.f32 %v3200_v25, %v3200_v25  ;;  %v4396_v9 = vpop.f32.mrb[125].mxu1 }
 0x224   : > { %3964 = vst [vmem:[%s5572_s26 + $0x18] sm:$0xff] %v3885_v39   ;;  %v5595_v35 = vadd.f32 %v4394_v56, %v5496_v52  ;;  %v4397_v52 = vadd.f32 %v4396_v9, %v4395_v47 }
 0x225   : > { %3963 = vst [vmem:[%s5572_s26 + $0x10] sm:$0xff] %v3880_v32   ;;  %v3376_v61 = vadd.f32 %v3375_v58, %v3205_v22  ;;  %v3444_v0 = vadd.f32 %v3443_v27, %v3413_v1  ;;  %v4475_v11 = vpop.f32.mrb[120].mxu0 }
 0x226   : > { %v3221_v7 = vadd.f32 %v4475_v11, %v5523_v5  ;;  %v3212_v63 = vpop.f32.mrb[121].mxu0  ;;  %v3108_v13 = vadd.f32 %v4397_v52, %v5505_v40 }
 0x227   : > { %v3445_v14 = vadd.f32 %v3444_v0, %v3414_v24  ;;  %v3213_v15 = vadd.f32 %v3212_v63, %v5511_v41  ;;  %v3377_v26 = vadd.f32 %v3376_v61, %v3208_v50  ;;  %v4476_v46 = vpop.f32.mrb[122].mxu0  ;;  %v4398_v50 = vpop.f32.mrb[126].mxu1 }
 0x228   : > { %v3224_v43 = vadd.f32 %v4476_v46, %v5526_v42  ;;  %v3215_v17 = vpop.f32.mrb[123].mxu0  ;;  %v4399_v28 = vpop.f32.mrb[127].mxu1  ;;  %v3418_v36 = vmul.f32 %v3221_v7, %v3221_v7 }
 0x229   : > { %v3378_v16 = vadd.f32 %v3377_v26, %v3213_v15  ;;  %v3416_v57 = vmul.f32 %v3213_v15, %v3213_v15  ;;  %v3446_v5 = vadd.f32 %v3445_v14, %v3415_v51  ;;  %v3216_v22 = vadd.f32 %v3215_v17, %v5514_v33  ;;  %v4401_v11 = vpop.f32.mrb[128].mxu1 }
 0x22a   : > { %v3895_v53 = vpack.c.bf16 %v3224_v43, %v3221_v7  ;;  %v4400_v25 = vadd.f32 %v4399_v28, %v4398_v50  ;;  %v3419_v59 = vmul.f32 %v3224_v43, %v3224_v43  ;;  %v4402_v56 = vpop.f32.mrb[129].mxu1 }
 0x22b   : > { %v3447_v19 = vadd.f32 %v3446_v5, %v3416_v57  ;;  %v3890_v41 = vpack.c.bf16 %v3216_v22, %v3213_v15  ;;  %v3379_v29 = vadd.f32 %v3378_v16, %v3216_v22  ;;  %v3417_v48 = vmul.f32 %v3216_v22, %v3216_v22  ;;  %v4404_v14 = vpop.f32.mrb[130].mxu1 }
 0x22c   : > { %3966 = vst [vmem:[%s5572_s26 + $0x28] sm:$0xff] %v3895_v53   ;;  %v5605_v60 = vadd.f32 %v4400_v25, %v5508_v45  ;;  %v4403_v45 = vadd.f32 %v4402_v56, %v4401_v11  ;;  %v4405_v15 = vpop.f32.mrb[131].mxu1 }
 0x22d   : > { %3965 = vst [vmem:[%s5572_s26 + $0x20] sm:$0xff] %v3890_v41   ;;  %v3380_v42 = vadd.f32 %v3379_v29, %v3221_v7  ;;  %v3448_v54 = vadd.f32 %v3447_v19, %v3417_v48  ;;  %v4479_v20 = vpop.f32.mrb[124].mxu0  ;;  %v4406_v17 = vadd.f32 %v4405_v15, %v4404_v14 }
 0x22e   : > { %v3237_v33 = vadd.f32 %v4479_v20, %v5547_v37  ;;  %v3228_v39 = vpop.f32.mrb[125].mxu0  ;;  %v5613_v5 = vadd.f32 %v4403_v45, %v5517_v31 }
 0x22f   : > { %v3449_v27 = vadd.f32 %v3448_v54, %v3418_v36  ;;  %v3229_v32 = vadd.f32 %v3228_v39, %v5535_v10  ;;  %v3381_v58 = vadd.f32 %v3380_v42, %v3224_v43  ;;  %v4480_v1 = vpop.f32.mrb[126].mxu0  ;;  %v5617_v19 = vadd.f32 %v4406_v17, %v5520_v4  ;;  %v4407_v31 = vpop.f32.mrb[132].mxu1 }
 0x230   : > { %v3240_v23 = vadd.f32 %v4480_v1, %v5550_v21  ;;  %v3231_v38 = vpop.f32.mrb[127].mxu0  ;;  %v3422_v26 = vmul.f32 %v3237_v33, %v3237_v33  ;;  %v4408_v36 = vpop.f32.mrb[133].mxu1 }
 0x231   : > { %v3382_v24 = vadd.f32 %v3381_v58, %v3229_v32  ;;  %v3420_v61 = vmul.f32 %v3229_v32, %v3229_v32  ;;  %v3450_v0 = vadd.f32 %v3449_v27, %v3419_v59  ;;  %v3232_v37 = vadd.f32 %v3231_v38, %v5538_v62  ;;  %v4410_v25 = vpop.f32.mrb[134].mxu1 }
 0x232   : > { %v3905_v40 = vpack.c.bf16 %v3240_v23, %v3237_v33  ;;  %v3423_v16 = vmul.f32 %v3240_v23, %v3240_v23  ;;  %v4409_v4 = vadd.f32 %v4408_v36, %v4407_v31  ;;  %v4411_v59 = vpop.f32.mrb[135].mxu1 }
 0x233   : > { %v3451_v51 = vadd.f32 %v3450_v0, %v3420_v61  ;;  %v3900_v10 = vpack.c.bf16 %v3232_v37, %v3229_v32  ;;  %v3383_v7 = vadd.f32 %v3382_v24, %v3232_v37  ;;  %v3421_v63 = vmul.f32 %v3232_v37, %v3232_v37 }
 0x234   : > { %3968 = vst [vmem:[%s5572_s26 + $0x38] sm:$0xff] %v3905_v40   ;;  %v4412_v32 = vadd.f32 %v4411_v59, %v4410_v25 }
 0x235   : > { %3967 = vst [vmem:[%s5572_s26 + $0x30] sm:$0xff] %v3900_v10   ;;  %v3384_v21 = vadd.f32 %v3383_v7, %v3237_v33  ;;  %v3452_v46 = vadd.f32 %v3451_v51, %v3421_v63  ;;  %v4483_v43 = vpop.f32.mrb[128].mxu0 }
 0x236   : > { %v3253_v62 = vadd.f32 %v4483_v43, %v5578_v12  ;;  %v3244_v57 = vpop.f32.mrb[129].mxu0  ;;  %v3127_v37 = vadd.f32 %v4412_v32, %v5532_v49 }
 0x237   : > { %v3453_v22 = vadd.f32 %v3452_v46, %v3422_v26  ;;  %v3245_v47 = vadd.f32 %v3244_v57, %v5559_v6  ;;  %v3385_v53 = vadd.f32 %v3384_v21, %v3240_v23  ;;  %v4484_v9 = vpop.f32.mrb[130].mxu0  ;;  %v3124_v23 = vadd.f32 %v4409_v4, %v5529_v55  ;;  %v4413_v7 = vpop.f32.mrb[136].mxu1 }
 0x238   : > { %v3256_v41 = vadd.f32 %v4484_v9, %v5583_v3  ;;  %v3247_v29 = vpop.f32.mrb[131].mxu0  ;;  %v3426_v33 = vmul.f32 %v3253_v62, %v3253_v62  ;;  %v4414_v55 = vpop.f32.mrb[137].mxu1 }
 0x239   : > { %v3386_v48 = vadd.f32 %v3385_v53, %v3245_v47  ;;  %v3424_v50 = vmul.f32 %v3245_v47, %v3245_v47  ;;  %v3454_v12 = vadd.f32 %v3453_v22, %v3423_v16  ;;  %v3248_v52 = vadd.f32 %v3247_v29, %v5564_v34  ;;  %v4416_v26 = vpop.f32.mrb[138].mxu1 }
 0x23a   : > { %v3915_v28 = vpack.c.bf16 %v3256_v41, %v3253_v62  ;;  %v3427_v58 = vmul.f32 %v3256_v41, %v3256_v41  ;;  %v4415_v21 = vadd.f32 %v4414_v55, %v4413_v7  ;;  %v4417_v49 = vpop.f32.mrb[139].mxu1 }
 0x23b   : > { %v3455_v42 = vadd.f32 %v3454_v12, %v3424_v50  ;;  %v3910_v6 = vpack.c.bf16 %v3248_v52, %v3245_v47  ;;  %v3387_v54 = vadd.f32 %v3386_v48, %v3248_v52  ;;  %v3425_v20 = vmul.f32 %v3248_v52, %v3248_v52 }
 0x23c   : > { %3970 = vst [vmem:[%s5572_s26 + $0x48] sm:$0xff] %v3915_v28   ;;  %v4418_v16 = vadd.f32 %v4417_v49, %v4416_v26  ;;  %v3132_v22 = vadd.f32 %v4415_v21, %v5541_v30 }
 0x23d   : > { %3969 = vst [vmem:[%s5572_s26 + $0x40] sm:$0xff] %v3910_v6   ;;  %v3388_v3 = vadd.f32 %v3387_v54, %v3253_v62  ;;  %v3456_v39 = vadd.f32 %v3455_v42, %v3425_v20  ;;  %v4487_v27 = vpop.f32.mrb[132].mxu0 }
 0x23e   : > { %v3269_v1 = vadd.f32 %v4487_v27, %v3108_v13  ;;  %v3260_v34 = vpop.f32.mrb[133].mxu0  ;;  %v3135_v29 = vadd.f32 %v4418_v16, %v5544_v8 }
 0x23f   : > { %v3457_v38 = vadd.f32 %v3456_v39, %v3426_v33  ;;  %v3261_v24 = vadd.f32 %v3260_v34, %v5591_v2  ;;  %v3389_v61 = vadd.f32 %v3388_v3, %v3256_v41  ;;  %v4488_v0 = vpop.f32.mrb[134].mxu0  ;;  %v4419_v36 = vpop.f32.mrb[140].mxu1 }
 0x240   : > { %v3272_v11 = vadd.f32 %v4488_v0, %v5605_v60  ;;  %v3263_v40 = vpop.f32.mrb[135].mxu0  ;;  %v3430_v46 = vmul.f32 %v3269_v1, %v3269_v1  ;;  %v4420_v6 = vpop.f32.mrb[141].mxu1 }
 0x241   : > { %v3390_v56 = vadd.f32 %v3389_v61, %v3261_v24  ;;  %v3428_v51 = vmul.f32 %v3261_v24, %v3261_v24  ;;  %v3458_v10 = vadd.f32 %v3457_v38, %v3427_v58  ;;  %v3264_v13 = vadd.f32 %v3263_v40, %v5595_v35  ;;  %v4422_v25 = vpop.f32.mrb[142].mxu1 }
 0x242   : > { %v3925_v63 = vpack.c.bf16 %v3272_v11, %v3269_v1  ;;  %v3431_v62 = vmul.f32 %v3272_v11, %v3272_v11  ;;  %v4421_v4 = vadd.f32 %v4420_v6, %v4419_v36  ;;  %v4423_v59 = vpop.f32.mrb[143].mxu1 }
 0x243   : > { %v3459_v14 = vadd.f32 %v3458_v10, %v3428_v51  ;;  %v3920_v45 = vpack.c.bf16 %v3264_v13, %v3261_v24  ;;  %v3391_v2 = vadd.f32 %v3390_v56, %v3264_v13  ;;  %v3429_v15 = vmul.f32 %v3264_v13, %v3264_v13 }
 0x244   : > { %3972 = vst [vmem:[%s5572_s26 + $0x58] sm:$0xff] %v3925_v63   ;;  %v4424_v27 = vadd.f32 %v4423_v59, %v4422_v25 }
 0x245   : > { %3971 = vst [vmem:[%s5572_s26 + $0x50] sm:$0xff] %v3920_v45   ;;  %v3392_v60 = vadd.f32 %v3391_v2, %v3269_v1  ;;  %v3460_v43 = vadd.f32 %v3459_v14, %v3429_v15  ;;  %v4491_v17 = vpop.f32.mrb[136].mxu0 }
 0x246   : > { %v3285_v57 = vadd.f32 %v4491_v17, %v3124_v23  ;;  %v3276_v35 = vpop.f32.mrb[137].mxu0  ;;  %v3143_v24 = vadd.f32 %v4424_v27, %v5556_v18 }
 0x247   : > { %v3461_v47 = vadd.f32 %v3460_v43, %v3430_v46  ;;  %v3277_v53 = vadd.f32 %v3276_v35, %v5613_v5  ;;  %v3393_v9 = vadd.f32 %v3392_v60, %v3272_v11  ;;  %v4492_v41 = vpop.f32.mrb[138].mxu0 }
 0x248   : > { %v3288_v48 = vadd.f32 %v4492_v41, %v3127_v37  ;;  %v3279_v50 = vpop.f32.mrb[139].mxu0  ;;  %v3434_v8 = vmul.f32 %v3285_v57, %v3285_v57 }
 0x249   : > { %v3394_v12 = vadd.f32 %v3393_v9, %v3277_v53  ;;  %v3432_v52 = vmul.f32 %v3277_v53, %v3277_v53  ;;  %v3462_v31 = vadd.f32 %v3461_v47, %v3431_v62  ;;  %v3280_v28 = vadd.f32 %v3279_v50, %v5617_v19 }
 0x24a   : > { %v3935_v42 = vpack.c.bf16 %v3288_v48, %v3285_v57  ;;  %v3435_v32 = vmul.f32 %v3288_v48, %v3288_v48  ;;  %v3140_v19 = vadd.f32 %v4421_v4, %v5553_v44 }
 0x24b   : > { %v3463_v30 = vadd.f32 %v3462_v31, %v3432_v52  ;;  %v3930_v54 = vpack.c.bf16 %v3280_v28, %v3277_v53  ;;  %v3395_v20 = vadd.f32 %v3394_v12, %v3280_v28  ;;  %v3433_v5 = vmul.f32 %v3280_v28, %v3280_v28 }
 0x24c   : > { %3974 = vst [vmem:[%s5572_s26 + $0x68] sm:$0xff] %v3935_v42  }
 0x24d   : > { %3973 = vst [vmem:[%s5572_s26 + $0x60] sm:$0xff] %v3930_v54   ;;  %v3396_v33 = vadd.f32 %v3395_v20, %v3285_v57  ;;  %v3464_v3 = vadd.f32 %v3463_v30, %v3433_v5  ;;  %v4495_v39 = vpop.f32.mrb[140].mxu0 }
 0x24e   : > { %v3292_v58 = vpop.f32.mrb[141].mxu0  ;;  %v3301_v61 = vadd.f32 %v4495_v39, %v3140_v19 }
 0x24f   : > { %v3465_v1 = vadd.f32 %v3464_v3, %v3434_v8  ;;  %v3293_v34 = vadd.f32 %v3292_v58, %v3132_v22  ;;  %v3397_v23 = vadd.f32 %v3396_v33, %v3288_v48  ;;  %v4496_v38 = vpop.f32.mrb[142].mxu0 }
 0x250   : > { %v3295_v0 = vpop.f32.mrb[143].mxu0  ;;  %v3304_v56 = vadd.f32 %v4496_v38, %v3143_v24  ;;  %v3438_v44 = vmul.f32 %v3301_v61, %v3301_v61 }
 0x251   : > { %v3398_v37 = vadd.f32 %v3397_v23, %v3293_v34  ;;  %v3436_v11 = vmul.f32 %v3293_v34, %v3293_v34  ;;  %v3466_v40 = vadd.f32 %v3465_v1, %v3435_v32  ;;  %v3296_v51 = vadd.f32 %v3295_v0, %v3135_v29 }
 0x252   : > { %v3945_v13 = vpack.c.bf16 %v3304_v56, %v3301_v61  ;;  %v3439_v14 = vmul.f32 %v3304_v56, %v3304_v56 }
 0x253   : > { %v3467_v10 = vadd.f32 %v3466_v40, %v3436_v11  ;;  %v3940_v7 = vpack.c.bf16 %v3296_v51, %v3293_v34  ;;  %v3399_v63 = vadd.f32 %v3398_v37, %v3296_v51  ;;  %v3437_v55 = vmul.f32 %v3296_v51, %v3296_v51 }
 0x254   : > { %3976 = vst [vmem:[%s5572_s26 + $0x78] sm:$0xff] %v3945_v13  }
 0x255   : > { %3975 = vst [vmem:[%s5572_s26 + $0x70] sm:$0xff] %v3940_v7   ;;  %v3400_v18 = vadd.f32 %v3399_v63, %v3301_v61  ;;  %v3468_v45 = vadd.f32 %v3467_v10, %v3437_v55 }
 0x257   : > { %v3401_v2 = vadd.f32 %v3400_v18, %v3304_v56  ;;  %v3469_v15 = vadd.f32 %v3468_v45, %v3438_v44 }
 0x259   : > { %v3402_v26 = vrot.slane %v3401_v2, 4  ;;  %v3470_v21 = vadd.f32 %v3469_v15, %v3439_v14 }
 0x25b   : > { %v3403_v49 = vadd.f32 %v3402_v26, %v3401_v2  ;;  %v3471_v46 = vrot.slane %v3470_v21, 4 }
 0x25d   : > { %v3404_v60 = vrot.slane %v3403_v49, 2  ;;  %v3472_v43 = vadd.f32 %v3471_v46, %v3470_v21 }
 0x25f   : > { %v3405_v17 = vadd.f32 %v3404_v60, %v3403_v49  ;;  %v3473_v16 = vrot.slane %v3472_v43, 2 }
 0x261   : > { %v3406_v62 = vrot.slane %v3405_v17, 1  ;;  %v3474_v57 = vadd.f32 %v3473_v16, %v3472_v43 }
 0x263   : > { %v3475_v35 = vrot.slane %v3474_v57, 1  ;;  %v3407_v22 = vadd.f32 %v3406_v62, %v3405_v17 }
 0x265   : > { %v3476_v47 = vadd.f32 %v3475_v35, %v3474_v57 }
 0x267   : > { %v3478_v53 = vsel %vm3477_vm0, %v3407_v22, %v3476_v47 }
 0x268   : > { %3479 = vst [vmem:[%s216_s28] sm:$0x3] %v3478_v53 }
 0x269 PF: > { %s15_s15 = sadd.s32 1, %s4812_s15  }
 0x26a   : > { %p12_p5 = scmp.ge.s32.totalorder %s15_s15, 4  }
 0x26c   :  { %14 = sbr.rel (!%p12_p5) target bundleno = 1 (0x1), region = 76 }

</bundles_post_ra>
